<compile_context>
chip_gen: v6e
topology: v6e:2x2x1
jax: 0.10.0
libtpu: 0.0.40
codegen_flags: <defaults>
</compile_context>

<pallas_src>
import functools

import jax
import jax.numpy as jnp
import numpy as np
from jax.experimental import pallas as pl
from jax.experimental.pallas import tpu as pltpu

NUM_BETAS = 11   # 10 SMPL betas + 1 appended zero column (matches init_shape concat)
HIDDEN = 1024    # fc1 / fc2 width, hardcoded in the PyTorch module
SC_PAD = 128     # lane-padded width of the fused (pred_shape | pred_cam) state


def _hmr_head_kernel(n_iter, inv_hw,
                     feat_ref, jb_ref,
                     w1f_ref, w1jb_ref, w1sc_ref, b1_ref,
                     w2_ref, b2_ref, wsc_ref, bsc_ref, init_psc_ref,
                     psc_out_ref, xf_out_ref):
    tm = feat_ref.shape[0]

    # AdaptiveAvgPool2d(1): spatial mean. Features arrive [TM, H*W, C] with C on
    # the lane axis -> sublane reduction, accumulated in f32.
    xf = jnp.sum(feat_ref[...].astype(jnp.float32), axis=1) * inv_hw   # [TM, C]
    xf_bf = xf.astype(jnp.bfloat16)

    # Hoist bias reads / broadcasts out of the unrolled IEF loop.
    b1 = b1_ref[...]
    b2 = b2_ref[...]
    bsc = bsc_ref[...]

    # Static part of fc1 (xf and j2d_emb‖bbox_info): invariant across iterations.
    base = (jnp.dot(xf_bf, w1f_ref[...], preferred_element_type=jnp.float32)
            + jnp.dot(jb_ref[...], w1jb_ref[...], preferred_element_type=jnp.float32)
            + b1)

    # Fused (pred_shape | pred_cam) state, lane-padded to SC_PAD columns.
    psc = jnp.broadcast_to(init_psc_ref[...], (tm, SC_PAD))           # f32

    for _ in range(n_iter):  # n_iter is a static Python int (=3), fully unrolled
        xc = base + jnp.dot(psc.astype(jnp.bfloat16), w1sc_ref[...],
                            preferred_element_type=jnp.float32)
        # TODO(synk): Dropout layers are identity here (eval-mode semantics).
        xc = jnp.dot(xc.astype(jnp.bfloat16), w2_ref[...],
                     preferred_element_type=jnp.float32) + b2
        psc = psc + jnp.dot(xc.astype(jnp.bfloat16), wsc_ref[...],
                            preferred_element_type=jnp.float32) + bsc

    psc_out_ref[...] = psc.astype(psc_out_ref.dtype)
    xf_out_ref[...] = xf.astype(xf_out_ref.dtype)


def hmr_shape_cam_head(features, j2d_emb, bbox_info, params, n_iter=3):
    """features: [N, C, H, W] (NCHW) or [N, C]; j2d_emb: [N, J]; bbox_info: [N, B]."""
    if features.ndim > 2:
        N, C, H, W = features.shape
        hw = H * W
        feat = jnp.transpose(features, (0, 2, 3, 1)).reshape(N, hw, C)
    else:
        N, C = features.shape
        hw = 1
        feat = features.reshape(N, 1, C)
    feat = feat.astype(jnp.bfloat16)

    jb = jnp.concatenate([j2d_emb, bbox_info], axis=1).astype(jnp.bfloat16)
    JB = jb.shape[1]

    # Batch tile: >=256 rows fills the 256x256 MXU on v6e/v7x; small batches just
    # pad up to the 8-row sublane granule. Padded rows are dropped in the wrapper.
    TM = 256 if N >= 256 else int(-(-N // 8) * 8)
    n_pad = int(-(-N // TM) * TM)
    if n_pad != N:
        feat = jnp.pad(feat, ((0, n_pad - N), (0, 0), (0, 0)))
        jb = jnp.pad(jb, ((0, n_pad - N), (0, 0)))
    grid = (n_pad // TM,)

    # Pack the weights: split-W1 segments, fused tiny-K operands, bf16 storage.
    pad_sc_in = SC_PAD - (NUM_BETAS + 3)
    w1f = params["w1f"].astype(jnp.bfloat16)                                  # [C, 1024]
    w1jb = jnp.concatenate([params["w1j"], params["w1b"]], 0).astype(jnp.bfloat16)
    w1sc = jnp.concatenate([params["w1s"], params["w1c"]], 0)                 # [14, 1024]
    w1sc = jnp.pad(w1sc, ((0, pad_sc_in), (0, 0))).astype(jnp.bfloat16)       # [128, 1024]
    w2 = params["w2"].astype(jnp.bfloat16)                                    # [1024, 1024]
    wsc = jnp.concatenate([params["ws"], params["wc"]], 1)                    # [1024, 14]
    wsc = jnp.pad(wsc, ((0, 0), (0, pad_sc_in))).astype(jnp.bfloat16)         # [1024, 128]
    b1 = params["b1"].astype(jnp.float32)
    b2 = params["b2"].astype(jnp.float32)
    bsc = jnp.pad(jnp.concatenate([params["bs"], params["bc"]], 1),
                  ((0, 0), (0, pad_sc_in))).astype(jnp.float32)               # [1, 128]
    init_psc = jnp.pad(jnp.concatenate([params["init_shape"], params["init_cam"]], 1),
                       ((0, 0), (0, pad_sc_in))).astype(jnp.float32)          # [1, 128]

    inputs = (feat, jb, w1f, w1jb, w1sc, b1, w2, b2, wsc, bsc, init_psc)

    def resident(arr):  # full-array block, constant index map -> VMEM-resident
        return pl.BlockSpec(arr.shape, lambda i, _nd=arr.ndim: (0,) * _nd)

    in_specs = ([pl.BlockSpec((TM, hw, C), lambda i: (i, 0, 0)),
                 pl.BlockSpec((TM, JB), lambda i: (i, 0))]
                + [resident(a) for a in inputs[2:]])

    out_specs = (pl.BlockSpec((TM, SC_PAD), lambda i: (i, 0)),
                 pl.BlockSpec((TM, C), lambda i: (i, 0)))
    out_shape = (jax.ShapeDtypeStruct((n_pad, SC_PAD), jnp.float32),
                 jax.ShapeDtypeStruct((n_pad, C), jnp.float32))

    # Explicit VMEM budget: 2x (double buffering) per block + 2 MiB margin,
    # capped at v7x's 64 MiB physical VMEM.
    block_bytes = (TM * hw * C * 2 + TM * JB * 2
                   + sum(int(a.size) * a.dtype.itemsize for a in inputs[2:])
                   + TM * SC_PAD * 4 + TM * C * 4)
    vmem_limit = int(min(2 * block_bytes + 2 * 1024 * 1024, 64 * 1024 * 1024))

    psc, xf = pl.pallas_call(
        functools.partial(_hmr_head_kernel, n_iter, 1.0 / hw),
        out_shape=out_shape,
        grid=grid,
        in_specs=in_specs,
        out_specs=out_specs,
        compiler_params=pltpu.CompilerParams(
            dimension_semantics=("parallel",),
            vmem_limit_bytes=vmem_limit),
    )(*inputs)

    return {"pred_cam": psc[:N, NUM_BETAS:NUM_BETAS + 3],
            "pred_shape": psc[:N, :NUM_BETAS],
            "body_feat": xf[:N]}


def init_params(key, feat_ch, j2d_dim, bbox_dim, hidden=HIDDEN):
    """Deterministic synthetic parameters (shapes match the PyTorch module)."""
    num_input_features = feat_ch + j2d_dim + bbox_dim
    d_in = num_input_features + NUM_BETAS + 3
    ks = jax.random.split(key, 16)

    def uniform(k, shape, bound):
        return jax.random.uniform(k, shape, jnp.float32, -bound, bound)

    def default_linear(kw, kb, fan_in, fan_out):
        bound = 1.0 / np.sqrt(fan_in)
        return uniform(kw, (fan_in, fan_out), bound), uniform(kb, (1, fan_out), bound)

    def xavier_linear(kw, kb, fan_in, fan_out, gain):
        a = gain * np.sqrt(6.0 / (fan_in + fan_out))
        bound_b = 1.0 / np.sqrt(fan_in)
        return uniform(kw, (fan_in, fan_out), a), uniform(kb, (1, fan_out), bound_b)

    w1, b1 = default_linear(ks[0], ks[1], d_in, hidden)
    w2, b2 = default_linear(ks[2], ks[3], hidden, hidden)
    ws, bs = xavier_linear(ks[4], ks[5], hidden, NUM_BETAS, gain=0.01)
    wc, bc = xavier_linear(ks[6], ks[7], hidden, 3, gain=0.01)

    # Synthetic SMPL mean params (stand-in for the .npz buffer load).
    init_shape10 = 0.1 * jax.random.normal(ks[8], (1, NUM_BETAS - 1), jnp.float32)
    init_shape = jnp.concatenate([init_shape10, jnp.zeros((1, 1), jnp.float32)], axis=-1)
    init_cam = jnp.array([[0.9, 0.0, 0.0]], dtype=jnp.float32)

    # Split W1 along its input axis to match the concat segments.
    o0, o1, o2, o3 = (feat_ch,
                      feat_ch + j2d_dim,
                      feat_ch + j2d_dim + bbox_dim,
                      feat_ch + j2d_dim + bbox_dim + NUM_BETAS)
    return {
        "w1f": w1[:o0], "w1j": w1[o0:o1], "w1b": w1[o1:o2],
        "w1s": w1[o2:o3], "w1c": w1[o3:], "b1": b1,
        "w2": w2, "b2": b2,
        "ws": ws, "bs": bs, "wc": wc, "bc": bc,
        "init_shape": init_shape, "init_cam": init_cam,
    }


def reference_forward(features, j2d_emb, bbox_info, p, n_iter=3):
    """Pure-JAX reference mirroring the PyTorch forward (eval mode, f32)."""
    n = features.shape[0]
    xf = jnp.mean(features, axis=(2, 3))
    w1 = jnp.concatenate([p["w1f"], p["w1j"], p["w1b"], p["w1s"], p["w1c"]], axis=0)
    pred_shape = jnp.broadcast_to(p["init_shape"], (n, NUM_BETAS))
    pred_cam = jnp.broadcast_to(p["init_cam"], (n, 3))
    hi = jax.lax.Precision.HIGHEST
    for _ in range(n_iter):
        xc = jnp.concatenate([xf, j2d_emb, bbox_info, pred_shape, pred_cam], axis=1)
        xc = jnp.dot(xc, w1, precision=hi) + p["b1"]
        xc = jnp.dot(xc, p["w2"], precision=hi) + p["b2"]
        pred_shape = jnp.dot(xc, p["ws"], precision=hi) + p["bs"] + pred_shape
        pred_cam = jnp.dot(xc, p["wc"], precision=hi) + p["bc"] + pred_cam
    return pred_cam, pred_shape, xf


if __name__ == "__main__":
    key = jax.random.PRNGKey(0)
    k_feat, k_j2d, k_bbox, k_par = jax.random.split(key, 4)

    N, C, H, W = 2, 4, 16, 16      # small NCHW feature map
    J_DIM, BBOX_DIM = 8, 3         # j2d embedding / bbox-info widths

    features = jax.random.normal(k_feat, (N, C, H, W), jnp.float32)
    j2d_emb = jax.random.normal(k_j2d, (N, J_DIM), jnp.float32)
    bbox_info = jax.random.normal(k_bbox, (N, BBOX_DIM), jnp.float32)
    params = init_params(k_par, C, J_DIM, BBOX_DIM)

    out = hmr_shape_cam_head(features, j2d_emb, bbox_info, params, n_iter=3)
    jax.block_until_ready(out)

    ref_cam, ref_shape, ref_xf = reference_forward(features, j2d_emb, bbox_info, params)
    assert out["pred_cam"].shape == (N, 3)
    assert out["pred_shape"].shape == (N, NUM_BETAS)
    assert out["body_feat"].shape == (N, C)
    assert np.allclose(np.asarray(out["pred_cam"]), np.asarray(ref_cam), atol=1e-2, rtol=1e-2)
    assert np.allclose(np.asarray(out["pred_shape"]), np.asarray(ref_shape), atol=1e-2, rtol=1e-2)
    assert np.allclose(np.asarray(out["body_feat"]), np.asarray(ref_xf), atol=1e-2, rtol=1e-2)

    print("KERNEL_OK")
</pallas_src>

<mosaic_0001>
module attributes {stable_mosaic.version = 11 : i64} {
  func.func @_hmr_head_kernel(%arg0: i32, %arg1: memref<8x256x4xbf16, #tpu.memory_space<vmem>>, %arg2: memref<8x11xbf16, #tpu.memory_space<vmem>>, %arg3: memref<4x1024xbf16, #tpu.memory_space<vmem>>, %arg4: memref<11x1024xbf16, #tpu.memory_space<vmem>>, %arg5: memref<128x1024xbf16, #tpu.memory_space<vmem>>, %arg6: memref<1x1024xf32, #tpu.memory_space<vmem>>, %arg7: memref<1024x1024xbf16, #tpu.memory_space<vmem>>, %arg8: memref<1x1024xf32, #tpu.memory_space<vmem>>, %arg9: memref<1024x128xbf16, #tpu.memory_space<vmem>>, %arg10: memref<1x128xf32, #tpu.memory_space<vmem>>, %arg11: memref<1x128xf32, #tpu.memory_space<vmem>>, %arg12: memref<8x128xf32, #tpu.memory_space<vmem>>, %arg13: memref<8x4xf32, #tpu.memory_space<vmem>>) attributes {dimension_semantics = [#tpu.dimension_semantics<parallel>], iteration_bounds = array<i64: 1>, scalar_prefetch = 0 : i64, scratch_operands = 0 : i64, tpu.core_type = #tpu.core_type<tc>, window_params = [{transform_indices = @transform_0, window_bounds = array<i64: 8, 256, 4>}, {transform_indices = @transform_1, window_bounds = array<i64: 8, 11>}, {pipeline_mode = #tpu.pipeline_mode<synchronous>, transform_indices = @transform_2, window_bounds = array<i64: 4, 1024>}, {pipeline_mode = #tpu.pipeline_mode<synchronous>, transform_indices = @transform_3, window_bounds = array<i64: 11, 1024>}, {pipeline_mode = #tpu.pipeline_mode<synchronous>, transform_indices = @transform_4, window_bounds = array<i64: 128, 1024>}, {pipeline_mode = #tpu.pipeline_mode<synchronous>, transform_indices = @transform_5, window_bounds = array<i64: 1, 1024>}, {pipeline_mode = #tpu.pipeline_mode<synchronous>, transform_indices = @transform_6, window_bounds = array<i64: 1024, 1024>}, {pipeline_mode = #tpu.pipeline_mode<synchronous>, transform_indices = @transform_7, window_bounds = array<i64: 1, 1024>}, {pipeline_mode = #tpu.pipeline_mode<synchronous>, transform_indices = @transform_8, window_bounds = array<i64: 1024, 128>}, {pipeline_mode = #tpu.pipeline_mode<synchronous>, transform_indices = @transform_9, window_bounds = array<i64: 1, 128>}, {pipeline_mode = #tpu.pipeline_mode<synchronous>, transform_indices = @transform_10, window_bounds = array<i64: 1, 128>}, {transform_indices = @transform_11, window_bounds = array<i64: 8, 128>}, {transform_indices = @transform_12, window_bounds = array<i64: 8, 4>}]} {
    %c0 = arith.constant 0 : index
    %c0_0 = arith.constant 0 : index
    %c0_1 = arith.constant 0 : index
    %0 = vector.load %arg1[%c0, %c0_0, %c0_1] : memref<8x256x4xbf16, #tpu.memory_space<vmem>>, vector<8x256x4xbf16>
    %1 = arith.extf %0 : vector<8x256x4xbf16> to vector<8x256x4xf32>
    %cst = arith.constant dense<0.000000e+00> : vector<8x4xf32>
    %2 = vector.multi_reduction <add>, %1, %cst [1] : vector<8x256x4xf32> to vector<8x4xf32>
    %cst_2 = arith.constant 3.906250e-03 : f32
    %3 = vector.broadcast %cst_2 : f32 to vector<8x4xf32>
    %4 = arith.mulf %2, %3 : vector<8x4xf32>
    %5 = arith.truncf %4 : vector<8x4xf32> to vector<8x4xbf16>
    %c0_3 = arith.constant 0 : index
    %c0_4 = arith.constant 0 : index
    %6 = vector.load %arg6[%c0_3, %c0_4] : memref<1x1024xf32, #tpu.memory_space<vmem>>, vector<1x1024xf32>
    %c0_5 = arith.constant 0 : index
    %c0_6 = arith.constant 0 : index
    %7 = vector.load %arg8[%c0_5, %c0_6] : memref<1x1024xf32, #tpu.memory_space<vmem>>, vector<1x1024xf32>
    %c0_7 = arith.constant 0 : index
    %c0_8 = arith.constant 0 : index
    %8 = vector.load %arg10[%c0_7, %c0_8] : memref<1x128xf32, #tpu.memory_space<vmem>>, vector<1x128xf32>
    %c0_9 = arith.constant 0 : index
    %c0_10 = arith.constant 0 : index
    %9 = vector.load %arg3[%c0_9, %c0_10] : memref<4x1024xbf16, #tpu.memory_space<vmem>>, vector<4x1024xbf16>
    %cst_11 = arith.constant dense<0.000000e+00> : vector<8x1024xf32>
    %10 = tpu.matmul %5, %9, %cst_11 {dimension_numbers = #tpu.dot_dimension_numbers<[1], [0], [0], [1], [0, 0, 1, 1], [], []>} : vector<8x4xbf16>, vector<4x1024xbf16>, vector<8x1024xf32> -> vector<8x1024xf32>
    %c0_12 = arith.constant 0 : index
    %c0_13 = arith.constant 0 : index
    %11 = vector.load %arg2[%c0_12, %c0_13] : memref<8x11xbf16, #tpu.memory_space<vmem>>, vector<8x11xbf16>
    %c0_14 = arith.constant 0 : index
    %c0_15 = arith.constant 0 : index
    %12 = vector.load %arg4[%c0_14, %c0_15] : memref<11x1024xbf16, #tpu.memory_space<vmem>>, vector<11x1024xbf16>
    %cst_16 = arith.constant dense<0.000000e+00> : vector<8x1024xf32>
    %13 = tpu.matmul %11, %12, %cst_16 {dimension_numbers = #tpu.dot_dimension_numbers<[1], [0], [0], [1], [0, 0, 1, 1], [], []>} : vector<8x11xbf16>, vector<11x1024xbf16>, vector<8x1024xf32> -> vector<8x1024xf32>
    %14 = arith.addf %10, %13 : vector<8x1024xf32>
    %15 = vector.broadcast %6 : vector<1x1024xf32> to vector<8x1024xf32>
    %16 = arith.addf %14, %15 : vector<8x1024xf32>
    %c0_17 = arith.constant 0 : index
    %c0_18 = arith.constant 0 : index
    %17 = vector.load %arg11[%c0_17, %c0_18] : memref<1x128xf32, #tpu.memory_space<vmem>>, vector<1x128xf32>
    %18 = vector.shape_cast %17 : vector<1x128xf32> to vector<1x128xf32>
    %19 = vector.broadcast %18 : vector<1x128xf32> to vector<8x128xf32>
    %20 = arith.truncf %19 : vector<8x128xf32> to vector<8x128xbf16>
    %c0_19 = arith.constant 0 : index
    %c0_20 = arith.constant 0 : index
    %21 = vector.load %arg5[%c0_19, %c0_20] : memref<128x1024xbf16, #tpu.memory_space<vmem>>, vector<128x1024xbf16>
    %cst_21 = arith.constant dense<0.000000e+00> : vector<8x1024xf32>
    %22 = tpu.matmul %20, %21, %cst_21 {dimension_numbers = #tpu.dot_dimension_numbers<[1], [0], [0], [1], [0, 0, 1, 1], [], []>} : vector<8x128xbf16>, vector<128x1024xbf16>, vector<8x1024xf32> -> vector<8x1024xf32>
    %23 = arith.addf %16, %22 : vector<8x1024xf32>
    %24 = arith.truncf %23 : vector<8x1024xf32> to vector<8x1024xbf16>
    %c0_22 = arith.constant 0 : index
    %c0_23 = arith.constant 0 : index
    %25 = vector.load %arg7[%c0_22, %c0_23] : memref<1024x1024xbf16, #tpu.memory_space<vmem>>, vector<1024x1024xbf16>
    %cst_24 = arith.constant dense<0.000000e+00> : vector<8x1024xf32>
    %26 = tpu.matmul %24, %25, %cst_24 {dimension_numbers = #tpu.dot_dimension_numbers<[1], [0], [0], [1], [0, 0, 1, 1], [], []>} : vector<8x1024xbf16>, vector<1024x1024xbf16>, vector<8x1024xf32> -> vector<8x1024xf32>
    %27 = vector.broadcast %7 : vector<1x1024xf32> to vector<8x1024xf32>
    %28 = arith.addf %26, %27 : vector<8x1024xf32>
    %29 = arith.truncf %28 : vector<8x1024xf32> to vector<8x1024xbf16>
    %c0_25 = arith.constant 0 : index
    %c0_26 = arith.constant 0 : index
    %30 = vector.load %arg9[%c0_25, %c0_26] : memref<1024x128xbf16, #tpu.memory_space<vmem>>, vector<1024x128xbf16>
    %cst_27 = arith.constant dense<0.000000e+00> : vector<8x128xf32>
    %31 = tpu.matmul %29, %30, %cst_27 {dimension_numbers = #tpu.dot_dimension_numbers<[1], [0], [0], [1], [0, 0, 1, 1], [], []>} : vector<8x1024xbf16>, vector<1024x128xbf16>, vector<8x128xf32> -> vector<8x128xf32>
    %32 = arith.addf %19, %31 : vector<8x128xf32>
    %33 = vector.broadcast %8 : vector<1x128xf32> to vector<8x128xf32>
    %34 = arith.addf %32, %33 : vector<8x128xf32>
    %35 = arith.truncf %34 : vector<8x128xf32> to vector<8x128xbf16>
    %c0_28 = arith.constant 0 : index
    %c0_29 = arith.constant 0 : index
    %36 = vector.load %arg5[%c0_28, %c0_29] : memref<128x1024xbf16, #tpu.memory_space<vmem>>, vector<128x1024xbf16>
    %cst_30 = arith.constant dense<0.000000e+00> : vector<8x1024xf32>
    %37 = tpu.matmul %35, %36, %cst_30 {dimension_numbers = #tpu.dot_dimension_numbers<[1], [0], [0], [1], [0, 0, 1, 1], [], []>} : vector<8x128xbf16>, vector<128x1024xbf16>, vector<8x1024xf32> -> vector<8x1024xf32>
    %38 = arith.addf %16, %37 : vector<8x1024xf32>
    %39 = arith.truncf %38 : vector<8x1024xf32> to vector<8x1024xbf16>
    %c0_31 = arith.constant 0 : index
    %c0_32 = arith.constant 0 : index
    %40 = vector.load %arg7[%c0_31, %c0_32] : memref<1024x1024xbf16, #tpu.memory_space<vmem>>, vector<1024x1024xbf16>
    %cst_33 = arith.constant dense<0.000000e+00> : vector<8x1024xf32>
    %41 = tpu.matmul %39, %40, %cst_33 {dimension_numbers = #tpu.dot_dimension_numbers<[1], [0], [0], [1], [0, 0, 1, 1], [], []>} : vector<8x1024xbf16>, vector<1024x1024xbf16>, vector<8x1024xf32> -> vector<8x1024xf32>
    %42 = vector.broadcast %7 : vector<1x1024xf32> to vector<8x1024xf32>
    %43 = arith.addf %41, %42 : vector<8x1024xf32>
    %44 = arith.truncf %43 : vector<8x1024xf32> to vector<8x1024xbf16>
    %c0_34 = arith.constant 0 : index
    %c0_35 = arith.constant 0 : index
    %45 = vector.load %arg9[%c0_34, %c0_35] : memref<1024x128xbf16, #tpu.memory_space<vmem>>, vector<1024x128xbf16>
    %cst_36 = arith.constant dense<0.000000e+00> : vector<8x128xf32>
    %46 = tpu.matmul %44, %45, %cst_36 {dimension_numbers = #tpu.dot_dimension_numbers<[1], [0], [0], [1], [0, 0, 1, 1], [], []>} : vector<8x1024xbf16>, vector<1024x128xbf16>, vector<8x128xf32> -> vector<8x128xf32>
    %47 = arith.addf %34, %46 : vector<8x128xf32>
    %48 = vector.broadcast %8 : vector<1x128xf32> to vector<8x128xf32>
    %49 = arith.addf %47, %48 : vector<8x128xf32>
    %50 = arith.truncf %49 : vector<8x128xf32> to vector<8x128xbf16>
    %c0_37 = arith.constant 0 : index
    %c0_38 = arith.constant 0 : index
    %51 = vector.load %arg5[%c0_37, %c0_38] : memref<128x1024xbf16, #tpu.memory_space<vmem>>, vector<128x1024xbf16>
    %cst_39 = arith.constant dense<0.000000e+00> : vector<8x1024xf32>
    %52 = tpu.matmul %50, %51, %cst_39 {dimension_numbers = #tpu.dot_dimension_numbers<[1], [0], [0], [1], [0, 0, 1, 1], [], []>} : vector<8x128xbf16>, vector<128x1024xbf16>, vector<8x1024xf32> -> vector<8x1024xf32>
    %53 = arith.addf %16, %52 : vector<8x1024xf32>
    %54 = arith.truncf %53 : vector<8x1024xf32> to vector<8x1024xbf16>
    %c0_40 = arith.constant 0 : index
    %c0_41 = arith.constant 0 : index
    %55 = vector.load %arg7[%c0_40, %c0_41] : memref<1024x1024xbf16, #tpu.memory_space<vmem>>, vector<1024x1024xbf16>
    %cst_42 = arith.constant dense<0.000000e+00> : vector<8x1024xf32>
    %56 = tpu.matmul %54, %55, %cst_42 {dimension_numbers = #tpu.dot_dimension_numbers<[1], [0], [0], [1], [0, 0, 1, 1], [], []>} : vector<8x1024xbf16>, vector<1024x1024xbf16>, vector<8x1024xf32> -> vector<8x1024xf32>
    %57 = vector.broadcast %7 : vector<1x1024xf32> to vector<8x1024xf32>
    %58 = arith.addf %56, %57 : vector<8x1024xf32>
    %59 = arith.truncf %58 : vector<8x1024xf32> to vector<8x1024xbf16>
    %c0_43 = arith.constant 0 : index
    %c0_44 = arith.constant 0 : index
    %60 = vector.load %arg9[%c0_43, %c0_44] : memref<1024x128xbf16, #tpu.memory_space<vmem>>, vector<1024x128xbf16>
    %cst_45 = arith.constant dense<0.000000e+00> : vector<8x128xf32>
    %61 = tpu.matmul %59, %60, %cst_45 {dimension_numbers = #tpu.dot_dimension_numbers<[1], [0], [0], [1], [0, 0, 1, 1], [], []>} : vector<8x1024xbf16>, vector<1024x128xbf16>, vector<8x128xf32> -> vector<8x128xf32>
    %62 = arith.addf %49, %61 : vector<8x128xf32>
    %63 = vector.broadcast %8 : vector<1x128xf32> to vector<8x128xf32>
    %64 = arith.addf %62, %63 : vector<8x128xf32>
    %c0_46 = arith.constant 0 : index
    %c0_47 = arith.constant 0 : index
    %65 = vector.load %arg12[%c0_46, %c0_47] : memref<8x128xf32, #tpu.memory_space<vmem>>, vector<8x128xf32>
    tpu.vector_store %arg12[%c0_46, %c0_47], %64 {strides = array<i32>} : memref<8x128xf32, #tpu.memory_space<vmem>>, vector<8x128xf32>,
    %c0_48 = arith.constant 0 : index
    %c0_49 = arith.constant 0 : index
    %66 = vector.load %arg13[%c0_48, %c0_49] : memref<8x4xf32, #tpu.memory_space<vmem>>, vector<8x4xf32>
    tpu.vector_store %arg13[%c0_48, %c0_49], %4 {strides = array<i32>} : memref<8x4xf32, #tpu.memory_space<vmem>>, vector<8x4xf32>,
    return
  }
  func.func @transform_0(%arg0: i32) -> (i32, i32, i32) {
    %c0_i32 = arith.constant 0 : i32
    %c0_i32_0 = arith.constant 0 : i32
    %c0_i32_1 = arith.constant 0 : i32
    return %arg0, %c0_i32, %c0_i32_0 : i32, i32, i32
  }
  func.func @transform_1(%arg0: i32) -> (i32, i32) {
    %c0_i32 = arith.constant 0 : i32
    %c0_i32_0 = arith.constant 0 : i32
    return %arg0, %c0_i32 : i32, i32
  }
  func.func @transform_2(%arg0: i32) -> (i32, i32) {
    %c0_i32 = arith.constant 0 : i32
    %c0_i32_0 = arith.constant 0 : i32
    %c0_i32_1 = arith.constant 0 : i32
    return %c0_i32, %c0_i32_0 : i32, i32
  }
  func.func @transform_3(%arg0: i32) -> (i32, i32) {
    %c0_i32 = arith.constant 0 : i32
    %c0_i32_0 = arith.constant 0 : i32
    %c0_i32_1 = arith.constant 0 : i32
    return %c0_i32, %c0_i32_0 : i32, i32
  }
  func.func @transform_4(%arg0: i32) -> (i32, i32) {
    %c0_i32 = arith.constant 0 : i32
    %c0_i32_0 = arith.constant 0 : i32
    %c0_i32_1 = arith.constant 0 : i32
    return %c0_i32, %c0_i32_0 : i32, i32
  }
  func.func @transform_5(%arg0: i32) -> (i32, i32) {
    %c0_i32 = arith.constant 0 : i32
    %c0_i32_0 = arith.constant 0 : i32
    %c0_i32_1 = arith.constant 0 : i32
    return %c0_i32, %c0_i32_0 : i32, i32
  }
  func.func @transform_6(%arg0: i32) -> (i32, i32) {
    %c0_i32 = arith.constant 0 : i32
    %c0_i32_0 = arith.constant 0 : i32
    %c0_i32_1 = arith.constant 0 : i32
    return %c0_i32, %c0_i32_0 : i32, i32
  }
  func.func @transform_7(%arg0: i32) -> (i32, i32) {
    %c0_i32 = arith.constant 0 : i32
    %c0_i32_0 = arith.constant 0 : i32
    %c0_i32_1 = arith.constant 0 : i32
    return %c0_i32, %c0_i32_0 : i32, i32
  }
  func.func @transform_8(%arg0: i32) -> (i32, i32) {
    %c0_i32 = arith.constant 0 : i32
    %c0_i32_0 = arith.constant 0 : i32
    %c0_i32_1 = arith.constant 0 : i32
    return %c0_i32, %c0_i32_0 : i32, i32
  }
  func.func @transform_9(%arg0: i32) -> (i32, i32) {
    %c0_i32 = arith.constant 0 : i32
    %c0_i32_0 = arith.constant 0 : i32
    %c0_i32_1 = arith.constant 0 : i32
    return %c0_i32, %c0_i32_0 : i32, i32
  }
  func.func @transform_10(%arg0: i32) -> (i32, i32) {
    %c0_i32 = arith.constant 0 : i32
    %c0_i32_0 = arith.constant 0 : i32
    %c0_i32_1 = arith.constant 0 : i32
    return %c0_i32, %c0_i32_0 : i32, i32
  }
  func.func @transform_11(%arg0: i32) -> (i32, i32) {
    %c0_i32 = arith.constant 0 : i32
    %c0_i32_0 = arith.constant 0 : i32
    return %arg0, %c0_i32 : i32, i32
  }
  func.func @transform_12(%arg0: i32) -> (i32, i32) {
    %c0_i32 = arith.constant 0 : i32
    %c0_i32_0 = arith.constant 0 : i32
    return %arg0, %c0_i32 : i32, i32
  }
}

</mosaic_0001>

<bundles_post_ra>
// kernel: tpu_custom_call.1
= control target key start
LH: loop header
LB: loop body
LE: loop exit
PB: predicated region body
PF: predicated region fallthrough
CT: control target
= control target key end

     0   :  { %18 = vsyncpa [#allocation3], 0  ;;  %s16186_s0 = inlined_call_operand.vmem [shape: bf16[8,256,4], index: 0, kind: input, shape index: {}]   ;;  %s16187_s1 = inlined_call_operand.hbm [shape: bf16[8,11], index: 1, kind: input, shape index: {}]   ;;  %s16188_s2 = inlined_call_operand.hbm [shape: bf16[4,1024], index: 2, kind: input, shape index: {}]   ;;  %s16189_s3 = inlined_call_operand.hbm [shape: bf16[11,1024], index: 3, kind: input, shape index: {}]   ;;  %s16190_s4 = inlined_call_operand.hbm [shape: bf16[128,1024], index: 4, kind: input, shape index: {}]   ;;  %s16191_s5 = inlined_call_operand.hbm [shape: f32[1,1024], index: 5, kind: input, shape index: {}]   ;;  %s16192_s6 = inlined_call_operand.hbm [shape: bf16[1024,1024], index: 6, kind: input, shape index: {}]   ;;  %s16193_s7 = inlined_call_operand.hbm [shape: f32[1,1024], index: 7, kind: input, shape index: {}]   ;;  %s16194_s8 = inlined_call_operand.hbm [shape: bf16[1024,128], index: 8, kind: input, shape index: {}]   ;;  %s16195_s9 = inlined_call_operand.hbm [shape: f32[1,128], index: 9, kind: input, shape index: {}]   ;;  %s16196_s10 = inlined_call_operand.hbm [shape: f32[1,128], index: 10, kind: input, shape index: {}]   ;;  %s16197_s11 = inlined_call_operand.hbm [shape: f32[8,128], index: 11, kind: output, shape index: {0}]   ;;  %s16198_s12 = inlined_call_operand.vmem [shape: f32[8,4], index: 12, kind: output, shape index: {1}]  }
   0x1   :  { %19 = vsyncpa [#allocation6], 0 }
   0x2   :  { %20 = vsyncpa [#allocation9], 0 }
   0x3   :  { %21 = vsyncpa [#allocation12], 0 }
   0x4   :  { %22 = vsyncpa [#allocation15], 0 }
   0x5   :  { %23 = vsyncpa [#allocation18], 0 }
   0x6   :  { %24 = vsyncpa [#allocation4], 0  ;;  %s10898_s21 = smov [#allocation5]  }
   0x7   :  { %s43_s22 = sshll.u32 %s10898_s21, 4  ;;  %s44_s22 = int_to_ptr.vmem [resolvable:$true] %s43_s22 }
   0x8   :  { %s10672_s23 = scalar_lea.vmem %s44_s22, 256  ;;  %p10677_p1 = scmp.lt.s32.totalorder %s44_s22, %s44_s22 }
   0x9   :  { %p10673_p0 = scmp.ne.s32.totalorder %s44_s22, %s10672_s23  ;;  %p10678_p2 = scmp.lt.s32.totalorder %s10672_s23, %s10672_s23 }
   0xb   :  { %p10679_p3 = por %p10678_p2, %p10677_p1 }
   0xd   :  { %p10680_p4 = pnand %p10679_p3, %p10673_p0 }
   0xf   :  { %10683 = shalt.err (!%p10680_p4)
}
  0x10   :  { %46 = dma.hbm_to_vmem [thread:$0]  %s16188_s2, 256, %s44_s22, [#allocation6]  }
  0x11   :  { %s10899_s26 = smov [#allocation8]   ;;  %s10900_s28 = smov [#allocation11]  }
  0x12   :  { %s64_s27 = sshll.u32 %s10899_s26, 4  ;;  %s86_s29 = sshll.u32 %s10900_s28, 4  ;;  %s65_s27 = int_to_ptr.vmem [resolvable:$true] %s64_s27  ;;  %s87_s29 = int_to_ptr.vmem [resolvable:$true] %s86_s29 }
  0x13   :  { %s10692_s30 = scalar_lea.vmem %s65_s27, 8192  ;;  %p10697_p6 = scmp.lt.s32.totalorder %s65_s27, %s65_s27 }
  0x14   :  { %p10693_p5 = scmp.ne.s32.totalorder %s65_s27, %s10692_s30  ;;  %p10698_p7 = scmp.lt.s32.totalorder %s10692_s30, %s10692_s30 }
  0x16   :  { %p10699_p8 = por %p10698_p7, %p10697_p6 }
  0x18   :  { %p10700_p9 = pnand %p10699_p8, %p10693_p5 }
  0x1a   :  { %10703 = shalt.err (!%p10700_p9)
}
  0x1b   :  { %s10901_s13 = smov 512   ;;  %s10902_s14 = smov 32  }
  0x1c   :  { %70 = dma.hbm_to_vmem [thread:$0]  %s16190_s4, 8192, %s65_s27, [#allocation9], %s10901_s13, %s10901_s13, %s10902_s14  }
  0x1d   :  { %s10712_s2 = scalar_lea.vmem %s87_s29, 65536  ;;  %p10717_p11 = scmp.lt.s32.totalorder %s87_s29, %s87_s29 }
  0x1e   :  { %p10713_p10 = scmp.ne.s32.totalorder %s87_s29, %s10712_s2  ;;  %p10718_p12 = scmp.lt.s32.totalorder %s10712_s2, %s10712_s2 }
  0x20   :  { %p10719_p13 = por %p10718_p12, %p10717_p11 }
  0x22   :  { %p10720_p0 = pnand %p10719_p13, %p10713_p10 }
  0x24   :  { %10723 = shalt.err (!%p10720_p0)
}
  0x25   :  { %92 = dma.hbm_to_vmem [thread:$0]  %s16192_s6, 65536, %s87_s29, [#allocation12], %s10901_s13, %s10901_s13, %s10902_s14  }
  0x26   :  { %s10903_s19 = smov [#allocation14]  }
  0x27   :  { %s108_s20 = sshll.u32 %s10903_s19, 4  ;;  %s109_s20 = int_to_ptr.vmem [resolvable:$true] %s108_s20 }
  0x28   :  { %s10732_s21 = scalar_lea.vmem %s109_s20, 8192  ;;  %p10737_p2 = scmp.lt.s32.totalorder %s109_s20, %s109_s20 }
  0x29   :  { %p10733_p1 = scmp.ne.s32.totalorder %s109_s20, %s10732_s21  ;;  %p10738_p3 = scmp.lt.s32.totalorder %s10732_s21, %s10732_s21 }
  0x2b   :  { %p10739_p4 = por %p10738_p3, %p10737_p2 }
  0x2d   :  { %p10740_p5 = pnand %p10739_p4, %p10733_p1 }
  0x2f   :  { %10743 = shalt.err (!%p10740_p5)
}
  0x30   :  { %s10904_s4 = smov 64   ;;  %s10905_s22 = smov 4  }
  0x31   :  { %114 = dma.hbm_to_vmem [thread:$0]  %s16194_s8, 8192, %s109_s20, [#allocation15], %s10904_s4, %s10904_s4, %s10905_s22  }
  0x32   :  { %s10906_s25 = smov [#allocation2]   ;;  %s10907_s27 = smov [#allocation7]  }
  0x33   :  { %s33_s26 = sshll.u32 %s10906_s25, 4  ;;  %s52_s6 = sshll.u32 %s10907_s27, 4  ;;  %s34_s26 = int_to_ptr.vmem [resolvable:$true] %s33_s26  ;;  %s53_s6 = int_to_ptr.vmem [resolvable:$true] %s52_s6 }
  0x34   :  { %s10752_s28 = scalar_lea.vmem %s34_s26, 64  ;;  %p10757_p7 = scmp.lt.s32.totalorder %s34_s26, %s34_s26 }
  0x35   :  { %p10753_p6 = scmp.ne.s32.totalorder %s34_s26, %s10752_s28  ;;  %p10758_p8 = scmp.lt.s32.totalorder %s10752_s28, %s10752_s28 }
  0x37   :  { %p10759_p9 = por %p10758_p8, %p10757_p7 }
  0x39   :  { %p10760_p10 = pnand %p10759_p9, %p10753_p6 }
  0x3b   :  { %10763 = shalt.err (!%p10760_p10)
}
  0x3c   :  { %36 = dma.hbm_to_vmem [thread:$0]  %s16187_s1, 64, %s34_s26, [#allocation3]  }
  0x3d   :  { %s10772_s15 = scalar_lea.vmem %s53_s6, 1024  ;;  %p10777_p12 = scmp.lt.s32.totalorder %s53_s6, %s53_s6 }
  0x3e   :  { %p10773_p11 = scmp.ne.s32.totalorder %s53_s6, %s10772_s15  ;;  %p10778_p13 = scmp.lt.s32.totalorder %s10772_s15, %s10772_s15 }
  0x40   :  { %p10779_p0 = por %p10778_p13, %p10777_p12 }
  0x42   :  { %p10780_p1 = pnand %p10779_p0, %p10773_p11 }
  0x44   :  { %10783 = shalt.err (!%p10780_p1)
}
  0x45   :  { %58 = dma.hbm_to_vmem [thread:$0]  %s16189_s3, 1024, %s53_s6, [#allocation6], %s10901_s13, %s10901_s13, %s10902_s14  }
  0x46   :  { %s10908_s2 = smov [#allocation10]   ;;  %s10909_s18 = smov [#allocation13]  }
  0x47   :  { %s77_s17 = sshll.u32 %s10908_s2, 4  ;;  %s99_s19 = sshll.u32 %s10909_s18, 4  ;;  %s78_s17 = int_to_ptr.vmem [resolvable:$true] %s77_s17  ;;  %s100_s19 = int_to_ptr.vmem [resolvable:$true] %s99_s19 }
  0x48   :  { %s10792_s1 = scalar_lea.vmem %s78_s17, 128  ;;  %p10797_p3 = scmp.lt.s32.totalorder %s78_s17, %s78_s17 }
  0x49   :  { %p10793_p2 = scmp.ne.s32.totalorder %s78_s17, %s10792_s1  ;;  %p10798_p4 = scmp.lt.s32.totalorder %s10792_s1, %s10792_s1 }
  0x4b   :  { %p10799_p5 = por %p10798_p4, %p10797_p3 }
  0x4d   :  { %p10800_p6 = pnand %p10799_p5, %p10793_p2 }
  0x4f   :  { %10803 = shalt.err (!%p10800_p6)
}
  0x50   :  { %80 = dma.hbm_to_vmem [thread:$0]  %s16191_s5, 128, %s78_s17, [#allocation9]  }
  0x51   :  { %s10812_s4 = scalar_lea.vmem %s100_s19, 128  ;;  %p10817_p8 = scmp.lt.s32.totalorder %s100_s19, %s100_s19 }
  0x52   :  { %p10813_p7 = scmp.ne.s32.totalorder %s100_s19, %s10812_s4  ;;  %p10818_p9 = scmp.lt.s32.totalorder %s10812_s4, %s10812_s4 }
  0x54   :  { %p10819_p10 = por %p10818_p9, %p10817_p8 }
  0x56   :  { %p10820_p11 = pnand %p10819_p10, %p10813_p7 }
  0x58   :  { %10823 = shalt.err (!%p10820_p11)
}
  0x59   :  { %102 = dma.hbm_to_vmem [thread:$0]  %s16193_s7, 128, %s100_s19, [#allocation12]  }
  0x5a   :  { %s10910_s14 = smov [#allocation16]   ;;  %s10911_s23 = smov [#allocation17]  }
  0x5b   :  { %s121_s22 = sshll.u32 %s10910_s14, 4  ;;  %s131_s24 = sshll.u32 %s10911_s23, 4  ;;  %s122_s22 = int_to_ptr.vmem [resolvable:$true] %s121_s22  ;;  %s132_s24 = int_to_ptr.vmem [resolvable:$true] %s131_s24 }
  0x5c   :  { %s10832_s25 = scalar_lea.vmem %s122_s22, 16  ;;  %s10836_s5 = scalar_lea.vmem %s122_s22, 32 }
  0x5d   :  { %p10833_p12 = scmp.ne.s32.totalorder %s122_s22, %s10832_s25  ;;  %p10837_p13 = scmp.lt.s32.totalorder %s122_s22, %s122_s22 }
  0x5e   :  { %p10838_p0 = scmp.lt.s32.totalorder %s10836_s5, %s10832_s25 }
  0x60   :  { %p10839_p1 = por %p10838_p0, %p10837_p13 }
  0x62   :  { %p10840_p2 = pnand %p10839_p1, %p10833_p12 }
  0x64   :  { %10843 = shalt.err (!%p10840_p2)
}
  0x65   :  { %124 = dma.hbm_to_vmem [thread:$0]  %s16195_s9, 16, %s122_s22, [#allocation15]  }
  0x66   :  { %s10852_s6 = scalar_lea.vmem %s132_s24, 16  ;;  %s10856_s7 = scalar_lea.vmem %s132_s24, 32 }
  0x67   :  { %p10853_p3 = scmp.ne.s32.totalorder %s132_s24, %s10852_s6  ;;  %p10857_p4 = scmp.lt.s32.totalorder %s132_s24, %s132_s24 }
  0x68   :  { %p10858_p5 = scmp.lt.s32.totalorder %s10856_s7, %s10852_s6 }
  0x6a   :  { %p10859_p6 = por %p10858_p5, %p10857_p4 }
  0x6c   :  { %p10860_p7 = pnand %p10859_p6, %p10853_p3 }
  0x6e   :  { %10863 = shalt.err (!%p10860_p7)
}
  0x6f   :  { %134 = dma.hbm_to_vmem [thread:$0]  %s16196_s10, 16, %s132_s24, [#allocation18]  }
  0x70   :  { %10884 = dma.done.wait [#allocation3], 64  }
  0x71   :  { %10885 = vsyncadd [#allocation3], 4294967232 }
  0x72   :  { %10886 = dma.done.wait [#allocation6], 1280  }
  0x73   :  { %10887 = vsyncadd [#allocation6], 4294966016 }
  0x74   :  { %10888 = dma.done.wait [#allocation9], 8320  }
  0x75   :  { %10889 = vsyncadd [#allocation9], 4294958976 }
  0x76   :  { %10890 = dma.done.wait [#allocation12], 65664  }
  0x77   :  { %10891 = vsyncadd [#allocation12], 4294901632 }
  0x78   :  { %10892 = dma.done.wait [#allocation15], 8208  }
  0x79   :  { %10893 = vsyncadd [#allocation15], 4294959088 }
  0x7a   :  { %10894 = dma.done.wait [#allocation18], 16  }
  0x7b   :  { %10895 = vsyncadd [#allocation18], 4294967280  ;;  %vm1297_vm0 = vcmask 1044480   ;;  %v16199_v0 = vmov 0   ;;  %v1526_v1 = vlaneseq  ;;  %v10913_v2 = vmov 1983009808  }
  0x7c   :  { %1357 = vmatprep.mubr.bf16.mxu0 %v16199_v0  ;;  %1398 = vmatprep.mubr.bf16.mxu1 %v16199_v0  ;;  %v1524_v3 = vunpack.c.l.s4 %v10913_v2  ;;  %vm1298_vm1 = vcmask 1045504   ;;  %v10914_v4 = vmov 65535   ;;  %v1253_v8 = vld [vmem:[#allocation7] sm:$0xff]  ;;  %v1254_v11 = vld [vmem:[#allocation7 + $0x8] sm:$0xff]  ;;  %v1255_v15 = vld [vmem:[#allocation7 + $0x10] sm:$0xff]  ;;  %vm1293_vm2 = vcmask 89088  }
  0x7d   :  { %v1299_v5 = vsel %vm1297_vm0, 4294967295, %v10914_v4  ;;  %v11022_v7 = vshrl.u32 %v1526_v1, 7  ;;  %v1257_v9 = vld [vmem:[#allocation7 + $0x20] sm:$0x33]  ;;  %v1258_v14 = vld [vmem:[#allocation7 + $0x28] sm:$0x33] }
  0x7e   :  { %v1525_v6 = vunpack.c.0.s8 %v1524_v3  ;;  %v1300_v10 = vsel %vm1298_vm1, %v1299_v5, 0  ;;  %v8883_v12 = vcombine.high %v1253_v8, %v1257_v9  ;;  %v8882_v13 = vcombine.low %v1253_v8, %v1257_v9  ;;  %v1259_v19 = vld [vmem:[#allocation7 + $0x30] sm:$0x33]  ;;  %v1256_v20 = vld [vmem:[#allocation7 + $0x18] sm:$0xff]  ;;  %v1252_v34 = vld [vmem:[#allocation2] sm:$0xf] }
  0x7f   :  { %17450 = vst [vmem:[#allocation27_spill] sm:$0xff] %v11022_v7  ;;  %v8885_v17 = vcombine.high %v1254_v11, %v1258_v14  ;;  %v8884_v18 = vcombine.low %v1254_v11, %v1258_v14  ;;  %v1260_v21 = vld [vmem:[#allocation7 + $0x38] sm:$0x33]  ;;  %v8886_v24 = vcombine.low %v1255_v15, %v1259_v19  ;;  %v8887_v25 = vcombine.high %v1255_v15, %v1259_v19  ;;  %v1250_v26 = vld [vmem:[#allocation5] sm:$0xff]  ;;  %v11064_v48 = vld [vmem:[%s16186_s0 + $0x18] sm:$0xff]  }
  0x80   :  { %v11025_v16 = vsub.s32 %v1525_v6, %v11022_v7  ;;  %v1305_v22 = vand.u32 %v8883_v12, %v1300_v10  ;;  %v1302_v23 = vand.u32 %v8882_v13, %v1300_v10  ;;  %v8888_v29 = vcombine.low %v1256_v20, %v1260_v21  ;;  %v11032_v41 = vld.sshfl [vmem:[#allocation5 + $0x8] sm:$0xff pattern:$0x76325410]  ;;  %v11049_v45 = vld [vmem:[%s16186_s0] sm:$0xff]   ;;  %v11089_v57 = vld [vmem:[%s16186_s0 + $0x38] sm:$0xff]  }
  0x81   :  { %v1311_v27 = vand.u32 %v8885_v17, %v1300_v10  ;;  %v1308_v28 = vand.u32 %v8884_v18, %v1300_v10  ;;  %v8889_v30 = vcombine.high %v1256_v20, %v1260_v21  ;;  %v1317_v31 = vand.u32 %v8887_v25, %v1300_v10  ;;  %17452 = vst [vmem:[#allocation29_spill] sm:$0xff] %v11032_v41  ;;  %v11054_v46 = vld [vmem:[%s16186_s0 + $0x8] sm:$0xff]   ;;  %v11059_v47 = vld [vmem:[%s16186_s0 + $0x10] sm:$0xff]   ;;  %v11069_v49 = vld [vmem:[%s16186_s0 + $0x20] sm:$0xff]  }
  0x82   :  { %17451 = vst [vmem:[#allocation28_spill] sm:$0xff] %v11025_v16  ;;  %1339 = vmatprep.subr.bf16.mxu0 %v1305_v22  ;;  %v1529_v32 = vrot.slane %v1250_v26, %v11025_v16  ;;  %v1522_v33 = vcombine.high %v1250_v26, %v1250_v26  ;;  %v1314_v35 = vand.u32 %v8886_v24, %v1300_v10  ;;  %vm1559_vm3 = vcmask 1041408   ;;  %v11075_v51 = vld [vmem:[%s16186_s0 + $0x28] sm:$0xff]   ;;  %v11080_v52 = vld [vmem:[%s16186_s0 + $0x30] sm:$0xff]   ;;  %v11094_v58 = vld [vmem:[%s16186_s0 + $0x40] sm:$0xff]  }
  0x83   :  { %1340 = vmatpush1.bf16.msra.mxu0 %v1302_v23  ;;  %1380 = vmatprep.subr.bf16.mxu1 %v1311_v27  ;;  %v1323_v36 = vand.u32 %v8889_v30, %v1300_v10  ;;  %v1320_v37 = vand.u32 %v8888_v29, %v1300_v10  ;;  %v1554_v44 = vcombine.high %v11032_v41, %v11032_v41  ;;  %v11103_v63 = vld [vmem:[%s16186_s0 + $0x48] sm:$0xff]   ;;  %v11108_v1 = vld [vmem:[%s16186_s0 + $0x50] sm:$0xff]   ;;  %v11117_v6 = vld [vmem:[%s16186_s0 + $0x58] sm:$0xff]   ;;  %vm678_vm4 = vcmask 31744  }
  0x84   :  { %1381 = vmatpush1.bf16.msra.mxu1 %v1308_v28  ;;  %1421 = vmatprep.subr.bf16.mxu0 %v1317_v31  ;;  %v1536_v38 = vrot.slane %v1522_v33, %v11025_v16  ;;  %v1537_v39 = vcombine.high %v1529_v32, %v1529_v32  ;;  %v1561_v42 = vsel %vm1559_vm3, %v1529_v32, 0  ;;  %v11122_v8 = vld [vmem:[%s16186_s0 + $0x60] sm:$0xff]   ;;  %v11131_v13 = vld [vmem:[%s16186_s0 + $0x68] sm:$0xff]   ;;  %v11136_v14 = vld [vmem:[%s16186_s0 + $0x70] sm:$0xff]   ;;  %vm1505_vm5 = vcmask 1041409  }
  0x85   :  { %1462 = vmatprep.subr.bf16.mxu1 %v1323_v36  ;;  %v11145_v20 = vld [vmem:[%s16186_s0 + $0x78] sm:$0xff]   ;;  %v11150_v21 = vld [vmem:[%s16186_s0 + $0x80] sm:$0xff]   ;;  %v11159_v26 = vld [vmem:[%s16186_s0 + $0x88] sm:$0xff]   ;;  %vm1507_vm6 = vcmask 1042434   ;;  %vm1509_vm7 = vcmask 1043459   ;;  %vm1511_vm8 = vcmask 1044484  }
  0x86   :  { %8890 = vmatmul.mubr.msk.bf16.vlgmr.msra.gmra.mxu0 %vm1293_vm2, %v1252_v34  ;;  %v1538_v40 = vcombine.high %v1536_v38, %v1536_v38  ;;  %v1567_v43 = vsel %vm1559_vm3, %v1536_v38, 0  ;;  %v11164_v27 = vld [vmem:[%s16186_s0 + $0x90] sm:$0xff]   ;;  %v11173_v32 = vld [vmem:[%s16186_s0 + $0x98] sm:$0xff]   ;;  %v11178_v33 = vld [vmem:[%s16186_s0 + $0xa0] sm:$0xff]   ;;  %vm1513_vm9 = vcmask 1045509   ;;  %vm1515_vm10 = vcmask 1046534  }
  0x87   :  { %8891 = vmatmul.mubr.msk.bf16.vlgmr.msra.gmra.mxu1 %vm1293_vm2, %v1252_v34  ;;  %1422 = vmatpush1.bf16.msra.mxu0 %v1314_v35  ;;  %v11187_v38 = vld [vmem:[%s16186_s0 + $0xa8] sm:$0xff]   ;;  %v11206_v36 = vld [vmem:[%s16186_s0 + $0xc0] sm:$0xff]   ;;  %v11220_v28 = vld [vmem:[%s16186_s0 + $0xd0] sm:$0xff]   ;;  %vm1517_vm11 = vcmask 1047559  }
  0x88   :  { %1439 = vmatprep.mubr.bf16.mxu0 %v16199_v0  ;;  %1463 = vmatpush1.bf16.msra.mxu1 %v1320_v37  ;;  %v11215_v29 = vld [vmem:[%s16186_s0 + $0xc8] sm:$0xff]   ;;  %17453 = vst [vmem:[#allocation30_spill] sm:$0xff] %v11220_v28  ;;  %v11225_v25 = vld [vmem:[%s16186_s0 + $0xd8] sm:$0xff]   ;;  %v11234_v18 = vld [vmem:[%s16186_s0 + $0xe0] sm:$0xff]  }
  0x89   :  { %1480 = vmatprep.mubr.bf16.mxu1 %v16199_v0  ;;  %8894 = vmatprep.subr.msk.bf16.mxu0 %vm1559_vm3, %v1537_v39  ;;  %v11192_v39 = vld [vmem:[%s16186_s0 + $0xb0] sm:$0xff]   ;;  %17454 = vst [vmem:[#allocation31_spill] sm:$0xff] %v11225_v25  ;;  %17455 = vst [vmem:[#allocation32_spill] sm:$0xff] %v11234_v18  ;;  %v11239_v17 = vld [vmem:[%s16186_s0 + $0xe8] sm:$0xff]  }
  0x8a   :  { %8896 = vmatprep.subr.msk.bf16.mxu1 %vm1559_vm3, %v1538_v40  ;;  %17456 = vst [vmem:[#allocation33_spill] sm:$0xff] %v11239_v17  ;;  %v11244_v15 = vld [vmem:[%s16186_s0 + $0xf0] sm:$0xff]   ;;  %v11253_v22 = vld [vmem:[%s16186_s0 + $0xf8] sm:$0xff]   ;;  %v11258_v9 = vld [vmem:[%s16186_s0 + $0x100] sm:$0xff]  }
  0x8b   :  { %17457 = vst [vmem:[#allocation34_spill] sm:$0xff] %v11244_v15  ;;  %17458 = vst [vmem:[#allocation35_spill] sm:$0xff] %v11253_v22  ;;  %v11263_v12 = vld [vmem:[%s16186_s0 + $0x108] sm:$0xff]   ;;  %v11272_v5 = vld [vmem:[%s16186_s0 + $0x110] sm:$0xff]  }
  0x8c   :  { %v11277_v24 = vld [vmem:[%s16186_s0 + $0x118] sm:$0xff]   ;;  %v11282_v11 = vld [vmem:[%s16186_s0 + $0x120] sm:$0xff]   ;;  %v11291_v30 = vld [vmem:[%s16186_s0 + $0x128] sm:$0xff]  }
  0x8d   :  { %v11296_v3 = vld [vmem:[%s16186_s0 + $0x130] sm:$0xff]   ;;  %v11305_v4 = vld [vmem:[%s16186_s0 + $0x138] sm:$0xff]   ;;  %v11319_v23 = vld [vmem:[%s16186_s0 + $0x148] sm:$0xff]  }
  0x8e   :  { %8892 = vmatmul.mubr.msk.bf16.vlgmr.msra.gmra.mxu0 %vm1293_vm2, %v1252_v34  ;;  %17459 = vst [vmem:[#allocation36_spill] sm:$0xff] %v11305_v4  ;;  %17461 = vst [vmem:[#allocation38_spill] sm:$0xff] %v11319_v23  ;;  %v11324_v35 = vld [vmem:[%s16186_s0 + $0x150] sm:$0xff]   ;;  %v11333_v10 = vld [vmem:[%s16186_s0 + $0x158] sm:$0xff]  }
  0x8f   :  { %8893 = vmatmul.mubr.msk.bf16.vlgmr.msra.gmra.mxu1 %vm1293_vm2, %v1252_v34  ;;  %1599 = vmatpush1.bf16.msra.mxu0 %v1561_v42  ;;  %v11310_v34 = vld [vmem:[%s16186_s0 + $0x140] sm:$0xff]   ;;  %17462 = vst [vmem:[#allocation39_spill] sm:$0xff] %v11324_v35  ;;  %17463 = vst [vmem:[#allocation40_spill] sm:$0xff] %v11333_v10  ;;  %v11347_v19 = vld [vmem:[%s16186_s0 + $0x168] sm:$0xff]  }
  0x90   :  { %1640 = vmatpush1.bf16.msra.mxu1 %v1567_v43  ;;  %1616 = vmatprep.mubr.bf16.mxu0 %v16199_v0  ;;  %17460 = vst [vmem:[#allocation37_spill] sm:$0xff] %v11310_v34  ;;  %v11338_v62 = vld [vmem:[%s16186_s0 + $0x160] sm:$0xff]   ;;  %17465 = vst [vmem:[#allocation42_spill] sm:$0xff] %v11347_v19  ;;  %v11352_v42 = vld [vmem:[%s16186_s0 + $0x170] sm:$0xff]  }
  0x91   :  { %1657 = vmatprep.mubr.bf16.mxu1 %v16199_v0  ;;  %8898 = vmatprep.subr.msk.bf16.mxu0 %vm1559_vm3, %v1554_v44  ;;  %v11201_v0 = vld [vmem:[%s16186_s0 + $0xb8] sm:$0xff]   ;;  %17464 = vst [vmem:[#allocation41_spill] sm:$0xff] %v11338_v62  ;;  %17466 = vst [vmem:[#allocation43_spill] sm:$0xff] %v11352_v42  ;;  %v11366_v40 = vld [vmem:[%s16186_s0 + $0x180] sm:$0xff]  }
  0x92   :  { %v11361_v31 = vld [vmem:[%s16186_s0 + $0x178] sm:$0xff]   ;;  %v11375_v2 = vld [vmem:[%s16186_s0 + $0x188] sm:$0xff]   ;;  %v11380_v60 = vld [vmem:[%s16186_s0 + $0x190] sm:$0xff]  }
  0x93   :  { %17467 = vst [vmem:[#allocation44_spill] sm:$0xff] %v11361_v31  ;;  %v11389_v44 = vld [vmem:[%s16186_s0 + $0x198] sm:$0xff]   ;;  %v11394_v56 = vld [vmem:[%s16186_s0 + $0x1a0] sm:$0xff]   ;;  %v11403_v43 = vld [vmem:[%s16186_s0 + $0x1a8] sm:$0xff]  }
  0x94   :  { %v11408_v54 = vld [vmem:[%s16186_s0 + $0x1b0] sm:$0xff]   ;;  %v11417_v61 = vld [vmem:[%s16186_s0 + $0x1b8] sm:$0xff]   ;;  %v11422_v50 = vld [vmem:[%s16186_s0 + $0x1c0] sm:$0xff]  }
  0x95   :  { %17468 = vst [vmem:[#allocation45_spill] sm:$0xff] %v11417_v61  ;;  %17469 = vst [vmem:[#allocation46_spill] sm:$0xff] %v11422_v50  ;;  %v11431_v37 = vld [vmem:[%s16186_s0 + $0x1c8] sm:$0xff]   ;;  %v11436_v41 = vld [vmem:[%s16186_s0 + $0x1d0] sm:$0xff]   ;;  %v17490_v61 = vunpack.c.l.bf16 %v11054_v46 }
  0x96   :  { %17470 = vst [vmem:[#allocation47_spill] sm:$0xff] %v11431_v37  ;;  %17471 = vst [vmem:[#allocation48_spill] sm:$0xff] %v11436_v41  ;;  %v11445_v59 = vld [vmem:[%s16186_s0 + $0x1d8] sm:$0xff]   ;;  %v11450_v31 = vld [vmem:[%s16186_s0 + $0x1e0] sm:$0xff]  }
  0x97   :  { %17472 = vst [vmem:[#allocation49_spill] sm:$0xff] %v11445_v59  ;;  %17473 = vst [vmem:[#allocation50_spill] sm:$0xff] %v11450_v31  ;;  %v11459_v55 = vld [vmem:[%s16186_s0 + $0x1e8] sm:$0xff]   ;;  %v11464_v19 = vld [vmem:[%s16186_s0 + $0x1f0] sm:$0xff]   ;;  %v682_v41 = vsel %vm678_vm4, %v17490_v61, 0.0 }
  0x98   :  { %17474 = vst [vmem:[#allocation51_spill] sm:$0xff] %v11459_v55  ;;  %17475 = vst [vmem:[#allocation52_spill] sm:$0xff] %v11464_v19  ;;  %v11473_v53 = vld [vmem:[%s16186_s0 + $0x1f8] sm:$0xff]   ;;  %v11478_v10 = vld [vmem:[%s16186_s0 + $0x200] sm:$0xff]  }
  0x99   :  { %17476 = vst [vmem:[#allocation53_spill] sm:$0xff] %v11473_v53  ;;  %v11487_v7 = vld [vmem:[%s16186_s0 + $0x208] sm:$0xff]   ;;  %v11492_v23 = vld [vmem:[%s16186_s0 + $0x210] sm:$0xff]   ;;  %v11501_v16 = vld [vmem:[%s16186_s0 + $0x218] sm:$0xff]  }
  0x9a   :  { %v11506_v22 = vld [vmem:[%s16186_s0 + $0x220] sm:$0xff]   ;;  %v11515_v42 = vld [vmem:[%s16186_s0 + $0x228] sm:$0xff]   ;;  %v11520_v37 = vld [vmem:[%s16186_s0 + $0x230] sm:$0xff]  }
  0x9b   :  { %17477 = vst [vmem:[#allocation54_spill] sm:$0xff] %v11520_v37  ;;  %v11529_v62 = vld [vmem:[%s16186_s0 + $0x238] sm:$0xff]   ;;  %v11534_v59 = vld [vmem:[%s16186_s0 + $0x240] sm:$0xff]   ;;  %v11543_v35 = vld [vmem:[%s16186_s0 + $0x248] sm:$0xff]   ;;  %v17488_v37 = vunpack.c.l.bf16 %v11049_v45 }
  0x9c   :  { %17478 = vst [vmem:[#allocation55_spill] sm:$0xff] %v11529_v62  ;;  %17479 = vst [vmem:[#allocation56_spill] sm:$0xff] %v11534_v59  ;;  %v11548_v55 = vld [vmem:[%s16186_s0 + $0x250] sm:$0xff]   ;;  %v11557_v34 = vld [vmem:[%s16186_s0 + $0x258] sm:$0xff]   ;;  %v17504_v59 = vunpack.c.l.bf16 %v11150_v21 }
  0x9d   :  { %17480 = vst [vmem:[#allocation57_spill] sm:$0xff] %v11543_v35  ;;  %17481 = vst [vmem:[#allocation58_spill] sm:$0xff] %v11548_v55  ;;  %v11562_v53 = vld [vmem:[%s16186_s0 + $0x260] sm:$0xff]   ;;  %v11571_v15 = vld [vmem:[%s16186_s0 + $0x268] sm:$0xff]   ;;  %v679_v18 = vsel %vm678_vm4, %v17488_v37, 0.0  ;;  %v17493_v35 = vunpack.c.h.bf16 %v11054_v46  ;;  %v17500_v55 = vunpack.c.h.bf16 %v11059_v47 }
  0x9e   :  { %17482 = vst [vmem:[#allocation59_spill] sm:$0xff] %v11557_v34  ;;  %17483 = vst [vmem:[#allocation60_spill] sm:$0xff] %v11562_v53  ;;  %v11576_v17 = vld [vmem:[%s16186_s0 + $0x270] sm:$0xff]   ;;  %v11589_v28 = vld [vmem:[%s16186_s0 + $0x278] sm:$0xff]   ;;  %v17489_v34 = vunpack.c.h.bf16 %v11049_v45 }
  0x9f   :  { %17484 = vst [vmem:[#allocation61_spill] sm:$0xff] %v11571_v15  ;;  %17485 = vst [vmem:[#allocation62_spill] sm:$0xff] %v11576_v17  ;;  %v11594_v19 = vld [vmem:[%s16186_s0 + $0x280] sm:$0xff]   ;;  %v11603_v25 = vld [vmem:[%s16186_s0 + $0x288] sm:$0xff]   ;;  %v688_v46 = vsel %vm678_vm4, %v17500_v55, 0.0 }
  0xa0   :  { %17486 = vst [vmem:[#allocation63_spill] sm:$0xff] %v11589_v28  ;;  %v11612_v50 = vld [vmem:[%s16186_s0 + $0x290] sm:$0xff]   ;;  %v11622_v62 = vld [vmem:[%s16186_s0 + $0x298] sm:$0xff]   ;;  %v680_v4 = vsel %vm678_vm4, %v17489_v34, 0.0  ;;  %v11639_v15 = vld [vmem:[%s16186_s0 + $0x2a0] sm:$0xff]   ;;  %v17497_v34 = vunpack.c.l.bf16 %v11059_v47  ;;  %v17502_v47 = vunpack.c.l.bf16 %v11064_v48 }
  0xa1   :  { %17487 = vst [vmem:[#allocation64_spill] sm:$0xff] %v11622_v62  ;;  %17491 = vst [vmem:[#allocation65_spill] sm:$0xff] %v11639_v15  ;;  %v681_v37 = vadd.f32 %v680_v4, %v679_v18  ;;  %v11647_v61 = vld [vmem:[%s16186_s0 + $0x2a8] sm:$0xff]   ;;  %v11652_v31 = vld [vmem:[%s16186_s0 + $0x2b0] sm:$0xff]   ;;  %v684_v4 = vsel %vm678_vm4, %v17493_v35, 0.0  ;;  %v748_v15 = vsel %vm678_vm4, %v17504_v59, 0.0  ;;  %v17505_v62 = vunpack.c.h.bf16 %v11150_v21 }
  0xa2   :  { %17492 = vst [vmem:[#allocation66_spill] sm:$0xff] %v11647_v61  ;;  %v11663_v45 = vld [vmem:[%s16186_s0 + $0x2b8] sm:$0xff]   ;;  %v11671_v35 = vld [vmem:[%s16186_s0 + $0x2c0] sm:$0xff]   ;;  %v11676_v53 = vld [vmem:[%s16186_s0 + $0x2c8] sm:$0xff]   ;;  %v690_v55 = vsel %vm678_vm4, %v17502_v47, 0.0  ;;  %v17507_v61 = vunpack.c.h.bf16 %v11064_v48  ;;  %v17513_v21 = vunpack.c.l.bf16 %v11164_v27 }
  0xa3   :  { %17494 = vst [vmem:[#allocation67_spill] sm:$0xff] %v11663_v45  ;;  %v683_v17 = vadd.f32 %v682_v41, %v681_v37  ;;  %17495 = vst [vmem:[#allocation68_spill] sm:$0xff] %v11671_v35  ;;  %v686_v41 = vsel %vm678_vm4, %v17497_v34, 0.0  ;;  %v11687_v28 = vld [vmem:[%s16186_s0 + $0x2d0] sm:$0xff]   ;;  %v11695_v34 = vld [vmem:[%s16186_s0 + $0x2d8] sm:$0xff]  }
  0xa4   :  { %17496 = vst [vmem:[#allocation69_spill] sm:$0xff] %v11676_v53  ;;  %17498 = vst [vmem:[#allocation70_spill] sm:$0xff] %v11687_v28  ;;  %v11709_v45 = vld [vmem:[%s16186_s0 + $0x2e0] sm:$0xff]   ;;  %v11730_v47 = vld [vmem:[%s16186_s0 + $0x2f0] sm:$0xff]   ;;  %v692_v28 = vsel %vm678_vm4, %v17507_v61, 0.0 }
  0xa5   :  { %v685_v18 = vadd.f32 %v684_v4, %v683_v17  ;;  %17499 = vst [vmem:[#allocation71_spill] sm:$0xff] %v11695_v34  ;;  %17501 = vst [vmem:[#allocation72_spill] sm:$0xff] %v11709_v45  ;;  %v749_v17 = vsel %vm678_vm4, %v17505_v62, 0.0  ;;  %v11743_v37 = vld [vmem:[%s16186_s0 + $0x2f8] sm:$0xff]   ;;  %v11748_v48 = vld [vmem:[%s16186_s0 + $0x300] sm:$0xff]   ;;  %v17512_v45 = vunpack.c.l.bf16 %v11069_v49 }
  0xa6   :  { %17506 = vst [vmem:[#allocation74_spill] sm:$0xff] %v11730_v47  ;;  %17509 = vst [vmem:[#allocation75_spill] sm:$0xff] %v11743_v37  ;;  %v11758_v62 = vld [vmem:[%s16186_s0 + $0x308] sm:$0xff]   ;;  %v17522_v47 = vunpack.c.h.bf16 %v11173_v32 }
  0xa7   :  { %v687_v4 = vadd.f32 %v686_v41, %v685_v18  ;;  %v11718_v18 = vld [vmem:[%s16186_s0 + $0x2e8] sm:$0xff]   ;;  %17511 = vst [vmem:[#allocation76_spill] sm:$0xff] %v11758_v62  ;;  %v694_v34 = vsel %vm678_vm4, %v17512_v45, 0.0 }
  0xa8   :  { %17503 = vst [vmem:[#allocation73_spill] sm:$0xff] %v11718_v18  ;;  %v17516_v18 = vunpack.c.h.bf16 %v11164_v27  ;;  %v761_v62 = vsel %vm678_vm4, %v17522_v47, 0.0  ;;  %v17531_v47 = vunpack.c.h.bf16 %v11263_v12 }
  0xa9   :  { %v689_v41 = vadd.f32 %v688_v46, %v687_v4  ;;  %v750_v46 = vadd.f32 %v749_v17, %v748_v15  ;;  %v17508_v4 = vunpack.c.l.bf16 %v11159_v26  ;;  %v17510_v15 = vunpack.c.h.bf16 %v11159_v26 }
  0xaa   :  { %v17518_v26 = vunpack.c.h.bf16 %v11069_v49 }
  0xab   :  { %v751_v59 = vsel %vm678_vm4, %v17508_v4, 0.0  ;;  %v691_v61 = vadd.f32 %v690_v55, %v689_v41  ;;  %v753_v17 = vsel %vm678_vm4, %v17510_v15, 0.0  ;;  %v11768_v41 = vld [vmem:[%s16186_s0 + $0x310] sm:$0xff]   ;;  %v755_v4 = vsel %vm678_vm4, %v17513_v21, 0.0  ;;  %v11786_v21 = vld [vmem:[%s16186_s0 + $0x320] sm:$0xff]  }
  0xac   :  { %v752_v53 = vadd.f32 %v751_v59, %v750_v46  ;;  %v11779_v46 = vld [vmem:[%s16186_s0 + $0x318] sm:$0xff]   ;;  %17514 = vst [vmem:[#allocation77_spill] sm:$0xff] %v11786_v21  ;;  %v757_v55 = vsel %vm678_vm4, %v17516_v18, 0.0  ;;  %v696_v45 = vsel %vm678_vm4, %v17518_v26, 0.0  ;;  %v17525_v18 = vunpack.c.h.bf16 %v11258_v9 }
  0xad   :  { %v693_v15 = vadd.f32 %v692_v28, %v691_v61  ;;  %v11791_v61 = vld [vmem:[%s16186_s0 + $0x328] sm:$0xff]   ;;  %v11801_v28 = vld [vmem:[%s16186_s0 + $0x330] sm:$0xff]   ;;  %v17541_v21 = vunpack.c.l.bf16 %v11187_v38 }
  0xae   :  { %v754_v59 = vadd.f32 %v753_v17, %v752_v53  ;;  %17515 = vst [vmem:[#allocation78_spill] sm:$0xff] %v11791_v61  ;;  %17517 = vst [vmem:[#allocation79_spill] sm:$0xff] %v11801_v28  ;;  %v818_v27 = vsel %vm678_vm4, %v17525_v18, 0.0  ;;  %v11856_v18 = vld [vmem:[%s16186_s0 + $0x350] sm:$0xff]  }
  0xaf   :  { %v695_v35 = vadd.f32 %v694_v34, %v693_v15  ;;  %v17519_v15 = vunpack.c.l.bf16 %v11173_v32  ;;  %17529 = vst [vmem:[#allocation83_spill] sm:$0xff] %v11856_v18 }
  0xb0   :  { %v756_v37 = vadd.f32 %v755_v4, %v754_v59  ;;  %v11820_v59 = vld [vmem:[%s16186_s0 + $0x338] sm:$0xff]   ;;  %v17524_v4 = vunpack.c.l.bf16 %v11258_v9  ;;  %v17535_v9 = vunpack.c.l.bf16 %v11272_v5 }
  0xb1   :  { %v759_v17 = vsel %vm678_vm4, %v17519_v15, 0.0  ;;  %17520 = vst [vmem:[#allocation80_spill] sm:$0xff] %v11820_v59  ;;  %v11825_v15 = vld [vmem:[%s16186_s0 + $0x340] sm:$0xff]   ;;  %v697_v53 = vadd.f32 %v696_v45, %v695_v35  ;;  %v17526_v35 = vunpack.c.l.bf16 %v11263_v12  ;;  %v17527_v45 = vunpack.c.l.bf16 %v11075_v51  ;;  %v11878_v12 = vld [vmem:[%s16186_s0 + $0x368] sm:$0xff]  }
  0xb2   :  { %v758_v49 = vadd.f32 %v757_v55, %v756_v37  ;;  %17521 = vst [vmem:[#allocation81_spill] sm:$0xff] %v11825_v15  ;;  %v11833_v37 = vld [vmem:[%s16186_s0 + $0x348] sm:$0xff]   ;;  %v817_v26 = vsel %vm678_vm4, %v17524_v4, 0.0  ;;  %v11872_v4 = vld [vmem:[%s16186_s0 + $0x360] sm:$0xff]   ;;  %17533 = vst [vmem:[#allocation86_spill] sm:$0xff] %v11878_v12 }
  0xb3   :  { %17523 = vst [vmem:[#allocation82_spill] sm:$0xff] %v11833_v37  ;;  %v820_v32 = vsel %vm678_vm4, %v17526_v35, 0.0  ;;  %v698_v34 = vsel %vm678_vm4, %v17527_v45, 0.0  ;;  %v819_v61 = vadd.f32 %v818_v27, %v817_v26  ;;  %v11861_v35 = vld [vmem:[%s16186_s0 + $0x358] sm:$0xff]   ;;  %17532 = vst [vmem:[#allocation85_spill] sm:$0xff] %v11872_v4  ;;  %v824_v26 = vsel %vm678_vm4, %v17535_v9, 0.0 }
  0xb4   :  { %v760_v55 = vadd.f32 %v759_v17, %v758_v49  ;;  %v17528_v17 = vunpack.c.l.bf16 %v11178_v33  ;;  %17530 = vst [vmem:[#allocation84_spill] sm:$0xff] %v11861_v35  ;;  %v17537_v27 = vunpack.c.h.bf16 %v11178_v33  ;;  %v17547_v4 = vunpack.c.l.bf16 %v11375_v2 }
  0xb5   :  { %v821_v59 = vadd.f32 %v820_v32, %v819_v61  ;;  %v17536_v32 = vunpack.c.h.bf16 %v11075_v51  ;;  %v17539_v51 = vunpack.c.h.bf16 %v11272_v5  ;;  %v11919_v5 = vld [vmem:[%s16186_s0 + $0x388] sm:$0xff]  }
  0xb6   :  { %v763_v49 = vsel %vm678_vm4, %v17528_v17, 0.0  ;;  %v762_v45 = vadd.f32 %v761_v62, %v760_v55  ;;  %v822_v17 = vsel %vm678_vm4, %v17531_v47, 0.0  ;;  %v11883_v62 = vld [vmem:[%s16186_s0 + $0x370] sm:$0xff]   ;;  %v699_v55 = vadd.f32 %v698_v34, %v697_v53  ;;  %v11953_v34 = vld [vmem:[%s16186_s0 + $0x3a0] sm:$0xff]  }
  0xb7   :  { %17534 = vst [vmem:[#allocation87_spill] sm:$0xff] %v11883_v62  ;;  %v700_v28 = vsel %vm678_vm4, %v17536_v32, 0.0  ;;  %v765_v37 = vsel %vm678_vm4, %v17537_v27, 0.0  ;;  %v823_v15 = vadd.f32 %v822_v17, %v821_v59  ;;  %v826_v9 = vsel %vm678_vm4, %v17539_v51, 0.0  ;;  %v11912_v17 = vld [vmem:[%s16186_s0 + $0x380] sm:$0xff]  }
  0xb8   :  { %v764_v47 = vadd.f32 %v763_v49, %v762_v45  ;;  %v11901_v49 = vld [vmem:[%s16186_s0 + $0x378] sm:$0xff]   ;;  %v701_v51 = vadd.f32 %v700_v28, %v699_v55  ;;  %v17540_v59 = vunpack.c.l.bf16 %v11080_v52  ;;  %v11934_v28 = vld [vmem:[%s16186_s0 + $0x390] sm:$0xff]   ;;  %v17546_v62 = vunpack.c.h.bf16 %v11366_v40 }
  0xb9   :  { %17538 = vst [vmem:[#allocation88_spill] sm:$0xff] %v11901_v49  ;;  %v825_v27 = vadd.f32 %v824_v26, %v823_v15  ;;  %v767_v15 = vsel %vm678_vm4, %v17541_v21, 0.0  ;;  %v17544_v21 = vunpack.c.h.bf16 %v11187_v38 }
  0xba   :  { %v766_v33 = vadd.f32 %v765_v37, %v764_v47  ;;  %v702_v53 = vsel %vm678_vm4, %v17540_v59, 0.0  ;;  %v17542_v37 = vunpack.c.l.bf16 %v11277_v24  ;;  %v11945_v59 = vld [vmem:[%s16186_s0 + $0x398] sm:$0xff]   ;;  %v887_v12 = vsel %vm678_vm4, %v17546_v62, 0.0 }
  0xbb   :  { %v827_v26 = vadd.f32 %v826_v9, %v825_v27  ;;  %v17543_v27 = vunpack.c.h.bf16 %v11080_v52  ;;  %v703_v45 = vadd.f32 %v702_v53, %v701_v51  ;;  %v769_v47 = vsel %vm678_vm4, %v17544_v21, 0.0  ;;  %v11978_v51 = vld [vmem:[%s16186_s0 + $0x3b0] sm:$0xff]   ;;  %v11989_v21 = vld [vmem:[%s16186_s0 + $0x3b8] sm:$0xff]  }
  0xbc   :  { %v828_v55 = vsel %vm678_vm4, %v17542_v37, 0.0  ;;  %v11958_v37 = vld [vmem:[%s16186_s0 + $0x3a8] sm:$0xff]   ;;  %v768_v9 = vadd.f32 %v767_v15, %v766_v33  ;;  %v17545_v52 = vunpack.c.l.bf16 %v11366_v40  ;;  %v889_v53 = vsel %vm678_vm4, %v17547_v4, 0.0  ;;  %17549 = vst [vmem:[#allocation89_spill] sm:$0xff] %v11989_v21 }
  0xbd   :  { %v704_v32 = vsel %vm678_vm4, %v17543_v27, 0.0  ;;  %v829_v49 = vadd.f32 %v828_v55, %v827_v26  ;;  %v17548_v15 = vunpack.c.h.bf16 %v11277_v24  ;;  %v11997_v24 = vld [vmem:[%s16186_s0 + $0x3c0] sm:$0xff]   ;;  %v17553_v33 = vunpack.c.l.bf16 %v11192_v39 }
  0xbe   :  { %v886_v27 = vsel %vm678_vm4, %v17545_v52, 0.0  ;;  %v17550_v52 = vunpack.c.h.bf16 %v11375_v2  ;;  %17551 = vst [vmem:[#allocation90_spill] sm:$0xff] %v11997_v24  ;;  %v770_v4 = vadd.f32 %v769_v47, %v768_v9 }
  0xbf   :  { %v830_v26 = vsel %vm678_vm4, %v17548_v15, 0.0  ;;  %v888_v40 = vadd.f32 %v887_v12, %v886_v27  ;;  %v705_v12 = vadd.f32 %v704_v32, %v703_v45  ;;  %v17552_v27 = vunpack.c.l.bf16 %v11089_v57 }
  0xc0   :  { %v891_v38 = vsel %vm678_vm4, %v17550_v52, 0.0  ;;  %v771_v2 = vsel %vm678_vm4, %v17553_v33, 0.0  ;;  %v831_v61 = vadd.f32 %v830_v26, %v829_v49  ;;  %v17554_v52 = vunpack.c.l.bf16 %v11380_v60  ;;  %v12020_v49 = vld [vmem:[%s16186_s0 + $0x3c8] sm:$0xff]  }
  0xc1   :  { %v706_v15 = vsel %vm678_vm4, %v17552_v27, 0.0  ;;  %v890_v55 = vadd.f32 %v889_v53, %v888_v40  ;;  %v17555_v32 = vunpack.c.l.bf16 %v11282_v11  ;;  %17556 = vst [vmem:[#allocation91_spill] sm:$0xff] %v12020_v49  ;;  %v17557_v26 = vunpack.c.h.bf16 %v11380_v60  ;;  %v17639_v49 = vld [vmem:[#allocation38_spill] sm:$0xff] }
  0xc2   :  { %v893_v35 = vsel %vm678_vm4, %v17554_v52, 0.0  ;;  %v17559_v33 = vunpack.c.h.bf16 %v11089_v57  ;;  %v17560_v45 = vunpack.c.h.bf16 %v11192_v39 }
  0xc3   :  { %v832_v47 = vsel %vm678_vm4, %v17555_v32, 0.0  ;;  %v892_v9 = vadd.f32 %v891_v38, %v890_v55  ;;  %v895_v27 = vsel %vm678_vm4, %v17557_v26, 0.0  ;;  %v12029_v38 = vld [vmem:[%s16186_s0 + $0x3d0] sm:$0xff]   ;;  %v707_v55 = vadd.f32 %v706_v15, %v705_v12 }
  0xc4   :  { %17558 = vst [vmem:[#allocation92_spill] sm:$0xff] %v12029_v38  ;;  %v772_v32 = vadd.f32 %v771_v2, %v770_v4  ;;  %v708_v53 = vsel %vm678_vm4, %v17559_v33, 0.0  ;;  %v773_v60 = vsel %vm678_vm4, %v17560_v45, 0.0  ;;  %v833_v18 = vadd.f32 %v832_v47, %v831_v61 }
  0xc5   :  { %v894_v40 = vadd.f32 %v893_v35, %v892_v9  ;;  %v17561_v26 = vunpack.c.l.bf16 %v11389_v44  ;;  %v17562_v4 = vunpack.c.h.bf16 %v11282_v11  ;;  %v17563_v15 = vunpack.c.l.bf16 %v11094_v58 }
  0xc6   :  { %v17564_v2 = vunpack.c.h.bf16 %v11389_v44  ;;  %v709_v47 = vadd.f32 %v708_v53, %v707_v55  ;;  %v17565_v9 = vunpack.c.h.bf16 %v11094_v58  ;;  %v774_v33 = vadd.f32 %v773_v60, %v772_v32 }
  0xc7   :  { %v897_v52 = vsel %vm678_vm4, %v17561_v26, 0.0  ;;  %v834_v35 = vsel %vm678_vm4, %v17562_v4, 0.0  ;;  %v896_v57 = vadd.f32 %v895_v27, %v894_v40  ;;  %v710_v61 = vsel %vm678_vm4, %v17563_v15, 0.0 }
  0xc8   :  { %v899_v45 = vsel %vm678_vm4, %v17564_v2, 0.0  ;;  %v712_v11 = vsel %vm678_vm4, %v17565_v9, 0.0  ;;  %v17566_v40 = vunpack.c.l.bf16 %v11103_v63  ;;  %v17567_v4 = vunpack.c.l.bf16 %v11201_v0 }
  0xc9   :  { %v898_v26 = vadd.f32 %v897_v52, %v896_v57  ;;  %v835_v15 = vadd.f32 %v834_v35, %v833_v18  ;;  %v17568_v44 = vunpack.c.l.bf16 %v11394_v56  ;;  %v17569_v53 = vunpack.c.h.bf16 %v11103_v63 }
  0xca   :  { %v714_v27 = vsel %vm678_vm4, %v17566_v40, 0.0  ;;  %v775_v39 = vsel %vm678_vm4, %v17567_v4, 0.0  ;;  %v17570_v55 = vunpack.c.l.bf16 %v11108_v1  ;;  %v17571_v32 = vunpack.c.l.bf16 %v11291_v30 }
  0xcb   :  { %v901_v2 = vsel %vm678_vm4, %v17568_v44, 0.0  ;;  %v716_v58 = vsel %vm678_vm4, %v17569_v53, 0.0  ;;  %v900_v57 = vadd.f32 %v899_v45, %v898_v26  ;;  %v17572_v18 = vunpack.c.h.bf16 %v11108_v1 }
  0xcc   :  { %v12071_v52 = vsel %vm678_vm4, %v17570_v55, 0.0  ;;  %v836_v60 = vsel %vm678_vm4, %v17571_v32, 0.0  ;;  %v17573_v9 = vunpack.c.l.bf16 %v11117_v6  ;;  %v17574_v40 = vunpack.c.h.bf16 %v11201_v0 }
  0xcd   :  { %v12079_v35 = vsel %vm678_vm4, %v17572_v18, 0.0  ;;  %v17575_v44 = vunpack.c.h.bf16 %v11394_v56  ;;  %v711_v55 = vadd.f32 %v710_v61, %v709_v47  ;;  %v776_v45 = vadd.f32 %v775_v39, %v774_v33 }
  0xce   :  { %v12084_v63 = vsel %vm678_vm4, %v17573_v9, 0.0  ;;  %v777_v4 = vsel %vm678_vm4, %v17574_v40, 0.0  ;;  %v902_v26 = vadd.f32 %v901_v2, %v900_v57  ;;  %v17576_v1 = vunpack.c.l.bf16 %v11478_v10 }
  0xcf   :  { %v903_v53 = vsel %vm678_vm4, %v17575_v44, 0.0  ;;  %v837_v18 = vadd.f32 %v836_v60, %v835_v15  ;;  %v17577_v12 = vunpack.c.l.bf16 %v11403_v43  ;;  %v17578_v0 = vunpack.c.h.bf16 %v11478_v10 }
  0xd0   :  { %v955_v32 = vsel %vm678_vm4, %v17576_v1, 0.0  ;;  %v17579_v56 = vunpack.c.l.bf16 %v11487_v7  ;;  %v17580_v39 = vunpack.c.h.bf16 %v11117_v6  ;;  %v17581_v47 = vunpack.c.h.bf16 %v11291_v30 }
  0xd1   :  { %v905_v9 = vsel %vm678_vm4, %v17577_v12, 0.0  ;;  %v956_v40 = vsel %vm678_vm4, %v17578_v0, 0.0  ;;  %v904_v15 = vadd.f32 %v903_v53, %v902_v26  ;;  %v17582_v12 = vunpack.c.l.bf16 %v11122_v8 }
  0xd2   :  { %v958_v44 = vsel %vm678_vm4, %v17579_v56, 0.0  ;;  %v12107_v61 = vsel %vm678_vm4, %v17580_v39, 0.0  ;;  %v838_v33 = vsel %vm678_vm4, %v17581_v47, 0.0  ;;  %v957_v2 = vadd.f32 %v956_v40, %v955_v32 }
  0xd3   :  { %v12115_v10 = vsel %vm678_vm4, %v17582_v12, 0.0  ;;  %v17583_v60 = vunpack.c.h.bf16 %v11122_v8  ;;  %v17584_v6 = vunpack.c.h.bf16 %v11403_v43  ;;  %v17585_v30 = vunpack.c.h.bf16 %v11487_v7 }
  0xd4   :  { %v713_v53 = vadd.f32 %v712_v11, %v711_v55  ;;  %v778_v26 = vadd.f32 %v777_v4, %v776_v45  ;;  %v906_v32 = vadd.f32 %v905_v9, %v904_v15  ;;  %v959_v40 = vadd.f32 %v958_v44, %v957_v2 }
  0xd5   :  { %v12120_v57 = vsel %vm678_vm4, %v17583_v60, 0.0  ;;  %v907_v1 = vsel %vm678_vm4, %v17584_v6, 0.0  ;;  %v960_v0 = vsel %vm678_vm4, %v17585_v30, 0.0  ;;  %v17586_v56 = vunpack.c.l.bf16 %v11131_v13 }
  0xd6   :  { %v17587_v8 = vunpack.c.l.bf16 %v11206_v36  ;;  %v839_v43 = vadd.f32 %v838_v33, %v837_v18  ;;  %v17588_v12 = vunpack.c.l.bf16 %v11492_v23  ;;  %v17589_v60 = vunpack.c.l.bf16 %v11296_v3 }
  0xd7   :  { %v12131_v39 = vsel %vm678_vm4, %v17586_v56, 0.0  ;;  %v908_v4 = vadd.f32 %v907_v1, %v906_v32  ;;  %v17590_v55 = vunpack.c.l.bf16 %v11408_v54  ;;  %v961_v9 = vadd.f32 %v960_v0, %v959_v40 }
  0xd8   :  { %v779_v47 = vsel %vm678_vm4, %v17587_v8, 0.0  ;;  %v962_v7 = vsel %vm678_vm4, %v17588_v12, 0.0  ;;  %v840_v11 = vsel %vm678_vm4, %v17589_v60, 0.0  ;;  %v17591_v44 = vunpack.c.h.bf16 %v11131_v13 }
  0xd9   :  { %v909_v45 = vsel %vm678_vm4, %v17590_v55, 0.0  ;;  %v17592_v18 = vunpack.c.l.bf16 %v11136_v14  ;;  %v17593_v2 = vunpack.c.h.bf16 %v11136_v14  ;;  %v17594_v1 = vunpack.c.h.bf16 %v11492_v23 }
  0xda   :  { %v12148_v15 = vsel %vm678_vm4, %v17591_v44, 0.0  ;;  %v715_v0 = vadd.f32 %v714_v27, %v713_v53  ;;  %v17595_v13 = vunpack.c.l.bf16 %v11145_v20  ;;  %v780_v40 = vadd.f32 %v779_v47, %v778_v26 }
  0xdb   :  { %v12153_v33 = vsel %vm678_vm4, %v17592_v18, 0.0  ;;  %v12158_v6 = vsel %vm678_vm4, %v17593_v2, 0.0  ;;  %v964_v30 = vsel %vm678_vm4, %v17594_v1, 0.0  ;;  %v963_v56 = vadd.f32 %v962_v7, %v961_v9 }
  0xdc   :  { %v12166_v32 = vsel %vm678_vm4, %v17595_v13, 0.0  ;;  %v17596_v8 = vunpack.c.h.bf16 %v11206_v36  ;;  %v841_v14 = vadd.f32 %v840_v11, %v839_v43  ;;  %v910_v60 = vadd.f32 %v909_v45, %v908_v4  ;;  %v17603_v45 = vld [vmem:[#allocation30_spill] sm:$0xff] }
  0xdd   :  { %v17597_v55 = vunpack.c.l.bf16 %v11501_v16  ;;  %v17598_v44 = vunpack.c.h.bf16 %v11145_v20  ;;  %v17599_v53 = vunpack.c.h.bf16 %v11296_v3  ;;  %v17600_v47 = vunpack.c.h.bf16 %v11408_v54 }
  0xde   :  { %v781_v12 = vsel %vm678_vm4, %v17596_v8, 0.0  ;;  %v965_v7 = vadd.f32 %v964_v30, %v963_v56  ;;  %v17601_v43 = vunpack.c.l.bf16 %v11215_v29  ;;  %v17602_v4 = vunpack.c.h.bf16 %v11215_v29  ;;  %v17607_v8 = vld [vmem:[#allocation31_spill] sm:$0xff] }
  0xdf   :  { %v966_v23 = vsel %vm678_vm4, %v17597_v55, 0.0  ;;  %v12177_v27 = vsel %vm678_vm4, %v17598_v44, 0.0  ;;  %v842_v26 = vsel %vm678_vm4, %v17599_v53, 0.0  ;;  %v911_v36 = vsel %vm678_vm4, %v17600_v47, 0.0 }
  0xe0   :  { %v783_v11 = vsel %vm678_vm4, %v17601_v43, 0.0  ;;  %v785_v20 = vsel %vm678_vm4, %v17602_v4, 0.0  ;;  %v17604_v9 = vunpack.c.l.bf16 %v17603_v45  ;;  %v17605_v3 = vunpack.c.h.bf16 %v11501_v16 }
  0xe1   :  { %v717_v54 = vadd.f32 %v716_v58, %v715_v0  ;;  %v782_v1 = vadd.f32 %v781_v12, %v780_v40  ;;  %v17606_v30 = vunpack.c.h.bf16 %v17603_v45  ;;  %v967_v56 = vadd.f32 %v966_v23, %v965_v7  ;;  %v17611_v40 = vld [vmem:[#allocation36_spill] sm:$0xff]  ;;  %v17613_v7 = vld [vmem:[#allocation45_spill] sm:$0xff] }
  0xe2   :  { %v787_v18 = vsel %vm678_vm4, %v17604_v9, 0.0  ;;  %v968_v2 = vsel %vm678_vm4, %v17605_v3, 0.0  ;;  %v17608_v29 = vunpack.c.l.bf16 %v17607_v8  ;;  %v843_v44 = vadd.f32 %v842_v26, %v841_v14  ;;  %v17615_v14 = vld [vmem:[#allocation32_spill] sm:$0xff]  ;;  %v17618_v3 = vld [vmem:[#allocation33_spill] sm:$0xff] }
  0xe3   :  { %v12200_v13 = vsel %vm678_vm4, %v17606_v30, 0.0  ;;  %v912_v53 = vadd.f32 %v911_v36, %v910_v60  ;;  %v17609_v47 = vunpack.c.l.bf16 %v11506_v22  ;;  %v17610_v58 = vunpack.c.h.bf16 %v17607_v8 }
  0xe4   :  { %v12205_v55 = vsel %vm678_vm4, %v17608_v29, 0.0  ;;  %v17612_v12 = vunpack.c.l.bf16 %v17611_v40  ;;  %v17614_v43 = vunpack.c.l.bf16 %v17613_v7  ;;  %v969_v45 = vadd.f32 %v968_v2, %v967_v56 }
  0xe5   :  { %v970_v16 = vsel %vm678_vm4, %v17609_v47, 0.0  ;;  %v12213_v0 = vsel %vm678_vm4, %v17610_v58, 0.0  ;;  %v17616_v60 = vunpack.c.l.bf16 %v17615_v14  ;;  %v17617_v36 = vunpack.c.h.bf16 %v17615_v14  ;;  %v17622_v14 = vld [vmem:[#allocation34_spill] sm:$0xff] }
  0xe6   :  { %v844_v23 = vsel %vm678_vm4, %v17612_v12, 0.0  ;;  %v913_v4 = vsel %vm678_vm4, %v17614_v43, 0.0  ;;  %v17619_v30 = vunpack.c.l.bf16 %v17618_v3  ;;  %v17620_v29 = vunpack.c.h.bf16 %v11506_v22 }
  0xe7   :  { %v12224_v26 = vsel %vm678_vm4, %v17616_v60, 0.0  ;;  %v12229_v9 = vsel %vm678_vm4, %v17617_v36, 0.0  ;;  %v719_v2 = vadd.f32 %v12071_v52, %v717_v54  ;;  %v784_v56 = vadd.f32 %v783_v11, %v782_v1 }
  0xe8   :  { %v12234_v8 = vsel %vm678_vm4, %v17619_v30, 0.0  ;;  %v972_v47 = vsel %vm678_vm4, %v17620_v29, 0.0  ;;  %v17621_v58 = vunpack.c.h.bf16 %v17618_v3  ;;  %v971_v43 = vadd.f32 %v970_v16, %v969_v45 }
  0xe9   :  { %v17623_v60 = vunpack.c.l.bf16 %v17622_v14  ;;  %v845_v30 = vadd.f32 %v844_v23, %v843_v44  ;;  %v914_v21 = vadd.f32 %v913_v4, %v912_v53  ;;  %v17624_v22 = vunpack.c.l.bf16 %v11515_v42  ;;  %v17628_v44 = vld [vmem:[#allocation35_spill] sm:$0xff] }
  0xea   :  { %v12243_v12 = vsel %vm678_vm4, %v17621_v58, 0.0  ;;  %v17625_v52 = vunpack.c.h.bf16 %v17622_v14  ;;  %v17626_v54 = vunpack.c.h.bf16 %v17611_v40  ;;  %v17627_v16 = vunpack.c.h.bf16 %v17613_v7  ;;  %v17632_v14 = vld [vmem:[#allocation37_spill] sm:$0xff] }
  0xeb   :  { %v12248_v36 = vsel %vm678_vm4, %v17623_v60, 0.0  ;;  %v974_v29 = vsel %vm678_vm4, %v17624_v22, 0.0  ;;  %v973_v3 = vadd.f32 %v972_v47, %v971_v43  ;;  %v17629_v53 = vunpack.c.l.bf16 %v17628_v44 }
  0xec   :  { %v12256_v11 = vsel %vm678_vm4, %v17625_v52, 0.0  ;;  %v846_v1 = vsel %vm678_vm4, %v17626_v54, 0.0  ;;  %v915_v45 = vsel %vm678_vm4, %v17627_v16, 0.0  ;;  %v17630_v4 = vunpack.c.h.bf16 %v17628_v44 }
  0xed   :  { %v12267_v23 = vsel %vm678_vm4, %v17629_v53, 0.0  ;;  %v17633_v60 = vunpack.c.l.bf16 %v17632_v14  ;;  %v17634_v22 = vunpack.c.h.bf16 %v11515_v42  ;;  %v721_v47 = vadd.f32 %v12079_v35, %v719_v2 }
  0xee   :  { %v12272_v58 = vsel %vm678_vm4, %v17630_v4, 0.0  ;;  %v786_v43 = vadd.f32 %v785_v20, %v784_v56  ;;  %v17635_v52 = vunpack.c.h.bf16 %v17632_v14  ;;  %v975_v16 = vadd.f32 %v974_v29, %v973_v3  ;;  %v17636_v4 = vld [vmem:[#allocation54_spill] sm:$0xff] }
  0xef   :  { %17631 = vst [vmem:[#allocation30_spill] sm:$0xff] %v12272_v58  ;;  %v848_v40 = vsel %vm678_vm4, %v17633_v60, 0.0  ;;  %v976_v7 = vsel %vm678_vm4, %v17634_v22, 0.0  ;;  %v847_v44 = vadd.f32 %v846_v1, %v845_v30  ;;  %v916_v53 = vadd.f32 %v915_v45, %v914_v21  ;;  %v17641_v20 = vld [vmem:[#allocation46_spill] sm:$0xff] }
  0xf0   :  { %v850_v54 = vsel %vm678_vm4, %v17635_v52, 0.0  ;;  %v17637_v62 = vunpack.c.l.bf16 %v17636_v4  ;;  %v17638_v60 = vunpack.c.l.bf16 %v11594_v19  ;;  %v17640_v22 = vunpack.c.l.bf16 %v17639_v49 }
  0xf1   :  { %v17642_v2 = vunpack.c.l.bf16 %v17641_v20  ;;  %v977_v14 = vadd.f32 %v976_v7, %v975_v16  ;;  %v17643_v30 = vunpack.c.h.bf16 %v11594_v19  ;;  %v17644_v29 = vunpack.c.h.bf16 %v17639_v49 }
  0xf2   :  { %v978_v38 = vsel %vm678_vm4, %v17637_v62, 0.0  ;;  %v1024_v42 = vsel %vm678_vm4, %v17638_v60, 0.0  ;;  %v852_v35 = vsel %vm678_vm4, %v17640_v22, 0.0  ;;  %v17645_v1 = vunpack.c.h.bf16 %v17636_v4 }
  0xf3   :  { %v917_v56 = vsel %vm678_vm4, %v17642_v2, 0.0  ;;  %v1025_v21 = vsel %vm678_vm4, %v17643_v30, 0.0  ;;  %v854_v62 = vsel %vm678_vm4, %v17644_v29, 0.0  ;;  %v17646_v52 = vunpack.c.l.bf16 %v11603_v25  ;;  %v17648_v29 = vld [vmem:[#allocation55_spill] sm:$0xff] }
  0xf4   :  { %v980_v45 = vsel %vm678_vm4, %v17645_v1, 0.0  ;;  %v1026_v3 = vadd.f32 %v1025_v21, %v1024_v42  ;;  %v723_v22 = vadd.f32 %v12084_v63, %v721_v47  ;;  %v788_v7 = vadd.f32 %v787_v18, %v786_v43  ;;  %v17650_v42 = vld [vmem:[#allocation39_spill] sm:$0xff] }
  0xf5   :  { %v1027_v60 = vsel %vm678_vm4, %v17646_v52, 0.0  ;;  %v979_v16 = vadd.f32 %v978_v38, %v977_v14  ;;  %v17647_v19 = vunpack.c.h.bf16 %v11603_v25  ;;  %v849_v49 = vadd.f32 %v848_v40, %v847_v44 }
  0xf6   :  { %v918_v30 = vadd.f32 %v917_v56, %v916_v53  ;;  %v17649_v24 = vunpack.c.l.bf16 %v17648_v29  ;;  %v1028_v1 = vadd.f32 %v1027_v60, %v1026_v3  ;;  %v17651_v21 = vunpack.c.l.bf16 %v17650_v42 }
  0xf7   :  { %v1029_v2 = vsel %vm678_vm4, %v17647_v19, 0.0  ;;  %v17652_v52 = vunpack.c.h.bf16 %v17641_v20  ;;  %v981_v38 = vadd.f32 %v980_v45, %v979_v16  ;;  %v17653_v25 = vunpack.c.l.bf16 %v11612_v50 }
  0xf8   :  { %v982_v4 = vsel %vm678_vm4, %v17649_v24, 0.0  ;;  %v856_v58 = vsel %vm678_vm4, %v17651_v21, 0.0  ;;  %v17654_v40 = vunpack.c.h.bf16 %v17650_v42  ;;  %v17655_v24 = vld [vmem:[#allocation40_spill] sm:$0xff]  ;;  %v17657_v53 = vunpack.c.h.bf16 %v17648_v29 }
  0xf9   :  { %v919_v63 = vsel %vm678_vm4, %v17652_v52, 0.0  ;;  %v1031_v18 = vsel %vm678_vm4, %v17653_v25, 0.0  ;;  %v17656_v43 = vunpack.c.l.bf16 %v17655_v24  ;;  %v1030_v56 = vadd.f32 %v1029_v2, %v1028_v1  ;;  %v17659_v21 = vld [vmem:[#allocation56_spill] sm:$0xff] }
  0xfa   :  { %v12327_v47 = vsel %vm678_vm4, %v17654_v40, 0.0  ;;  %v984_v20 = vsel %vm678_vm4, %v17657_v53, 0.0  ;;  %v725_v14 = vadd.f32 %v12107_v61, %v723_v22  ;;  %v790_v45 = vadd.f32 %v12200_v13, %v788_v7  ;;  %v17662_v61 = vld [vmem:[#allocation47_spill] sm:$0xff] }
  0xfb   :  { %v12332_v44 = vsel %vm678_vm4, %v17656_v43, 0.0  ;;  %v983_v3 = vadd.f32 %v982_v4, %v981_v38  ;;  %v17658_v60 = vunpack.c.h.bf16 %v11612_v50  ;;  %v851_v19 = vadd.f32 %v850_v54, %v849_v49  ;;  %v17664_v50 = vld [vmem:[#allocation64_spill] sm:$0xff]  ;;  %v17666_v49 = vld [vmem:[#allocation41_spill] sm:$0xff] }
  0xfc   :  { %v920_v42 = vadd.f32 %v919_v63, %v918_v30  ;;  %v17660_v52 = vunpack.c.l.bf16 %v17659_v21  ;;  %v1032_v40 = vadd.f32 %v1031_v18, %v1030_v56  ;;  %v17661_v29 = vunpack.c.h.bf16 %v17655_v24 }
  0xfd   :  { %v1033_v16 = vsel %vm678_vm4, %v17658_v60, 0.0  ;;  %v17663_v22 = vunpack.c.l.bf16 %v17662_v61  ;;  %v985_v7 = vadd.f32 %v984_v20, %v983_v3  ;;  %v17665_v4 = vunpack.c.l.bf16 %v17664_v50 }
  0xfe   :  { %v986_v25 = vsel %vm678_vm4, %v17660_v52, 0.0  ;;  %v12348_v2 = vsel %vm678_vm4, %v17661_v29, 0.0  ;;  %v17667_v30 = vunpack.c.l.bf16 %v17666_v49  ;;  %v17668_v63 = vunpack.c.h.bf16 %v17666_v49  ;;  %v17671_v29 = vld [vmem:[#allocation42_spill] sm:$0xff] }
  0xff   :  { %v921_v13 = vsel %vm678_vm4, %v17663_v22, 0.0  ;;  %v1035_v54 = vsel %vm678_vm4, %v17665_v4, 0.0  ;;  %v17669_v18 = vunpack.c.h.bf16 %v17659_v21  ;;  %v1034_v43 = vadd.f32 %v1033_v16, %v1032_v40 }
 0x100   :  { %v12359_v1 = vsel %vm678_vm4, %v17667_v30, 0.0  ;;  %v12364_v38 = vsel %vm678_vm4, %v17668_v63, 0.0  ;;  %v727_v53 = vadd.f32 %v12115_v10, %v725_v14  ;;  %v792_v20 = vadd.f32 %v12205_v55, %v790_v45  ;;  %v17675_v45 = vld [vmem:[#allocation65_spill] sm:$0xff] }
 0x101   :  { %v988_v24 = vsel %vm678_vm4, %v17669_v18, 0.0  ;;  %v987_v56 = vadd.f32 %v986_v25, %v985_v7  ;;  %v17670_v3 = vunpack.c.h.bf16 %v17664_v50  ;;  %v853_v52 = vadd.f32 %v852_v35, %v851_v19  ;;  %v17677_v19 = vld [vmem:[#allocation43_spill] sm:$0xff]  ;;  %v17680_v50 = vld [vmem:[#allocation57_spill] sm:$0xff] }
 0x102   :  { %v17672_v22 = vunpack.c.l.bf16 %v17671_v29  ;;  %v922_v49 = vadd.f32 %v921_v13, %v920_v42  ;;  %v1036_v21 = vadd.f32 %v1035_v54, %v1034_v43  ;;  %v17673_v30 = vunpack.c.h.bf16 %v17671_v29  ;;  %v17682_v43 = vld [vmem:[#allocation44_spill] sm:$0xff] }
 0x103   :  { %v1037_v60 = vsel %vm678_vm4, %v17670_v3, 0.0  ;;  %v17674_v10 = vunpack.c.h.bf16 %v17662_v61  ;;  %v989_v14 = vadd.f32 %v988_v24, %v987_v56  ;;  %v17676_v25 = vunpack.c.l.bf16 %v17675_v45 }
 0x104   :  { %v12377_v4 = vsel %vm678_vm4, %v17672_v22, 0.0  ;;  %v12382_v16 = vsel %vm678_vm4, %v17673_v30, 0.0  ;;  %v17678_v40 = vunpack.c.l.bf16 %v17677_v19  ;;  %v17679_v42 = vunpack.c.h.bf16 %v17677_v19 }
 0x105   :  { %v923_v55 = vsel %vm678_vm4, %v17674_v10, 0.0  ;;  %v1039_v35 = vsel %vm678_vm4, %v17676_v25, 0.0  ;;  %v17681_v54 = vunpack.c.l.bf16 %v17680_v50  ;;  %v1038_v63 = vadd.f32 %v1037_v60, %v1036_v21 }
 0x106   :  { %v12393_v7 = vsel %vm678_vm4, %v17678_v40, 0.0  ;;  %v12398_v13 = vsel %vm678_vm4, %v17679_v42, 0.0  ;;  %v729_v18 = vadd.f32 %v12120_v57, %v727_v53  ;;  %v794_v24 = vadd.f32 %v12213_v0, %v792_v20  ;;  %v17686_v57 = vld [vmem:[#allocation48_spill] sm:$0xff] }
 0x107   :  { %v990_v61 = vsel %vm678_vm4, %v17681_v54, 0.0  ;;  %v17683_v56 = vunpack.c.l.bf16 %v17682_v43  ;;  %v17684_v29 = vunpack.c.h.bf16 %v17675_v45  ;;  %v855_v30 = vadd.f32 %v854_v62, %v853_v52  ;;  %v17689_v45 = vld [vmem:[#allocation66_spill] sm:$0xff]  ;;  %v17691_v52 = vld [vmem:[#allocation49_spill] sm:$0xff] }
 0x108   :  { %v17685_v10 = vunpack.c.h.bf16 %v17682_v43  ;;  %v924_v60 = vadd.f32 %v923_v55, %v922_v49  ;;  %v1040_v21 = vadd.f32 %v1039_v35, %v1038_v63  ;;  %v17687_v53 = vunpack.c.l.bf16 %v17686_v57 }
 0x109   :  { %v12408_v3 = vsel %vm678_vm4, %v17683_v56, 0.0  ;;  %v1041_v22 = vsel %vm678_vm4, %v17684_v29, 0.0  ;;  %v17688_v20 = vunpack.c.h.bf16 %v17686_v57  ;;  %v991_v40 = vadd.f32 %v990_v61, %v989_v14  ;;  %v17695_v61 = vld [vmem:[#allocation50_spill] sm:$0xff] }
 0x10a   :  { %v12416_v25 = vsel %vm678_vm4, %v17685_v10, 0.0  ;;  %v925_v0 = vsel %vm678_vm4, %v17687_v53, 0.0  ;;  %v17690_v42 = vunpack.c.l.bf16 %v17689_v45  ;;  %v17692_v54 = vunpack.c.l.bf16 %v17691_v52 }
 0x10b   :  { %v927_v19 = vsel %vm678_vm4, %v17688_v20, 0.0  ;;  %v17693_v49 = vunpack.c.h.bf16 %v17691_v52  ;;  %v17694_v35 = vunpack.c.h.bf16 %v17680_v50  ;;  %v1042_v56 = vadd.f32 %v1041_v22, %v1040_v21 }
 0x10c   :  { %v1043_v62 = vsel %vm678_vm4, %v17690_v42, 0.0  ;;  %v929_v43 = vsel %vm678_vm4, %v17692_v54, 0.0  ;;  %v731_v29 = vadd.f32 %v12131_v39, %v729_v18  ;;  %v796_v14 = vadd.f32 %v12224_v26, %v794_v24 }
 0x10d   :  { %v931_v55 = vsel %vm678_vm4, %v17693_v49, 0.0  ;;  %v992_v63 = vsel %vm678_vm4, %v17694_v35, 0.0  ;;  %v17696_v10 = vunpack.c.l.bf16 %v17695_v61  ;;  %v17697_v53 = vunpack.c.h.bf16 %v17689_v45 }
 0x10e   :  { %v857_v42 = vadd.f32 %v856_v58, %v855_v30  ;;  %v926_v52 = vadd.f32 %v925_v0, %v924_v60  ;;  %v17698_v50 = vunpack.c.h.bf16 %v17695_v61  ;;  %v1044_v22 = vadd.f32 %v1043_v62, %v1042_v56  ;;  %v17702_v30 = vld [vmem:[#allocation58_spill] sm:$0xff]  ;;  %v17704_v62 = vld [vmem:[#allocation76_spill] sm:$0xff] }
 0x10f   :  { %v12441_v57 = vsel %vm678_vm4, %v17696_v10, 0.0  ;;  %v1045_v20 = vsel %vm678_vm4, %v17697_v53, 0.0  ;;  %v993_v39 = vadd.f32 %v992_v63, %v991_v40  ;;  %v17699_v26 = vunpack.c.l.bf16 %v11652_v31 }
 0x110   :  { %v12449_v54 = vsel %vm678_vm4, %v17698_v50, 0.0  ;;  %v17700_v24 = vunpack.c.l.bf16 %v11748_v48  ;;  %v17701_v45 = vunpack.c.h.bf16 %v11748_v48  ;;  %v17703_v60 = vunpack.c.l.bf16 %v17702_v30 }
 0x111   :  { %v1047_v18 = vsel %vm678_vm4, %v17699_v26, 0.0  ;;  %v1046_v49 = vadd.f32 %v1045_v20, %v1044_v22  ;;  %v17705_v40 = vunpack.c.l.bf16 %v17704_v62  ;;  %v733_v56 = vadd.f32 %v12148_v15, %v731_v29  ;;  %v17708_v20 = vld [vmem:[#allocation51_spill] sm:$0xff] }
 0x112   :  { %v1093_v21 = vsel %vm678_vm4, %v17700_v24, 0.0  ;;  %v1094_v58 = vsel %vm678_vm4, %v17701_v45, 0.0  ;;  %v994_v0 = vsel %vm678_vm4, %v17703_v60, 0.0  ;;  %v798_v61 = vadd.f32 %v12229_v9, %v796_v14  ;;  %v17710_v9 = vld [vmem:[#allocation67_spill] sm:$0xff] }
 0x113   :  { %v1095_v35 = vadd.f32 %v1094_v58, %v1093_v21  ;;  %v1096_v63 = vsel %vm678_vm4, %v17705_v40, 0.0  ;;  %v17706_v10 = vunpack.c.h.bf16 %v11652_v31  ;;  %v17707_v53 = vunpack.c.h.bf16 %v17704_v62 }
 0x114   :  { %v859_v26 = vadd.f32 %v12327_v47, %v857_v42  ;;  %v17709_v22 = vunpack.c.l.bf16 %v17708_v20  ;;  %v1048_v21 = vadd.f32 %v1047_v18, %v1046_v49  ;;  %v928_v15 = vadd.f32 %v927_v19, %v926_v52 }
 0x115   :  { %v1049_v48 = vsel %vm678_vm4, %v17706_v10, 0.0  ;;  %v1098_v50 = vsel %vm678_vm4, %v17707_v53, 0.0  ;;  %v1097_v45 = vadd.f32 %v1096_v63, %v1095_v35  ;;  %v995_v29 = vadd.f32 %v994_v0, %v993_v39  ;;  %v17717_v53 = vld [vmem:[#allocation52_spill] sm:$0xff] }
 0x116   :  { %v12478_v24 = vsel %vm678_vm4, %v17709_v22, 0.0  ;;  %v17711_v14 = vunpack.c.l.bf16 %v17710_v9  ;;  %v17712_v58 = vunpack.c.l.bf16 %v11768_v41  ;;  %v17713_v62 = vunpack.c.h.bf16 %v17708_v20 }
 0x117   :  { %v17714_v42 = vunpack.c.h.bf16 %v17702_v30  ;;  %v1050_v49 = vadd.f32 %v1049_v48, %v1048_v21  ;;  %v1099_v19 = vadd.f32 %v1098_v50, %v1097_v45  ;;  %v735_v52 = vadd.f32 %v12153_v33, %v733_v56 }
 0x118   :  { %v1051_v31 = vsel %vm678_vm4, %v17711_v14, 0.0  ;;  %v1100_v60 = vsel %vm678_vm4, %v17712_v58, 0.0  ;;  %v12489_v47 = vsel %vm678_vm4, %v17713_v62, 0.0  ;;  %v800_v39 = vadd.f32 %v12234_v8, %v798_v61  ;;  %v17719_v8 = vld [vmem:[#allocation68_spill] sm:$0xff] }
 0x119   :  { %v996_v18 = vsel %vm678_vm4, %v17714_v42, 0.0  ;;  %v17715_v0 = vunpack.c.h.bf16 %v17710_v9  ;;  %v17716_v40 = vunpack.c.h.bf16 %v11768_v41  ;;  %v861_v10 = vadd.f32 %v12332_v44, %v859_v26  ;;  %v17723_v26 = vld [vmem:[#allocation59_spill] sm:$0xff] }
 0x11a   :  { %v17718_v30 = vunpack.c.l.bf16 %v17717_v53  ;;  %v1052_v48 = vadd.f32 %v1051_v31, %v1050_v49  ;;  %v1101_v50 = vadd.f32 %v1100_v60, %v1099_v19  ;;  %v930_v33 = vadd.f32 %v929_v43, %v928_v15  ;;  %v17727_v49 = vld [vmem:[#allocation53_spill] sm:$0xff] }
 0x11b   :  { %v1053_v35 = vsel %vm678_vm4, %v17715_v0, 0.0  ;;  %v1102_v63 = vsel %vm678_vm4, %v17716_v40, 0.0  ;;  %v997_v56 = vadd.f32 %v996_v18, %v995_v29  ;;  %v17720_v61 = vunpack.c.l.bf16 %v17719_v8 }
 0x11c   :  { %v12506_v20 = vsel %vm678_vm4, %v17718_v30, 0.0  ;;  %v17721_v21 = vunpack.c.l.bf16 %v11779_v46  ;;  %v17722_v45 = vunpack.c.h.bf16 %v17717_v53  ;;  %v17724_v9 = vunpack.c.l.bf16 %v17723_v26  ;;  %v17731_v53 = vld [vmem:[#allocation77_spill] sm:$0xff] }
 0x11d   :  { %v1055_v22 = vsel %vm678_vm4, %v17720_v61, 0.0  ;;  %v1054_v31 = vadd.f32 %v1053_v35, %v1052_v48  ;;  %v1103_v43 = vadd.f32 %v1102_v63, %v1101_v50  ;;  %v737_v15 = vadd.f32 %v12158_v6, %v735_v52 }
 0x11e   :  { %v1104_v41 = vsel %vm678_vm4, %v17721_v21, 0.0  ;;  %v12517_v44 = vsel %vm678_vm4, %v17722_v45, 0.0  ;;  %v998_v14 = vsel %vm678_vm4, %v17724_v9, 0.0  ;;  %v802_v29 = vadd.f32 %v12243_v12, %v800_v39  ;;  %v17729_v12 = vld [vmem:[#allocation69_spill] sm:$0xff] }
 0x11f   :  { %v17725_v58 = vunpack.c.h.bf16 %v17719_v8  ;;  %v17726_v62 = vunpack.c.h.bf16 %v11779_v46  ;;  %v863_v18 = vadd.f32 %v12348_v2, %v861_v10  ;;  %v17728_v19 = vunpack.c.l.bf16 %v17727_v49 }
 0x120   :  { %v1056_v35 = vadd.f32 %v1055_v22, %v1054_v31  ;;  %v1105_v40 = vadd.f32 %v1104_v41, %v1103_v43  ;;  %v932_v6 = vadd.f32 %v931_v55, %v930_v33  ;;  %v999_v52 = vadd.f32 %v998_v14, %v997_v56 }
 0x121   :  { %v1057_v60 = vsel %vm678_vm4, %v17725_v58, 0.0  ;;  %v1106_v42 = vsel %vm678_vm4, %v17726_v62, 0.0  ;;  %v12534_v0 = vsel %vm678_vm4, %v17728_v19, 0.0  ;;  %v17730_v39 = vunpack.c.l.bf16 %v17729_v12 }
 0x122   :  { %v17732_v30 = vunpack.c.l.bf16 %v17731_v53  ;;  %v17733_v48 = vunpack.c.h.bf16 %v17727_v49  ;;  %v17734_v10 = vunpack.c.h.bf16 %v17723_v26  ;;  %v1058_v8 = vadd.f32 %v1057_v60, %v1056_v35  ;;  %v17737_v26 = vld [vmem:[#allocation60_spill] sm:$0xff]  ;;  %v17741_v60 = vld [vmem:[#allocation78_spill] sm:$0xff] }
 0x123   :  { %v1059_v63 = vsel %vm678_vm4, %v17730_v39, 0.0  ;;  %v1107_v55 = vadd.f32 %v1106_v42, %v1105_v40  ;;  %v739_v33 = vadd.f32 %v12166_v32, %v737_v15  ;;  %v12552_v56 = vadd.f32 %v12248_v36, %v802_v29  ;;  %v17739_v15 = vld [vmem:[#allocation70_spill] sm:$0xff] }
 0x124   :  { %v1108_v46 = vsel %vm678_vm4, %v17732_v30, 0.0  ;;  %v12545_v2 = vsel %vm678_vm4, %v17733_v48, 0.0  ;;  %v1000_v50 = vsel %vm678_vm4, %v17734_v10, 0.0  ;;  %v17735_v61 = vunpack.c.h.bf16 %v17729_v12 }
 0x125   :  { %v17736_v21 = vunpack.c.h.bf16 %v17731_v53  ;;  %v865_v45 = vadd.f32 %v12359_v1, %v863_v18  ;;  %v17738_v9 = vunpack.c.l.bf16 %v17737_v26  ;;  %v1060_v31 = vadd.f32 %v1059_v63, %v1058_v8 }
 0x126   :  { %v1061_v22 = vsel %vm678_vm4, %v17735_v61, 0.0  ;;  %v1109_v43 = vadd.f32 %v1108_v46, %v1107_v55  ;;  %v934_v32 = vadd.f32 %v12441_v57, %v932_v6  ;;  %v1001_v36 = vadd.f32 %v1000_v50, %v999_v52  ;;  %v17750_v55 = vld [vmem:[#allocation71_spill] sm:$0xff] }
 0x127   :  { %v1110_v41 = vsel %vm678_vm4, %v17736_v21, 0.0  ;;  %v1002_v14 = vsel %vm678_vm4, %v17738_v9, 0.0  ;;  %v17740_v29 = vunpack.c.l.bf16 %v17739_v15  ;;  %v17742_v62 = vunpack.c.l.bf16 %v17741_v60  ;;  %v17752_v21 = vld [vmem:[#allocation79_spill] sm:$0xff] }
 0x128   :  { %v1062_v49 = vadd.f32 %v1061_v22, %v1060_v31  ;;  %v1111_v19 = vadd.f32 %v1110_v41, %v1109_v43  ;;  %v17743_v1 = vunpack.c.l.bf16 %v11912_v17  ;;  %v17744_v35 = vunpack.c.h.bf16 %v11912_v17 }
 0x129   :  { %v1063_v58 = vsel %vm678_vm4, %v17740_v29, 0.0  ;;  %v1112_v42 = vsel %vm678_vm4, %v17742_v62, 0.0  ;;  %v17745_v57 = vunpack.c.h.bf16 %v17739_v15  ;;  %v17746_v52 = vunpack.c.h.bf16 %v17741_v60 }
 0x12a   :  { %v1162_v18 = vsel %vm678_vm4, %v17743_v1, 0.0  ;;  %v1163_v40 = vsel %vm678_vm4, %v17744_v35, 0.0  ;;  %v17747_v63 = vunpack.c.l.bf16 %v11919_v5  ;;  %v867_v30 = vadd.f32 %v12364_v38, %v865_v45 }
 0x12b   :  { %v1065_v6 = vsel %vm678_vm4, %v17745_v57, 0.0  ;;  %v1114_v12 = vsel %vm678_vm4, %v17746_v52, 0.0  ;;  %v1164_v39 = vadd.f32 %v1163_v40, %v1162_v18  ;;  %v1064_v46 = vadd.f32 %v1063_v58, %v1062_v49  ;;  %v17758_v18 = vld [vmem:[#allocation61_spill] sm:$0xff] }
 0x12c   :  { %v1165_v53 = vsel %vm678_vm4, %v17747_v63, 0.0  ;;  %v1113_v48 = vadd.f32 %v1112_v42, %v1111_v19  ;;  %v17748_v17 = vunpack.c.h.bf16 %v11919_v5  ;;  %v17749_v50 = vunpack.c.h.bf16 %v17737_v26 }
 0x12d   :  { %v17751_v61 = vunpack.c.l.bf16 %v17750_v55  ;;  %v17753_v41 = vunpack.c.l.bf16 %v17752_v21  ;;  %v1166_v31 = vadd.f32 %v1165_v53, %v1164_v39  ;;  %v1003_v38 = vadd.f32 %v1002_v14, %v1001_v36 }
 0x12e   :  { %v1167_v10 = vsel %vm678_vm4, %v17748_v17, 0.0  ;;  %v1004_v8 = vsel %vm678_vm4, %v17749_v50, 0.0  ;;  %v1066_v45 = vadd.f32 %v1065_v6, %v1064_v46  ;;  %v1115_v43 = vadd.f32 %v1114_v12, %v1113_v48  ;;  %v17762_v6 = vld [vmem:[#allocation80_spill] sm:$0xff] }
 0x12f   :  { %v1067_v22 = vsel %vm678_vm4, %v17751_v61, 0.0  ;;  %v1116_v9 = vsel %vm678_vm4, %v17753_v41, 0.0  ;;  %v17754_v5 = vunpack.c.l.bf16 %v11934_v28  ;;  %v936_v26 = vadd.f32 %v12449_v54, %v934_v32  ;;  %v17760_v32 = vld [vmem:[#allocation72_spill] sm:$0xff] }
 0x130   :  { %v17755_v29 = vunpack.c.h.bf16 %v17750_v55  ;;  %v17756_v60 = vunpack.c.h.bf16 %v17752_v21  ;;  %v1168_v42 = vadd.f32 %v1167_v10, %v1166_v31  ;;  %v869_v49 = vadd.f32 %v12377_v4, %v867_v30 }
 0x131   :  { %v1169_v15 = vsel %vm678_vm4, %v17754_v5, 0.0  ;;  %v1068_v14 = vadd.f32 %v1067_v22, %v1066_v45  ;;  %v1117_v36 = vadd.f32 %v1116_v9, %v1115_v43  ;;  %v17757_v19 = vunpack.c.h.bf16 %v11934_v28  ;;  %v17770_v45 = vld [vmem:[#allocation81_spill] sm:$0xff] }
 0x132   :  { %v1069_v58 = vsel %vm678_vm4, %v17755_v29, 0.0  ;;  %v1118_v62 = vsel %vm678_vm4, %v17756_v60, 0.0  ;;  %v17759_v35 = vunpack.c.l.bf16 %v17758_v18  ;;  %v17761_v40 = vunpack.c.l.bf16 %v17760_v32 }
 0x133   :  { %v1171_v1 = vsel %vm678_vm4, %v17757_v19, 0.0  ;;  %v17763_v52 = vunpack.c.l.bf16 %v17762_v6  ;;  %v1170_v39 = vadd.f32 %v1169_v15, %v1168_v42  ;;  %v1005_v4 = vadd.f32 %v1004_v8, %v1003_v38 }
 0x134   :  { %v1006_v54 = vsel %vm678_vm4, %v17759_v35, 0.0  ;;  %v1071_v57 = vsel %vm678_vm4, %v17761_v40, 0.0  ;;  %v1070_v63 = vadd.f32 %v1069_v58, %v1068_v14  ;;  %v1119_v53 = vadd.f32 %v1118_v62, %v1117_v36 }
 0x135   :  { %v1120_v12 = vsel %vm678_vm4, %v17763_v52, 0.0  ;;  %v17764_v28 = vunpack.c.l.bf16 %v11945_v59  ;;  %v938_v46 = vadd.f32 %v12478_v24, %v936_v26  ;;  %v17765_v48 = vunpack.c.h.bf16 %v17760_v32  ;;  %v17768_v24 = vld [vmem:[#allocation73_spill] sm:$0xff] }
 0x136   :  { %v17766_v10 = vunpack.c.h.bf16 %v17762_v6  ;;  %v1172_v55 = vadd.f32 %v1171_v1, %v1170_v39  ;;  %v871_v61 = vadd.f32 %v12382_v16, %v869_v49  ;;  %v1072_v8 = vadd.f32 %v1071_v57, %v1070_v63  ;;  %v17780_v39 = vld [vmem:[#allocation62_spill] sm:$0xff] }
 0x137   :  { %v1173_v30 = vsel %vm678_vm4, %v17764_v28, 0.0  ;;  %v1073_v17 = vsel %vm678_vm4, %v17765_v48, 0.0  ;;  %v1121_v22 = vadd.f32 %v1120_v12, %v1119_v53  ;;  %v17767_v21 = vunpack.c.h.bf16 %v11945_v59 }
 0x138   :  { %v1122_v50 = vsel %vm678_vm4, %v17766_v10, 0.0  ;;  %v741_v9 = vadd.f32 %v12177_v27, %v739_v33  ;;  %v17769_v31 = vunpack.c.l.bf16 %v17768_v24  ;;  %v17771_v43 = vunpack.c.l.bf16 %v17770_v45 }
 0x139   :  { %v1175_v41 = vsel %vm678_vm4, %v17767_v21, 0.0  ;;  %v1174_v15 = vadd.f32 %v1173_v30, %v1172_v55  ;;  %v1007_v26 = vadd.f32 %v1006_v54, %v1005_v4  ;;  %v1074_v29 = vadd.f32 %v1073_v17, %v1072_v8 }
 0x13a   :  { %v1075_v38 = vsel %vm678_vm4, %v17769_v31, 0.0  ;;  %v1124_v5 = vsel %vm678_vm4, %v17771_v43, 0.0  ;;  %v1123_v16 = vadd.f32 %v1122_v50, %v1121_v22  ;;  %v17772_v58 = vunpack.c.l.bf16 %v11953_v34 }
 0x13b   :  { %v940_v60 = vadd.f32 %v12489_v47, %v938_v46  ;;  %v17773_v27 = vunpack.c.h.bf16 %v17758_v18  ;;  %v17774_v62 = vunpack.c.h.bf16 %v17770_v45  ;;  %v1176_v49 = vadd.f32 %v1175_v41, %v1174_v15  ;;  %v17776_v18 = vld [vmem:[#allocation82_spill] sm:$0xff] }
 0x13c   :  { %v1177_v59 = vsel %vm678_vm4, %v17772_v58, 0.0  ;;  %v806_v14 = vadd.f32 %v12256_v11, %v12552_v56  ;;  %v873_v36 = vadd.f32 %v12393_v7, %v871_v61  ;;  %v1125_v19 = vadd.f32 %v1124_v5, %v1123_v16  ;;  %v17784_v61 = vld [vmem:[#allocation83_spill] sm:$0xff] }
 0x13d   :  { %v1008_v33 = vsel %vm678_vm4, %v17773_v27, 0.0  ;;  %v1126_v42 = vsel %vm678_vm4, %v17774_v62, 0.0  ;;  %v17775_v1 = vunpack.c.h.bf16 %v11953_v34  ;;  %v742_v47 = vrot.slane %v741_v9, 4 }
 0x13e   :  { %v1076_v54 = vadd.f32 %v1075_v38, %v1074_v29  ;;  %v17777_v32 = vunpack.c.l.bf16 %v17776_v18  ;;  %v1178_v57 = vadd.f32 %v1177_v59, %v1176_v49  ;;  %v1009_v6 = vadd.f32 %v1008_v33, %v1007_v26  ;;  %v17791_v29 = vld [vmem:[#allocation30_spill] sm:$0xff]  ;;  %v17793_v33 = vld [vmem:[#allocation63_spill] sm:$0xff]  ;;  %v17795_v49 = vld [vmem:[#allocation84_spill] sm:$0xff] }
 0x13f   :  { %v1179_v35 = vsel %vm678_vm4, %v17775_v1, 0.0  ;;  %v17778_v52 = vunpack.c.h.bf16 %v17768_v24  ;;  %v1127_v11 = vadd.f32 %v1126_v42, %v1125_v19  ;;  %v17779_v7 = vunpack.c.l.bf16 %v11958_v37  ;;  %v17786_v24 = vld [vmem:[#allocation74_spill] sm:$0xff] }
 0x140   :  { %v1128_v40 = vsel %vm678_vm4, %v17777_v32, 0.0  ;;  %v942_v34 = vadd.f32 %v12506_v20, %v940_v60  ;;  %v17781_v4 = vunpack.c.l.bf16 %v17780_v39  ;;  %v17782_v53 = vunpack.c.h.bf16 %v17776_v18 }
 0x141   :  { %v1077_v12 = vsel %vm678_vm4, %v17778_v52, 0.0  ;;  %v1181_v56 = vsel %vm678_vm4, %v17779_v7, 0.0  ;;  %v1180_v30 = vadd.f32 %v1179_v35, %v1178_v57  ;;  %v808_v46 = vadd.f32 %v12267_v23, %v806_v14 }
 0x142   :  { %v1010_v63 = vsel %vm678_vm4, %v17781_v4, 0.0  ;;  %v1130_v28 = vsel %vm678_vm4, %v17782_v53, 0.0  ;;  %v875_v48 = vadd.f32 %v12398_v13, %v873_v36  ;;  %v1129_v17 = vadd.f32 %v1128_v40, %v1127_v11 }
 0x143   :  { %v17783_v10 = vunpack.c.h.bf16 %v11958_v37  ;;  %v12680_v55 = vadd.f32 %v742_v47, %v741_v9  ;;  %v1078_v20 = vadd.f32 %v1077_v12, %v1076_v54  ;;  %v17785_v8 = vunpack.c.l.bf16 %v17784_v61  ;;  %v17798_v54 = vld [vmem:[#allocation89_spill] sm:$0xff] }
 0x144   :  { %v1182_v21 = vadd.f32 %v1181_v56, %v1180_v30  ;;  %v1011_v41 = vadd.f32 %v1010_v63, %v1009_v6  ;;  %v17787_v31 = vunpack.c.l.bf16 %v17786_v24  ;;  %v1131_v38 = vadd.f32 %v1130_v28, %v1129_v17  ;;  %v17803_v63 = vld [vmem:[#allocation85_spill] sm:$0xff]  ;;  %v10530_v30 = vld [vmem:[#allocation5 + $0x8] sm:$0xff] }
 0x145   :  { %v1183_v50 = vsel %vm678_vm4, %v17783_v10, 0.0  ;;  %v1132_v22 = vsel %vm678_vm4, %v17785_v8, 0.0  ;;  %v17788_v13 = vunpack.c.l.bf16 %v11978_v51  ;;  %v944_v45 = vadd.f32 %v12517_v44, %v942_v34  ;;  %v17805_v17 = vld [vmem:[#allocation75_spill] sm:$0xff] }
 0x146   :  { %v1079_v23 = vsel %vm678_vm4, %v17787_v31, 0.0  ;;  %v17789_v9 = vunpack.c.h.bf16 %v17780_v39  ;;  %v17790_v5 = vunpack.c.h.bf16 %v17784_v61  ;;  %v1184_v26 = vadd.f32 %v1183_v50, %v1182_v21 }
 0x147   :  { %v1185_v37 = vsel %vm678_vm4, %v17788_v13, 0.0  ;;  %v810_v16 = vadd.f32 %v17791_v29, %v808_v46  ;;  %v877_v58 = vadd.f32 %v12408_v3, %v875_v48  ;;  %v1133_v59 = vadd.f32 %v1132_v22, %v1131_v38  ;;  %v12735_v22 = vpop.f32.mrf.mxu0  ;;  %v12737_v21 = vpop.f32.mrf.mxu1  ;;  %v17810_v38 = vld [vmem:[#allocation28_spill] sm:$0xff]  ;;  %v17812_v29 = vld [vmem:[#allocation86_spill] sm:$0xff] }
 0x148   :  { %v1012_v43 = vsel %vm678_vm4, %v17789_v9, 0.0  ;;  %v1134_v15 = vsel %vm678_vm4, %v17790_v5, 0.0  ;;  %v17792_v60 = vunpack.c.h.bf16 %v11978_v51  ;;  %v17794_v44 = vunpack.c.l.bf16 %v17793_v33 }
 0x149   :  { %v1080_v42 = vadd.f32 %v1079_v23, %v1078_v20  ;;  %v17796_v14 = vunpack.c.l.bf16 %v17795_v49  ;;  %v1186_v19 = vadd.f32 %v1185_v37, %v1184_v26  ;;  %v1013_v1 = vadd.f32 %v1012_v43, %v1011_v41  ;;  %v12751_v26 = vpop.f32.mrf.mxu1 }
 0x14a   :  { %v1187_v27 = vsel %vm678_vm4, %v17792_v60, 0.0  ;;  %v1014_v62 = vsel %vm678_vm4, %v17794_v44, 0.0  ;;  %v17797_v35 = vunpack.c.h.bf16 %v17786_v24  ;;  %v1135_v47 = vadd.f32 %v1134_v15, %v1133_v59  ;;  %v12749_v15 = vpop.f32.mrf.mxu0 }
 0x14b   :  { %v1136_v36 = vsel %vm678_vm4, %v17796_v14, 0.0  ;;  %v17799_v51 = vunpack.c.l.bf16 %v17798_v54  ;;  %v946_v32 = vadd.f32 %v12534_v0, %v944_v45  ;;  %v17800_v40 = vunpack.c.h.bf16 %v17793_v33 }
 0x14c   :  { %v1081_v3 = vsel %vm678_vm4, %v17797_v35, 0.0  ;;  %v17801_v6 = vunpack.c.h.bf16 %v17795_v49  ;;  %v1188_v12 = vadd.f32 %v1187_v27, %v1186_v19  ;;  %v811_v11 = vrot.slane %v810_v16, 4  ;;  %v1404_v19 = vpop.f32.mrf.mxu1 }
 0x14d   :  { %v1189_v18 = vsel %vm678_vm4, %v17799_v51, 0.0  ;;  %v1016_v57 = vsel %vm678_vm4, %v17800_v40, 0.0  ;;  %v879_v7 = vadd.f32 %v12416_v25, %v877_v58  ;;  %v1137_v56 = vadd.f32 %v1136_v36, %v1135_v47  ;;  %v17807_v25 = vld [vmem:[#allocation90_spill] sm:$0xff]  ;;  %v1363_v36 = vpop.f32.mrf.mxu0 }
 0x14e   :  { %v1138_v52 = vsel %vm678_vm4, %v17801_v6, 0.0  ;;  %v17802_v34 = vunpack.c.h.bf16 %v17798_v54  ;;  %v1082_v4 = vadd.f32 %v1081_v3, %v1080_v42  ;;  %v17804_v0 = vunpack.c.l.bf16 %v17803_v63  ;;  %v17815_v42 = vld [vmem:[#allocation91_spill] sm:$0xff]  ;;  %v10178_v3 = vld [vmem:[%s16186_s0 + $0x3d8] sm:$0xff]  }
 0x14f   :  { %v1190_v28 = vadd.f32 %v1189_v18, %v1188_v12  ;;  %v1539_v46 = vcombine.high %v10530_v30, %v10530_v30  ;;  %v1015_v48 = vadd.f32 %v1014_v62, %v1013_v1  ;;  %v17806_v10 = vunpack.c.l.bf16 %v17805_v17  ;;  %v17817_v1 = vld [vmem:[#allocation92_spill] sm:$0xff]  ;;  %v1364_v12 = vpop.f32.mrf.mxu0 }
 0x150   :  { %v1191_v39 = vsel %vm678_vm4, %v17802_v34, 0.0  ;;  %v1140_v53 = vsel %vm678_vm4, %v17804_v0, 0.0  ;;  %v1139_v20 = vadd.f32 %v1138_v52, %v1137_v56  ;;  %v17808_v61 = vunpack.c.l.bf16 %v17807_v25 }
 0x151   :  { %v1083_v50 = vsel %vm678_vm4, %v17806_v10, 0.0  ;;  %v948_v41 = vadd.f32 %v12545_v2, %v946_v32  ;;  %v17809_v24 = vunpack.c.h.bf16 %v17803_v63  ;;  %v1192_v23 = vadd.f32 %v1191_v39, %v1190_v28  ;;  %v17820_v39 = vld [vmem:[#allocation87_spill] sm:$0xff] }
 0x152   :  { %v1193_v8 = vsel %vm678_vm4, %v17808_v61, 0.0  ;;  %v12744_v13 = vrot.slane %v1539_v46, %v17810_v38  ;;  %v812_v37 = vadd.f32 %v811_v11, %v810_v16  ;;  %v880_v45 = vrot.slane %v879_v7, 4  ;;  %v1405_v11 = vpop.f32.mrf.mxu1 }
 0x153   :  { %v1142_v31 = vsel %vm678_vm4, %v17809_v24, 0.0  ;;  %v1141_v9 = vadd.f32 %v1140_v53, %v1139_v20  ;;  %v17811_v43 = vunpack.c.h.bf16 %v17807_v25  ;;  %v1084_v2 = vadd.f32 %v1083_v50, %v1082_v4  ;;  %v10179_v50 = vld [vmem:[%s16186_s0 + $0x3e0] sm:$0xff]   ;;  %v10181_v11 = vld [vmem:[%s16186_s0 + $0x3f0] sm:$0xff]  }
 0x154   :  { %v17813_v58 = vunpack.c.l.bf16 %v17812_v29  ;;  %v1194_v60 = vadd.f32 %v1193_v8, %v1192_v23  ;;  %v1555_v27 = vcombine.high %v12744_v13, %v12744_v13  ;;  %v1017_v16 = vadd.f32 %v1016_v57, %v1015_v48  ;;  %v12782_v48 = vpop.f32.mrf.mxu0 }
 0x155   :  { %v1195_v5 = vsel %vm678_vm4, %v17811_v43, 0.0  ;;  %v17814_v33 = vunpack.c.h.bf16 %v17805_v17  ;;  %v1143_v62 = vadd.f32 %v1142_v31, %v1141_v9  ;;  %v17816_v49 = vunpack.c.l.bf16 %v17815_v42  ;;  %v12784_v17 = vpop.f32.mrf.mxu1 }
 0x156   :  { %v1144_v59 = vsel %vm678_vm4, %v17813_v58, 0.0  ;;  %v10035_v35 = vunpack.c.h.bf16 %v17817_v1  ;;  %v949_v47 = vrot.slane %v948_v41, 4  ;;  %v17818_v54 = vunpack.c.h.bf16 %v17812_v29  ;;  %8900 = vmatprep.subr.msk.bf16.mxu1 %vm1559_vm3, %v1555_v27 }
 0x157   :  { %v1085_v44 = vsel %vm678_vm4, %v17814_v33, 0.0  ;;  %v1197_v14 = vsel %vm678_vm4, %v17816_v49, 0.0  ;;  %v1196_v18 = vadd.f32 %v1195_v5, %v1194_v60  ;;  %v744_v32 = vrot.slane %v12680_v55, 2  ;;  %v12796_v9 = vpop.f32.mrf.mxu1 }
 0x158   :  { %v1146_v51 = vsel %vm678_vm4, %v17818_v54, 0.0  ;;  %v881_v40 = vadd.f32 %v880_v45, %v879_v7  ;;  %v1145_v57 = vadd.f32 %v1144_v59, %v1143_v62  ;;  %v17819_v6 = vunpack.c.h.bf16 %v17815_v42  ;;  %v12794_v45 = vpop.f32.mrf.mxu0  ;;  %v10180_v42 = vld [vmem:[%s16186_s0 + $0x3e8] sm:$0xff]  }
 0x159   :  { %v813_v56 = vrot.slane %v812_v37, 2  ;;  %v1086_v34 = vadd.f32 %v1085_v44, %v1084_v2  ;;  %v17821_v4 = vunpack.c.l.bf16 %v17820_v39  ;;  %v1198_v0 = vadd.f32 %v1197_v14, %v1196_v18  ;;  %v17824_v2 = vld [vmem:[#allocation88_spill] sm:$0xff]  ;;  %v1486_v44 = vpop.f32.mrf.mxu1 }
 0x15a   :  { %v1199_v52 = vsel %vm678_vm4, %v17819_v6, 0.0  ;;  %v10038_v53 = vunpack.c.l.bf16 %v10178_v3  ;;  %v1018_v28 = vrot.slane %v1017_v16, 4  ;;  %v1147_v30 = vadd.f32 %v1146_v51, %v1145_v57  ;;  %v1445_v33 = vpop.f32.mrf.mxu0 }
 0x15b   :  { %v1148_v63 = vsel %vm678_vm4, %v17821_v4, 0.0  ;;  %v17822_v46 = vunpack.c.l.bf16 %v17817_v1  ;;  %v10039_v10 = vunpack.c.h.bf16 %v10178_v3  ;;  %v950_v20 = vadd.f32 %v949_v47, %v948_v41  ;;  %v1487_v47 = vpop.f32.mrf.mxu1 }
 0x15c   :  { %v17823_v25 = vunpack.c.h.bf16 %v17820_v39  ;;  %v1200_v8 = vadd.f32 %v1199_v52, %v1198_v0  ;;  %v745_v24 = vadd.f32 %v744_v32, %v12680_v55  ;;  %v882_v31 = vrot.slane %v881_v40, 2  ;;  %v1446_v3 = vpop.f32.mrf.mxu0 }
 0x15d   :  { %v1201_v7 = vsel %vm678_vm4, %v17822_v46, 0.0  ;;  %v1149_v23 = vadd.f32 %v1148_v63, %v1147_v30  ;;  %v1203_v38 = vsel %vm678_vm4, %v10035_v35, 0.0  ;;  %v814_v43 = vadd.f32 %v813_v56, %v812_v37 }
 0x15e   :  { %v1150_v61 = vsel %vm678_vm4, %v17823_v25, 0.0  ;;  %v1087_v5 = vrot.slane %v1086_v34, 4  ;;  %v17825_v29 = vunpack.c.l.bf16 %v17824_v2  ;;  %v1202_v58 = vadd.f32 %v1201_v7, %v1200_v8  ;;  %v10182_v25 = vld [vmem:[%s16186_s0 + $0x3f8] sm:$0xff]  }
 0x15f   :  { %v10042_v59 = vunpack.c.l.bf16 %v10179_v50  ;;  %v1019_v60 = vadd.f32 %v1018_v28, %v1017_v16  ;;  %v1151_v27 = vadd.f32 %v1150_v61, %v1149_v23  ;;  %v1205_v55 = vsel %vm678_vm4, %v10038_v53, 0.0 }
 0x160   :  { %v1152_v41 = vsel %vm678_vm4, %v17825_v29, 0.0  ;;  %v10043_v62 = vunpack.c.h.bf16 %v10179_v50  ;;  %v951_v49 = vrot.slane %v950_v20, 2  ;;  %v17826_v37 = vunpack.c.h.bf16 %v17824_v2 }
 0x161   :  { %v1204_v36 = vadd.f32 %v1203_v38, %v1202_v58  ;;  %v746_v19 = vrot.slane %v745_v24, 1  ;;  %v883_v1 = vadd.f32 %v882_v31, %v881_v40  ;;  %v1153_v35 = vadd.f32 %v1152_v41, %v1151_v27 }
 0x162   :  { %v1154_v14 = vsel %vm678_vm4, %v17826_v37, 0.0  ;;  %v1207_v16 = vsel %vm678_vm4, %v10039_v10, 0.0  ;;  %v815_v54 = vrot.slane %v814_v43, 1  ;;  %v1088_v51 = vadd.f32 %v1087_v5, %v1086_v34 }
 0x163   :  { %v1206_v18 = vadd.f32 %v1205_v55, %v1204_v36  ;;  %v10046_v32 = vunpack.c.l.bf16 %v10180_v42  ;;  %v1020_v57 = vrot.slane %v1019_v60, 2  ;;  %v1155_v6 = vadd.f32 %v1154_v14, %v1153_v35 }
 0x164   :  { %v1209_v52 = vsel %vm678_vm4, %v10042_v59, 0.0  ;;  %v10047_v12 = vunpack.c.h.bf16 %v10180_v42  ;;  %v952_v56 = vadd.f32 %v951_v49, %v950_v20  ;;  %v747_v39 = vadd.f32 %v746_v19, %v745_v24 }
 0x165   :  { %v1208_v40 = vadd.f32 %v1207_v16, %v1206_v18  ;;  %v884_v4 = vrot.slane %v883_v1, 1  ;;  %v1156_v63 = vrot.slane %v1155_v6, 4  ;;  %v1211_v0 = vsel %vm678_vm4, %v10043_v62, 0.0 }
 0x166   :  { %v816_v53 = vadd.f32 %v815_v54, %v814_v43  ;;  %v1089_v34 = vrot.slane %v1088_v51, 2  ;;  %v10050_v30 = vunpack.c.l.bf16 %v10181_v11  ;;  %v1021_v46 = vadd.f32 %v1020_v57, %v1019_v60 }
 0x167   :  { %v1210_v28 = vadd.f32 %v1209_v52, %v1208_v40  ;;  %v1157_v7 = vadd.f32 %v1156_v63, %v1155_v6  ;;  %v1213_v10 = vsel %vm678_vm4, %v10046_v32, 0.0  ;;  %v10051_v50 = vunpack.c.h.bf16 %v10181_v11 }
 0x168   :  { %v953_v20 = vrot.slane %v952_v56, 1  ;;  %v885_v8 = vadd.f32 %v884_v4, %v883_v1  ;;  %v1215_v31 = vsel %vm678_vm4, %v10047_v12, 0.0  ;;  %v1231_v23 = vmul.f32 0.00390625, %v747_v39 }
 0x169   :  { %v1212_v61 = vadd.f32 %v1211_v0, %v1210_v28  ;;  %v1158_v24 = vrot.slane %v1157_v7, 2  ;;  %v1090_v38 = vadd.f32 %v1089_v34, %v1088_v51  ;;  %v1232_v5 = vmul.f32 0.00390625, %v816_v53 }
 0x16a   :  { %v10054_v2 = vunpack.c.l.bf16 %v10182_v25  ;;  %v1022_v29 = vrot.slane %v1021_v46, 1  ;;  %v1217_v41 = vsel %vm678_vm4, %v10050_v30, 0.0  ;;  %v10055_v58 = vunpack.c.h.bf16 %v10182_v25 }
 0x16b   :  { %v1214_v43 = vadd.f32 %v1213_v10, %v1212_v61  ;;  %v954_v59 = vadd.f32 %v953_v20, %v952_v56  ;;  %v1159_v27 = vadd.f32 %v1158_v24, %v1157_v7  ;;  %v1219_v55 = vsel %vm678_vm4, %v10051_v50, 0.0 }
 0x16c   :  { %v1233_v33 = vmul.f32 0.00390625, %v885_v8  ;;  %v1239_v44 = vpack.c.bf16 %v1231_v23, %v1231_v23  ;;  %v1091_v62 = vrot.slane %v1090_v38, 1  ;;  %v1240_v49 = vpack.c.bf16 %v1232_v5, %v1232_v5 }
 0x16d   :  { %v1216_v60 = vadd.f32 %v1215_v31, %v1214_v43  ;;  %v1023_v37 = vadd.f32 %v1022_v29, %v1021_v46  ;;  %v1221_v14 = vsel %vm678_vm4, %v10054_v2, 0.0  ;;  %v1223_v19 = vsel %vm678_vm4, %v10055_v58, 0.0 }
 0x16e   :  { %v1234_v1 = vmul.f32 0.00390625, %v954_v59  ;;  %v1160_v35 = vrot.slane %v1159_v27, 1  ;;  %v1241_v16 = vpack.c.bf16 %v1233_v33, %v1233_v33  ;;  %v1497_v3 = vunpack.c.l.b16 %v1239_v44 }
 0x16f   :  { %v1218_v42 = vadd.f32 %v1217_v41, %v1216_v60  ;;  %v1092_v47 = vadd.f32 %v1091_v62, %v1090_v38  ;;  %v1498_v51 = vunpack.c.l.b16 %v1240_v49  ;;  %v8849_v18 = vsel %vm1505_vm5, %v1232_v5, %v1231_v23  ;;  %v1861_v60 = vld [vmem:[#allocation8 + $0x1c0] sm:$0xff] }
 0x170   :  { %v1235_v32 = vmul.f32 0.00390625, %v1023_v37  ;;  %v1242_v6 = vpack.c.bf16 %v1234_v1, %v1234_v1  ;;  %v1161_v52 = vadd.f32 %v1160_v35, %v1159_v27  ;;  %v1499_v12 = vunpack.c.l.b16 %v1241_v16  ;;  %v1865_v27 = vld [vmem:[#allocation8 + $0x1e0] sm:$0xff]  ;;  %v1854_v35 = vld [vmem:[#allocation8 + $0x188] sm:$0xff] }
 0x171   :  { %v1220_v36 = vadd.f32 %v1219_v55, %v1218_v42  ;;  %v8850_v11 = vsel %vm1507_vm6, %v1233_v33, %v8849_v18  ;;  %v1236_v40 = vmul.f32 0.00390625, %v1092_v47  ;;  %v1506_v39 = vsel %vm1505_vm5, %v1498_v51, %v1497_v3  ;;  %v1862_v55 = vld [vmem:[#allocation8 + $0x1c8] sm:$0xff]  ;;  %v1845_v18 = vld [vmem:[#allocation8 + $0x140] sm:$0xff] }
 0x172   :  { %v1243_v4 = vpack.c.bf16 %v1235_v32, %v1235_v32  ;;  %v1500_v0 = vunpack.c.l.b16 %v1242_v6  ;;  %v8851_v53 = vsel %vm1509_vm7, %v1234_v1, %v8850_v11  ;;  %v1237_v34 = vmul.f32 0.00390625, %v1161_v52  ;;  %v1866_v33 = vld [vmem:[#allocation8 + $0x1e8] sm:$0xff]  ;;  %v1853_v1 = vld [vmem:[#allocation8 + $0x180] sm:$0xff] }
 0x173   :  { %v1222_v54 = vadd.f32 %v1221_v14, %v1220_v36  ;;  %v1508_v28 = vsel %vm1507_vm6, %v1499_v12, %v1506_v39  ;;  %v1244_v46 = vpack.c.bf16 %v1236_v40, %v1236_v40  ;;  %v8852_v10 = vsel %vm1511_vm8, %v1235_v32, %v8851_v53  ;;  %v17827_v42 = vld [vmem:[#allocation29_spill] sm:$0xff]  ;;  %v1849_v32 = vld [vmem:[#allocation8 + $0x160] sm:$0xff] }
 0x174   :  { %v1501_v7 = vunpack.c.l.b16 %v1243_v4  ;;  %v1510_v25 = vsel %vm1509_vm7, %v1500_v0, %v1508_v28  ;;  %v1245_v20 = vpack.c.bf16 %v1237_v34, %v1237_v34  ;;  %v8853_v24 = vsel %vm1513_vm9, %v1236_v40, %v8852_v10  ;;  %v1858_v16 = vld [vmem:[#allocation8 + $0x1a8] sm:$0xff]  ;;  %v1837_v40 = vld [vmem:[#allocation8 + $0x100] sm:$0xff] }
 0x175   :  { %v1224_v57 = vadd.f32 %v1223_v19, %v1222_v54  ;;  %v1502_v8 = vunpack.c.l.b16 %v1244_v46  ;;  %v8854_v43 = vsel %vm1515_vm10, %v1237_v34, %v8853_v24  ;;  %v1573_v49 = vsel %vm1559_vm3, %v17827_v42, 0  ;;  %v1850_v6 = vld [vmem:[#allocation8 + $0x168] sm:$0xff]  ;;  %v1841_v39 = vld [vmem:[#allocation8 + $0x120] sm:$0xff] }
 0x176   :  { %v1512_v31 = vsel %vm1511_vm8, %v1501_v7, %v1510_v25  ;;  %v1503_v38 = vunpack.c.l.b16 %v1245_v20  ;;  %v1579_v37 = vsel %vm1559_vm3, %v12744_v13, 0  ;;  %v12831_v14 = vcombine.high %v1861_v60, %v1865_v27  ;;  %v1857_v13 = vld [vmem:[#allocation8 + $0x1a0] sm:$0xff]  ;;  %v1838_v4 = vld [vmem:[#allocation8 + $0x108] sm:$0xff] }
 0x177   :  { %v1225_v56 = vrot.slane %v1224_v57, 4  ;;  %v1514_v2 = vsel %vm1513_vm9, %v1502_v8, %v1512_v31  ;;  %v12833_v36 = vcombine.high %v1862_v55, %v1866_v33  ;;  %v17829_v19 = vmov 0   ;;  %v1833_v46 = vld [vmem:[#allocation8 + $0xe0] sm:$0xff]  ;;  %v1830_v7 = vld [vmem:[#allocation8 + $0xc8] sm:$0xff] }
 0x178   :  { %v1516_v58 = vsel %vm1515_vm10, %v1503_v38, %v1514_v2  ;;  %17828 = vst [vmem:[#allocation31_spill] sm:$0xff] %v12831_v14  ;;  %v12841_v3 = vcombine.low %v1861_v60, %v1865_v27  ;;  %v12843_v47 = vcombine.low %v1862_v55, %v1866_v33  ;;  %v12845_v54 = vcombine.high %v1853_v1, %v1857_v13  ;;  %v1834_v10 = vld [vmem:[#allocation8 + $0xe8] sm:$0xff]  ;;  %v1821_v8 = vld [vmem:[#allocation8 + $0x80] sm:$0xff] }
 0x179   :  { %v1226_v63 = vadd.f32 %v1225_v56, %v1224_v57  ;;  %v12847_v51 = vcombine.high %v1854_v35, %v1858_v16  ;;  %v1846_v57 = vld [vmem:[#allocation8 + $0x148] sm:$0xff]  ;;  %v12853_v52 = vcombine.low %v1853_v1, %v1857_v13  ;;  %v12855_v12 = vcombine.low %v1854_v35, %v1858_v16  ;;  %v1825_v24 = vld [vmem:[#allocation8 + $0xa0] sm:$0xff]  ;;  %v1863_v16 = vld [vmem:[#allocation8 + $0x1d0] sm:$0xff] }
 0x17a   :  { %v12859_v11 = vcombine.high %v1845_v18, %v1849_v32  ;;  %v12861_v56 = vcombine.high %v1846_v57, %v1850_v6  ;;  %v12867_v0 = vcombine.low %v1845_v18, %v1849_v32  ;;  %v12869_v53 = vcombine.low %v1846_v57, %v1850_v6  ;;  %v1822_v31 = vld [vmem:[#allocation8 + $0x88] sm:$0xff]  ;;  %v1867_v18 = vld [vmem:[#allocation8 + $0x1f0] sm:$0xff]  ;;  %v1864_v32 = vld [vmem:[#allocation8 + $0x1d8] sm:$0xff] }
 0x17b   :  { %v1227_v30 = vrot.slane %v1226_v63, 2  ;;  %v12873_v34 = vcombine.high %v1837_v40, %v1841_v39  ;;  %v12903_v60 = vcombine.low %v1821_v8, %v1825_v24  ;;  %v1806_v42 = vld [vmem:[#allocation8 + $0x8] sm:$0xff]  ;;  %v1868_v57 = vld [vmem:[#allocation8 + $0x1f8] sm:$0xff] }
 0x17d   :  { %v1228_v50 = vadd.f32 %v1227_v30, %v1226_v63  ;;  %v1842_v63 = vld [vmem:[#allocation8 + $0x128] sm:$0xff]  ;;  %v1829_v30 = vld [vmem:[#allocation8 + $0xc0] sm:$0xff] }
 0x17e   :  { %v12875_v28 = vcombine.high %v1838_v4, %v1842_v63  ;;  %v12881_v25 = vcombine.low %v1838_v4, %v1842_v63  ;;  %v12885_v20 = vcombine.high %v1829_v30, %v1833_v46  ;;  %v12891_v38 = vcombine.low %v1829_v30, %v1833_v46  ;;  %v1855_v30 = vld [vmem:[#allocation8 + $0x190] sm:$0xff] }
 0x17f   :  { %v1229_v61 = vrot.slane %v1228_v50, 1  ;;  %v12933_v4 = vcombine.high %v1863_v16, %v1867_v18  ;;  %v12935_v63 = vcombine.high %v1864_v32, %v1868_v57  ;;  %v1859_v46 = vld [vmem:[#allocation8 + $0x1b0] sm:$0xff] }
 0x181   :  { %v1230_v23 = vadd.f32 %v1229_v61, %v1228_v50  ;;  %v12879_v50 = vcombine.low %v1837_v40, %v1841_v39  ;;  %v12887_v61 = vcombine.high %v1830_v7, %v1834_v10  ;;  %v8902_v39 = vld [vmem:[#allocation17] ss:$0 sm:$0xff]  ;;  %17837 = vst [vmem:[#allocation54_spill] sm:$0xff] %v12935_v63 }
 0x183   :  { %v1238_v5 = vmul.f32 0.00390625, %v1230_v23  ;;  %v1826_v23 = vld [vmem:[#allocation8 + $0xa8] sm:$0xff] }
 0x184   :  { %v12899_v2 = vcombine.high %v1822_v31, %v1826_v23  ;;  %v12905_v27 = vcombine.low %v1822_v31, %v1826_v23  ;;  %v12943_v31 = vcombine.low %v1864_v32, %v1868_v57  ;;  %v12947_v23 = vcombine.high %v1855_v30, %v1859_v46  ;;  %v1843_v32 = vld [vmem:[#allocation8 + $0x130] sm:$0xff]  ;;  %v1840_v57 = vld [vmem:[#allocation8 + $0x118] sm:$0xff] }
 0x185   :  { %v1246_v29 = vpack.c.bf16 %v1238_v5, %v1238_v5  ;;  %v8855_v41 = vsel %vm1517_vm11, %v1238_v5, %v8854_v43  ;;  %v12893_v43 = vcombine.low %v1830_v7, %v1834_v10  ;;  %v12897_v5 = vcombine.high %v1821_v8, %v1825_v24  ;;  %v1856_v7 = vld [vmem:[#allocation8 + $0x198] sm:$0xff] }
 0x186   :  { %8857 = vst.msk [vmem:[%s16198_s12] sm:$0xff] %vm678_vm4, %v8855_v41  ;;  %17831 = vst [vmem:[#allocation45_spill] sm:$0xff] %v12899_v2  ;;  %v1817_v41 = vld [vmem:[#allocation8 + $0x60] sm:$0xff]  ;;  %v1860_v10 = vld [vmem:[#allocation8 + $0x1b8] sm:$0xff]  ;;  %v12937_v8 = vpack.c.bf16 %v8902_v39, %v8902_v39  ;;  %v12941_v24 = vcombine.low %v1863_v16, %v1867_v18  ;;  %s10915_s12 = smov [#allocation19]  }
 0x187   :  { %v1504_v59 = vunpack.c.l.b16 %v1246_v29  ;;  %17830 = vst [vmem:[#allocation36_spill] sm:$0xff] %v12893_v43  ;;  %v1813_v29 = vld [vmem:[#allocation8 + $0x40] sm:$0xff]  ;;  %17832 = vst [vmem:[#allocation32_spill] sm:$0xff] %v12905_v27  ;;  %v1839_v18 = vld [vmem:[#allocation8 + $0x110] sm:$0xff]  ;;  %s8864_s16 = sshll.u32 %s10915_s12, 4  ;;  %s8865_s16 = int_to_ptr.vmem [resolvable:$true] %s8864_s16 }
 0x188   :  { %v12909_v55 = vcombine.high %v1813_v29, %v1817_v41  ;;  %17838 = vst [vmem:[#allocation38_spill] sm:$0xff] %v12941_v24  ;;  %17839 = vst [vmem:[#allocation46_spill] sm:$0xff] %v12943_v31  ;;  %v1844_v39 = vld [vmem:[#allocation8 + $0x138] sm:$0xff]  ;;  %s10864_s2 = scalar_lea.vmem %s8865_s16, 128  ;;  %p10869_p9 = scmp.lt.s32.totalorder %s8865_s16, %s8865_s16 }
 0x189   :  { %v1518_v44 = vsel %vm1517_vm11, %v1504_v59, %v1516_v58  ;;  %v1814_v58 = vld [vmem:[#allocation8 + $0x48] sm:$0xff]  ;;  %17840 = vst [vmem:[#allocation55_spill] sm:$0xff] %v12947_v23  ;;  %p10865_p8 = scmp.ne.s32.totalorder %s8865_s16, %s10864_s2  ;;  %p10870_p10 = scmp.lt.s32.totalorder %s10864_s2, %s10864_s2 }
 0x18a   :  { %v1519_v62 = vpack.c.b16 %v1518_v44, %v1518_v44  ;;  %v1818_v59 = vld [vmem:[#allocation8 + $0x68] sm:$0xff]  ;;  %v1805_v44 = vld [vmem:[#allocation8] sm:$0xff] }
 0x18b   :  { %v12911_v33 = vcombine.high %v1814_v58, %v1818_v59  ;;  %v12917_v1 = vcombine.low %v1814_v58, %v1818_v59  ;;  %v1851_v58 = vld [vmem:[#allocation8 + $0x170] sm:$0xff]  ;;  %v1848_v59 = vld [vmem:[#allocation8 + $0x158] sm:$0xff]  ;;  %p10871_p11 = por %p10870_p10, %p10869_p9 }
 0x18c   :  { %8895 = vmatmul.mubr.msk.bf16.vlgmr.msra.gmra.mxu0 %vm678_vm4, %v1519_v62  ;;  %8897 = vmatmul.mubr.msk.bf16.vlgmr.msra.gmra.mxu1 %vm678_vm4, %v1519_v62 }
 0x18d   :  { %1681 = vmatpush1.bf16.msra.mxu0 %v1573_v49  ;;  %1722 = vmatpush1.bf16.msra.mxu1 %v1579_v37  ;;  %17833 = vst [vmem:[#allocation33_spill] sm:$0xff] %v12911_v33  ;;  %v1810_v49 = vld [vmem:[#allocation8 + $0x28] sm:$0xff]  ;;  %v12915_v37 = vcombine.low %v1813_v29, %v1817_v41  ;;  %17834 = vst [vmem:[#allocation34_spill] sm:$0xff] %v12917_v1  ;;  %v12949_v29 = vcombine.high %v1856_v7, %v1860_v10  ;;  %v1847_v41 = vld [vmem:[#allocation8 + $0x150] sm:$0xff]  ;;  %p10872_p12 = pnand %p10871_p11, %p10865_p8 }
 0x18e   :  { %1698 = vmatprep.mubr.bf16.mxu0 %v17829_v19  ;;  %1739 = vmatprep.mubr.bf16.mxu1 %v17829_v19  ;;  %v12923_v35 = vcombine.high %v1806_v42, %v1810_v49  ;;  %v12929_v40 = vcombine.low %v1806_v42, %v1810_v49  ;;  %v12957_v42 = vcombine.low %v1856_v7, %v1860_v10 }
 0x18f   :  { %2189 = vmatprep.subr.bf16.mxu0 %v12831_v14  ;;  %2230 = vmatprep.subr.bf16.mxu1 %v12833_v36  ;;  %17841 = vst [vmem:[#allocation39_spill] sm:$0xff] %v12949_v29  ;;  %v12961_v49 = vcombine.high %v1847_v41, %v1851_v58  ;;  %v12975_v7 = vcombine.high %v1839_v18, %v1843_v32 }
 0x190   :  { %17835 = vst [vmem:[#allocation35_spill] sm:$0xff] %v12923_v35  ;;  %17836 = vst [vmem:[#allocation37_spill] sm:$0xff] %v12929_v40  ;;  %v12977_v10 = vcombine.high %v1840_v57, %v1844_v39 }
 0x191   :  { %17843 = vst [vmem:[#allocation56_spill] sm:$0xff] %v12957_v42  ;;  %17844 = vst [vmem:[#allocation47_spill] sm:$0xff] %v12961_v49 }
 0x192   :  { %17848 = vst [vmem:[#allocation65_spill] sm:$0xff] %v12975_v7  ;;  %17849 = vst [vmem:[#allocation43_spill] sm:$0xff] %v12977_v10 }
 0x194   :  { %8899 = vmatmul.mubr.msk.bf16.vlgmr.msra.gmra.mxu0 %vm678_vm4, %v1519_v62  ;;  %8901 = vmatmul.mubr.msk.bf16.vlgmr.msra.gmra.mxu1 %vm678_vm4, %v1519_v62  ;;  %v1809_v62 = vld [vmem:[#allocation8 + $0x20] sm:$0xff] }
 0x195   :  { %2190 = vmatpush1.bf16.msra.mxu0 %v12841_v3  ;;  %2231 = vmatpush1.bf16.msra.mxu1 %v12843_v47  ;;  %v12921_v13 = vcombine.high %v1805_v44, %v1809_v62  ;;  %v12927_v6 = vcombine.low %v1805_v44, %v1809_v62  ;;  %v1852_v44 = vld [vmem:[#allocation8 + $0x178] sm:$0xff]  ;;  %v12955_v62 = vcombine.low %v1855_v30, %v1859_v46 }
 0x196   :  { %2191 = vmatprep.subr.bf16.mxu0 %v12845_v54  ;;  %2232 = vmatprep.subr.bf16.mxu1 %v12847_v51  ;;  %v12963_v16 = vcombine.high %v1848_v59, %v1852_v44  ;;  %v12969_v30 = vcombine.low %v1847_v41, %v1851_v58  ;;  %v12971_v46 = vcombine.low %v1848_v59, %v1852_v44 }
 0x197   :  { %2221 = vmatprep.mubr.bf16.mxu0 %v17829_v19  ;;  %2262 = vmatprep.mubr.bf16.mxu1 %v17829_v19  ;;  %17842 = vst [vmem:[#allocation40_spill] sm:$0xff] %v12955_v62  ;;  %v12981_v41 = vcombine.low %v1839_v18, %v1843_v32  ;;  %v12983_v58 = vcombine.low %v1840_v57, %v1844_v39 }
 0x198   :  { %17845 = vst [vmem:[#allocation64_spill] sm:$0xff] %v12963_v16  ;;  %17846 = vst [vmem:[#allocation41_spill] sm:$0xff] %v12969_v30 }
 0x199   :  { %2192 = vmatpush1.bf16.msra.mxu0 %v12853_v52  ;;  %2233 = vmatpush1.bf16.msra.mxu1 %v12855_v12  ;;  %17847 = vst [vmem:[#allocation42_spill] sm:$0xff] %v12971_v46  ;;  %17850 = vst [vmem:[#allocation57_spill] sm:$0xff] %v12981_v41 }
 0x19a   :  { %2193 = vmatprep.subr.bf16.mxu0 %v12859_v11  ;;  %2234 = vmatprep.subr.bf16.mxu1 %v12861_v56  ;;  %17851 = vst [vmem:[#allocation44_spill] sm:$0xff] %v12983_v58 }
 0x19d   :  { %2194 = vmatpush1.bf16.msra.mxu0 %v12867_v0  ;;  %2235 = vmatpush1.bf16.msra.mxu1 %v12869_v53 }
 0x19e   :  { %2195 = vmatprep.subr.bf16.mxu0 %v12873_v34  ;;  %2236 = vmatprep.subr.bf16.mxu1 %v12875_v28 }
 0x1a1   :  { %2196 = vmatpush1.bf16.msra.mxu0 %v12879_v50  ;;  %2237 = vmatpush1.bf16.msra.mxu1 %v12881_v25 }
 0x1a2   :  { %2197 = vmatprep.subr.bf16.mxu0 %v12885_v20  ;;  %2238 = vmatprep.subr.bf16.mxu1 %v12887_v61 }
 0x1a5   :  { %2198 = vmatpush1.bf16.msra.mxu0 %v12891_v38  ;;  %2239 = vmatpush1.bf16.msra.mxu1 %v12893_v43 }
 0x1a6   :  { %2199 = vmatprep.subr.bf16.mxu0 %v12897_v5  ;;  %2240 = vmatprep.subr.bf16.mxu1 %v12899_v2 }
 0x1a9   :  { %2200 = vmatpush1.bf16.msra.mxu0 %v12903_v60  ;;  %2241 = vmatpush1.bf16.msra.mxu1 %v12905_v27 }
 0x1aa   :  { %2201 = vmatprep.subr.bf16.mxu0 %v12909_v55  ;;  %2242 = vmatprep.subr.bf16.mxu1 %v12911_v33  ;;  %v2581_v33 = vld [vmem:[#allocation11 + $0x6a0] sm:$0xff] }
 0x1ad   :  { %2202 = vmatpush1.bf16.msra.mxu0 %v12915_v37  ;;  %2243 = vmatpush1.bf16.msra.mxu1 %v12917_v1  ;;  %v2577_v1 = vld [vmem:[#allocation11 + $0x680] sm:$0xff] }
 0x1ae   :  { %2203 = vmatprep.subr.bf16.mxu0 %v12921_v13  ;;  %2244 = vmatprep.subr.bf16.mxu1 %v12923_v35  ;;  %v2453_v35 = vld [vmem:[#allocation11 + $0x2a0] sm:$0xff] }
 0x1b1   :  { %2204 = vmatpush1.bf16.msra.mxu0 %v12927_v6  ;;  %2245 = vmatpush1.bf16.msra.mxu1 %v12929_v40  ;;  %v2449_v40 = vld [vmem:[#allocation11 + $0x280] sm:$0xff] }
 0x1b2   :  { %2271 = vmatprep.subr.bf16.mxu0 %v12933_v4  ;;  %2312 = vmatprep.subr.bf16.mxu1 %v12935_v63 }
 0x1b4   :  { %2222 = vmatmul.mubr.bf16.vlgmr.msra.gmra.mxu0 %v12937_v8  ;;  %2263 = vmatmul.mubr.bf16.vlgmr.msra.gmra.mxu1 %v12937_v8 }
 0x1b5   :  { %2272 = vmatpush1.bf16.msra.mxu0 %v12941_v24  ;;  %2313 = vmatpush1.bf16.msra.mxu1 %v12943_v31  ;;  %v1832_v31 = vld [vmem:[#allocation8 + $0xd8] sm:$0xff] }
 0x1b6   :  { %2273 = vmatprep.subr.bf16.mxu0 %v12947_v23  ;;  %2314 = vmatprep.subr.bf16.mxu1 %v12949_v29  ;;  %v1831_v29 = vld [vmem:[#allocation8 + $0xd0] sm:$0xff]  ;;  %v1836_v24 = vld [vmem:[#allocation8 + $0xf8] sm:$0xff] }
 0x1b7   :  { %2303 = vmatprep.mubr.bf16.mxu0 %v17829_v19  ;;  %2344 = vmatprep.mubr.bf16.mxu1 %v17829_v19  ;;  %v1835_v23 = vld [vmem:[#allocation8 + $0xf0] sm:$0xff]  ;;  %v12989_v44 = vcombine.high %v1832_v31, %v1836_v24  ;;  %v12995_v32 = vcombine.low %v1832_v31, %v1836_v24 }
 0x1b8   :  { %v12987_v59 = vcombine.high %v1831_v29, %v1835_v23  ;;  %v12993_v18 = vcombine.low %v1831_v29, %v1835_v23 }
 0x1b9   :  { %2274 = vmatpush1.bf16.msra.mxu0 %v12955_v62  ;;  %2315 = vmatpush1.bf16.msra.mxu1 %v12957_v42  ;;  %17853 = vst [vmem:[#allocation66_spill] sm:$0xff] %v12989_v44  ;;  %v1824_v42 = vld [vmem:[#allocation8 + $0x98] sm:$0xff]  ;;  %17855 = vst [vmem:[#allocation50_spill] sm:$0xff] %v12995_v32 }
 0x1ba   :  { %2275 = vmatprep.subr.bf16.mxu0 %v12961_v49  ;;  %2316 = vmatprep.subr.bf16.mxu1 %v12963_v16  ;;  %17852 = vst [vmem:[#allocation48_spill] sm:$0xff] %v12987_v59  ;;  %v1823_v16 = vld [vmem:[#allocation8 + $0x90] sm:$0xff]  ;;  %v1828_v62 = vld [vmem:[#allocation8 + $0xb8] sm:$0xff]  ;;  %17854 = vst [vmem:[#allocation49_spill] sm:$0xff] %v12993_v18 }
 0x1bb   :  { %v1827_v49 = vld [vmem:[#allocation8 + $0xb0] sm:$0xff]  ;;  %v13001_v39 = vcombine.high %v1824_v42, %v1828_v62  ;;  %v13007_v24 = vcombine.low %v1824_v42, %v1828_v62 }
 0x1bc   :  { %v12999_v57 = vcombine.high %v1823_v16, %v1827_v49  ;;  %v13005_v23 = vcombine.low %v1823_v16, %v1827_v49 }
 0x1bd   :  { %2276 = vmatpush1.bf16.msra.mxu0 %v12969_v30  ;;  %2317 = vmatpush1.bf16.msra.mxu1 %v12971_v46  ;;  %17857 = vst [vmem:[#allocation76_spill] sm:$0xff] %v13001_v39  ;;  %v1816_v46 = vld [vmem:[#allocation8 + $0x58] sm:$0xff]  ;;  %17859 = vst [vmem:[#allocation67_spill] sm:$0xff] %v13007_v24 }
 0x1be   :  { %2277 = vmatprep.subr.bf16.mxu0 %v12975_v7  ;;  %2318 = vmatprep.subr.bf16.mxu1 %v12977_v10  ;;  %17856 = vst [vmem:[#allocation58_spill] sm:$0xff] %v12999_v57  ;;  %v1815_v10 = vld [vmem:[#allocation8 + $0x50] sm:$0xff]  ;;  %v1820_v30 = vld [vmem:[#allocation8 + $0x78] sm:$0xff]  ;;  %17858 = vst [vmem:[#allocation51_spill] sm:$0xff] %v13005_v23 }
 0x1bf   :  { %v1819_v7 = vld [vmem:[#allocation8 + $0x70] sm:$0xff]  ;;  %v13013_v29 = vcombine.high %v1816_v46, %v1820_v30  ;;  %v13019_v62 = vcombine.low %v1816_v46, %v1820_v30 }
 0x1c0   :  { %v13011_v31 = vcombine.high %v1815_v10, %v1819_v7  ;;  %v13017_v49 = vcombine.low %v1815_v10, %v1819_v7 }
 0x1c1   :  { %2278 = vmatpush1.bf16.msra.mxu0 %v12981_v41  ;;  %2319 = vmatpush1.bf16.msra.mxu1 %v12983_v58  ;;  %17861 = vst [vmem:[#allocation68_spill] sm:$0xff] %v13013_v29  ;;  %v1808_v58 = vld [vmem:[#allocation8 + $0x18] sm:$0xff]  ;;  %17863 = vst [vmem:[#allocation53_spill] sm:$0xff] %v13019_v62 }
 0x1c2   :  { %2279 = vmatprep.subr.bf16.mxu0 %v12987_v59  ;;  %2320 = vmatprep.subr.bf16.mxu1 %v12989_v44  ;;  %17860 = vst [vmem:[#allocation52_spill] sm:$0xff] %v13011_v31  ;;  %v1807_v44 = vld [vmem:[#allocation8 + $0x10] sm:$0xff]  ;;  %v1812_v41 = vld [vmem:[#allocation8 + $0x38] sm:$0xff]  ;;  %17862 = vst [vmem:[#allocation59_spill] sm:$0xff] %v13017_v49 }
 0x1c3   :  { %v1811_v59 = vld [vmem:[#allocation8 + $0x30] sm:$0xff]  ;;  %v13025_v16 = vcombine.high %v1808_v58, %v1812_v41  ;;  %v13031_v30 = vcombine.low %v1808_v58, %v1812_v41 }
 0x1c4   :  { %v13023_v42 = vcombine.high %v1807_v44, %v1811_v59  ;;  %v13029_v7 = vcombine.low %v1807_v44, %v1811_v59 }
 0x1c5   :  { %2280 = vmatpush1.bf16.msra.mxu0 %v12993_v18  ;;  %2321 = vmatpush1.bf16.msra.mxu1 %v12995_v32  ;;  %17865 = vst [vmem:[#allocation77_spill] sm:$0xff] %v13025_v16  ;;  %v2553_v32 = vld [vmem:[#allocation11 + $0x5c0] sm:$0xff]  ;;  %17867 = vst [vmem:[#allocation70_spill] sm:$0xff] %v13031_v30 }
 0x1c6   :  { %2281 = vmatprep.subr.bf16.mxu0 %v12999_v57  ;;  %2322 = vmatprep.subr.bf16.mxu1 %v13001_v39  ;;  %17864 = vst [vmem:[#allocation69_spill] sm:$0xff] %v13023_v42  ;;  %v2425_v39 = vld [vmem:[#allocation11 + $0x1c0] sm:$0xff]  ;;  %17866 = vst [vmem:[#allocation60_spill] sm:$0xff] %v13029_v7 }
 0x1c7   :  { %v2429_v57 = vld [vmem:[#allocation11 + $0x1e0] sm:$0xff] }
 0x1c8   :  { %v2557_v18 = vld [vmem:[#allocation11 + $0x5e0] sm:$0xff]  ;;  %v13035_v46 = vcombine.high %v2425_v39, %v2429_v57  ;;  %v13041_v59 = vcombine.low %v2425_v39, %v2429_v57 }
 0x1c9   :  { %2282 = vmatpush1.bf16.msra.mxu0 %v13005_v23  ;;  %2323 = vmatpush1.bf16.msra.mxu1 %v13007_v24  ;;  %v13037_v10 = vcombine.high %v2553_v32, %v2557_v18  ;;  %v2545_v24 = vld [vmem:[#allocation11 + $0x580] sm:$0xff]  ;;  %v13043_v41 = vcombine.low %v2553_v32, %v2557_v18 }
 0x1ca   :  { %2283 = vmatprep.subr.bf16.mxu0 %v13011_v31  ;;  %2324 = vmatprep.subr.bf16.mxu1 %v13013_v29  ;;  %17868 = vst [vmem:[#allocation78_spill] sm:$0xff] %v13035_v46  ;;  %v2417_v29 = vld [vmem:[#allocation11 + $0x180] sm:$0xff]  ;;  %17870 = vst [vmem:[#allocation79_spill] sm:$0xff] %v13041_v59 }
 0x1cb   :  { %17869 = vst [vmem:[#allocation71_spill] sm:$0xff] %v13037_v10  ;;  %v2421_v31 = vld [vmem:[#allocation11 + $0x1a0] sm:$0xff]  ;;  %17871 = vst [vmem:[#allocation61_spill] sm:$0xff] %v13043_v41 }
 0x1cc   :  { %v2549_v23 = vld [vmem:[#allocation11 + $0x5a0] sm:$0xff]  ;;  %v13047_v58 = vcombine.high %v2417_v29, %v2421_v31  ;;  %v13055_v18 = vcombine.low %v2417_v29, %v2421_v31 }
 0x1cd   :  { %2284 = vmatpush1.bf16.msra.mxu0 %v13017_v49  ;;  %2325 = vmatpush1.bf16.msra.mxu1 %v13019_v62  ;;  %v13049_v44 = vcombine.high %v2545_v24, %v2549_v23  ;;  %v2537_v62 = vld [vmem:[#allocation11 + $0x540] sm:$0xff]  ;;  %v13057_v32 = vcombine.low %v2545_v24, %v2549_v23 }
 0x1ce   :  { %2285 = vmatprep.subr.bf16.mxu0 %v13023_v42  ;;  %2326 = vmatprep.subr.bf16.mxu1 %v13025_v16  ;;  %17872 = vst [vmem:[#allocation72_spill] sm:$0xff] %v13047_v58  ;;  %v2409_v16 = vld [vmem:[#allocation11 + $0x140] sm:$0xff]  ;;  %17874 = vst [vmem:[#allocation73_spill] sm:$0xff] %v13055_v18 }
 0x1cf   :  { %17873 = vst [vmem:[#allocation80_spill] sm:$0xff] %v13049_v44  ;;  %v2413_v42 = vld [vmem:[#allocation11 + $0x160] sm:$0xff]  ;;  %17875 = vst [vmem:[#allocation81_spill] sm:$0xff] %v13057_v32 }
 0x1d0   :  { %v2541_v49 = vld [vmem:[#allocation11 + $0x560] sm:$0xff]  ;;  %v13061_v57 = vcombine.high %v2409_v16, %v2413_v42  ;;  %v13067_v31 = vcombine.low %v2409_v16, %v2413_v42 }
 0x1d1   :  { %2286 = vmatpush1.bf16.msra.mxu0 %v13029_v7  ;;  %2327 = vmatpush1.bf16.msra.mxu1 %v13031_v30  ;;  %v13063_v39 = vcombine.high %v2537_v62, %v2541_v49  ;;  %v2529_v30 = vld [vmem:[#allocation11 + $0x500] sm:$0xff]  ;;  %v13069_v23 = vcombine.low %v2537_v62, %v2541_v49 }
 0x1d2   :  { %5482 = vmatprep.subr.bf16.mxu0 %v13035_v46  ;;  %5523 = vmatprep.subr.bf16.mxu1 %v13037_v10  ;;  %17876 = vst [vmem:[#allocation82_spill] sm:$0xff] %v13061_v57  ;;  %v2401_v10 = vld [vmem:[#allocation11 + $0x100] sm:$0xff]  ;;  %17878 = vst [vmem:[#allocation83_spill] sm:$0xff] %v13067_v31 }
 0x1d3   :  { %17877 = vst [vmem:[#allocation62_spill] sm:$0xff] %v13063_v39  ;;  %v2405_v46 = vld [vmem:[#allocation11 + $0x120] sm:$0xff]  ;;  %17879 = vst [vmem:[#allocation74_spill] sm:$0xff] %v13069_v23 }
 0x1d4   :  { %2304 = vmatmul.mubr.bf16.vlgmr.msra.gmra.mxu0 %v12937_v8  ;;  %2345 = vmatmul.mubr.bf16.vlgmr.msra.gmra.mxu1 %v12937_v8  ;;  %v2533_v8 = vld [vmem:[#allocation11 + $0x520] sm:$0xff]  ;;  %v13073_v24 = vcombine.high %v2401_v10, %v2405_v46  ;;  %v13079_v42 = vcombine.low %v2401_v10, %v2405_v46 }
 0x1d5   :  { %5483 = vmatpush1.bf16.msra.mxu0 %v13041_v59  ;;  %5524 = vmatpush1.bf16.msra.mxu1 %v13043_v41  ;;  %v13075_v29 = vcombine.high %v2529_v30, %v2533_v8  ;;  %v2521_v41 = vld [vmem:[#allocation11 + $0x4c0] sm:$0xff]  ;;  %v13081_v49 = vcombine.low %v2529_v30, %v2533_v8 }
 0x1d6   :  { %5484 = vmatprep.subr.bf16.mxu0 %v13047_v58  ;;  %5525 = vmatprep.subr.bf16.mxu1 %v13049_v44  ;;  %17880 = vst [vmem:[#allocation30_spill] sm:$0xff] %v13073_v24  ;;  %v2393_v44 = vld [vmem:[#allocation11 + $0xc0] sm:$0xff]  ;;  %17882 = vst [vmem:[#allocation84_spill] sm:$0xff] %v13079_v42 }
 0x1d7   :  { %17881 = vst [vmem:[#allocation63_spill] sm:$0xff] %v13075_v29  ;;  %v2397_v58 = vld [vmem:[#allocation11 + $0xe0] sm:$0xff]  ;;  %17883 = vst [vmem:[#allocation89_spill] sm:$0xff] %v13081_v49 }
 0x1d8   :  { %v2525_v59 = vld [vmem:[#allocation11 + $0x4e0] sm:$0xff]  ;;  %v13085_v62 = vcombine.high %v2393_v44, %v2397_v58  ;;  %v13091_v46 = vcombine.low %v2393_v44, %v2397_v58 }
 0x1d9   :  { %5485 = vmatpush1.bf16.msra.mxu0 %v13055_v18  ;;  %5526 = vmatpush1.bf16.msra.mxu1 %v13057_v32  ;;  %v13087_v16 = vcombine.high %v2521_v41, %v2525_v59  ;;  %v2513_v32 = vld [vmem:[#allocation11 + $0x480] sm:$0xff]  ;;  %v13093_v30 = vcombine.low %v2521_v41, %v2525_v59 }
 0x1da   :  { %5486 = vmatprep.subr.bf16.mxu0 %v13061_v57  ;;  %5527 = vmatprep.subr.bf16.mxu1 %v13063_v39  ;;  %17884 = vst [vmem:[#allocation85_spill] sm:$0xff] %v13085_v62  ;;  %v2385_v39 = vld [vmem:[#allocation11 + $0x80] sm:$0xff]  ;;  %17886 = vst [vmem:[#allocation90_spill] sm:$0xff] %v13091_v46 }
 0x1db   :  { %17885 = vst [vmem:[#allocation75_spill] sm:$0xff] %v13087_v16  ;;  %v2389_v57 = vld [vmem:[#allocation11 + $0xa0] sm:$0xff]  ;;  %17887 = vst [vmem:[#allocation28_spill] sm:$0xff] %v13093_v30 }
 0x1dc   :  { %v2517_v18 = vld [vmem:[#allocation11 + $0x4a0] sm:$0xff]  ;;  %v13097_v10 = vcombine.high %v2385_v39, %v2389_v57  ;;  %v13103_v58 = vcombine.low %v2385_v39, %v2389_v57 }
 0x1dd   :  { %5487 = vmatpush1.bf16.msra.mxu0 %v13067_v31  ;;  %5528 = vmatpush1.bf16.msra.mxu1 %v13069_v23  ;;  %v13099_v8 = vcombine.high %v2513_v32, %v2517_v18  ;;  %v2505_v23 = vld [vmem:[#allocation11 + $0x440] sm:$0xff]  ;;  %v13105_v59 = vcombine.low %v2513_v32, %v2517_v18 }
 0x1de   :  { %5488 = vmatprep.subr.bf16.mxu0 %v13073_v24  ;;  %5529 = vmatprep.subr.bf16.mxu1 %v13075_v29  ;;  %17888 = vst [vmem:[#allocation86_spill] sm:$0xff] %v13097_v10  ;;  %v2377_v29 = vld [vmem:[#allocation11 + $0x40] sm:$0xff]  ;;  %17890 = vst [vmem:[#allocation92_spill] sm:$0xff] %v13103_v58 }
 0x1df   :  { %17889 = vst [vmem:[#allocation91_spill] sm:$0xff] %v13099_v8  ;;  %v2381_v24 = vld [vmem:[#allocation11 + $0x60] sm:$0xff]  ;;  %17891 = vst [vmem:[#allocation87_spill] sm:$0xff] %v13105_v59 }
 0x1e0   :  { %v2509_v31 = vld [vmem:[#allocation11 + $0x460] sm:$0xff]  ;;  %v13109_v41 = vcombine.high %v2377_v29, %v2381_v24  ;;  %v13115_v57 = vcombine.low %v2377_v29, %v2381_v24 }
 0x1e1   :  { %5489 = vmatpush1.bf16.msra.mxu0 %v13079_v42  ;;  %5530 = vmatpush1.bf16.msra.mxu1 %v13081_v49  ;;  %v13111_v44 = vcombine.high %v2505_v23, %v2509_v31  ;;  %v2497_v49 = vld [vmem:[#allocation11 + $0x400] sm:$0xff]  ;;  %v13117_v18 = vcombine.low %v2505_v23, %v2509_v31 }
 0x1e2   :  { %5490 = vmatprep.subr.bf16.mxu0 %v13085_v62  ;;  %5531 = vmatprep.subr.bf16.mxu1 %v13087_v16  ;;  %17892 = vst [vmem:[#allocation88_spill] sm:$0xff] %v13109_v41  ;;  %v2369_v16 = vld [vmem:[#allocation11] sm:$0xff]  ;;  %17894 = vst [vmem:[#allocation93_spill] sm:$0xff] %v13115_v57 }
 0x1e3   :  { %17893 = vst [vmem:[#allocation29_spill] sm:$0xff] %v13111_v44  ;;  %v2373_v62 = vld [vmem:[#allocation11 + $0x20] sm:$0xff]  ;;  %17895 = vst [vmem:[#allocation94_spill] sm:$0xff] %v13117_v18 }
 0x1e4   :  { %v2501_v42 = vld [vmem:[#allocation11 + $0x420] sm:$0xff]  ;;  %v13121_v32 = vcombine.high %v2369_v16, %v2373_v62  ;;  %v13127_v24 = vcombine.low %v2369_v16, %v2373_v62 }
 0x1e5   :  { %5491 = vmatpush1.bf16.msra.mxu0 %v13091_v46  ;;  %5532 = vmatpush1.bf16.msra.mxu1 %v13093_v30  ;;  %v13123_v39 = vcombine.high %v2497_v49, %v2501_v42  ;;  %v2617_v30 = vld [vmem:[#allocation11 + $0x7c0] sm:$0xff]  ;;  %v13129_v31 = vcombine.low %v2497_v49, %v2501_v42 }
 0x1e6   :  { %5492 = vmatprep.subr.bf16.mxu0 %v13097_v10  ;;  %5533 = vmatprep.subr.bf16.mxu1 %v13099_v8  ;;  %17896 = vst [vmem:[#allocation95_spill] sm:$0xff] %v13121_v32  ;;  %v2489_v8 = vld [vmem:[#allocation11 + $0x3c0] sm:$0xff]  ;;  %17898 = vst [vmem:[#allocation97_spill] sm:$0xff] %v13127_v24 }
 0x1e7   :  { %17897 = vst [vmem:[#allocation96_spill] sm:$0xff] %v13123_v39  ;;  %v2493_v10 = vld [vmem:[#allocation11 + $0x3e0] sm:$0xff]  ;;  %17899 = vst [vmem:[#allocation98_spill] sm:$0xff] %v13129_v31 }
 0x1e8   :  { %v2621_v46 = vld [vmem:[#allocation11 + $0x7e0] sm:$0xff]  ;;  %v13133_v23 = vcombine.high %v2489_v8, %v2493_v10  ;;  %v13139_v62 = vcombine.low %v2489_v8, %v2493_v10 }
 0x1e9   :  { %5493 = vmatpush1.bf16.msra.mxu0 %v13103_v58  ;;  %5534 = vmatpush1.bf16.msra.mxu1 %v13105_v59  ;;  %v13135_v29 = vcombine.high %v2617_v30, %v2621_v46  ;;  %v2609_v59 = vld [vmem:[#allocation11 + $0x780] sm:$0xff]  ;;  %v13141_v42 = vcombine.low %v2617_v30, %v2621_v46 }
 0x1ea   :  { %5494 = vmatprep.subr.bf16.mxu0 %v13109_v41  ;;  %5535 = vmatprep.subr.bf16.mxu1 %v13111_v44  ;;  %17900 = vst [vmem:[#allocation99_spill] sm:$0xff] %v13133_v23  ;;  %v2481_v44 = vld [vmem:[#allocation11 + $0x380] sm:$0xff]  ;;  %17902 = vst [vmem:[#allocation101_spill] sm:$0xff] %v13139_v62 }
 0x1eb   :  { %17901 = vst [vmem:[#allocation100_spill] sm:$0xff] %v13135_v29  ;;  %v2485_v41 = vld [vmem:[#allocation11 + $0x3a0] sm:$0xff]  ;;  %17903 = vst [vmem:[#allocation102_spill] sm:$0xff] %v13141_v42 }
 0x1ec   :  { %v2613_v58 = vld [vmem:[#allocation11 + $0x7a0] sm:$0xff]  ;;  %v13145_v49 = vcombine.high %v2481_v44, %v2485_v41  ;;  %v13151_v10 = vcombine.low %v2481_v44, %v2485_v41 }
 0x1ed   :  { %5495 = vmatpush1.bf16.msra.mxu0 %v13115_v57  ;;  %5536 = vmatpush1.bf16.msra.mxu1 %v13117_v18  ;;  %v13147_v16 = vcombine.high %v2609_v59, %v2613_v58  ;;  %v2601_v18 = vld [vmem:[#allocation11 + $0x740] sm:$0xff]  ;;  %v13153_v46 = vcombine.low %v2609_v59, %v2613_v58 }
 0x1ee   :  { %5496 = vmatprep.subr.bf16.mxu0 %v13121_v32  ;;  %5537 = vmatprep.subr.bf16.mxu1 %v13123_v39  ;;  %17904 = vst [vmem:[#allocation103_spill] sm:$0xff] %v13145_v49  ;;  %v2473_v39 = vld [vmem:[#allocation11 + $0x340] sm:$0xff]  ;;  %17906 = vst [vmem:[#allocation105_spill] sm:$0xff] %v13151_v10 }
 0x1ef   :  { %17905 = vst [vmem:[#allocation104_spill] sm:$0xff] %v13147_v16  ;;  %v2477_v32 = vld [vmem:[#allocation11 + $0x360] sm:$0xff]  ;;  %17907 = vst [vmem:[#allocation106_spill] sm:$0xff] %v13153_v46 }
 0x1f0   :  { %v2605_v57 = vld [vmem:[#allocation11 + $0x760] sm:$0xff]  ;;  %v13157_v30 = vcombine.high %v2473_v39, %v2477_v32  ;;  %v13169_v58 = vcombine.low %v2473_v39, %v2477_v32 }
 0x1f1   :  { %5497 = vmatpush1.bf16.msra.mxu0 %v13127_v24  ;;  %5538 = vmatpush1.bf16.msra.mxu1 %v13129_v31  ;;  %v13159_v8 = vcombine.high %v2601_v18, %v2605_v57  ;;  %v2593_v31 = vld [vmem:[#allocation11 + $0x700] sm:$0xff]  ;;  %v13171_v59 = vcombine.low %v2601_v18, %v2605_v57 }
 0x1f2   :  { %5498 = vmatprep.subr.bf16.mxu0 %v13133_v23  ;;  %5539 = vmatprep.subr.bf16.mxu1 %v13135_v29  ;;  %17908 = vst [vmem:[#allocation107_spill] sm:$0xff] %v13157_v30  ;;  %v2465_v29 = vld [vmem:[#allocation11 + $0x300] sm:$0xff]  ;;  %17910 = vst [vmem:[#allocation109_spill] sm:$0xff] %v13169_v58 }
 0x1f3   :  { %17909 = vst [vmem:[#allocation108_spill] sm:$0xff] %v13159_v8  ;;  %v2469_v23 = vld [vmem:[#allocation11 + $0x320] sm:$0xff]  ;;  %17911 = vst [vmem:[#allocation110_spill] sm:$0xff] %v13171_v59 }
 0x1f4   :  { %v2597_v24 = vld [vmem:[#allocation11 + $0x720] sm:$0xff]  ;;  %v13173_v44 = vcombine.high %v2465_v29, %v2469_v23  ;;  %v13188_v39 = vcombine.low %v2465_v29, %v2469_v23  ;;  %v13208_v29 = vcombine.high %v2577_v1, %v2581_v33 }
 0x1f5   :  { %5499 = vmatpush2.bf16.msra.mxu0 %v13139_v62  ;;  %5540 = vmatpush2.bf16.msra.mxu1 %v13141_v42  ;;  %v13161_v7 = vld [vmem:[#allocation11 + $0x9c0] sm:$0xff] }
 0x1f6   :  { %5500 = vmatprep.subr.bf16.mxu0 %v13145_v49  ;;  %5541 = vmatprep.subr.bf16.mxu1 %v13147_v16  ;;  %v13163_v62 = vld [vmem:[#allocation11 + $0x9e0] sm:$0xff]  ;;  %17912 = vst [vmem:[#allocation111_spill] sm:$0xff] %v13173_v44  ;;  %v13177_v49 = vcombine.high %v2593_v31, %v2597_v24  ;;  %17916 = vst [vmem:[#allocation115_spill] sm:$0xff] %v13188_v39 }
 0x1f7   :  { %v13165_v41 = vld [vmem:[#allocation11 + $0xdc0] sm:$0xff]  ;;  %v13181_v63 = vcombine.low %v13161_v7, %v13163_v62  ;;  %17923 = vst [vmem:[#allocation122_spill] sm:$0xff] %v13208_v29 }
 0x1f8   :  { %v2813_v16 = vld [vmem:[#allocation11 + $0xde0] sm:$0xff]  ;;  %17913 = vst [vmem:[#allocation112_spill] sm:$0xff] %v13177_v49 }
 0x1f9   :  { %5501 = vmatpush2.bf16.msra.mxu0 %v13151_v10  ;;  %5542 = vmatpush2.bf16.msra.mxu1 %v13153_v46  ;;  %v2457_v42 = vld [vmem:[#allocation11 + $0x2c0] sm:$0xff]  ;;  %17914 = vst [vmem:[#allocation113_spill] sm:$0xff] %v13181_v63  ;;  %v13184_v46 = vcombine.low %v13165_v41, %v2813_v16 }
 0x1fa   :  { %5502 = vmatprep.subr.bf16.mxu0 %v13157_v30  ;;  %5543 = vmatprep.subr.bf16.mxu1 %v13159_v8  ;;  %v2461_v32 = vld [vmem:[#allocation11 + $0x2e0] sm:$0xff]  ;;  %v13190_v8 = vcombine.low %v2593_v31, %v2597_v24  ;;  %v13206_v31 = vcombine.high %v2449_v40, %v2453_v35 }
 0x1fb   :  { %17915 = vst [vmem:[#allocation114_spill] sm:$0xff] %v13184_v46  ;;  %v2585_v57 = vld [vmem:[#allocation11 + $0x6c0] sm:$0xff]  ;;  %v13194_v30 = vcombine.high %v2457_v42, %v2461_v32  ;;  %v13200_v23 = vcombine.low %v2457_v42, %v2461_v32  ;;  %v13212_v42 = vcombine.low %v2449_v40, %v2453_v35  ;;  %v13214_v32 = vcombine.low %v2577_v1, %v2581_v33 }
 0x1fc   :  { %v2589_v18 = vld [vmem:[#allocation11 + $0x6e0] sm:$0xff]  ;;  %17917 = vst [vmem:[#allocation116_spill] sm:$0xff] %v13190_v8  ;;  %17922 = vst [vmem:[#allocation121_spill] sm:$0xff] %v13206_v31 }
 0x1fd   :  { %5503 = vmatpush2.bf16.msra.mxu0 %v13169_v58  ;;  %5544 = vmatpush2.bf16.msra.mxu1 %v13171_v59  ;;  %17918 = vst [vmem:[#allocation117_spill] sm:$0xff] %v13194_v30  ;;  %v13196_v10 = vcombine.high %v2585_v57, %v2589_v18  ;;  %17920 = vst [vmem:[#allocation119_spill] sm:$0xff] %v13200_v23  ;;  %v13202_v24 = vcombine.low %v2585_v57, %v2589_v18  ;;  %v2569_v59 = vld [vmem:[#allocation11 + $0x640] sm:$0xff] }
 0x1fe   :  { %5504 = vmatprep.subr.bf16.mxu0 %v13173_v44  ;;  %5545 = vmatprep.subr.bf16.mxu1 %v13177_v49  ;;  %v2441_v49 = vld [vmem:[#allocation11 + $0x240] sm:$0xff]  ;;  %17924 = vst [vmem:[#allocation123_spill] sm:$0xff] %v13212_v42  ;;  %17925 = vst [vmem:[#allocation124_spill] sm:$0xff] %v13214_v32 }
 0x1ff   :  { %17919 = vst [vmem:[#allocation118_spill] sm:$0xff] %v13196_v10  ;;  %17921 = vst [vmem:[#allocation120_spill] sm:$0xff] %v13202_v24  ;;  %v2445_v44 = vld [vmem:[#allocation11 + $0x260] sm:$0xff] }
 0x200   :  { %v2573_v58 = vld [vmem:[#allocation11 + $0x660] sm:$0xff]  ;;  %v13218_v57 = vcombine.high %v2441_v49, %v2445_v44  ;;  %v13224_v35 = vcombine.low %v2441_v49, %v2445_v44  ;;  %v13244_v49 = vcombine.high %v13161_v7, %v13163_v62  ;;  %v17936_v44 = vld [vmem:[#allocation27_spill] sm:$0xff] }
 0x201   :  { %5505 = vmatpush2.bf16.msra.mxu0 %v13188_v39  ;;  %5546 = vmatpush2.bf16.msra.mxu1 %v13190_v8  ;;  %v13220_v18 = vcombine.high %v2569_v59, %v2573_v58  ;;  %v2561_v8 = vld [vmem:[#allocation11 + $0x600] sm:$0xff]  ;;  %v13226_v33 = vcombine.low %v2569_v59, %v2573_v58  ;;  %v13247_v58 = vcombine.high %v13165_v41, %v2813_v16  ;;  %v16528_v7 = vsub.s32 6, %v17936_v44  ;;  %v13255_v16 = vld [vmem:[#allocation10] sm:$0xff] }
 0x202   :  { %5506 = vmatprep.subr.bf16.mxu0 %v13194_v30  ;;  %5547 = vmatprep.subr.bf16.mxu1 %v13196_v10  ;;  %17926 = vst [vmem:[#allocation125_spill] sm:$0xff] %v13218_v57  ;;  %v2433_v10 = vld [vmem:[#allocation11 + $0x200] sm:$0xff]  ;;  %17928 = vst [vmem:[#allocation127_spill] sm:$0xff] %v13224_v35 }
 0x203   :  { %17927 = vst [vmem:[#allocation126_spill] sm:$0xff] %v13220_v18  ;;  %v2437_v30 = vld [vmem:[#allocation11 + $0x220] sm:$0xff]  ;;  %17929 = vst [vmem:[#allocation128_spill] sm:$0xff] %v13226_v33 }
 0x204   :  { %v2565_v39 = vld [vmem:[#allocation11 + $0x620] sm:$0xff]  ;;  %v13230_v1 = vcombine.high %v2433_v10, %v2437_v30  ;;  %17934 = vst [vmem:[#allocation133_spill] sm:$0xff] %v13244_v49  ;;  %17935 = vst [vmem:[#allocation134_spill] sm:$0xff] %v13247_v58 }
 0x205   :  { %5507 = vmatpush2.bf16.msra.mxu0 %v13200_v23  ;;  %5548 = vmatpush2.bf16.msra.mxu1 %v13202_v24  ;;  %v13232_v40 = vcombine.high %v2561_v8, %v2565_v39 }
 0x206   :  { %5508 = vmatprep.subr.bf16.mxu0 %v13206_v31  ;;  %5549 = vmatprep.subr.bf16.mxu1 %v13208_v29  ;;  %17930 = vst [vmem:[#allocation129_spill] sm:$0xff] %v13230_v1  ;;  %v13236_v29 = vcombine.low %v2433_v10, %v2437_v30  ;;  %v16531_v31 = vsub.s32 2, %v17936_v44 }
 0x207   :  { %17931 = vst [vmem:[#allocation130_spill] sm:$0xff] %v13232_v40 }
 0x208   :  { %17932 = vst [vmem:[#allocation131_spill] sm:$0xff] %v13236_v29 }
 0x209   :  { %5509 = vmatpush2.bf16.msra.mxu0 %v13212_v42  ;;  %5550 = vmatpush2.bf16.msra.mxu1 %v13214_v32  ;;  %v13238_v42 = vcombine.low %v2561_v8, %v2565_v39  ;;  %v16523_v39 = vsub.s32 4, %v17936_v44 }
 0x20a   :  { %5510 = vmatprep.subr.bf16.mxu0 %v13218_v57  ;;  %5551 = vmatprep.subr.bf16.mxu1 %v13220_v18 }
 0x20b   :  { %17933 = vst [vmem:[#allocation132_spill] sm:$0xff] %v13238_v42 }
 0x20d   :  { %5511 = vmatpush2.bf16.msra.mxu0 %v13224_v35  ;;  %5552 = vmatpush2.bf16.msra.mxu1 %v13226_v33 }
 0x20e   :  { %5512 = vmatprep.subr.bf16.mxu0 %v13230_v1  ;;  %5553 = vmatprep.subr.bf16.mxu1 %v13232_v40 }
 0x211   :  { %5513 = vmatpush2.bf16.msra.mxu0 %v13236_v29  ;;  %5554 = vmatpush2.bf16.msra.mxu1 %v13238_v42 }
 0x212   :  { %5564 = vmatprep.subr.bf16.mxu0 %v13244_v49  ;;  %5605 = vmatprep.subr.bf16.mxu1 %v13247_v58  ;;  %v1768_v49 = vrot.slane %v13255_v16, %v16523_v39  ;;  %v1776_v58 = vrot.slane %v13255_v16, %v16528_v7  ;;  %v16534_v7 = vsub.s32 0, %v17936_v44 }
 0x24c   :  { %v1618_v10 = vpop.f32.mrf.mxu0  ;;  %v1659_v30 = vpop.f32.mrf.mxu1 }
 0x24e   :  { %v1620_v8 = vpop.f32.mrf.mxu0  ;;  %v1661_v59 = vpop.f32.mrf.mxu1 }
 0x250   :  { %v1622_v62 = vpop.f32.mrf.mxu0  ;;  %v1663_v40 = vpop.f32.mrf.mxu1 }
 0x252   :  { %v1623_v41 = vpop.f32.mrf.mxu0  ;;  %v1664_v29 = vpop.f32.mrf.mxu1 }
 0x254   :  { %v1700_v42 = vpop.f32.mrf.mxu0  ;;  %v1741_v1 = vpop.f32.mrf.mxu1 }
 0x255   :  { %v1701_v33 = vadd.f32 %v1700_v42, %v12782_v48  ;;  %v1742_v35 = vadd.f32 %v1741_v1, %v12784_v17  ;;  %v16532_v48 = vsub.s32 1, %v17936_v44  ;;  %v16533_v17 = vsub.s32 3, %v17936_v44 }
 0x256   :  { %v13265_v62 = vpop.f32.mrf.mxu0  ;;  %v13267_v40 = vpop.f32.mrf.mxu1  ;;  %v1619_v42 = vadd.f32 %v1618_v10, %v12735_v22  ;;  %v1662_v1 = vadd.f32 %v1661_v59, %v12751_v26  ;;  %v2673_v59 = vld [vmem:[#allocation11 + $0x980] sm:$0xff] }
 0x257   :  { %v13269_v41 = vadd.f32 %v1768_v49, %v1701_v33  ;;  %v13271_v29 = vadd.f32 %v1776_v58, %v1742_v35  ;;  %v1752_v33 = vrot.slane %v13255_v16, %v16534_v7  ;;  %v1660_v35 = vadd.f32 %v1659_v30, %v12737_v21 }
 0x258   :  { %v1704_v18 = vpop.f32.mrf.mxu0  ;;  %v1745_v39 = vpop.f32.mrf.mxu1  ;;  %v1764_v22 = vrot.slane %v13255_v16, %v16533_v17 }
 0x259   :  { %17937 = vst [vmem:[#allocation27_spill] sm:$0xff] %v13269_v41  ;;  %17938 = vst [vmem:[#allocation135_spill] sm:$0xff] %v13271_v29  ;;  %v1756_v18 = vrot.slane %v13255_v16, %v16532_v48  ;;  %v13293_v49 = vadd.f32 %v1752_v33, %v1619_v42  ;;  %v2677_v33 = vld [vmem:[#allocation11 + $0x9a0] sm:$0xff] }
 0x25a   :  { %v1705_v57 = vpop.f32.mrf.mxu0  ;;  %v1746_v32 = vpop.f32.mrf.mxu1  ;;  %v13299_v39 = vadd.f32 %v1764_v22, %v1662_v1 }
 0x25b   :  { %v1760_v32 = vrot.slane %v13255_v16, %v16531_v31  ;;  %v1621_v57 = vadd.f32 %v1620_v8, %v12749_v15  ;;  %17939 = vst [vmem:[#allocation136_spill] sm:$0xff] %v13293_v49 }
 0x25c   :  { %17942 = vst [vmem:[#allocation139_spill] sm:$0xff] %v13299_v39 }
 0x25d   :  { %v13295_v58 = vadd.f32 %v1760_v32, %v1660_v35  ;;  %v13297_v30 = vadd.f32 %v1756_v18, %v1621_v57  ;;  %v2801_v35 = vld [vmem:[#allocation11 + $0xd80] sm:$0xff] }
 0x25e   :  { %v2805_v32 = vld [vmem:[#allocation11 + $0xda0] sm:$0xff] }
 0x25f   :  { %17940 = vst [vmem:[#allocation137_spill] sm:$0xff] %v13295_v58  ;;  %17941 = vst [vmem:[#allocation138_spill] sm:$0xff] %v13297_v30 }
 0x274   :  { %v2223_v21 = vpop.f32.mrf.mxu0  ;;  %v2264_v10 = vpop.f32.mrf.mxu1 }
 0x275   :  { %v2353_v15 = vadd.f32 %v2223_v21, %v13293_v49  ;;  %v2355_v8 = vadd.f32 %v2264_v10, %v13295_v58  ;;  %v13313_v58 = vcombine.high %v2673_v59, %v2677_v33  ;;  %v2789_v49 = vld [vmem:[#allocation11 + $0xd20] sm:$0xff] }
 0x276   :  { %v2225_v31 = vpop.f32.mrf.mxu0  ;;  %v2266_v26 = vpop.f32.mrf.mxu1 }
 0x277   :  { %v2354_v48 = vadd.f32 %v2225_v31, %v13297_v30  ;;  %v2356_v42 = vadd.f32 %v2266_v26, %v13299_v39  ;;  %v13309_v1 = vpack.c.bf16 %v2353_v15, %v2353_v15  ;;  %v13311_v22 = vpack.c.bf16 %v2355_v8, %v2355_v8  ;;  %17943 = vst [vmem:[#allocation140_spill] sm:$0xff] %v13313_v58  ;;  %v2665_v26 = vld [vmem:[#allocation11 + $0x940] sm:$0xff] }
 0x278   :  { %v2227_v17 = vpop.f32.mrf.mxu0  ;;  %v2268_v7 = vpop.f32.mrf.mxu1  ;;  %v13315_v31 = vcombine.high %v2801_v35, %v2805_v32  ;;  %v13323_v15 = vcombine.low %v2673_v59, %v2677_v33  ;;  %v13325_v8 = vcombine.low %v2801_v35, %v2805_v32  ;;  %v2661_v39 = vld [vmem:[#allocation11 + $0x920] sm:$0xff] }
 0x279   :  { %v13305_v57 = vpack.c.bf16 %v2354_v48, %v2354_v48  ;;  %v13307_v18 = vpack.c.bf16 %v2356_v42, %v2356_v42  ;;  %v2669_v7 = vld [vmem:[#allocation11 + $0x960] sm:$0xff] }
 0x27a   :  { %v2228_v21 = vpop.f32.mrf.mxu0  ;;  %v2269_v10 = vpop.f32.mrf.mxu1  ;;  %17944 = vst [vmem:[#allocation141_spill] sm:$0xff] %v13315_v31  ;;  %v2793_v48 = vld [vmem:[#allocation11 + $0xd40] sm:$0xff]  ;;  %17945 = vst [vmem:[#allocation142_spill] sm:$0xff] %v13323_v15  ;;  %v13329_v42 = vcombine.high %v2665_v26, %v2669_v7  ;;  %v13335_v59 = vcombine.low %v2665_v26, %v2669_v7 }
 0x27b   :  { %5514 = vmatprep.mubr.bf16.mxu0 %v13305_v57  ;;  %5555 = vmatprep.mubr.bf16.mxu1 %v13307_v18  ;;  %v2797_v17 = vld [vmem:[#allocation11 + $0xd60] sm:$0xff]  ;;  %17946 = vst [vmem:[#allocation143_spill] sm:$0xff] %v13325_v8 }
 0x27c   :  { %5515 = vmatmul.mubr.bf16.vlgmr.msra.gmra.mxu0 %v13309_v1  ;;  %5556 = vmatmul.mubr.bf16.vlgmr.msra.gmra.mxu1 %v13311_v22  ;;  %17947 = vst [vmem:[#allocation144_spill] sm:$0xff] %v13329_v42  ;;  %v13331_v21 = vcombine.high %v2793_v48, %v2797_v17  ;;  %v2657_v10 = vld [vmem:[#allocation11 + $0x900] sm:$0xff]  ;;  %17949 = vst [vmem:[#allocation146_spill] sm:$0xff] %v13335_v59  ;;  %v13337_v33 = vcombine.low %v2793_v48, %v2797_v17 }
 0x27d   :  { %5565 = vmatpush1.bf16.msra.mxu0 %v13181_v63  ;;  %5606 = vmatpush1.bf16.msra.mxu1 %v13184_v46  ;;  %v2785_v30 = vld [vmem:[#allocation11 + $0xd00] sm:$0xff]  ;;  %v13341_v35 = vcombine.high %v2657_v10, %v2661_v39  ;;  %v13347_v26 = vcombine.low %v2657_v10, %v2661_v39 }
 0x27e   :  { %5566 = vmatprep.subr.bf16.mxu0 %v13313_v58  ;;  %5607 = vmatprep.subr.bf16.mxu1 %v13315_v31  ;;  %17948 = vst [vmem:[#allocation145_spill] sm:$0xff] %v13331_v21  ;;  %17950 = vst [vmem:[#allocation147_spill] sm:$0xff] %v13337_v33  ;;  %v13343_v32 = vcombine.high %v2785_v30, %v2789_v49  ;;  %v2649_v31 = vld [vmem:[#allocation11 + $0x8c0] sm:$0xff]  ;;  %v13349_v7 = vcombine.low %v2785_v30, %v2789_v49 }
 0x27f   :  { %17951 = vst [vmem:[#allocation148_spill] sm:$0xff] %v13341_v35  ;;  %v2653_v58 = vld [vmem:[#allocation11 + $0x8e0] sm:$0xff]  ;;  %17953 = vst [vmem:[#allocation150_spill] sm:$0xff] %v13347_v26 }
 0x280   :  { %17952 = vst [vmem:[#allocation149_spill] sm:$0xff] %v13343_v32  ;;  %v2777_v46 = vld [vmem:[#allocation11 + $0xcc0] sm:$0xff]  ;;  %17954 = vst [vmem:[#allocation151_spill] sm:$0xff] %v13349_v7  ;;  %v13353_v48 = vcombine.high %v2649_v31, %v2653_v58  ;;  %v13359_v39 = vcombine.low %v2649_v31, %v2653_v58 }
 0x281   :  { %5567 = vmatpush1.bf16.msra.mxu0 %v13323_v15  ;;  %5608 = vmatpush1.bf16.msra.mxu1 %v13325_v8  ;;  %v2781_v63 = vld [vmem:[#allocation11 + $0xce0] sm:$0xff] }
 0x282   :  { %5568 = vmatprep.subr.bf16.mxu0 %v13329_v42  ;;  %5609 = vmatprep.subr.bf16.mxu1 %v13331_v21  ;;  %17955 = vst [vmem:[#allocation152_spill] sm:$0xff] %v13353_v48  ;;  %v13355_v17 = vcombine.high %v2777_v46, %v2781_v63  ;;  %v2641_v21 = vld [vmem:[#allocation11 + $0x880] sm:$0xff]  ;;  %17957 = vst [vmem:[#allocation154_spill] sm:$0xff] %v13359_v39  ;;  %v13361_v49 = vcombine.low %v2777_v46, %v2781_v63 }
 0x283   :  { %v2645_v42 = vld [vmem:[#allocation11 + $0x8a0] sm:$0xff] }
 0x284   :  { %17956 = vst [vmem:[#allocation153_spill] sm:$0xff] %v13355_v17  ;;  %v2769_v8 = vld [vmem:[#allocation11 + $0xc80] sm:$0xff]  ;;  %17958 = vst [vmem:[#allocation155_spill] sm:$0xff] %v13361_v49  ;;  %v13365_v30 = vcombine.high %v2641_v21, %v2645_v42  ;;  %v13373_v63 = vcombine.low %v2641_v21, %v2645_v42  ;;  %v17966_v42 = vsub.s32 7, %v17936_v44  ;;  %v1703_v21 = vadd.f32 %v13265_v62, %v12794_v45 }
 0x285   :  { %5569 = vmatpush1.bf16.msra.mxu0 %v13335_v59  ;;  %5610 = vmatpush1.bf16.msra.mxu1 %v13337_v33  ;;  %v2773_v15 = vld [vmem:[#allocation11 + $0xca0] sm:$0xff] }
 0x286   :  { %5570 = vmatprep.subr.bf16.mxu0 %v13341_v35  ;;  %5611 = vmatprep.subr.bf16.mxu1 %v13343_v32  ;;  %17959 = vst [vmem:[#allocation156_spill] sm:$0xff] %v13365_v30  ;;  %v13367_v10 = vcombine.high %v2769_v8, %v2773_v15  ;;  %v2633_v32 = vld [vmem:[#allocation11 + $0x840] sm:$0xff]  ;;  %17961 = vst [vmem:[#allocation158_spill] sm:$0xff] %v13373_v63  ;;  %v13375_v46 = vcombine.low %v2769_v8, %v2773_v15 }
 0x287   :  { %v2637_v35 = vld [vmem:[#allocation11 + $0x860] sm:$0xff]  ;;  %v1780_v15 = vrot.slane %v13255_v16, %v17966_v42 }
 0x288   :  { %17960 = vst [vmem:[#allocation157_spill] sm:$0xff] %v13367_v10  ;;  %v2761_v33 = vld [vmem:[#allocation11 + $0xc40] sm:$0xff]  ;;  %17962 = vst [vmem:[#allocation159_spill] sm:$0xff] %v13375_v46  ;;  %v13379_v58 = vcombine.high %v2633_v32, %v2637_v35  ;;  %v13389_v8 = vcombine.low %v2633_v32, %v2637_v35 }
 0x289   :  { %5571 = vmatpush1.bf16.msra.mxu0 %v13347_v26  ;;  %5612 = vmatpush1.bf16.msra.mxu1 %v13349_v7  ;;  %v2765_v59 = vld [vmem:[#allocation11 + $0xc60] sm:$0xff] }
 0x28a   :  { %5572 = vmatprep.subr.bf16.mxu0 %v13353_v48  ;;  %5613 = vmatprep.subr.bf16.mxu1 %v13355_v17  ;;  %17963 = vst [vmem:[#allocation160_spill] sm:$0xff] %v13379_v58  ;;  %v13381_v31 = vcombine.high %v2761_v33, %v2765_v59  ;;  %v2625_v17 = vld [vmem:[#allocation11 + $0x800] sm:$0xff]  ;;  %17967 = vst [vmem:[#allocation162_spill] sm:$0xff] %v13389_v8 }
 0x28b   :  { %v2629_v26 = vld [vmem:[#allocation11 + $0x820] sm:$0xff] }
 0x28c   :  { %17964 = vst [vmem:[#allocation161_spill] sm:$0xff] %v13381_v31  ;;  %v2753_v48 = vld [vmem:[#allocation11 + $0xc00] sm:$0xff] }
 0x28d   :  { %5573 = vmatpush1.bf16.msra.mxu0 %v13359_v39  ;;  %5614 = vmatpush1.bf16.msra.mxu1 %v13361_v49  ;;  %v2757_v7 = vld [vmem:[#allocation11 + $0xc20] sm:$0xff]  ;;  %v17965_v39 = vsub.s32 5, %v17936_v44 }
 0x28e   :  { %5574 = vmatprep.subr.bf16.mxu0 %v13365_v30  ;;  %5615 = vmatprep.subr.bf16.mxu1 %v13367_v10  ;;  %v1744_v10 = vadd.f32 %v13267_v40, %v12796_v9  ;;  %v13397_v30 = vcombine.low %v2761_v33, %v2765_v59  ;;  %v2745_v35 = vld [vmem:[#allocation11 + $0xbc0] sm:$0xff]  ;;  %v13409_v40 = vcombine.low %v2625_v17, %v2629_v26 }
 0x28f   :  { %v1772_v49 = vrot.slane %v13255_v16, %v17965_v39  ;;  %v13401_v39 = vcombine.high %v2625_v17, %v2629_v26  ;;  %v13403_v16 = vcombine.high %v2753_v48, %v2757_v7  ;;  %v2749_v32 = vld [vmem:[#allocation11 + $0xbe0] sm:$0xff] }
 0x290   :  { %17968 = vst [vmem:[#allocation163_spill] sm:$0xff] %v13397_v30  ;;  %v2873_v45 = vld [vmem:[#allocation11 + $0xfc0] sm:$0xff]  ;;  %17971 = vst [vmem:[#allocation166_spill] sm:$0xff] %v13409_v40  ;;  %v13413_v33 = vadd.f32 %v1780_v15, %v1744_v10 }
 0x291   :  { %5575 = vmatpush1.bf16.msra.mxu0 %v13373_v63  ;;  %5616 = vmatpush1.bf16.msra.mxu1 %v13375_v46  ;;  %17969 = vst [vmem:[#allocation164_spill] sm:$0xff] %v13401_v39  ;;  %17970 = vst [vmem:[#allocation165_spill] sm:$0xff] %v13403_v16  ;;  %v2877_v62 = vld [vmem:[#allocation11 + $0xfe0] sm:$0xff]  ;;  %v13411_v59 = vadd.f32 %v1772_v49, %v1703_v21  ;;  %v13421_v63 = vcombine.high %v2745_v35, %v2749_v32 }
 0x292   :  { %5576 = vmatprep.subr.bf16.mxu0 %v13379_v58  ;;  %5617 = vmatprep.subr.bf16.mxu1 %v13381_v31  ;;  %17973 = vst [vmem:[#allocation168_spill] sm:$0xff] %v13413_v33  ;;  %v13417_v31 = vcombine.low %v2753_v48, %v2757_v7  ;;  %v13423_v26 = vcombine.high %v2873_v45, %v2877_v62  ;;  %v2737_v17 = vld [vmem:[#allocation11 + $0xb80] sm:$0xff] }
 0x293   :  { %17972 = vst [vmem:[#allocation167_spill] sm:$0xff] %v13411_v59  ;;  %17975 = vst [vmem:[#allocation170_spill] sm:$0xff] %v13421_v63  ;;  %v2741_v15 = vld [vmem:[#allocation11 + $0xba0] sm:$0xff]  ;;  %v13427_v7 = vcombine.low %v2745_v35, %v2749_v32 }
 0x294   :  { %v13405_v42 = vpop.f32.mrf.mxu0  ;;  %v13407_v9 = vpop.f32.mrf.mxu1  ;;  %17974 = vst [vmem:[#allocation169_spill] sm:$0xff] %v13417_v31  ;;  %17976 = vst [vmem:[#allocation171_spill] sm:$0xff] %v13423_v26  ;;  %v2865_v21 = vld [vmem:[#allocation11 + $0xf80] sm:$0xff] }
 0x295   :  { %5577 = vmatpush1.bf16.msra.mxu0 %v13389_v8  ;;  %5618 = vmatpush1.bf16.msra.mxu1 %v13397_v30  ;;  %v2869_v30 = vld [vmem:[#allocation11 + $0xfa0] sm:$0xff]  ;;  %17977 = vst [vmem:[#allocation172_spill] sm:$0xff] %v13427_v7 }
 0x296   :  { %v2307_v58 = vpop.f32.mrf.mxu0  ;;  %v2348_v46 = vpop.f32.mrf.mxu1  ;;  %5578 = vmatprep.subr.bf16.mxu0 %v13401_v39  ;;  %5619 = vmatprep.subr.bf16.mxu1 %v13403_v16  ;;  %v13435_v16 = vcombine.low %v2873_v45, %v2877_v62  ;;  %v2729_v35 = vld [vmem:[#allocation11 + $0xb40] sm:$0xff]  ;;  %v13447_v45 = vcombine.low %v2737_v17, %v2741_v15  ;;  %v13449_v62 = vcombine.low %v2865_v21, %v2869_v30 }
 0x297   :  { %v2358_v49 = vadd.f32 %v2307_v58, %v13411_v59  ;;  %v2360_v10 = vadd.f32 %v2348_v46, %v13413_v33  ;;  %v13439_v46 = vcombine.high %v2737_v17, %v2741_v15  ;;  %v13441_v58 = vcombine.high %v2865_v21, %v2869_v30 }
 0x298   :  { %v2309_v48 = vpop.f32.mrf.mxu0  ;;  %v2350_v8 = vpop.f32.mrf.mxu1  ;;  %17978 = vst [vmem:[#allocation173_spill] sm:$0xff] %v13435_v16  ;;  %17981 = vst [vmem:[#allocation176_spill] sm:$0xff] %v13447_v45 }
 0x299   :  { %v13429_v24 = vpack.c.bf16 %v2358_v49, %v2358_v49  ;;  %v13431_v39 = vpack.c.bf16 %v2360_v10, %v2360_v10  ;;  %5579 = vmatpush1.bf16.msra.mxu0 %v13409_v40  ;;  %5620 = vmatpush1.bf16.msra.mxu1 %v13417_v31  ;;  %17979 = vst [vmem:[#allocation174_spill] sm:$0xff] %v13439_v46  ;;  %17980 = vst [vmem:[#allocation175_spill] sm:$0xff] %v13441_v58  ;;  %v2733_v49 = vld [vmem:[#allocation11 + $0xb60] sm:$0xff] }
 0x29a   :  { %5580 = vmatprep.subr.bf16.mxu0 %v13421_v63  ;;  %5621 = vmatprep.subr.bf16.mxu1 %v13423_v26  ;;  %v2310_v8 = vpop.f32.mrf.mxu0  ;;  %v2351_v32 = vpop.f32.mrf.mxu1  ;;  %v2857_v10 = vld [vmem:[#allocation11 + $0xf40] sm:$0xff]  ;;  %17982 = vst [vmem:[#allocation177_spill] sm:$0xff] %v13449_v62  ;;  %v13459_v17 = vcombine.low %v2729_v35, %v2733_v49 }
 0x29b   :  { %5596 = vmatprep.mubr.bf16.mxu0 %v13429_v24  ;;  %5637 = vmatprep.mubr.bf16.mxu1 %v13431_v39  ;;  %v2861_v48 = vld [vmem:[#allocation11 + $0xf60] sm:$0xff]  ;;  %v13453_v8 = vcombine.high %v2729_v35, %v2733_v49 }
 0x29c   :  { %v13455_v32 = vcombine.high %v2857_v10, %v2861_v48  ;;  %v2721_v26 = vld [vmem:[#allocation11 + $0xb00] sm:$0xff]  ;;  %17985 = vst [vmem:[#allocation180_spill] sm:$0xff] %v13459_v17  ;;  %v13461_v30 = vcombine.low %v2857_v10, %v2861_v48 }
 0x29d   :  { %5581 = vmatpush2.bf16.msra.mxu0 %v13427_v7  ;;  %5622 = vmatpush2.bf16.msra.mxu1 %v13435_v16  ;;  %17983 = vst [vmem:[#allocation178_spill] sm:$0xff] %v13453_v8  ;;  %v2725_v63 = vld [vmem:[#allocation11 + $0xb20] sm:$0xff] }
 0x29e   :  { %5582 = vmatprep.subr.bf16.mxu0 %v13439_v46  ;;  %5623 = vmatprep.subr.bf16.mxu1 %v13441_v58  ;;  %17984 = vst [vmem:[#allocation179_spill] sm:$0xff] %v13455_v32  ;;  %v2849_v31 = vld [vmem:[#allocation11 + $0xf00] sm:$0xff]  ;;  %17986 = vst [vmem:[#allocation181_spill] sm:$0xff] %v13461_v30  ;;  %v13465_v15 = vcombine.high %v2721_v26, %v2725_v63  ;;  %v13471_v35 = vcombine.low %v2721_v26, %v2725_v63 }
 0x29f   :  { %v2853_v40 = vld [vmem:[#allocation11 + $0xf20] sm:$0xff] }
 0x2a0   :  { %17987 = vst [vmem:[#allocation182_spill] sm:$0xff] %v13465_v15  ;;  %v13467_v21 = vcombine.high %v2849_v31, %v2853_v40  ;;  %v2713_v58 = vld [vmem:[#allocation11 + $0xac0] sm:$0xff]  ;;  %17989 = vst [vmem:[#allocation184_spill] sm:$0xff] %v13471_v35  ;;  %v13473_v49 = vcombine.low %v2849_v31, %v2853_v40 }
 0x2a1   :  { %5583 = vmatpush2.bf16.msra.mxu0 %v13447_v45  ;;  %5624 = vmatpush2.bf16.msra.mxu1 %v13449_v62  ;;  %v2717_v46 = vld [vmem:[#allocation11 + $0xae0] sm:$0xff] }
 0x2a2   :  { %5584 = vmatprep.subr.bf16.mxu0 %v13453_v8  ;;  %5625 = vmatprep.subr.bf16.mxu1 %v13455_v32  ;;  %17988 = vst [vmem:[#allocation183_spill] sm:$0xff] %v13467_v21  ;;  %v2841_v16 = vld [vmem:[#allocation11 + $0xec0] sm:$0xff]  ;;  %17990 = vst [vmem:[#allocation185_spill] sm:$0xff] %v13473_v49  ;;  %v13477_v10 = vcombine.high %v2713_v58, %v2717_v46  ;;  %v13483_v63 = vcombine.low %v2713_v58, %v2717_v46 }
 0x2a3   :  { %v2845_v7 = vld [vmem:[#allocation11 + $0xee0] sm:$0xff] }
 0x2a4   :  { %17991 = vst [vmem:[#allocation186_spill] sm:$0xff] %v13477_v10  ;;  %v13479_v48 = vcombine.high %v2841_v16, %v2845_v7  ;;  %v2705_v32 = vld [vmem:[#allocation11 + $0xa80] sm:$0xff]  ;;  %17993 = vst [vmem:[#allocation188_spill] sm:$0xff] %v13483_v63  ;;  %v13485_v31 = vcombine.low %v2841_v16, %v2845_v7 }
 0x2a5   :  { %5585 = vmatpush2.bf16.msra.mxu0 %v13459_v17  ;;  %5626 = vmatpush2.bf16.msra.mxu1 %v13461_v30  ;;  %v2709_v8 = vld [vmem:[#allocation11 + $0xaa0] sm:$0xff] }
 0x2a6   :  { %5586 = vmatprep.subr.bf16.mxu0 %v13465_v15  ;;  %5627 = vmatprep.subr.bf16.mxu1 %v13467_v21  ;;  %17992 = vst [vmem:[#allocation187_spill] sm:$0xff] %v13479_v48  ;;  %v2833_v62 = vld [vmem:[#allocation11 + $0xe80] sm:$0xff]  ;;  %17994 = vst [vmem:[#allocation189_spill] sm:$0xff] %v13485_v31  ;;  %v13489_v40 = vcombine.high %v2705_v32, %v2709_v8  ;;  %v13495_v46 = vcombine.low %v2705_v32, %v2709_v8 }
 0x2a7   :  { %v2837_v45 = vld [vmem:[#allocation11 + $0xea0] sm:$0xff] }
 0x2a8   :  { %17995 = vst [vmem:[#allocation190_spill] sm:$0xff] %v13489_v40  ;;  %v13491_v26 = vcombine.high %v2833_v62, %v2837_v45  ;;  %v2697_v21 = vld [vmem:[#allocation11 + $0xa40] sm:$0xff]  ;;  %17997 = vst [vmem:[#allocation192_spill] sm:$0xff] %v13495_v46  ;;  %v13497_v16 = vcombine.low %v2833_v62, %v2837_v45 }
 0x2a9   :  { %5587 = vmatpush2.bf16.msra.mxu0 %v13471_v35  ;;  %5628 = vmatpush2.bf16.msra.mxu1 %v13473_v49  ;;  %v2701_v15 = vld [vmem:[#allocation11 + $0xa60] sm:$0xff] }
 0x2aa   :  { %5588 = vmatprep.subr.bf16.mxu0 %v13477_v10  ;;  %5629 = vmatprep.subr.bf16.mxu1 %v13479_v48  ;;  %17996 = vst [vmem:[#allocation191_spill] sm:$0xff] %v13491_v26  ;;  %v2825_v30 = vld [vmem:[#allocation11 + $0xe40] sm:$0xff]  ;;  %17998 = vst [vmem:[#allocation193_spill] sm:$0xff] %v13497_v16  ;;  %v13501_v7 = vcombine.high %v2697_v21, %v2701_v15  ;;  %v13507_v8 = vcombine.low %v2697_v21, %v2701_v15 }
 0x2ab   :  { %v2829_v17 = vld [vmem:[#allocation11 + $0xe60] sm:$0xff]  ;;  %v2357_v21 = vadd.f32 %v13405_v42, %v13269_v41  ;;  %v2526_v41 = vld [vmem:[#allocation11 + $0x4e8] sm:$0xff] }
 0x2ac   :  { %17999 = vst [vmem:[#allocation194_spill] sm:$0xff] %v13501_v7  ;;  %v13503_v58 = vcombine.high %v2825_v30, %v2829_v17  ;;  %v2689_v48 = vld [vmem:[#allocation11 + $0xa00] sm:$0xff]  ;;  %18001 = vst [vmem:[#allocation196_spill] sm:$0xff] %v13507_v8  ;;  %v13509_v45 = vcombine.low %v2825_v30, %v2829_v17 }
 0x2ad   :  { %5589 = vmatpush2.bf16.msra.mxu0 %v13483_v63  ;;  %5630 = vmatpush2.bf16.msra.mxu1 %v13485_v31  ;;  %v2693_v10 = vld [vmem:[#allocation11 + $0xa20] sm:$0xff]  ;;  %v2554_v31 = vld [vmem:[#allocation11 + $0x5c8] sm:$0xff]  ;;  %v13537_v42 = vpack.c.bf16 %v2357_v21, %v2357_v21 }
 0x2ae   :  { %5590 = vmatprep.subr.bf16.mxu0 %v13489_v40  ;;  %5631 = vmatprep.subr.bf16.mxu1 %v13491_v26  ;;  %18000 = vst [vmem:[#allocation195_spill] sm:$0xff] %v13503_v58  ;;  %v2817_v49 = vld [vmem:[#allocation11 + $0xe00] sm:$0xff]  ;;  %18002 = vst [vmem:[#allocation197_spill] sm:$0xff] %v13509_v45  ;;  %v13513_v62 = vcombine.high %v2689_v48, %v2693_v10  ;;  %v2426_v26 = vld [vmem:[#allocation11 + $0x1c8] sm:$0xff]  ;;  %v13519_v15 = vcombine.low %v2689_v48, %v2693_v10 }
 0x2af   :  { %v2821_v35 = vld [vmem:[#allocation11 + $0xe20] sm:$0xff]  ;;  %v2430_v40 = vld [vmem:[#allocation11 + $0x1e8] sm:$0xff] }
 0x2b0   :  { %18003 = vst [vmem:[#allocation198_spill] sm:$0xff] %v13513_v62  ;;  %v13515_v32 = vcombine.high %v2817_v49, %v2821_v35  ;;  %v2558_v63 = vld [vmem:[#allocation11 + $0x5e8] sm:$0xff]  ;;  %18005 = vst [vmem:[#allocation200_spill] sm:$0xff] %v13519_v15  ;;  %v13521_v17 = vcombine.low %v2817_v49, %v2821_v35  ;;  %v13523_v30 = vcombine.high %v2426_v26, %v2430_v40 }
 0x2b1   :  { %5591 = vmatpush2.bf16.msra.mxu0 %v13495_v46  ;;  %5632 = vmatpush2.bf16.msra.mxu1 %v13497_v16  ;;  %v2546_v10 = vld [vmem:[#allocation11 + $0x588] sm:$0xff]  ;;  %v13535_v35 = vcombine.low %v2426_v26, %v2430_v40 }
 0x2b2   :  { %5592 = vmatprep.subr.bf16.mxu0 %v13501_v7  ;;  %5633 = vmatprep.subr.bf16.mxu1 %v13503_v58  ;;  %18004 = vst [vmem:[#allocation199_spill] sm:$0xff] %v13515_v32  ;;  %18006 = vst [vmem:[#allocation201_spill] sm:$0xff] %v13521_v17  ;;  %v2359_v58 = vadd.f32 %v13407_v9, %v13271_v29  ;;  %v13531_v7 = vcombine.high %v2554_v31, %v2558_v63  ;;  %v2550_v48 = vld [vmem:[#allocation11 + $0x5a8] sm:$0xff] }
 0x2b3   :  { %18007 = vst [vmem:[#allocation202_spill] sm:$0xff] %v13523_v30  ;;  %18009 = vst [vmem:[#allocation204_spill] sm:$0xff] %v13535_v35  ;;  %v13542_v9 = vcombine.low %v2554_v31, %v2558_v63  ;;  %v2410_v29 = vld [vmem:[#allocation11 + $0x148] sm:$0xff]  ;;  %v13557_v31 = vcombine.low %v2546_v10, %v2550_v48 }
 0x2b4   :  { %18008 = vst [vmem:[#allocation203_spill] sm:$0xff] %v13531_v7  ;;  %v13539_v49 = vpack.c.bf16 %v2359_v58, %v2359_v58  ;;  %v2538_v40 = vld [vmem:[#allocation11 + $0x548] sm:$0xff] }
 0x2b5   :  { %5593 = vmatpush2.bf16.msra.mxu0 %v13507_v8  ;;  %5634 = vmatpush2.bf16.msra.mxu1 %v13509_v45  ;;  %v2418_v8 = vld [vmem:[#allocation11 + $0x188] sm:$0xff]  ;;  %18010 = vst [vmem:[#allocation205_spill] sm:$0xff] %v13542_v9  ;;  %18014 = vst [vmem:[#allocation209_spill] sm:$0xff] %v13557_v31 }
 0x2b6   :  { %5594 = vmatprep.subr.bf16.mxu0 %v13513_v62  ;;  %5635 = vmatprep.subr.bf16.mxu1 %v13515_v32  ;;  %v2422_v45 = vld [vmem:[#allocation11 + $0x1a8] sm:$0xff]  ;;  %v13547_v62 = vcombine.high %v2546_v10, %v2550_v48 }
 0x2b7   :  { %v13545_v32 = vcombine.high %v2418_v8, %v2422_v45  ;;  %v2542_v26 = vld [vmem:[#allocation11 + $0x568] sm:$0xff]  ;;  %v13553_v63 = vcombine.low %v2418_v8, %v2422_v45 }
 0x2b8   :  { %18012 = vst [vmem:[#allocation207_spill] sm:$0xff] %v13547_v62  ;;  %v13563_v21 = vcombine.high %v2538_v40, %v2542_v26  ;;  %v13570_v45 = vcombine.low %v2538_v40, %v2542_v26 }
 0x2b9   :  { %5595 = vmatpush2.bf16.msra.mxu0 %v13519_v15  ;;  %5636 = vmatpush2.bf16.msra.mxu1 %v13521_v17  ;;  %18011 = vst [vmem:[#allocation206_spill] sm:$0xff] %v13545_v32  ;;  %v2414_v15 = vld [vmem:[#allocation11 + $0x168] sm:$0xff]  ;;  %18013 = vst [vmem:[#allocation208_spill] sm:$0xff] %v13553_v63 }
 0x2ba   :  { %5646 = vmatprep.subr.bf16.mxu0 %v13523_v30  ;;  %5687 = vmatprep.subr.bf16.mxu1 %v13531_v7  ;;  %v13559_v58 = vcombine.high %v2410_v29, %v2414_v15  ;;  %18016 = vst [vmem:[#allocation211_spill] sm:$0xff] %v13563_v21  ;;  %v2402_v7 = vld [vmem:[#allocation11 + $0x108] sm:$0xff]  ;;  %v13566_v8 = vcombine.low %v2410_v29, %v2414_v15  ;;  %18018 = vst [vmem:[#allocation213_spill] sm:$0xff] %v13570_v45 }
 0x2bb   :  { %v2530_v30 = vld [vmem:[#allocation11 + $0x508] sm:$0xff] }
 0x2bc   :  { %5597 = vmatmul.mubr.bf16.vlgmr.msra.gmra.mxu0 %v13537_v42  ;;  %5638 = vmatmul.mubr.bf16.vlgmr.msra.gmra.mxu1 %v13539_v49  ;;  %18015 = vst [vmem:[#allocation210_spill] sm:$0xff] %v13559_v58  ;;  %v2534_v17 = vld [vmem:[#allocation11 + $0x528] sm:$0xff]  ;;  %18017 = vst [vmem:[#allocation212_spill] sm:$0xff] %v13566_v8 }
 0x2bd   :  { %5647 = vmatpush1.bf16.msra.mxu0 %v13535_v35  ;;  %5678 = vmatprep.mubr.bf16.mxu0 %v13305_v57  ;;  %v2406_v35 = vld [vmem:[#allocation11 + $0x128] sm:$0xff]  ;;  %v13575_v48 = vcombine.high %v2530_v30, %v2534_v17  ;;  %v13582_v15 = vcombine.low %v2530_v30, %v2534_v17 }
 0x2be   :  { %5688 = vmatpush1.bf16.msra.mxu1 %v13542_v9  ;;  %5719 = vmatprep.mubr.bf16.mxu1 %v13307_v18  ;;  %v13572_v10 = vcombine.high %v2402_v7, %v2406_v35  ;;  %v2522_v9 = vld [vmem:[#allocation11 + $0x4c8] sm:$0xff]  ;;  %v13578_v29 = vcombine.low %v2402_v7, %v2406_v35 }
 0x2bf   :  { %5648 = vmatprep.subr.bf16.mxu0 %v13545_v32  ;;  %5689 = vmatprep.subr.bf16.mxu1 %v13547_v62  ;;  %18020 = vst [vmem:[#allocation215_spill] sm:$0xff] %v13575_v48  ;;  %v2394_v62 = vld [vmem:[#allocation11 + $0xc8] sm:$0xff]  ;;  %18022 = vst [vmem:[#allocation217_spill] sm:$0xff] %v13582_v15  ;;  %v13587_v26 = vcombine.high %v2522_v9, %v2526_v41  ;;  %v13594_v17 = vcombine.low %v2522_v9, %v2526_v41 }
 0x2c0   :  { %18019 = vst [vmem:[#allocation214_spill] sm:$0xff] %v13572_v10  ;;  %v2398_v32 = vld [vmem:[#allocation11 + $0xe8] sm:$0xff]  ;;  %18021 = vst [vmem:[#allocation216_spill] sm:$0xff] %v13578_v29 }
 0x2c1   :  { %5649 = vmatpush1.bf16.msra.mxu0 %v13553_v63  ;;  %v13584_v40 = vcombine.high %v2394_v62, %v2398_v32  ;;  %18024 = vst [vmem:[#allocation219_spill] sm:$0xff] %v13587_v26  ;;  %v2518_v63 = vld [vmem:[#allocation11 + $0x4a8] sm:$0xff]  ;;  %v13590_v7 = vcombine.low %v2394_v62, %v2398_v32  ;;  %18026 = vst [vmem:[#allocation221_spill] sm:$0xff] %v13594_v17 }
 0x2c2   :  { %5690 = vmatpush1.bf16.msra.mxu1 %v13557_v31  ;;  %5650 = vmatprep.subr.bf16.mxu0 %v13559_v58  ;;  %v2390_v58 = vld [vmem:[#allocation11 + $0xa8] sm:$0xff] }
 0x2c3   :  { %5691 = vmatprep.subr.bf16.mxu1 %v13563_v21  ;;  %18023 = vst [vmem:[#allocation218_spill] sm:$0xff] %v13584_v40  ;;  %v2386_v21 = vld [vmem:[#allocation11 + $0x88] sm:$0xff]  ;;  %18025 = vst [vmem:[#allocation220_spill] sm:$0xff] %v13590_v7 }
 0x2c4   :  { %v2514_v31 = vld [vmem:[#allocation11 + $0x488] sm:$0xff]  ;;  %v13596_v30 = vcombine.high %v2386_v21, %v2390_v58  ;;  %v13602_v62 = vcombine.low %v2386_v21, %v2390_v58 }
 0x2c5   :  { %5651 = vmatpush1.bf16.msra.mxu0 %v13566_v8  ;;  %v13599_v35 = vcombine.high %v2514_v31, %v2518_v63  ;;  %v2510_v8 = vld [vmem:[#allocation11 + $0x468] sm:$0xff]  ;;  %v13606_v41 = vcombine.low %v2514_v31, %v2518_v63 }
 0x2c6   :  { %5692 = vmatpush1.bf16.msra.mxu1 %v13570_v45  ;;  %5652 = vmatprep.subr.bf16.mxu0 %v13572_v10  ;;  %18027 = vst [vmem:[#allocation222_spill] sm:$0xff] %v13596_v30  ;;  %v2382_v10 = vld [vmem:[#allocation11 + $0x68] sm:$0xff]  ;;  %18029 = vst [vmem:[#allocation224_spill] sm:$0xff] %v13602_v62 }
 0x2c7   :  { %5693 = vmatprep.subr.bf16.mxu1 %v13575_v48  ;;  %18028 = vst [vmem:[#allocation223_spill] sm:$0xff] %v13599_v35  ;;  %v2378_v48 = vld [vmem:[#allocation11 + $0x48] sm:$0xff]  ;;  %18030 = vst [vmem:[#allocation225_spill] sm:$0xff] %v13606_v41 }
 0x2c8   :  { %v2506_v45 = vld [vmem:[#allocation11 + $0x448] sm:$0xff]  ;;  %v13608_v32 = vcombine.high %v2378_v48, %v2382_v10  ;;  %v13614_v58 = vcombine.low %v2378_v48, %v2382_v10 }
 0x2c9   :  { %5653 = vmatpush1.bf16.msra.mxu0 %v13578_v29  ;;  %v13611_v9 = vcombine.high %v2506_v45, %v2510_v8  ;;  %v2502_v29 = vld [vmem:[#allocation11 + $0x428] sm:$0xff]  ;;  %v13618_v63 = vcombine.low %v2506_v45, %v2510_v8 }
 0x2ca   :  { %5694 = vmatpush1.bf16.msra.mxu1 %v13582_v15  ;;  %5654 = vmatprep.subr.bf16.mxu0 %v13584_v40  ;;  %18031 = vst [vmem:[#allocation226_spill] sm:$0xff] %v13608_v32  ;;  %v2374_v40 = vld [vmem:[#allocation11 + $0x28] sm:$0xff]  ;;  %18033 = vst [vmem:[#allocation228_spill] sm:$0xff] %v13614_v58 }
 0x2cb   :  { %5695 = vmatprep.subr.bf16.mxu1 %v13587_v26  ;;  %18032 = vst [vmem:[#allocation227_spill] sm:$0xff] %v13611_v9  ;;  %v2370_v26 = vld [vmem:[#allocation11 + $0x8] sm:$0xff]  ;;  %18034 = vst [vmem:[#allocation229_spill] sm:$0xff] %v13618_v63 }
 0x2cc   :  { %v2498_v15 = vld [vmem:[#allocation11 + $0x408] sm:$0xff]  ;;  %v13620_v31 = vcombine.high %v2370_v26, %v2374_v40  ;;  %v13626_v10 = vcombine.low %v2370_v26, %v2374_v40 }
 0x2cd   :  { %5655 = vmatpush1.bf16.msra.mxu0 %v13590_v7  ;;  %v13623_v21 = vcombine.high %v2498_v15, %v2502_v29  ;;  %v2622_v7 = vld [vmem:[#allocation11 + $0x7e8] sm:$0xff]  ;;  %v13630_v8 = vcombine.low %v2498_v15, %v2502_v29 }
 0x2ce   :  { %5696 = vmatpush1.bf16.msra.mxu1 %v13594_v17  ;;  %5656 = vmatprep.subr.bf16.mxu0 %v13596_v30  ;;  %18035 = vst [vmem:[#allocation230_spill] sm:$0xff] %v13620_v31  ;;  %v2494_v30 = vld [vmem:[#allocation11 + $0x3e8] sm:$0xff]  ;;  %18037 = vst [vmem:[#allocation232_spill] sm:$0xff] %v13626_v10 }
 0x2cf   :  { %5697 = vmatprep.subr.bf16.mxu1 %v13599_v35  ;;  %18036 = vst [vmem:[#allocation231_spill] sm:$0xff] %v13623_v21  ;;  %v2490_v35 = vld [vmem:[#allocation11 + $0x3c8] sm:$0xff]  ;;  %18038 = vst [vmem:[#allocation233_spill] sm:$0xff] %v13630_v8 }
 0x2d0   :  { %v2618_v17 = vld [vmem:[#allocation11 + $0x7c8] sm:$0xff]  ;;  %v13632_v45 = vcombine.high %v2490_v35, %v2494_v30  ;;  %v13638_v40 = vcombine.low %v2490_v35, %v2494_v30 }
 0x2d1   :  { %5657 = vmatpush1.bf16.msra.mxu0 %v13602_v62  ;;  %v13635_v48 = vcombine.high %v2618_v17, %v2622_v7  ;;  %v2614_v62 = vld [vmem:[#allocation11 + $0x7a8] sm:$0xff]  ;;  %v13642_v29 = vcombine.low %v2618_v17, %v2622_v7 }
 0x2d2   :  { %5698 = vmatpush1.bf16.msra.mxu1 %v13606_v41  ;;  %5658 = vmatprep.subr.bf16.mxu0 %v13608_v32  ;;  %18039 = vst [vmem:[#allocation234_spill] sm:$0xff] %v13632_v45  ;;  %v2486_v32 = vld [vmem:[#allocation11 + $0x3a8] sm:$0xff]  ;;  %18041 = vst [vmem:[#allocation236_spill] sm:$0xff] %v13638_v40 }
 0x2d3   :  { %5699 = vmatprep.subr.bf16.mxu1 %v13611_v9  ;;  %18040 = vst [vmem:[#allocation235_spill] sm:$0xff] %v13635_v48  ;;  %v2482_v9 = vld [vmem:[#allocation11 + $0x388] sm:$0xff]  ;;  %18042 = vst [vmem:[#allocation237_spill] sm:$0xff] %v13642_v29 }
 0x2d4   :  { %v2610_v41 = vld [vmem:[#allocation11 + $0x788] sm:$0xff]  ;;  %v13644_v15 = vcombine.high %v2482_v9, %v2486_v32  ;;  %v13650_v30 = vcombine.low %v2482_v9, %v2486_v32 }
 0x2d5   :  { %5659 = vmatpush1.bf16.msra.mxu0 %v13614_v58  ;;  %v13647_v26 = vcombine.high %v2610_v41, %v2614_v62  ;;  %v2606_v58 = vld [vmem:[#allocation11 + $0x768] sm:$0xff]  ;;  %v13654_v7 = vcombine.low %v2610_v41, %v2614_v62 }
 0x2d6   :  { %5700 = vmatpush1.bf16.msra.mxu1 %v13618_v63  ;;  %5660 = vmatprep.subr.bf16.mxu0 %v13620_v31  ;;  %18043 = vst [vmem:[#allocation238_spill] sm:$0xff] %v13644_v15  ;;  %v2478_v31 = vld [vmem:[#allocation11 + $0x368] sm:$0xff]  ;;  %18045 = vst [vmem:[#allocation240_spill] sm:$0xff] %v13650_v30 }
 0x2d7   :  { %5701 = vmatprep.subr.bf16.mxu1 %v13623_v21  ;;  %18044 = vst [vmem:[#allocation239_spill] sm:$0xff] %v13647_v26  ;;  %v2474_v21 = vld [vmem:[#allocation11 + $0x348] sm:$0xff]  ;;  %18046 = vst [vmem:[#allocation241_spill] sm:$0xff] %v13654_v7 }
 0x2d8   :  { %v2602_v63 = vld [vmem:[#allocation11 + $0x748] sm:$0xff]  ;;  %v13656_v17 = vcombine.high %v2474_v21, %v2478_v31  ;;  %v13662_v32 = vcombine.low %v2474_v21, %v2478_v31 }
 0x2d9   :  { %5661 = vmatpush1.bf16.msra.mxu0 %v13626_v10  ;;  %v13659_v35 = vcombine.high %v2602_v63, %v2606_v58  ;;  %v2598_v10 = vld [vmem:[#allocation11 + $0x728] sm:$0xff]  ;;  %v13666_v62 = vcombine.low %v2602_v63, %v2606_v58 }
 0x2da   :  { %5702 = vmatpush1.bf16.msra.mxu1 %v13630_v8  ;;  %5662 = vmatprep.subr.bf16.mxu0 %v13632_v45  ;;  %18047 = vst [vmem:[#allocation242_spill] sm:$0xff] %v13656_v17  ;;  %v2470_v45 = vld [vmem:[#allocation11 + $0x328] sm:$0xff]  ;;  %18049 = vst [vmem:[#allocation244_spill] sm:$0xff] %v13662_v32 }
 0x2db   :  { %5703 = vmatprep.subr.bf16.mxu1 %v13635_v48  ;;  %18048 = vst [vmem:[#allocation243_spill] sm:$0xff] %v13659_v35  ;;  %v2466_v48 = vld [vmem:[#allocation11 + $0x308] sm:$0xff]  ;;  %18050 = vst [vmem:[#allocation245_spill] sm:$0xff] %v13666_v62 }
 0x2dc   :  { %v2594_v8 = vld [vmem:[#allocation11 + $0x708] sm:$0xff]  ;;  %v13668_v41 = vcombine.high %v2466_v48, %v2470_v45  ;;  %v13674_v31 = vcombine.low %v2466_v48, %v2470_v45 }
 0x2dd   :  { %5663 = vmatpush2.bf16.msra.mxu0 %v13638_v40  ;;  %v13671_v9 = vcombine.high %v2594_v8, %v2598_v10  ;;  %v2590_v40 = vld [vmem:[#allocation11 + $0x6e8] sm:$0xff]  ;;  %v13678_v58 = vcombine.low %v2594_v8, %v2598_v10 }
 0x2de   :  { %5704 = vmatpush2.bf16.msra.mxu1 %v13642_v29  ;;  %5664 = vmatprep.subr.bf16.mxu0 %v13644_v15  ;;  %18051 = vst [vmem:[#allocation246_spill] sm:$0xff] %v13668_v41  ;;  %v2462_v15 = vld [vmem:[#allocation11 + $0x2e8] sm:$0xff]  ;;  %18053 = vst [vmem:[#allocation248_spill] sm:$0xff] %v13674_v31 }
 0x2df   :  { %5705 = vmatprep.subr.bf16.mxu1 %v13647_v26  ;;  %18052 = vst [vmem:[#allocation247_spill] sm:$0xff] %v13671_v9  ;;  %v2458_v26 = vld [vmem:[#allocation11 + $0x2c8] sm:$0xff]  ;;  %18054 = vst [vmem:[#allocation249_spill] sm:$0xff] %v13678_v58 }
 0x2e0   :  { %v2586_v29 = vld [vmem:[#allocation11 + $0x6c8] sm:$0xff]  ;;  %v13680_v63 = vcombine.high %v2458_v26, %v2462_v15  ;;  %v13686_v45 = vcombine.low %v2458_v26, %v2462_v15 }
 0x2e1   :  { %5665 = vmatpush2.bf16.msra.mxu0 %v13650_v30  ;;  %v13683_v21 = vcombine.high %v2586_v29, %v2590_v40  ;;  %v2582_v30 = vld [vmem:[#allocation11 + $0x6a8] sm:$0xff]  ;;  %v13690_v10 = vcombine.low %v2586_v29, %v2590_v40 }
 0x2e2   :  { %5706 = vmatpush2.bf16.msra.mxu1 %v13654_v7  ;;  %5666 = vmatprep.subr.bf16.mxu0 %v13656_v17  ;;  %18055 = vst [vmem:[#allocation250_spill] sm:$0xff] %v13680_v63  ;;  %v2454_v17 = vld [vmem:[#allocation11 + $0x2a8] sm:$0xff]  ;;  %18057 = vst [vmem:[#allocation252_spill] sm:$0xff] %v13686_v45 }
 0x2e3   :  { %5707 = vmatprep.subr.bf16.mxu1 %v13659_v35  ;;  %18056 = vst [vmem:[#allocation251_spill] sm:$0xff] %v13683_v21  ;;  %v2450_v35 = vld [vmem:[#allocation11 + $0x288] sm:$0xff]  ;;  %18058 = vst [vmem:[#allocation253_spill] sm:$0xff] %v13690_v10 }
 0x2e4   :  { %v2578_v7 = vld [vmem:[#allocation11 + $0x688] sm:$0xff]  ;;  %v13692_v8 = vcombine.high %v2450_v35, %v2454_v17  ;;  %v13698_v15 = vcombine.low %v2450_v35, %v2454_v17 }
 0x2e5   :  { %5667 = vmatpush2.bf16.msra.mxu0 %v13662_v32  ;;  %v13695_v48 = vcombine.high %v2578_v7, %v2582_v30  ;;  %v2574_v32 = vld [vmem:[#allocation11 + $0x668] sm:$0xff]  ;;  %v13702_v40 = vcombine.low %v2578_v7, %v2582_v30 }
 0x2e6   :  { %5708 = vmatpush2.bf16.msra.mxu1 %v13666_v62  ;;  %5668 = vmatprep.subr.bf16.mxu0 %v13668_v41  ;;  %18059 = vst [vmem:[#allocation254_spill] sm:$0xff] %v13692_v8  ;;  %v2446_v41 = vld [vmem:[#allocation11 + $0x268] sm:$0xff]  ;;  %18061 = vst [vmem:[#allocation256_spill] sm:$0xff] %v13698_v15 }
 0x2e7   :  { %5709 = vmatprep.subr.bf16.mxu1 %v13671_v9  ;;  %18060 = vst [vmem:[#allocation255_spill] sm:$0xff] %v13695_v48  ;;  %v2442_v9 = vld [vmem:[#allocation11 + $0x248] sm:$0xff]  ;;  %18062 = vst [vmem:[#allocation257_spill] sm:$0xff] %v13702_v40 }
 0x2e8   :  { %v2570_v62 = vld [vmem:[#allocation11 + $0x648] sm:$0xff]  ;;  %v13704_v29 = vcombine.high %v2442_v9, %v2446_v41  ;;  %v13710_v17 = vcombine.low %v2442_v9, %v2446_v41 }
 0x2e9   :  { %5669 = vmatpush2.bf16.msra.mxu0 %v13674_v31  ;;  %v13707_v26 = vcombine.high %v2570_v62, %v2574_v32  ;;  %v2566_v31 = vld [vmem:[#allocation11 + $0x628] sm:$0xff]  ;;  %v13714_v30 = vcombine.low %v2570_v62, %v2574_v32 }
 0x2ea   :  { %5710 = vmatpush2.bf16.msra.mxu1 %v13678_v58  ;;  %5670 = vmatprep.subr.bf16.mxu0 %v13680_v63  ;;  %18063 = vst [vmem:[#allocation258_spill] sm:$0xff] %v13704_v29  ;;  %v2438_v63 = vld [vmem:[#allocation11 + $0x228] sm:$0xff]  ;;  %18065 = vst [vmem:[#allocation260_spill] sm:$0xff] %v13710_v17 }
 0x2eb   :  { %5711 = vmatprep.subr.bf16.mxu1 %v13683_v21  ;;  %18064 = vst [vmem:[#allocation259_spill] sm:$0xff] %v13707_v26  ;;  %v2434_v21 = vld [vmem:[#allocation11 + $0x208] sm:$0xff]  ;;  %18066 = vst [vmem:[#allocation261_spill] sm:$0xff] %v13714_v30 }
 0x2ec   :  { %v2562_v58 = vld [vmem:[#allocation11 + $0x608] sm:$0xff]  ;;  %v13716_v7 = vcombine.high %v2434_v21, %v2438_v63  ;;  %v13722_v41 = vcombine.low %v2434_v21, %v2438_v63 }
 0x2ed   :  { %5671 = vmatpush2.bf16.msra.mxu0 %v13686_v45  ;;  %v13719_v35 = vcombine.high %v2562_v58, %v2566_v31  ;;  %v2814_v45 = vld [vmem:[#allocation11 + $0xde8] sm:$0xff]  ;;  %v13726_v32 = vcombine.low %v2562_v58, %v2566_v31 }
 0x2ee   :  { %5712 = vmatpush2.bf16.msra.mxu1 %v13690_v10  ;;  %5672 = vmatprep.subr.bf16.mxu0 %v13692_v8  ;;  %18067 = vst [vmem:[#allocation262_spill] sm:$0xff] %v13716_v7  ;;  %v2686_v8 = vld [vmem:[#allocation11 + $0x9e8] sm:$0xff]  ;;  %18069 = vst [vmem:[#allocation264_spill] sm:$0xff] %v13722_v41 }
 0x2ef   :  { %5713 = vmatprep.subr.bf16.mxu1 %v13695_v48  ;;  %18068 = vst [vmem:[#allocation263_spill] sm:$0xff] %v13719_v35  ;;  %v2682_v48 = vld [vmem:[#allocation11 + $0x9c8] sm:$0xff]  ;;  %18070 = vst [vmem:[#allocation265_spill] sm:$0xff] %v13726_v32 }
 0x2f0   :  { %v2810_v10 = vld [vmem:[#allocation11 + $0xdc8] sm:$0xff]  ;;  %v13728_v62 = vcombine.high %v2682_v48, %v2686_v8 }
 0x2f1   :  { %5673 = vmatpush2.bf16.msra.mxu0 %v13698_v15  ;;  %v13731_v9 = vcombine.high %v2810_v10, %v2814_v45  ;;  %v2802_v63 = vld [vmem:[#allocation11 + $0xd88] sm:$0xff]  ;;  %v13738_v31 = vcombine.low %v2810_v10, %v2814_v45 }
 0x2f2   :  { %5714 = vmatpush2.bf16.msra.mxu1 %v13702_v40  ;;  %5674 = vmatprep.subr.bf16.mxu0 %v13704_v29  ;;  %18071 = vst [vmem:[#allocation266_spill] sm:$0xff] %v13728_v62  ;;  %v2678_v29 = vld [vmem:[#allocation11 + $0x9a8] sm:$0xff]  ;;  %v13734_v40 = vcombine.low %v2682_v48, %v2686_v8 }
 0x2f3   :  { %5715 = vmatprep.subr.bf16.mxu1 %v13707_v26  ;;  %18072 = vst [vmem:[#allocation267_spill] sm:$0xff] %v13731_v9  ;;  %v2674_v26 = vld [vmem:[#allocation11 + $0x988] sm:$0xff]  ;;  %18074 = vst [vmem:[#allocation269_spill] sm:$0xff] %v13738_v31 }
 0x2f4   :  { %18073 = vst [vmem:[#allocation268_spill] sm:$0xff] %v13734_v40  ;;  %v2806_v21 = vld [vmem:[#allocation11 + $0xda8] sm:$0xff]  ;;  %v13741_v58 = vcombine.high %v2674_v26, %v2678_v29 }
 0x2f5   :  { %5675 = vmatpush2.bf16.msra.mxu0 %v13710_v17  ;;  %v2794_v8 = vld [vmem:[#allocation11 + $0xd48] sm:$0xff]  ;;  %v13752_v45 = vcombine.low %v2802_v63, %v2806_v21 }
 0x2f6   :  { %5716 = vmatpush2.bf16.msra.mxu1 %v13714_v30  ;;  %5676 = vmatprep.subr.bf16.mxu0 %v13716_v7  ;;  %18075 = vst [vmem:[#allocation270_spill] sm:$0xff] %v13741_v58  ;;  %v2670_v7 = vld [vmem:[#allocation11 + $0x968] sm:$0xff]  ;;  %v13744_v30 = vcombine.high %v2802_v63, %v2806_v21 }
 0x2f7   :  { %5717 = vmatprep.subr.bf16.mxu1 %v13719_v35  ;;  %v2666_v35 = vld [vmem:[#allocation11 + $0x948] sm:$0xff]  ;;  %18078 = vst [vmem:[#allocation273_spill] sm:$0xff] %v13752_v45 }
 0x2f8   :  { %18076 = vst [vmem:[#allocation271_spill] sm:$0xff] %v13744_v30  ;;  %v2798_v48 = vld [vmem:[#allocation11 + $0xd68] sm:$0xff]  ;;  %v13754_v10 = vcombine.high %v2666_v35, %v2670_v7 }
 0x2f9   :  { %5677 = vmatpush2.bf16.msra.mxu0 %v13722_v41  ;;  %v2662_v41 = vld [vmem:[#allocation11 + $0x928] sm:$0xff]  ;;  %v13766_v63 = vcombine.low %v2794_v8, %v2798_v48 }
 0x2fa   :  { %5718 = vmatpush2.bf16.msra.mxu1 %v13726_v32  ;;  %5728 = vmatprep.subr.bf16.mxu0 %v13728_v62  ;;  %v13748_v32 = vcombine.low %v2674_v26, %v2678_v29  ;;  %18079 = vst [vmem:[#allocation274_spill] sm:$0xff] %v13754_v10  ;;  %v2658_v62 = vld [vmem:[#allocation11 + $0x908] sm:$0xff] }
 0x2fb   :  { %5769 = vmatprep.subr.bf16.mxu1 %v13731_v9  ;;  %v13758_v9 = vcombine.high %v2794_v8, %v2798_v48  ;;  %v2786_v29 = vld [vmem:[#allocation11 + $0xd08] sm:$0xff]  ;;  %18082 = vst [vmem:[#allocation277_spill] sm:$0xff] %v13766_v63  ;;  %v13768_v21 = vcombine.high %v2658_v62, %v2662_v41 }
 0x2fc   :  { %5679 = vmatmul.mubr.bf16.vlgmr.msra.gmra.mxu0 %v13309_v1  ;;  %18077 = vst [vmem:[#allocation272_spill] sm:$0xff] %v13748_v32  ;;  %v2790_v26 = vld [vmem:[#allocation11 + $0xd28] sm:$0xff] }
 0x2fd   :  { %5720 = vmatmul.mubr.bf16.vlgmr.msra.gmra.mxu1 %v13311_v22  ;;  %5729 = vmatpush1.bf16.msra.mxu0 %v13734_v40  ;;  %18080 = vst [vmem:[#allocation275_spill] sm:$0xff] %v13758_v9  ;;  %v13762_v40 = vcombine.low %v2666_v35, %v2670_v7  ;;  %18083 = vst [vmem:[#allocation278_spill] sm:$0xff] %v13768_v21  ;;  %v2778_v17 = vld [vmem:[#allocation11 + $0xcc8] sm:$0xff]  ;;  %v13774_v7 = vcombine.low %v2658_v62, %v2662_v41 }
 0x2fe   :  { %5760 = vmatprep.mubr.bf16.mxu0 %v13429_v24  ;;  %5770 = vmatpush1.bf16.msra.mxu1 %v13738_v31  ;;  %v2650_v31 = vld [vmem:[#allocation11 + $0x8c8] sm:$0xff]  ;;  %v13778_v35 = vcombine.low %v2786_v29, %v2790_v26 }
 0x2ff   :  { %5801 = vmatprep.mubr.bf16.mxu1 %v13431_v39  ;;  %5730 = vmatprep.subr.bf16.mxu0 %v13741_v58  ;;  %18081 = vst [vmem:[#allocation276_spill] sm:$0xff] %v13762_v40  ;;  %v13771_v58 = vcombine.high %v2786_v29, %v2790_v26  ;;  %v2782_v15 = vld [vmem:[#allocation11 + $0xce8] sm:$0xff]  ;;  %18085 = vst [vmem:[#allocation280_spill] sm:$0xff] %v13774_v7 }
 0x300   :  { %5771 = vmatprep.subr.bf16.mxu1 %v13744_v30  ;;  %v2654_v30 = vld [vmem:[#allocation11 + $0x8e8] sm:$0xff]  ;;  %18086 = vst [vmem:[#allocation281_spill] sm:$0xff] %v13778_v35  ;;  %v13783_v48 = vcombine.high %v2778_v17, %v2782_v15  ;;  %v13790_v62 = vcombine.low %v2778_v17, %v2782_v15 }
 0x301   :  { %5731 = vmatpush1.bf16.msra.mxu0 %v13748_v32  ;;  %18084 = vst [vmem:[#allocation279_spill] sm:$0xff] %v13771_v58  ;;  %v13780_v8 = vcombine.high %v2650_v31, %v2654_v30  ;;  %v2774_v32 = vld [vmem:[#allocation11 + $0xca8] sm:$0xff]  ;;  %v13786_v41 = vcombine.low %v2650_v31, %v2654_v30 }
 0x302   :  { %5772 = vmatpush1.bf16.msra.mxu1 %v13752_v45  ;;  %5732 = vmatprep.subr.bf16.mxu0 %v13754_v10  ;;  %18088 = vst [vmem:[#allocation283_spill] sm:$0xff] %v13783_v48  ;;  %v2646_v10 = vld [vmem:[#allocation11 + $0x8a8] sm:$0xff]  ;;  %18090 = vst [vmem:[#allocation285_spill] sm:$0xff] %v13790_v62 }
 0x303   :  { %5773 = vmatprep.subr.bf16.mxu1 %v13758_v9  ;;  %18087 = vst [vmem:[#allocation282_spill] sm:$0xff] %v13780_v8  ;;  %v2642_v9 = vld [vmem:[#allocation11 + $0x888] sm:$0xff]  ;;  %18089 = vst [vmem:[#allocation284_spill] sm:$0xff] %v13786_v41 }
 0x304   :  { %v2770_v45 = vld [vmem:[#allocation11 + $0xc88] sm:$0xff]  ;;  %v13792_v29 = vcombine.high %v2642_v9, %v2646_v10  ;;  %v13798_v30 = vcombine.low %v2642_v9, %v2646_v10 }
 0x305   :  { %5733 = vmatpush1.bf16.msra.mxu0 %v13762_v40  ;;  %v13795_v26 = vcombine.high %v2770_v45, %v2774_v32  ;;  %v2766_v40 = vld [vmem:[#allocation11 + $0xc68] sm:$0xff]  ;;  %v13802_v15 = vcombine.low %v2770_v45, %v2774_v32 }
 0x306   :  { %5774 = vmatpush1.bf16.msra.mxu1 %v13766_v63  ;;  %5734 = vmatprep.subr.bf16.mxu0 %v13768_v21  ;;  %18091 = vst [vmem:[#allocation286_spill] sm:$0xff] %v13792_v29  ;;  %v2638_v21 = vld [vmem:[#allocation11 + $0x868] sm:$0xff]  ;;  %18093 = vst [vmem:[#allocation288_spill] sm:$0xff] %v13798_v30 }
 0x307   :  { %5775 = vmatprep.subr.bf16.mxu1 %v13771_v58  ;;  %18092 = vst [vmem:[#allocation287_spill] sm:$0xff] %v13795_v26  ;;  %v2634_v58 = vld [vmem:[#allocation11 + $0x848] sm:$0xff]  ;;  %18094 = vst [vmem:[#allocation289_spill] sm:$0xff] %v13802_v15 }
 0x308   :  { %v2762_v63 = vld [vmem:[#allocation11 + $0xc48] sm:$0xff]  ;;  %v13804_v17 = vcombine.high %v2634_v58, %v2638_v21  ;;  %v13810_v9 = vcombine.low %v2634_v58, %v2638_v21 }
 0x309   :  { %5735 = vmatpush1.bf16.msra.mxu0 %v13774_v7  ;;  %v13807_v31 = vcombine.high %v2762_v63, %v2766_v40  ;;  %v2758_v7 = vld [vmem:[#allocation11 + $0xc28] sm:$0xff]  ;;  %v13814_v32 = vcombine.low %v2762_v63, %v2766_v40 }
 0x30a   :  { %5776 = vmatpush1.bf16.msra.mxu1 %v13778_v35  ;;  %5736 = vmatprep.subr.bf16.mxu0 %v13780_v8  ;;  %18095 = vst [vmem:[#allocation290_spill] sm:$0xff] %v13804_v17  ;;  %v2630_v8 = vld [vmem:[#allocation11 + $0x828] sm:$0xff]  ;;  %18097 = vst [vmem:[#allocation292_spill] sm:$0xff] %v13810_v9 }
 0x30b   :  { %5777 = vmatprep.subr.bf16.mxu1 %v13783_v48  ;;  %18096 = vst [vmem:[#allocation291_spill] sm:$0xff] %v13807_v31  ;;  %v2626_v48 = vld [vmem:[#allocation11 + $0x808] sm:$0xff]  ;;  %18098 = vst [vmem:[#allocation293_spill] sm:$0xff] %v13814_v32 }
 0x30c   :  { %v2754_v35 = vld [vmem:[#allocation11 + $0xc08] sm:$0xff]  ;;  %v13816_v45 = vcombine.high %v2626_v48, %v2630_v8  ;;  %v13822_v58 = vcombine.low %v2626_v48, %v2630_v8 }
 0x30d   :  { %5737 = vmatpush1.bf16.msra.mxu0 %v13786_v41  ;;  %v13819_v10 = vcombine.high %v2754_v35, %v2758_v7  ;;  %v2878_v41 = vld [vmem:[#allocation11 + $0xfe8] sm:$0xff]  ;;  %v13826_v40 = vcombine.low %v2754_v35, %v2758_v7 }
 0x30e   :  { %5778 = vmatpush1.bf16.msra.mxu1 %v13790_v62  ;;  %5738 = vmatprep.subr.bf16.mxu0 %v13792_v29  ;;  %18099 = vst [vmem:[#allocation294_spill] sm:$0xff] %v13816_v45  ;;  %v2750_v29 = vld [vmem:[#allocation11 + $0xbe8] sm:$0xff]  ;;  %18101 = vst [vmem:[#allocation296_spill] sm:$0xff] %v13822_v58 }
 0x30f   :  { %5779 = vmatprep.subr.bf16.mxu1 %v13795_v26  ;;  %18100 = vst [vmem:[#allocation295_spill] sm:$0xff] %v13819_v10  ;;  %v2746_v26 = vld [vmem:[#allocation11 + $0xbc8] sm:$0xff]  ;;  %18102 = vst [vmem:[#allocation297_spill] sm:$0xff] %v13826_v40 }
 0x310   :  { %v2874_v62 = vld [vmem:[#allocation11 + $0xfc8] sm:$0xff]  ;;  %v13828_v63 = vcombine.high %v2746_v26, %v2750_v29  ;;  %v13834_v8 = vcombine.low %v2746_v26, %v2750_v29 }
 0x311   :  { %5739 = vmatpush1.bf16.msra.mxu0 %v13798_v30  ;;  %v13831_v21 = vcombine.high %v2874_v62, %v2878_v41  ;;  %v2870_v30 = vld [vmem:[#allocation11 + $0xfa8] sm:$0xff]  ;;  %v13838_v7 = vcombine.low %v2874_v62, %v2878_v41 }
 0x312   :  { %5780 = vmatpush1.bf16.msra.mxu1 %v13802_v15  ;;  %5740 = vmatprep.subr.bf16.mxu0 %v13804_v17  ;;  %18103 = vst [vmem:[#allocation298_spill] sm:$0xff] %v13828_v63  ;;  %v2742_v17 = vld [vmem:[#allocation11 + $0xba8] sm:$0xff]  ;;  %18105 = vst [vmem:[#allocation300_spill] sm:$0xff] %v13834_v8 }
 0x313   :  { %5781 = vmatprep.subr.bf16.mxu1 %v13807_v31  ;;  %18104 = vst [vmem:[#allocation299_spill] sm:$0xff] %v13831_v21  ;;  %v2738_v31 = vld [vmem:[#allocation11 + $0xb88] sm:$0xff]  ;;  %18106 = vst [vmem:[#allocation301_spill] sm:$0xff] %v13838_v7 }
 0x314   :  { %v2866_v15 = vld [vmem:[#allocation11 + $0xf88] sm:$0xff]  ;;  %v13840_v35 = vcombine.high %v2738_v31, %v2742_v17  ;;  %v13846_v29 = vcombine.low %v2738_v31, %v2742_v17 }
 0x315   :  { %5741 = vmatpush1.bf16.msra.mxu0 %v13810_v9  ;;  %v13843_v48 = vcombine.high %v2866_v15, %v2870_v30  ;;  %v2862_v9 = vld [vmem:[#allocation11 + $0xf68] sm:$0xff]  ;;  %v13850_v41 = vcombine.low %v2866_v15, %v2870_v30 }
 0x316   :  { %5782 = vmatpush1.bf16.msra.mxu1 %v13814_v32  ;;  %5742 = vmatprep.subr.bf16.mxu0 %v13816_v45  ;;  %18107 = vst [vmem:[#allocation302_spill] sm:$0xff] %v13840_v35  ;;  %v2734_v45 = vld [vmem:[#allocation11 + $0xb68] sm:$0xff]  ;;  %18109 = vst [vmem:[#allocation304_spill] sm:$0xff] %v13846_v29 }
 0x317   :  { %5783 = vmatprep.subr.bf16.mxu1 %v13819_v10  ;;  %18108 = vst [vmem:[#allocation303_spill] sm:$0xff] %v13843_v48  ;;  %v2730_v10 = vld [vmem:[#allocation11 + $0xb48] sm:$0xff]  ;;  %18110 = vst [vmem:[#allocation305_spill] sm:$0xff] %v13850_v41 }
 0x318   :  { %v2858_v32 = vld [vmem:[#allocation11 + $0xf48] sm:$0xff]  ;;  %v13852_v62 = vcombine.high %v2730_v10, %v2734_v45  ;;  %v13858_v17 = vcombine.low %v2730_v10, %v2734_v45 }
 0x319   :  { %5743 = vmatpush1.bf16.msra.mxu0 %v13822_v58  ;;  %v13855_v26 = vcombine.high %v2858_v32, %v2862_v9  ;;  %v2854_v58 = vld [vmem:[#allocation11 + $0xf28] sm:$0xff]  ;;  %v13862_v30 = vcombine.low %v2858_v32, %v2862_v9 }
 0x31a   :  { %5784 = vmatpush1.bf16.msra.mxu1 %v13826_v40  ;;  %5744 = vmatprep.subr.bf16.mxu0 %v13828_v63  ;;  %18111 = vst [vmem:[#allocation306_spill] sm:$0xff] %v13852_v62  ;;  %v2726_v63 = vld [vmem:[#allocation11 + $0xb28] sm:$0xff]  ;;  %18113 = vst [vmem:[#allocation308_spill] sm:$0xff] %v13858_v17 }
 0x31b   :  { %5785 = vmatprep.subr.bf16.mxu1 %v13831_v21  ;;  %18112 = vst [vmem:[#allocation307_spill] sm:$0xff] %v13855_v26  ;;  %v2722_v21 = vld [vmem:[#allocation11 + $0xb08] sm:$0xff]  ;;  %18114 = vst [vmem:[#allocation309_spill] sm:$0xff] %v13862_v30 }
 0x31c   :  { %v2850_v40 = vld [vmem:[#allocation11 + $0xf08] sm:$0xff]  ;;  %v13864_v15 = vcombine.high %v2722_v21, %v2726_v63  ;;  %v13870_v45 = vcombine.low %v2722_v21, %v2726_v63 }
 0x31d   :  { %5745 = vmatpush2.bf16.msra.mxu0 %v13834_v8  ;;  %v13867_v31 = vcombine.high %v2850_v40, %v2854_v58  ;;  %v2846_v8 = vld [vmem:[#allocation11 + $0xee8] sm:$0xff]  ;;  %v13874_v9 = vcombine.low %v2850_v40, %v2854_v58 }
 0x31e   :  { %5786 = vmatpush2.bf16.msra.mxu1 %v13838_v7  ;;  %5746 = vmatprep.subr.bf16.mxu0 %v13840_v35  ;;  %18115 = vst [vmem:[#allocation310_spill] sm:$0xff] %v13864_v15  ;;  %v2718_v35 = vld [vmem:[#allocation11 + $0xae8] sm:$0xff]  ;;  %18117 = vst [vmem:[#allocation312_spill] sm:$0xff] %v13870_v45 }
 0x31f   :  { %5787 = vmatprep.subr.bf16.mxu1 %v13843_v48  ;;  %18116 = vst [vmem:[#allocation311_spill] sm:$0xff] %v13867_v31  ;;  %v2714_v48 = vld [vmem:[#allocation11 + $0xac8] sm:$0xff]  ;;  %18118 = vst [vmem:[#allocation313_spill] sm:$0xff] %v13874_v9 }
 0x320   :  { %v2842_v7 = vld [vmem:[#allocation11 + $0xec8] sm:$0xff]  ;;  %v13876_v32 = vcombine.high %v2714_v48, %v2718_v35  ;;  %v13882_v63 = vcombine.low %v2714_v48, %v2718_v35 }
 0x321   :  { %5747 = vmatpush2.bf16.msra.mxu0 %v13846_v29  ;;  %v13879_v10 = vcombine.high %v2842_v7, %v2846_v8  ;;  %v2838_v29 = vld [vmem:[#allocation11 + $0xea8] sm:$0xff]  ;;  %v13886_v58 = vcombine.low %v2842_v7, %v2846_v8 }
 0x322   :  { %5788 = vmatpush2.bf16.msra.mxu1 %v13850_v41  ;;  %5748 = vmatprep.subr.bf16.mxu0 %v13852_v62  ;;  %18119 = vst [vmem:[#allocation314_spill] sm:$0xff] %v13876_v32  ;;  %v2710_v62 = vld [vmem:[#allocation11 + $0xaa8] sm:$0xff]  ;;  %18121 = vst [vmem:[#allocation316_spill] sm:$0xff] %v13882_v63 }
 0x323   :  { %5789 = vmatprep.subr.bf16.mxu1 %v13855_v26  ;;  %18120 = vst [vmem:[#allocation315_spill] sm:$0xff] %v13879_v10  ;;  %v2706_v26 = vld [vmem:[#allocation11 + $0xa88] sm:$0xff]  ;;  %18122 = vst [vmem:[#allocation317_spill] sm:$0xff] %v13886_v58 }
 0x324   :  { %v2834_v41 = vld [vmem:[#allocation11 + $0xe88] sm:$0xff]  ;;  %v13888_v40 = vcombine.high %v2706_v26, %v2710_v62  ;;  %v13894_v35 = vcombine.low %v2706_v26, %v2710_v62 }
 0x325   :  { %5749 = vmatpush2.bf16.msra.mxu0 %v13858_v17  ;;  %v13891_v21 = vcombine.high %v2834_v41, %v2838_v29  ;;  %v2830_v17 = vld [vmem:[#allocation11 + $0xe68] sm:$0xff]  ;;  %v13898_v8 = vcombine.low %v2834_v41, %v2838_v29 }
 0x326   :  { %5790 = vmatpush2.bf16.msra.mxu1 %v13862_v30  ;;  %5750 = vmatprep.subr.bf16.mxu0 %v13864_v15  ;;  %18123 = vst [vmem:[#allocation318_spill] sm:$0xff] %v13888_v40  ;;  %v2702_v15 = vld [vmem:[#allocation11 + $0xa68] sm:$0xff]  ;;  %18125 = vst [vmem:[#allocation320_spill] sm:$0xff] %v13894_v35 }
 0x327   :  { %5791 = vmatprep.subr.bf16.mxu1 %v13867_v31  ;;  %18124 = vst [vmem:[#allocation319_spill] sm:$0xff] %v13891_v21  ;;  %v2698_v31 = vld [vmem:[#allocation11 + $0xa48] sm:$0xff]  ;;  %18126 = vst [vmem:[#allocation321_spill] sm:$0xff] %v13898_v8 }
 0x328   :  { %v2826_v30 = vld [vmem:[#allocation11 + $0xe48] sm:$0xff]  ;;  %v13900_v7 = vcombine.high %v2698_v31, %v2702_v15  ;;  %v13906_v62 = vcombine.low %v2698_v31, %v2702_v15  ;;  %v13926_v31 = vld [vmem:[#allocation13] sm:$0xff] }
 0x329   :  { %5751 = vmatpush2.bf16.msra.mxu0 %v13870_v45  ;;  %v13903_v48 = vcombine.high %v2826_v30, %v2830_v17  ;;  %v2822_v45 = vld [vmem:[#allocation11 + $0xe28] sm:$0xff]  ;;  %v13910_v29 = vcombine.low %v2826_v30, %v2830_v17 }
 0x32a   :  { %5792 = vmatpush2.bf16.msra.mxu1 %v13874_v9  ;;  %5752 = vmatprep.subr.bf16.mxu0 %v13876_v32  ;;  %18127 = vst [vmem:[#allocation322_spill] sm:$0xff] %v13900_v7  ;;  %v2694_v32 = vld [vmem:[#allocation11 + $0xa28] sm:$0xff]  ;;  %18129 = vst [vmem:[#allocation324_spill] sm:$0xff] %v13906_v62 }
 0x32b   :  { %5793 = vmatprep.subr.bf16.mxu1 %v13879_v10  ;;  %18128 = vst [vmem:[#allocation323_spill] sm:$0xff] %v13903_v48  ;;  %v2690_v10 = vld [vmem:[#allocation11 + $0xa08] sm:$0xff]  ;;  %18130 = vst [vmem:[#allocation325_spill] sm:$0xff] %v13910_v29 }
 0x32c   :  { %v2818_v9 = vld [vmem:[#allocation11 + $0xe08] sm:$0xff]  ;;  %v13912_v41 = vcombine.high %v2690_v10, %v2694_v32  ;;  %v13918_v15 = vcombine.low %v2690_v10, %v2694_v32  ;;  %v18138_v10 = vsub.s32 0, %v17936_v44 }
 0x32d   :  { %5753 = vmatpush2.bf16.msra.mxu0 %v13882_v63  ;;  %v13915_v26 = vcombine.high %v2818_v9, %v2822_v45  ;;  %v2559_v63 = vld [vmem:[#allocation11 + $0x5f0] sm:$0xff]  ;;  %v13922_v17 = vcombine.low %v2818_v9, %v2822_v45 }
 0x32e   :  { %5794 = vmatpush2.bf16.msra.mxu1 %v13886_v58  ;;  %5754 = vmatprep.subr.bf16.mxu0 %v13888_v40  ;;  %18131 = vst [vmem:[#allocation326_spill] sm:$0xff] %v13912_v41  ;;  %v2431_v40 = vld [vmem:[#allocation11 + $0x1f0] sm:$0xff]  ;;  %18133 = vst [vmem:[#allocation328_spill] sm:$0xff] %v13918_v15 }
 0x32f   :  { %5795 = vmatprep.subr.bf16.mxu1 %v13891_v21  ;;  %18132 = vst [vmem:[#allocation327_spill] sm:$0xff] %v13915_v26  ;;  %v2427_v21 = vld [vmem:[#allocation11 + $0x1d0] sm:$0xff]  ;;  %18134 = vst [vmem:[#allocation329_spill] sm:$0xff] %v13922_v17 }
 0x330   :  { %v2555_v58 = vld [vmem:[#allocation11 + $0x5d0] sm:$0xff]  ;;  %v13924_v30 = vcombine.high %v2427_v21, %v2431_v40  ;;  %v13932_v32 = vcombine.low %v2427_v21, %v2431_v40 }
 0x331   :  { %5755 = vmatpush2.bf16.msra.mxu0 %v13894_v35  ;;  %v2547_v45 = vld [vmem:[#allocation11 + $0x590] sm:$0xff] }
 0x332   :  { %5796 = vmatpush2.bf16.msra.mxu1 %v13898_v8  ;;  %5756 = vmatprep.subr.bf16.mxu0 %v13900_v7  ;;  %18135 = vst [vmem:[#allocation330_spill] sm:$0xff] %v13924_v30  ;;  %v2419_v7 = vld [vmem:[#allocation11 + $0x190] sm:$0xff]  ;;  %18137 = vst [vmem:[#allocation332_spill] sm:$0xff] %v13932_v32 }
 0x333   :  { %5797 = vmatprep.subr.bf16.mxu1 %v13903_v48  ;;  %v13929_v48 = vcombine.high %v2555_v58, %v2559_v63  ;;  %v2423_v8 = vld [vmem:[#allocation11 + $0x1b0] sm:$0xff] }
 0x334   :  { %v2551_v9 = vld [vmem:[#allocation11 + $0x5b0] sm:$0xff]  ;;  %v13949_v21 = vcombine.high %v2419_v7, %v2423_v8 }
 0x335   :  { %5757 = vmatpush2.bf16.msra.mxu0 %v13906_v62  ;;  %18136 = vst [vmem:[#allocation331_spill] sm:$0xff] %v13929_v48  ;;  %v13961_v46 = vcombine.low %v2547_v45, %v2551_v9 }
 0x336   :  { %5798 = vmatpush2.bf16.msra.mxu1 %v13910_v29  ;;  %5758 = vmatprep.subr.bf16.mxu0 %v13912_v41  ;;  %v13937_v41 = vrot.slane %v13926_v31, %v18138_v10  ;;  %v18141_v29 = vsub.s32 1, %v17936_v44  ;;  %18143 = vst [vmem:[#allocation336_spill] sm:$0xff] %v13949_v21  ;;  %v2415_v10 = vld [vmem:[#allocation11 + $0x170] sm:$0xff] }
 0x337   :  { %5799 = vmatprep.subr.bf16.mxu1 %v13915_v26  ;;  %v13941_v26 = vcombine.low %v2555_v58, %v2559_v63  ;;  %v2543_v63 = vld [vmem:[#allocation11 + $0x570] sm:$0xff]  ;;  %18146 = vst [vmem:[#allocation339_spill] sm:$0xff] %v13961_v46 }
 0x338   :  { %18139 = vst [vmem:[#allocation333_spill] sm:$0xff] %v13937_v41  ;;  %v13947_v40 = vrot.slane %v13926_v31, %v18141_v29  ;;  %v13957_v29 = vcombine.low %v2419_v7, %v2423_v8  ;;  %v2403_v7 = vld [vmem:[#allocation11 + $0x110] sm:$0xff] }
 0x339   :  { %5759 = vmatpush2.bf16.msra.mxu0 %v13918_v15  ;;  %18140 = vst [vmem:[#allocation334_spill] sm:$0xff] %v13941_v26  ;;  %v2411_v15 = vld [vmem:[#allocation11 + $0x150] sm:$0xff] }
 0x33a   :  { %5800 = vmatpush2.bf16.msra.mxu1 %v13922_v17  ;;  %5810 = vmatprep.subr.bf16.mxu0 %v13924_v30  ;;  %18142 = vst [vmem:[#allocation335_spill] sm:$0xff] %v13947_v40  ;;  %v13952_v17 = vcombine.high %v2547_v45, %v2551_v9  ;;  %v2539_v30 = vld [vmem:[#allocation11 + $0x550] sm:$0xff]  ;;  %18145 = vst [vmem:[#allocation338_spill] sm:$0xff] %v13957_v29  ;;  %v13963_v33 = vcombine.high %v2411_v15, %v2415_v10 }
 0x33b   :  { %5851 = vmatprep.subr.bf16.mxu1 %v13929_v48  ;;  %v13970_v8 = vcombine.high %v2539_v30, %v2543_v63  ;;  %v2531_v45 = vld [vmem:[#allocation11 + $0x510] sm:$0xff] }
 0x33c   :  { %5761 = vmatmul.mubr.bf16.vlgmr.msra.gmra.mxu0 %v13537_v42  ;;  %v5516_v62 = vpop.f32.mrf.mxu0  ;;  %v5557_v35 = vpop.f32.mrf.mxu1  ;;  %18144 = vst [vmem:[#allocation337_spill] sm:$0xff] %v13952_v17  ;;  %18147 = vst [vmem:[#allocation340_spill] sm:$0xff] %v13963_v33  ;;  %v2535_v9 = vld [vmem:[#allocation11 + $0x530] sm:$0xff] }
 0x33d   :  { %5802 = vmatmul.mubr.bf16.vlgmr.msra.gmra.mxu1 %v13539_v49  ;;  %v5517_v58 = vadd.f32 %v5516_v62, %v13937_v41  ;;  %5811 = vmatpush1.bf16.msra.mxu0 %v13932_v32  ;;  %18148 = vst [vmem:[#allocation341_spill] sm:$0xff] %v13970_v8  ;;  %v2407_v32 = vld [vmem:[#allocation11 + $0x130] sm:$0xff] }
 0x33e   :  { %5842 = vmatprep.mubr.bf16.mxu0 %v13305_v57  ;;  %5852 = vmatpush1.bf16.msra.mxu1 %v13941_v26  ;;  %v5518_v48 = vpop.f32.mrf.mxu0  ;;  %v5559_v16 = vpop.f32.mrf.mxu1 }
 0x33f   :  { %v13965_v59 = vadd.f32 %v5557_v35, %v5517_v58  ;;  %5883 = vmatprep.mubr.bf16.mxu1 %v13307_v18  ;;  %v5519_v62 = vadd.f32 %v5518_v48, %v13947_v40  ;;  %5812 = vmatprep.subr.bf16.mxu0 %v13949_v21  ;;  %v13976_v35 = vcombine.low %v2411_v15, %v2415_v10 }
 0x340   :  { %5853 = vmatprep.subr.bf16.mxu1 %v13952_v17  ;;  %v5520_v26 = vpop.f32.mrf.mxu0  ;;  %v5561_v41 = vpop.f32.mrf.mxu1  ;;  %v13980_v21 = vcombine.low %v2539_v30, %v2543_v63  ;;  %v13982_v40 = vcombine.high %v2403_v7, %v2407_v32  ;;  %v13988_v15 = vcombine.low %v2403_v7, %v2407_v32  ;;  %v13992_v30 = vcombine.low %v2531_v45, %v2535_v9 }
 0x341   :  { %v13973_v23 = vadd.f32 %v5559_v16, %v5519_v62  ;;  %5813 = vmatpush1.bf16.msra.mxu0 %v13957_v29  ;;  %18149 = vst [vmem:[#allocation342_spill] sm:$0xff] %v13976_v35  ;;  %v13985_v41 = vcombine.high %v2531_v45, %v2535_v9  ;;  %v2395_v16 = vld [vmem:[#allocation11 + $0xd0] sm:$0xff] }
 0x342   :  { %5854 = vmatpush1.bf16.msra.mxu1 %v13961_v46  ;;  %v5521_v48 = vpop.f32.mrf.mxu0  ;;  %v5562_v58 = vpop.f32.mrf.mxu1  ;;  %5814 = vmatprep.subr.bf16.mxu0 %v13963_v33  ;;  %18150 = vst [vmem:[#allocation343_spill] sm:$0xff] %v13980_v21  ;;  %18151 = vst [vmem:[#allocation344_spill] sm:$0xff] %v13982_v40  ;;  %v2399_v26 = vld [vmem:[#allocation11 + $0xf0] sm:$0xff] }
 0x343   :  { %5855 = vmatprep.subr.bf16.mxu1 %v13970_v8  ;;  %18152 = vst [vmem:[#allocation345_spill] sm:$0xff] %v13985_v41  ;;  %v2523_v62 = vld [vmem:[#allocation11 + $0x4d0] sm:$0xff]  ;;  %18153 = vst [vmem:[#allocation346_spill] sm:$0xff] %v13988_v15  ;;  %v13994_v10 = vcombine.high %v2395_v16, %v2399_v26  ;;  %v14000_v32 = vcombine.low %v2395_v16, %v2399_v26 }
 0x344   :  { %v2527_v29 = vld [vmem:[#allocation11 + $0x4f0] sm:$0xff]  ;;  %18154 = vst [vmem:[#allocation347_spill] sm:$0xff] %v13992_v30 }
 0x345   :  { %5815 = vmatpush1.bf16.msra.mxu0 %v13976_v35  ;;  %18155 = vst [vmem:[#allocation348_spill] sm:$0xff] %v13994_v10  ;;  %v13997_v63 = vcombine.high %v2523_v62, %v2527_v29  ;;  %v2387_v48 = vld [vmem:[#allocation11 + $0x90] sm:$0xff]  ;;  %18157 = vst [vmem:[#allocation350_spill] sm:$0xff] %v14000_v32  ;;  %v14004_v7 = vcombine.low %v2523_v62, %v2527_v29 }
 0x346   :  { %5856 = vmatpush1.bf16.msra.mxu1 %v13980_v21  ;;  %5816 = vmatprep.subr.bf16.mxu0 %v13982_v40  ;;  %v2391_v58 = vld [vmem:[#allocation11 + $0xb0] sm:$0xff] }
 0x347   :  { %5857 = vmatprep.subr.bf16.mxu1 %v13985_v41  ;;  %18156 = vst [vmem:[#allocation349_spill] sm:$0xff] %v13997_v63  ;;  %v2515_v8 = vld [vmem:[#allocation11 + $0x490] sm:$0xff]  ;;  %18158 = vst [vmem:[#allocation351_spill] sm:$0xff] %v14004_v7  ;;  %v14006_v45 = vcombine.high %v2387_v48, %v2391_v58  ;;  %v14012_v16 = vcombine.low %v2387_v48, %v2391_v58 }
 0x348   :  { %v2519_v33 = vld [vmem:[#allocation11 + $0x4b0] sm:$0xff] }
 0x349   :  { %5817 = vmatpush1.bf16.msra.mxu0 %v13988_v15  ;;  %18159 = vst [vmem:[#allocation352_spill] sm:$0xff] %v14006_v45  ;;  %v14009_v9 = vcombine.high %v2515_v8, %v2519_v33  ;;  %v2379_v41 = vld [vmem:[#allocation11 + $0x50] sm:$0xff]  ;;  %18161 = vst [vmem:[#allocation354_spill] sm:$0xff] %v14012_v16  ;;  %v14016_v29 = vcombine.low %v2515_v8, %v2519_v33 }
 0x34a   :  { %5858 = vmatpush1.bf16.msra.mxu1 %v13992_v30  ;;  %5818 = vmatprep.subr.bf16.mxu0 %v13994_v10  ;;  %v2383_v40 = vld [vmem:[#allocation11 + $0x70] sm:$0xff] }
 0x34b   :  { %5859 = vmatprep.subr.bf16.mxu1 %v13997_v63  ;;  %18160 = vst [vmem:[#allocation353_spill] sm:$0xff] %v14009_v9  ;;  %v2507_v21 = vld [vmem:[#allocation11 + $0x450] sm:$0xff]  ;;  %18162 = vst [vmem:[#allocation355_spill] sm:$0xff] %v14016_v29  ;;  %v14018_v26 = vcombine.high %v2379_v41, %v2383_v40  ;;  %v14024_v48 = vcombine.low %v2379_v41, %v2383_v40 }
 0x34c   :  { %v2511_v35 = vld [vmem:[#allocation11 + $0x470] sm:$0xff] }
 0x34d   :  { %5819 = vmatpush1.bf16.msra.mxu0 %v14000_v32  ;;  %18163 = vst [vmem:[#allocation356_spill] sm:$0xff] %v14018_v26  ;;  %v14021_v62 = vcombine.high %v2507_v21, %v2511_v35  ;;  %v2371_v63 = vld [vmem:[#allocation11 + $0x10] sm:$0xff]  ;;  %18165 = vst [vmem:[#allocation358_spill] sm:$0xff] %v14024_v48  ;;  %v14028_v33 = vcombine.low %v2507_v21, %v2511_v35 }
 0x34e   :  { %5860 = vmatpush1.bf16.msra.mxu1 %v14004_v7  ;;  %5820 = vmatprep.subr.bf16.mxu0 %v14006_v45  ;;  %v2375_v10 = vld [vmem:[#allocation11 + $0x30] sm:$0xff] }
 0x34f   :  { %5861 = vmatprep.subr.bf16.mxu1 %v14009_v9  ;;  %18164 = vst [vmem:[#allocation357_spill] sm:$0xff] %v14021_v62  ;;  %v2499_v30 = vld [vmem:[#allocation11 + $0x410] sm:$0xff]  ;;  %18166 = vst [vmem:[#allocation359_spill] sm:$0xff] %v14028_v33  ;;  %v14030_v8 = vcombine.high %v2371_v63, %v2375_v10  ;;  %v14036_v40 = vcombine.low %v2371_v63, %v2375_v10 }
 0x350   :  { %v2503_v15 = vld [vmem:[#allocation11 + $0x430] sm:$0xff] }
 0x351   :  { %5821 = vmatpush1.bf16.msra.mxu0 %v14012_v16  ;;  %18167 = vst [vmem:[#allocation360_spill] sm:$0xff] %v14030_v8  ;;  %v14033_v58 = vcombine.high %v2499_v30, %v2503_v15  ;;  %v2491_v9 = vld [vmem:[#allocation11 + $0x3d0] sm:$0xff]  ;;  %18169 = vst [vmem:[#allocation362_spill] sm:$0xff] %v14036_v40  ;;  %v14040_v21 = vcombine.low %v2499_v30, %v2503_v15 }
 0x352   :  { %5862 = vmatpush1.bf16.msra.mxu1 %v14016_v29  ;;  %5822 = vmatprep.subr.bf16.mxu0 %v14018_v26  ;;  %v2495_v45 = vld [vmem:[#allocation11 + $0x3f0] sm:$0xff] }
 0x353   :  { %5863 = vmatprep.subr.bf16.mxu1 %v14021_v62  ;;  %18168 = vst [vmem:[#allocation361_spill] sm:$0xff] %v14033_v58  ;;  %v2619_v7 = vld [vmem:[#allocation11 + $0x7d0] sm:$0xff]  ;;  %18170 = vst [vmem:[#allocation363_spill] sm:$0xff] %v14040_v21  ;;  %v14042_v35 = vcombine.high %v2491_v9, %v2495_v45  ;;  %v14048_v10 = vcombine.low %v2491_v9, %v2495_v45 }
 0x354   :  { %v2623_v32 = vld [vmem:[#allocation11 + $0x7f0] sm:$0xff] }
 0x355   :  { %5823 = vmatpush1.bf16.msra.mxu0 %v14024_v48  ;;  %18171 = vst [vmem:[#allocation364_spill] sm:$0xff] %v14042_v35  ;;  %v14045_v41 = vcombine.high %v2619_v7, %v2623_v32  ;;  %v2483_v62 = vld [vmem:[#allocation11 + $0x390] sm:$0xff]  ;;  %18173 = vst [vmem:[#allocation366_spill] sm:$0xff] %v14048_v10  ;;  %v14052_v15 = vcombine.low %v2619_v7, %v2623_v32 }
 0x356   :  { %5864 = vmatpush1.bf16.msra.mxu1 %v14028_v33  ;;  %5824 = vmatprep.subr.bf16.mxu0 %v14030_v8  ;;  %v2487_v26 = vld [vmem:[#allocation11 + $0x3b0] sm:$0xff] }
 0x357   :  { %5865 = vmatprep.subr.bf16.mxu1 %v14033_v58  ;;  %18172 = vst [vmem:[#allocation365_spill] sm:$0xff] %v14045_v41  ;;  %v2611_v29 = vld [vmem:[#allocation11 + $0x790] sm:$0xff]  ;;  %18174 = vst [vmem:[#allocation367_spill] sm:$0xff] %v14052_v15  ;;  %v14054_v30 = vcombine.high %v2483_v62, %v2487_v26  ;;  %v14060_v45 = vcombine.low %v2483_v62, %v2487_v26 }
 0x358   :  { %v2615_v16 = vld [vmem:[#allocation11 + $0x7b0] sm:$0xff] }
 0x359   :  { %5825 = vmatpush1.bf16.msra.mxu0 %v14036_v40  ;;  %18175 = vst [vmem:[#allocation368_spill] sm:$0xff] %v14054_v30  ;;  %v14057_v63 = vcombine.high %v2611_v29, %v2615_v16  ;;  %v2475_v58 = vld [vmem:[#allocation11 + $0x350] sm:$0xff]  ;;  %18177 = vst [vmem:[#allocation370_spill] sm:$0xff] %v14060_v45  ;;  %v14064_v32 = vcombine.low %v2611_v29, %v2615_v16 }
 0x35a   :  { %5866 = vmatpush1.bf16.msra.mxu1 %v14040_v21  ;;  %5826 = vmatprep.subr.bf16.mxu0 %v14042_v35  ;;  %v2479_v8 = vld [vmem:[#allocation11 + $0x370] sm:$0xff] }
 0x35b   :  { %5867 = vmatprep.subr.bf16.mxu1 %v14045_v41  ;;  %18176 = vst [vmem:[#allocation369_spill] sm:$0xff] %v14057_v63  ;;  %v2603_v33 = vld [vmem:[#allocation11 + $0x750] sm:$0xff]  ;;  %18178 = vst [vmem:[#allocation371_spill] sm:$0xff] %v14064_v32  ;;  %v14066_v7 = vcombine.high %v2475_v58, %v2479_v8  ;;  %v14072_v26 = vcombine.low %v2475_v58, %v2479_v8 }
 0x35c   :  { %v2607_v48 = vld [vmem:[#allocation11 + $0x770] sm:$0xff] }
 0x35d   :  { %5827 = vmatpush2.bf16.msra.mxu0 %v14048_v10  ;;  %18179 = vst [vmem:[#allocation372_spill] sm:$0xff] %v14066_v7  ;;  %v14069_v9 = vcombine.high %v2603_v33, %v2607_v48  ;;  %v2467_v41 = vld [vmem:[#allocation11 + $0x310] sm:$0xff]  ;;  %18181 = vst [vmem:[#allocation374_spill] sm:$0xff] %v14072_v26  ;;  %v14076_v16 = vcombine.low %v2603_v33, %v2607_v48 }
 0x35e   :  { %5868 = vmatpush2.bf16.msra.mxu1 %v14052_v15  ;;  %5828 = vmatprep.subr.bf16.mxu0 %v14054_v30  ;;  %v2471_v35 = vld [vmem:[#allocation11 + $0x330] sm:$0xff] }
 0x35f   :  { %5869 = vmatprep.subr.bf16.mxu1 %v14057_v63  ;;  %18180 = vst [vmem:[#allocation373_spill] sm:$0xff] %v14069_v9  ;;  %v2595_v21 = vld [vmem:[#allocation11 + $0x710] sm:$0xff]  ;;  %18182 = vst [vmem:[#allocation375_spill] sm:$0xff] %v14076_v16  ;;  %v14078_v29 = vcombine.high %v2467_v41, %v2471_v35  ;;  %v14084_v8 = vcombine.low %v2467_v41, %v2471_v35 }
 0x360   :  { %v2599_v40 = vld [vmem:[#allocation11 + $0x730] sm:$0xff] }
 0x361   :  { %5829 = vmatpush2.bf16.msra.mxu0 %v14060_v45  ;;  %18183 = vst [vmem:[#allocation376_spill] sm:$0xff] %v14078_v29  ;;  %v14081_v62 = vcombine.high %v2595_v21, %v2599_v40  ;;  %v2459_v63 = vld [vmem:[#allocation11 + $0x2d0] sm:$0xff]  ;;  %18185 = vst [vmem:[#allocation378_spill] sm:$0xff] %v14084_v8  ;;  %v14088_v48 = vcombine.low %v2595_v21, %v2599_v40 }
 0x362   :  { %5870 = vmatpush2.bf16.msra.mxu1 %v14064_v32  ;;  %5830 = vmatprep.subr.bf16.mxu0 %v14066_v7  ;;  %v2463_v30 = vld [vmem:[#allocation11 + $0x2f0] sm:$0xff] }
 0x363   :  { %5871 = vmatprep.subr.bf16.mxu1 %v14069_v9  ;;  %18184 = vst [vmem:[#allocation377_spill] sm:$0xff] %v14081_v62  ;;  %v2587_v15 = vld [vmem:[#allocation11 + $0x6d0] sm:$0xff]  ;;  %18186 = vst [vmem:[#allocation379_spill] sm:$0xff] %v14088_v48  ;;  %v14090_v33 = vcombine.high %v2459_v63, %v2463_v30  ;;  %v14096_v35 = vcombine.low %v2459_v63, %v2463_v30 }
 0x364   :  { %v2591_v10 = vld [vmem:[#allocation11 + $0x6f0] sm:$0xff] }
 0x365   :  { %5831 = vmatpush2.bf16.msra.mxu0 %v14072_v26  ;;  %18187 = vst [vmem:[#allocation380_spill] sm:$0xff] %v14090_v33  ;;  %v14093_v58 = vcombine.high %v2587_v15, %v2591_v10  ;;  %v2451_v9 = vld [vmem:[#allocation11 + $0x290] sm:$0xff]  ;;  %18189 = vst [vmem:[#allocation382_spill] sm:$0xff] %v14096_v35  ;;  %v14100_v40 = vcombine.low %v2587_v15, %v2591_v10 }
 0x366   :  { %5872 = vmatpush2.bf16.msra.mxu1 %v14076_v16  ;;  %5832 = vmatprep.subr.bf16.mxu0 %v14078_v29  ;;  %v2455_v7 = vld [vmem:[#allocation11 + $0x2b0] sm:$0xff] }
 0x367   :  { %5873 = vmatprep.subr.bf16.mxu1 %v14081_v62  ;;  %18188 = vst [vmem:[#allocation381_spill] sm:$0xff] %v14093_v58  ;;  %v2579_v32 = vld [vmem:[#allocation11 + $0x690] sm:$0xff]  ;;  %18190 = vst [vmem:[#allocation383_spill] sm:$0xff] %v14100_v40  ;;  %v14102_v21 = vcombine.high %v2451_v9, %v2455_v7  ;;  %v14108_v30 = vcombine.low %v2451_v9, %v2455_v7 }
 0x368   :  { %v2583_v45 = vld [vmem:[#allocation11 + $0x6b0] sm:$0xff] }
 0x369   :  { %5833 = vmatpush2.bf16.msra.mxu0 %v14084_v8  ;;  %18191 = vst [vmem:[#allocation384_spill] sm:$0xff] %v14102_v21  ;;  %v14105_v41 = vcombine.high %v2579_v32, %v2583_v45  ;;  %v2443_v62 = vld [vmem:[#allocation11 + $0x250] sm:$0xff]  ;;  %18193 = vst [vmem:[#allocation386_spill] sm:$0xff] %v14108_v30  ;;  %v14112_v10 = vcombine.low %v2579_v32, %v2583_v45 }
 0x36a   :  { %5874 = vmatpush2.bf16.msra.mxu1 %v14088_v48  ;;  %5834 = vmatprep.subr.bf16.mxu0 %v14090_v33  ;;  %v2447_v29 = vld [vmem:[#allocation11 + $0x270] sm:$0xff] }
 0x36b   :  { %5875 = vmatprep.subr.bf16.mxu1 %v14093_v58  ;;  %18192 = vst [vmem:[#allocation385_spill] sm:$0xff] %v14105_v41  ;;  %v2571_v16 = vld [vmem:[#allocation11 + $0x650] sm:$0xff]  ;;  %18194 = vst [vmem:[#allocation387_spill] sm:$0xff] %v14112_v10  ;;  %v14114_v15 = vcombine.high %v2443_v62, %v2447_v29  ;;  %v14120_v7 = vcombine.low %v2443_v62, %v2447_v29 }
 0x36c   :  { %v2575_v26 = vld [vmem:[#allocation11 + $0x670] sm:$0xff] }
 0x36d   :  { %5835 = vmatpush2.bf16.msra.mxu0 %v14096_v35  ;;  %18195 = vst [vmem:[#allocation388_spill] sm:$0xff] %v14114_v15  ;;  %v14117_v63 = vcombine.high %v2571_v16, %v2575_v26  ;;  %v2435_v58 = vld [vmem:[#allocation11 + $0x210] sm:$0xff]  ;;  %18197 = vst [vmem:[#allocation390_spill] sm:$0xff] %v14120_v7  ;;  %v14124_v45 = vcombine.low %v2571_v16, %v2575_v26 }
 0x36e   :  { %5876 = vmatpush2.bf16.msra.mxu1 %v14100_v40  ;;  %5836 = vmatprep.subr.bf16.mxu0 %v14102_v21  ;;  %v2439_v33 = vld [vmem:[#allocation11 + $0x230] sm:$0xff] }
 0x36f   :  { %5877 = vmatprep.subr.bf16.mxu1 %v14105_v41  ;;  %18196 = vst [vmem:[#allocation389_spill] sm:$0xff] %v14117_v63  ;;  %v2563_v48 = vld [vmem:[#allocation11 + $0x610] sm:$0xff]  ;;  %18198 = vst [vmem:[#allocation391_spill] sm:$0xff] %v14124_v45  ;;  %v14126_v32 = vcombine.high %v2435_v58, %v2439_v33  ;;  %v14132_v29 = vcombine.low %v2435_v58, %v2439_v33 }
 0x370   :  { %v2567_v8 = vld [vmem:[#allocation11 + $0x630] sm:$0xff] }
 0x371   :  { %5837 = vmatpush2.bf16.msra.mxu0 %v14108_v30  ;;  %18199 = vst [vmem:[#allocation392_spill] sm:$0xff] %v14126_v32  ;;  %v14129_v9 = vcombine.high %v2563_v48, %v2567_v8  ;;  %v2683_v41 = vld [vmem:[#allocation11 + $0x9d0] sm:$0xff]  ;;  %18201 = vst [vmem:[#allocation394_spill] sm:$0xff] %v14132_v29  ;;  %v14136_v26 = vcombine.low %v2563_v48, %v2567_v8 }
 0x372   :  { %5878 = vmatpush2.bf16.msra.mxu1 %v14112_v10  ;;  %5838 = vmatprep.subr.bf16.mxu0 %v14114_v15  ;;  %v2687_v21 = vld [vmem:[#allocation11 + $0x9f0] sm:$0xff] }
 0x373   :  { %5879 = vmatprep.subr.bf16.mxu1 %v14117_v63  ;;  %18200 = vst [vmem:[#allocation393_spill] sm:$0xff] %v14129_v9  ;;  %v2811_v40 = vld [vmem:[#allocation11 + $0xdd0] sm:$0xff]  ;;  %18202 = vst [vmem:[#allocation395_spill] sm:$0xff] %v14136_v26  ;;  %v14138_v16 = vcombine.high %v2683_v41, %v2687_v21  ;;  %v14144_v10 = vcombine.low %v2683_v41, %v2687_v21 }
 0x374   :  { %v2815_v35 = vld [vmem:[#allocation11 + $0xdf0] sm:$0xff] }
 0x375   :  { %5839 = vmatpush2.bf16.msra.mxu0 %v14120_v7  ;;  %18203 = vst [vmem:[#allocation396_spill] sm:$0xff] %v14138_v16  ;;  %v14141_v62 = vcombine.high %v2811_v40, %v2815_v35  ;;  %v2675_v63 = vld [vmem:[#allocation11 + $0x990] sm:$0xff]  ;;  %18205 = vst [vmem:[#allocation398_spill] sm:$0xff] %v14144_v10  ;;  %v14148_v8 = vcombine.low %v2811_v40, %v2815_v35 }
 0x376   :  { %5880 = vmatpush2.bf16.msra.mxu1 %v14124_v45  ;;  %5840 = vmatprep.subr.bf16.mxu0 %v14126_v32  ;;  %v2679_v15 = vld [vmem:[#allocation11 + $0x9b0] sm:$0xff] }
 0x377   :  { %5881 = vmatprep.subr.bf16.mxu1 %v14129_v9  ;;  %18204 = vst [vmem:[#allocation397_spill] sm:$0xff] %v14141_v62  ;;  %v2803_v33 = vld [vmem:[#allocation11 + $0xd90] sm:$0xff]  ;;  %18206 = vst [vmem:[#allocation399_spill] sm:$0xff] %v14148_v8  ;;  %v14151_v48 = vcombine.high %v2675_v63, %v2679_v15  ;;  %v14159_v35 = vcombine.low %v2675_v63, %v2679_v15 }
 0x378   :  { %v2807_v58 = vld [vmem:[#allocation11 + $0xdb0] sm:$0xff] }
 0x379   :  { %5841 = vmatpush2.bf16.msra.mxu0 %v14132_v29  ;;  %v2667_v9 = vld [vmem:[#allocation11 + $0x950] sm:$0xff]  ;;  %v14154_v21 = vcombine.high %v2803_v33, %v2807_v58  ;;  %18208 = vst [vmem:[#allocation401_spill] sm:$0xff] %v14159_v35 }
 0x37a   :  { %5882 = vmatpush2.bf16.msra.mxu1 %v14136_v26  ;;  %5892 = vmatprep.subr.bf16.mxu0 %v14138_v16  ;;  %v2671_v32 = vld [vmem:[#allocation11 + $0x970] sm:$0xff]  ;;  %v14163_v16 = vcombine.low %v2803_v33, %v2807_v58 }
 0x37b   :  { %5933 = vmatprep.subr.bf16.mxu1 %v14141_v62  ;;  %18207 = vst [vmem:[#allocation400_spill] sm:$0xff] %v14154_v21  ;;  %v2795_v41 = vld [vmem:[#allocation11 + $0xd50] sm:$0xff]  ;;  %v14165_v30 = vcombine.high %v2667_v9, %v2671_v32 }
 0x37c   :  { %v5598_v45 = vpop.f32.mrf.mxu0  ;;  %v5639_v7 = vpop.f32.mrf.mxu1  ;;  %5843 = vmatmul.mubr.bf16.vlgmr.msra.gmra.mxu0 %v13309_v1  ;;  %v2799_v29 = vld [vmem:[#allocation11 + $0xd70] sm:$0xff]  ;;  %18209 = vst [vmem:[#allocation402_spill] sm:$0xff] %v14163_v16 }
 0x37d   :  { %v5599_v26 = vadd.f32 %v5598_v45, %v13965_v59  ;;  %5884 = vmatmul.mubr.bf16.vlgmr.msra.gmra.mxu1 %v13311_v22  ;;  %5893 = vmatpush1.bf16.msra.mxu0 %v14144_v10  ;;  %18210 = vst [vmem:[#allocation403_spill] sm:$0xff] %v14165_v30  ;;  %v14172_v15 = vcombine.high %v2795_v41, %v2799_v29  ;;  %v2659_v63 = vld [vmem:[#allocation11 + $0x910] sm:$0xff] }
 0x37e   :  { %5924 = vmatprep.mubr.bf16.mxu0 %v13429_v24  ;;  %5934 = vmatpush1.bf16.msra.mxu1 %v14148_v8  ;;  %v5600_v40 = vpop.f32.mrf.mxu0  ;;  %v5641_v62 = vpop.f32.mrf.mxu1  ;;  %v2663_v45 = vld [vmem:[#allocation11 + $0x930] sm:$0xff] }
 0x37f   :  { %v14167_v46 = vadd.f32 %v5639_v7, %v5599_v26  ;;  %5965 = vmatprep.mubr.bf16.mxu1 %v13431_v39  ;;  %v5601_v59 = vadd.f32 %v5600_v40, %v13973_v23  ;;  %5894 = vmatprep.subr.bf16.mxu0 %v14151_v48  ;;  %18211 = vst [vmem:[#allocation404_spill] sm:$0xff] %v14172_v15  ;;  %v2787_v33 = vld [vmem:[#allocation11 + $0xd10] sm:$0xff] }
 0x380   :  { %v5602_v10 = vpop.f32.mrf.mxu0  ;;  %v5643_v8 = vpop.f32.mrf.mxu1  ;;  %5935 = vmatprep.subr.bf16.mxu1 %v14154_v21  ;;  %v2791_v58 = vld [vmem:[#allocation11 + $0xd30] sm:$0xff]  ;;  %v14178_v7 = vcombine.low %v2667_v9, %v2671_v32  ;;  %v14182_v40 = vcombine.low %v2795_v41, %v2799_v29  ;;  %v14190_v32 = vcombine.low %v2659_v63, %v2663_v45 }
 0x381   :  { %v14175_v17 = vadd.f32 %v5641_v62, %v5601_v59  ;;  %5895 = vmatpush1.bf16.msra.mxu0 %v14159_v35  ;;  %v14184_v10 = vcombine.high %v2659_v63, %v2663_v45  ;;  %v14187_v8 = vcombine.high %v2787_v33, %v2791_v58  ;;  %v2651_v62 = vld [vmem:[#allocation11 + $0x8d0] sm:$0xff]  ;;  %v14194_v9 = vcombine.low %v2787_v33, %v2791_v58 }
 0x382   :  { %18212 = vst [vmem:[#allocation405_spill] sm:$0xff] %v14178_v7  ;;  %5936 = vmatpush1.bf16.msra.mxu1 %v14163_v16  ;;  %v5603_v23 = vpop.f32.mrf.mxu0  ;;  %v5644_v26 = vpop.f32.mrf.mxu1  ;;  %5896 = vmatprep.subr.bf16.mxu0 %v14165_v30  ;;  %18213 = vst [vmem:[#allocation406_spill] sm:$0xff] %v14182_v40  ;;  %v2655_v59 = vld [vmem:[#allocation11 + $0x8f0] sm:$0xff] }
 0x383   :  { %18214 = vst [vmem:[#allocation407_spill] sm:$0xff] %v14184_v10  ;;  %5937 = vmatprep.subr.bf16.mxu1 %v14172_v15  ;;  %18215 = vst [vmem:[#allocation408_spill] sm:$0xff] %v14187_v8  ;;  %v2779_v21 = vld [vmem:[#allocation11 + $0xcd0] sm:$0xff]  ;;  %v14196_v29 = vcombine.high %v2651_v62, %v2655_v59  ;;  %v14202_v63 = vcombine.low %v2651_v62, %v2655_v59 }
 0x384   :  { %v2783_v35 = vld [vmem:[#allocation11 + $0xcf0] sm:$0xff]  ;;  %18216 = vst [vmem:[#allocation409_spill] sm:$0xff] %v14190_v32  ;;  %18217 = vst [vmem:[#allocation410_spill] sm:$0xff] %v14194_v9 }
 0x385   :  { %5897 = vmatpush1.bf16.msra.mxu0 %v14178_v7  ;;  %18218 = vst [vmem:[#allocation411_spill] sm:$0xff] %v14196_v29  ;;  %v14199_v41 = vcombine.high %v2779_v21, %v2783_v35  ;;  %v2643_v23 = vld [vmem:[#allocation11 + $0x890] sm:$0xff]  ;;  %18220 = vst [vmem:[#allocation413_spill] sm:$0xff] %v14202_v63  ;;  %v14206_v45 = vcombine.low %v2779_v21, %v2783_v35 }
 0x386   :  { %5938 = vmatpush1.bf16.msra.mxu1 %v14182_v40  ;;  %5898 = vmatprep.subr.bf16.mxu0 %v14184_v10  ;;  %v2647_v26 = vld [vmem:[#allocation11 + $0x8b0] sm:$0xff] }
 0x387   :  { %5939 = vmatprep.subr.bf16.mxu1 %v14187_v8  ;;  %18219 = vst [vmem:[#allocation412_spill] sm:$0xff] %v14199_v41  ;;  %v2771_v15 = vld [vmem:[#allocation11 + $0xc90] sm:$0xff]  ;;  %18221 = vst [vmem:[#allocation414_spill] sm:$0xff] %v14206_v45  ;;  %v14208_v33 = vcombine.high %v2643_v23, %v2647_v26  ;;  %v14214_v62 = vcombine.low %v2643_v23, %v2647_v26 }
 0x388   :  { %v2775_v30 = vld [vmem:[#allocation11 + $0xcb0] sm:$0xff] }
 0x389   :  { %5899 = vmatpush1.bf16.msra.mxu0 %v14190_v32  ;;  %18222 = vst [vmem:[#allocation415_spill] sm:$0xff] %v14208_v33  ;;  %v14211_v58 = vcombine.high %v2771_v15, %v2775_v30  ;;  %v2635_v8 = vld [vmem:[#allocation11 + $0x850] sm:$0xff]  ;;  %18224 = vst [vmem:[#allocation417_spill] sm:$0xff] %v14214_v62  ;;  %v14218_v21 = vcombine.low %v2771_v15, %v2775_v30 }
 0x38a   :  { %5940 = vmatpush1.bf16.msra.mxu1 %v14194_v9  ;;  %5900 = vmatprep.subr.bf16.mxu0 %v14196_v29  ;;  %v2639_v10 = vld [vmem:[#allocation11 + $0x870] sm:$0xff] }
 0x38b   :  { %5941 = vmatprep.subr.bf16.mxu1 %v14199_v41  ;;  %18223 = vst [vmem:[#allocation416_spill] sm:$0xff] %v14211_v58  ;;  %v2763_v40 = vld [vmem:[#allocation11 + $0xc50] sm:$0xff]  ;;  %18225 = vst [vmem:[#allocation418_spill] sm:$0xff] %v14218_v21  ;;  %v14220_v35 = vcombine.high %v2635_v8, %v2639_v10  ;;  %v14226_v23 = vcombine.low %v2635_v8, %v2639_v10 }
 0x38c   :  { %v2767_v7 = vld [vmem:[#allocation11 + $0xc70] sm:$0xff] }
 0x38d   :  { %5901 = vmatpush1.bf16.msra.mxu0 %v14202_v63  ;;  %18226 = vst [vmem:[#allocation419_spill] sm:$0xff] %v14220_v35  ;;  %v14223_v59 = vcombine.high %v2763_v40, %v2767_v7  ;;  %v2627_v41 = vld [vmem:[#allocation11 + $0x810] sm:$0xff]  ;;  %18228 = vst [vmem:[#allocation421_spill] sm:$0xff] %v14226_v23  ;;  %v14230_v30 = vcombine.low %v2763_v40, %v2767_v7 }
 0x38e   :  { %5942 = vmatpush1.bf16.msra.mxu1 %v14206_v45  ;;  %5902 = vmatprep.subr.bf16.mxu0 %v14208_v33  ;;  %v2631_v29 = vld [vmem:[#allocation11 + $0x830] sm:$0xff] }
 0x38f   :  { %5943 = vmatprep.subr.bf16.mxu1 %v14211_v58  ;;  %18227 = vst [vmem:[#allocation420_spill] sm:$0xff] %v14223_v59  ;;  %v2755_v9 = vld [vmem:[#allocation11 + $0xc10] sm:$0xff]  ;;  %18229 = vst [vmem:[#allocation422_spill] sm:$0xff] %v14230_v30  ;;  %v14232_v15 = vcombine.high %v2627_v41, %v2631_v29  ;;  %v14238_v10 = vcombine.low %v2627_v41, %v2631_v29 }
 0x390   :  { %v2759_v32 = vld [vmem:[#allocation11 + $0xc30] sm:$0xff] }
 0x391   :  { %5903 = vmatpush1.bf16.msra.mxu0 %v14214_v62  ;;  %18230 = vst [vmem:[#allocation423_spill] sm:$0xff] %v14232_v15  ;;  %v14235_v26 = vcombine.high %v2755_v9, %v2759_v32  ;;  %v2747_v58 = vld [vmem:[#allocation11 + $0xbd0] sm:$0xff]  ;;  %18232 = vst [vmem:[#allocation425_spill] sm:$0xff] %v14238_v10  ;;  %v14242_v7 = vcombine.low %v2755_v9, %v2759_v32 }
 0x392   :  { %5944 = vmatpush1.bf16.msra.mxu1 %v14218_v21  ;;  %5904 = vmatprep.subr.bf16.mxu0 %v14220_v35  ;;  %v2751_v33 = vld [vmem:[#allocation11 + $0xbf0] sm:$0xff] }
 0x393   :  { %5945 = vmatprep.subr.bf16.mxu1 %v14223_v59  ;;  %18231 = vst [vmem:[#allocation424_spill] sm:$0xff] %v14235_v26  ;;  %v2875_v45 = vld [vmem:[#allocation11 + $0xfd0] sm:$0xff]  ;;  %18233 = vst [vmem:[#allocation426_spill] sm:$0xff] %v14242_v7  ;;  %v14244_v40 = vcombine.high %v2747_v58, %v2751_v33  ;;  %v14250_v29 = vcombine.low %v2747_v58, %v2751_v33 }
 0x394   :  { %v2879_v63 = vld [vmem:[#allocation11 + $0xff0] sm:$0xff] }
 0x395   :  { %5905 = vmatpush1.bf16.msra.mxu0 %v14226_v23  ;;  %18234 = vst [vmem:[#allocation427_spill] sm:$0xff] %v14244_v40  ;;  %v14247_v8 = vcombine.high %v2875_v45, %v2879_v63  ;;  %v2739_v59 = vld [vmem:[#allocation11 + $0xb90] sm:$0xff]  ;;  %18236 = vst [vmem:[#allocation429_spill] sm:$0xff] %v14250_v29  ;;  %v14254_v32 = vcombine.low %v2875_v45, %v2879_v63 }
 0x396   :  { %5946 = vmatpush1.bf16.msra.mxu1 %v14230_v30  ;;  %5906 = vmatprep.subr.bf16.mxu0 %v14232_v15  ;;  %v2743_v35 = vld [vmem:[#allocation11 + $0xbb0] sm:$0xff] }
 0x397   :  { %5947 = vmatprep.subr.bf16.mxu1 %v14235_v26  ;;  %18235 = vst [vmem:[#allocation428_spill] sm:$0xff] %v14247_v8  ;;  %v2867_v21 = vld [vmem:[#allocation11 + $0xf90] sm:$0xff]  ;;  %18237 = vst [vmem:[#allocation430_spill] sm:$0xff] %v14254_v32  ;;  %v14256_v9 = vcombine.high %v2739_v59, %v2743_v35  ;;  %v14262_v33 = vcombine.low %v2739_v59, %v2743_v35 }
 0x398   :  { %v2871_v62 = vld [vmem:[#allocation11 + $0xfb0] sm:$0xff] }
 0x399   :  { %5907 = vmatpush1.bf16.msra.mxu0 %v14238_v10  ;;  %18238 = vst [vmem:[#allocation431_spill] sm:$0xff] %v14256_v9  ;;  %v14259_v41 = vcombine.high %v2867_v21, %v2871_v62  ;;  %v2731_v26 = vld [vmem:[#allocation11 + $0xb50] sm:$0xff]  ;;  %18240 = vst [vmem:[#allocation433_spill] sm:$0xff] %v14262_v33  ;;  %v14266_v63 = vcombine.low %v2867_v21, %v2871_v62 }
 0x39a   :  { %5948 = vmatpush1.bf16.msra.mxu1 %v14242_v7  ;;  %5908 = vmatprep.subr.bf16.mxu0 %v14244_v40  ;;  %v2735_v15 = vld [vmem:[#allocation11 + $0xb70] sm:$0xff] }
 0x39b   :  { %5949 = vmatprep.subr.bf16.mxu1 %v14247_v8  ;;  %18239 = vst [vmem:[#allocation432_spill] sm:$0xff] %v14259_v41  ;;  %v2859_v30 = vld [vmem:[#allocation11 + $0xf50] sm:$0xff]  ;;  %18241 = vst [vmem:[#allocation434_spill] sm:$0xff] %v14266_v63  ;;  %v14268_v45 = vcombine.high %v2731_v26, %v2735_v15  ;;  %v14274_v35 = vcombine.low %v2731_v26, %v2735_v15 }
 0x39c   :  { %v2863_v23 = vld [vmem:[#allocation11 + $0xf70] sm:$0xff] }
 0x39d   :  { %5909 = vmatpush2.bf16.msra.mxu0 %v14250_v29  ;;  %18242 = vst [vmem:[#allocation435_spill] sm:$0xff] %v14268_v45  ;;  %v14271_v58 = vcombine.high %v2859_v30, %v2863_v23  ;;  %v2723_v8 = vld [vmem:[#allocation11 + $0xb10] sm:$0xff]  ;;  %18244 = vst [vmem:[#allocation437_spill] sm:$0xff] %v14274_v35  ;;  %v14278_v62 = vcombine.low %v2859_v30, %v2863_v23 }
 0x39e   :  { %5950 = vmatpush2.bf16.msra.mxu1 %v14254_v32  ;;  %5910 = vmatprep.subr.bf16.mxu0 %v14256_v9  ;;  %v2727_v40 = vld [vmem:[#allocation11 + $0xb30] sm:$0xff] }
 0x39f   :  { %5951 = vmatprep.subr.bf16.mxu1 %v14259_v41  ;;  %18243 = vst [vmem:[#allocation436_spill] sm:$0xff] %v14271_v58  ;;  %v2851_v7 = vld [vmem:[#allocation11 + $0xf10] sm:$0xff]  ;;  %18245 = vst [vmem:[#allocation438_spill] sm:$0xff] %v14278_v62  ;;  %v14280_v21 = vcombine.high %v2723_v8, %v2727_v40  ;;  %v14286_v15 = vcombine.low %v2723_v8, %v2727_v40 }
 0x3a0   :  { %v2855_v10 = vld [vmem:[#allocation11 + $0xf30] sm:$0xff] }
 0x3a1   :  { %5911 = vmatpush2.bf16.msra.mxu0 %v14262_v33  ;;  %18246 = vst [vmem:[#allocation439_spill] sm:$0xff] %v14280_v21  ;;  %v14283_v59 = vcombine.high %v2851_v7, %v2855_v10  ;;  %v2715_v41 = vld [vmem:[#allocation11 + $0xad0] sm:$0xff]  ;;  %18248 = vst [vmem:[#allocation441_spill] sm:$0xff] %v14286_v15  ;;  %v14290_v23 = vcombine.low %v2851_v7, %v2855_v10 }
 0x3a2   :  { %5952 = vmatpush2.bf16.msra.mxu1 %v14266_v63  ;;  %5912 = vmatprep.subr.bf16.mxu0 %v14268_v45  ;;  %v2719_v9 = vld [vmem:[#allocation11 + $0xaf0] sm:$0xff] }
 0x3a3   :  { %5953 = vmatprep.subr.bf16.mxu1 %v14271_v58  ;;  %18247 = vst [vmem:[#allocation440_spill] sm:$0xff] %v14283_v59  ;;  %v2843_v32 = vld [vmem:[#allocation11 + $0xed0] sm:$0xff]  ;;  %18249 = vst [vmem:[#allocation442_spill] sm:$0xff] %v14290_v23  ;;  %v14292_v30 = vcombine.high %v2715_v41, %v2719_v9  ;;  %v14298_v40 = vcombine.low %v2715_v41, %v2719_v9 }
 0x3a4   :  { %v2847_v29 = vld [vmem:[#allocation11 + $0xef0] sm:$0xff] }
 0x3a5   :  { %5913 = vmatpush2.bf16.msra.mxu0 %v14274_v35  ;;  %18250 = vst [vmem:[#allocation443_spill] sm:$0xff] %v14292_v30  ;;  %v14295_v26 = vcombine.high %v2843_v32, %v2847_v29  ;;  %v2707_v58 = vld [vmem:[#allocation11 + $0xa90] sm:$0xff]  ;;  %18252 = vst [vmem:[#allocation445_spill] sm:$0xff] %v14298_v40  ;;  %v14302_v10 = vcombine.low %v2843_v32, %v2847_v29 }
 0x3a6   :  { %5954 = vmatpush2.bf16.msra.mxu1 %v14278_v62  ;;  %5914 = vmatprep.subr.bf16.mxu0 %v14280_v21  ;;  %v2711_v45 = vld [vmem:[#allocation11 + $0xab0] sm:$0xff] }
 0x3a7   :  { %5955 = vmatprep.subr.bf16.mxu1 %v14283_v59  ;;  %18251 = vst [vmem:[#allocation444_spill] sm:$0xff] %v14295_v26  ;;  %v2835_v63 = vld [vmem:[#allocation11 + $0xe90] sm:$0xff]  ;;  %18253 = vst [vmem:[#allocation446_spill] sm:$0xff] %v14302_v10  ;;  %v14304_v7 = vcombine.high %v2707_v58, %v2711_v45  ;;  %v14310_v9 = vcombine.low %v2707_v58, %v2711_v45 }
 0x3a8   :  { %v2839_v33 = vld [vmem:[#allocation11 + $0xeb0] sm:$0xff] }
 0x3a9   :  { %5915 = vmatpush2.bf16.msra.mxu0 %v14286_v15  ;;  %18254 = vst [vmem:[#allocation447_spill] sm:$0xff] %v14304_v7  ;;  %v14307_v8 = vcombine.high %v2835_v63, %v2839_v33  ;;  %v2699_v59 = vld [vmem:[#allocation11 + $0xa50] sm:$0xff]  ;;  %18256 = vst [vmem:[#allocation449_spill] sm:$0xff] %v14310_v9  ;;  %v14314_v29 = vcombine.low %v2835_v63, %v2839_v33 }
 0x3aa   :  { %5956 = vmatpush2.bf16.msra.mxu1 %v14290_v23  ;;  %5916 = vmatprep.subr.bf16.mxu0 %v14292_v30  ;;  %v2703_v21 = vld [vmem:[#allocation11 + $0xa70] sm:$0xff] }
 0x3ab   :  { %5957 = vmatprep.subr.bf16.mxu1 %v14295_v26  ;;  %18255 = vst [vmem:[#allocation448_spill] sm:$0xff] %v14307_v8  ;;  %v2827_v62 = vld [vmem:[#allocation11 + $0xe50] sm:$0xff]  ;;  %18257 = vst [vmem:[#allocation450_spill] sm:$0xff] %v14314_v29  ;;  %v14316_v32 = vcombine.high %v2699_v59, %v2703_v21  ;;  %v14322_v45 = vcombine.low %v2699_v59, %v2703_v21 }
 0x3ac   :  { %v2831_v35 = vld [vmem:[#allocation11 + $0xe70] sm:$0xff] }
 0x3ad   :  { %5917 = vmatpush2.bf16.msra.mxu0 %v14298_v40  ;;  %18258 = vst [vmem:[#allocation451_spill] sm:$0xff] %v14316_v32  ;;  %v14319_v41 = vcombine.high %v2827_v62, %v2831_v35  ;;  %v2691_v26 = vld [vmem:[#allocation11 + $0xa10] sm:$0xff]  ;;  %18260 = vst [vmem:[#allocation453_spill] sm:$0xff] %v14322_v45  ;;  %v14326_v33 = vcombine.low %v2827_v62, %v2831_v35  ;;  %v2560_v40 = vld [vmem:[#allocation11 + $0x5f8] sm:$0xff] }
 0x3ae   :  { %5958 = vmatpush2.bf16.msra.mxu1 %v14302_v10  ;;  %5918 = vmatprep.subr.bf16.mxu0 %v14304_v7  ;;  %v2695_v30 = vld [vmem:[#allocation11 + $0xa30] sm:$0xff]  ;;  %v2432_v7 = vld [vmem:[#allocation11 + $0x1f8] sm:$0xff] }
 0x3af   :  { %5959 = vmatprep.subr.bf16.mxu1 %v14307_v8  ;;  %18259 = vst [vmem:[#allocation452_spill] sm:$0xff] %v14319_v41  ;;  %v2819_v23 = vld [vmem:[#allocation11 + $0xe10] sm:$0xff]  ;;  %18261 = vst [vmem:[#allocation454_spill] sm:$0xff] %v14326_v33  ;;  %v14328_v63 = vcombine.high %v2691_v26, %v2695_v30  ;;  %v2428_v8 = vld [vmem:[#allocation11 + $0x1d8] sm:$0xff]  ;;  %v14334_v21 = vcombine.low %v2691_v26, %v2695_v30 }
 0x3b0   :  { %v2823_v15 = vld [vmem:[#allocation11 + $0xe30] sm:$0xff]  ;;  %v2556_v10 = vld [vmem:[#allocation11 + $0x5d8] sm:$0xff]  ;;  %v14340_v62 = vcombine.high %v2428_v8, %v2432_v7  ;;  %v14351_v26 = vcombine.low %v2428_v8, %v2432_v7 }
 0x3b1   :  { %5919 = vmatpush2.bf16.msra.mxu0 %v14310_v9  ;;  %18262 = vst [vmem:[#allocation455_spill] sm:$0xff] %v14328_v63  ;;  %v14331_v58 = vcombine.high %v2819_v23, %v2823_v15  ;;  %18264 = vst [vmem:[#allocation457_spill] sm:$0xff] %v14334_v21  ;;  %v14338_v35 = vcombine.low %v2819_v23, %v2823_v15  ;;  %v14343_v59 = vcombine.high %v2556_v10, %v2560_v40  ;;  %v2552_v15 = vld [vmem:[#allocation11 + $0x5b8] sm:$0xff] }
 0x3b2   :  { %5960 = vmatpush2.bf16.msra.mxu1 %v14314_v29  ;;  %5920 = vmatprep.subr.bf16.mxu0 %v14316_v32  ;;  %18266 = vst [vmem:[#allocation459_spill] sm:$0xff] %v14340_v62  ;;  %v2424_v32 = vld [vmem:[#allocation11 + $0x1b8] sm:$0xff]  ;;  %18270 = vst [vmem:[#allocation462_spill] sm:$0xff] %v14351_v26  ;;  %v14355_v23 = vcombine.low %v2556_v10, %v2560_v40 }
 0x3b3   :  { %5961 = vmatprep.subr.bf16.mxu1 %v14319_v41  ;;  %18263 = vst [vmem:[#allocation456_spill] sm:$0xff] %v14331_v58  ;;  %18265 = vst [vmem:[#allocation458_spill] sm:$0xff] %v14338_v35  ;;  %v2420_v41 = vld [vmem:[#allocation11 + $0x198] sm:$0xff] }
 0x3b4   :  { %18267 = vst [vmem:[#allocation460_spill] sm:$0xff] %v14343_v59  ;;  %18271 = vst [vmem:[#allocation463_spill] sm:$0xff] %v14355_v23  ;;  %v2416_v7 = vld [vmem:[#allocation11 + $0x178] sm:$0xff] }
 0x3b5   :  { %5921 = vmatpush2.bf16.msra.mxu0 %v14322_v45  ;;  %v18268_v45 = vsub.s32 2, %v17936_v44 }
 0x3b6   :  { %5962 = vmatpush2.bf16.msra.mxu1 %v14326_v33  ;;  %5922 = vmatprep.subr.bf16.mxu0 %v14328_v63  ;;  %v2548_v63 = vld [vmem:[#allocation11 + $0x598] sm:$0xff]  ;;  %v14363_v33 = vcombine.high %v2420_v41, %v2424_v32 }
 0x3b7   :  { %5963 = vmatprep.subr.bf16.mxu1 %v14331_v58  ;;  %v14349_v30 = vrot.slane %v13926_v31, %v18268_v45  ;;  %v18272_v58 = vsub.s32 3, %v17936_v44  ;;  %v2412_v45 = vld [vmem:[#allocation11 + $0x158] sm:$0xff]  ;;  %v14366_v29 = vcombine.high %v2548_v63, %v2552_v15 }
 0x3b8   :  { %18274 = vst [vmem:[#allocation465_spill] sm:$0xff] %v14363_v33  ;;  %v14377_v9 = vcombine.high %v2412_v45, %v2416_v7 }
 0x3b9   :  { %5923 = vmatpush2.bf16.msra.mxu0 %v14334_v21  ;;  %18269 = vst [vmem:[#allocation461_spill] sm:$0xff] %v14349_v30  ;;  %v14361_v21 = vrot.slane %v13926_v31, %v18272_v58  ;;  %18275 = vst [vmem:[#allocation466_spill] sm:$0xff] %v14366_v29  ;;  %v14371_v31 = vcombine.low %v2420_v41, %v2424_v32  ;;  %v2404_v41 = vld [vmem:[#allocation11 + $0x118] sm:$0xff] }
 0x3ba   :  { %5964 = vmatpush2.bf16.msra.mxu1 %v14338_v35  ;;  %5974 = vmatprep.subr.bf16.mxu0 %v14340_v62  ;;  %v2540_v35 = vld [vmem:[#allocation11 + $0x558] sm:$0xff]  ;;  %18277 = vst [vmem:[#allocation468_spill] sm:$0xff] %v14377_v9 }
 0x3bb   :  { %6015 = vmatprep.subr.bf16.mxu1 %v14343_v59  ;;  %18273 = vst [vmem:[#allocation464_spill] sm:$0xff] %v14361_v21  ;;  %v2544_v62 = vld [vmem:[#allocation11 + $0x578] sm:$0xff]  ;;  %18276 = vst [vmem:[#allocation467_spill] sm:$0xff] %v14371_v31  ;;  %v14375_v59 = vcombine.low %v2548_v63, %v2552_v15 }
 0x3bc   :  { %v5680_v8 = vpop.f32.mrf.mxu0  ;;  %5925 = vmatmul.mubr.bf16.vlgmr.msra.gmra.mxu0 %v13537_v42  ;;  %v14384_v32 = vcombine.high %v2540_v35, %v2544_v62  ;;  %v2532_v63 = vld [vmem:[#allocation11 + $0x518] sm:$0xff] }
 0x3bd   :  { %v5681_v40 = vadd.f32 %v5680_v8, %v14349_v30  ;;  %v5721_v10 = vpop.f32.mrf.mxu1  ;;  %5966 = vmatmul.mubr.bf16.vlgmr.msra.gmra.mxu1 %v13539_v49  ;;  %5975 = vmatpush1.bf16.msra.mxu0 %v14351_v26  ;;  %v2536_v15 = vld [vmem:[#allocation11 + $0x538] sm:$0xff] }
 0x3be   :  { %6006 = vmatprep.mubr.bf16.mxu0 %v13305_v57  ;;  %6016 = vmatpush1.bf16.msra.mxu1 %v14355_v23  ;;  %v5682_v58 = vpop.f32.mrf.mxu0  ;;  %18278 = vst [vmem:[#allocation469_spill] sm:$0xff] %v14384_v32  ;;  %v2408_v57 = vld [vmem:[#allocation11 + $0x138] sm:$0xff] }
 0x3bf   :  { %v14379_v16 = vadd.f32 %v5721_v10, %v5681_v40  ;;  %6047 = vmatprep.mubr.bf16.mxu1 %v13307_v18  ;;  %v5683_v8 = vadd.f32 %v5682_v58, %v14361_v21  ;;  %v5723_v30 = vpop.f32.mrf.mxu1  ;;  %5976 = vmatprep.subr.bf16.mxu0 %v14363_v33  ;;  %v14390_v18 = vcombine.low %v2412_v45, %v2416_v7 }
 0x3c0   :  { %v5684_v26 = vpop.f32.mrf.mxu0  ;;  %6017 = vmatprep.subr.bf16.mxu1 %v14366_v29  ;;  %v14394_v58 = vcombine.low %v2540_v35, %v2544_v62  ;;  %v14396_v33 = vcombine.high %v2404_v41, %v2408_v57  ;;  %v14399_v29 = vcombine.high %v2532_v63, %v2536_v15  ;;  %v14402_v45 = vcombine.low %v2404_v41, %v2408_v57 }
 0x3c1   :  { %v14387_v23 = vadd.f32 %v5723_v30, %v5683_v8  ;;  %v5725_v40 = vpop.f32.mrf.mxu1  ;;  %5977 = vmatpush1.bf16.msra.mxu0 %v14371_v31  ;;  %18279 = vst [vmem:[#allocation470_spill] sm:$0xff] %v14390_v18  ;;  %v2396_v30 = vld [vmem:[#allocation11 + $0xd8] sm:$0xff]  ;;  %v14406_v35 = vcombine.low %v2532_v63, %v2536_v15 }
 0x3c2   :  { %6018 = vmatpush1.bf16.msra.mxu1 %v14375_v59  ;;  %v5685_v10 = vpop.f32.mrf.mxu0  ;;  %5978 = vmatprep.subr.bf16.mxu0 %v14377_v9  ;;  %18280 = vst [vmem:[#allocation471_spill] sm:$0xff] %v14394_v58  ;;  %18281 = vst [vmem:[#allocation472_spill] sm:$0xff] %v14396_v33  ;;  %v2400_v8 = vld [vmem:[#allocation11 + $0xf8] sm:$0xff] }
 0x3c3   :  { %v5726_v26 = vpop.f32.mrf.mxu1  ;;  %6019 = vmatprep.subr.bf16.mxu1 %v14384_v32  ;;  %18282 = vst [vmem:[#allocation473_spill] sm:$0xff] %v14399_v29  ;;  %v2524_v40 = vld [vmem:[#allocation11 + $0x4d8] sm:$0xff]  ;;  %18283 = vst [vmem:[#allocation474_spill] sm:$0xff] %v14402_v45  ;;  %v14408_v62 = vcombine.high %v2396_v30, %v2400_v8  ;;  %v14414_v41 = vcombine.low %v2396_v30, %v2400_v8 }
 0x3c4   :  { %v2528_v31 = vld [vmem:[#allocation11 + $0x4f8] sm:$0xff]  ;;  %18284 = vst [vmem:[#allocation475_spill] sm:$0xff] %v14406_v35 }
 0x3c5   :  { %5979 = vmatpush1.bf16.msra.mxu0 %v14390_v18  ;;  %18285 = vst [vmem:[#allocation476_spill] sm:$0xff] %v14408_v62  ;;  %v14411_v7 = vcombine.high %v2524_v40, %v2528_v31  ;;  %v2388_v10 = vld [vmem:[#allocation11 + $0x98] sm:$0xff]  ;;  %18287 = vst [vmem:[#allocation478_spill] sm:$0xff] %v14414_v41  ;;  %v14418_v57 = vcombine.low %v2524_v40, %v2528_v31 }
 0x3c6   :  { %6020 = vmatpush1.bf16.msra.mxu1 %v14394_v58  ;;  %5980 = vmatprep.subr.bf16.mxu0 %v14396_v33  ;;  %v2392_v26 = vld [vmem:[#allocation11 + $0xb8] sm:$0xff] }
 0x3c7   :  { %6021 = vmatprep.subr.bf16.mxu1 %v14399_v29  ;;  %18286 = vst [vmem:[#allocation477_spill] sm:$0xff] %v14411_v7  ;;  %v2516_v32 = vld [vmem:[#allocation11 + $0x498] sm:$0xff]  ;;  %18288 = vst [vmem:[#allocation479_spill] sm:$0xff] %v14418_v57  ;;  %v14420_v63 = vcombine.high %v2388_v10, %v2392_v26  ;;  %v14426_v30 = vcombine.low %v2388_v10, %v2392_v26 }
 0x3c8   :  { %v2520_v9 = vld [vmem:[#allocation11 + $0x4b8] sm:$0xff] }
 0x3c9   :  { %5981 = vmatpush1.bf16.msra.mxu0 %v14402_v45  ;;  %18289 = vst [vmem:[#allocation480_spill] sm:$0xff] %v14420_v63  ;;  %v14423_v15 = vcombine.high %v2516_v32, %v2520_v9  ;;  %v2380_v29 = vld [vmem:[#allocation11 + $0x58] sm:$0xff]  ;;  %18291 = vst [vmem:[#allocation482_spill] sm:$0xff] %v14426_v30  ;;  %v14430_v31 = vcombine.low %v2516_v32, %v2520_v9 }
 0x3ca   :  { %6022 = vmatpush1.bf16.msra.mxu1 %v14406_v35  ;;  %5982 = vmatprep.subr.bf16.mxu0 %v14408_v62  ;;  %v2384_v33 = vld [vmem:[#allocation11 + $0x78] sm:$0xff] }
 0x3cb   :  { %6023 = vmatprep.subr.bf16.mxu1 %v14411_v7  ;;  %18290 = vst [vmem:[#allocation481_spill] sm:$0xff] %v14423_v15  ;;  %v2508_v58 = vld [vmem:[#allocation11 + $0x458] sm:$0xff]  ;;  %18292 = vst [vmem:[#allocation483_spill] sm:$0xff] %v14430_v31  ;;  %v14432_v8 = vcombine.high %v2380_v29, %v2384_v33  ;;  %v14438_v10 = vcombine.low %v2380_v29, %v2384_v33 }
 0x3cc   :  { %v2512_v18 = vld [vmem:[#allocation11 + $0x478] sm:$0xff] }
 0x3cd   :  { %5983 = vmatpush1.bf16.msra.mxu0 %v14414_v41  ;;  %18293 = vst [vmem:[#allocation484_spill] sm:$0xff] %v14432_v8  ;;  %v14435_v40 = vcombine.high %v2508_v58, %v2512_v18  ;;  %v2372_v7 = vld [vmem:[#allocation11 + $0x18] sm:$0xff]  ;;  %18295 = vst [vmem:[#allocation486_spill] sm:$0xff] %v14438_v10  ;;  %v14442_v9 = vcombine.low %v2508_v58, %v2512_v18 }
 0x3ce   :  { %6024 = vmatpush1.bf16.msra.mxu1 %v14418_v57  ;;  %5984 = vmatprep.subr.bf16.mxu0 %v14420_v63  ;;  %v2376_v62 = vld [vmem:[#allocation11 + $0x38] sm:$0xff] }
 0x3cf   :  { %6025 = vmatprep.subr.bf16.mxu1 %v14423_v15  ;;  %18294 = vst [vmem:[#allocation485_spill] sm:$0xff] %v14435_v40  ;;  %v2500_v35 = vld [vmem:[#allocation11 + $0x418] sm:$0xff]  ;;  %18296 = vst [vmem:[#allocation487_spill] sm:$0xff] %v14442_v9  ;;  %v14444_v32 = vcombine.high %v2372_v7, %v2376_v62  ;;  %v14450_v29 = vcombine.low %v2372_v7, %v2376_v62 }
 0x3d0   :  { %v2504_v45 = vld [vmem:[#allocation11 + $0x438] sm:$0xff] }
 0x3d1   :  { %5985 = vmatpush1.bf16.msra.mxu0 %v14426_v30  ;;  %18297 = vst [vmem:[#allocation488_spill] sm:$0xff] %v14444_v32  ;;  %v14447_v26 = vcombine.high %v2500_v35, %v2504_v45  ;;  %v2492_v15 = vld [vmem:[#allocation11 + $0x3d8] sm:$0xff]  ;;  %18299 = vst [vmem:[#allocation490_spill] sm:$0xff] %v14450_v29  ;;  %v14454_v33 = vcombine.low %v2500_v35, %v2504_v45 }
 0x3d2   :  { %6026 = vmatpush1.bf16.msra.mxu1 %v14430_v31  ;;  %5986 = vmatprep.subr.bf16.mxu0 %v14432_v8  ;;  %v2496_v63 = vld [vmem:[#allocation11 + $0x3f8] sm:$0xff] }
 0x3d3   :  { %6027 = vmatprep.subr.bf16.mxu1 %v14435_v40  ;;  %18298 = vst [vmem:[#allocation489_spill] sm:$0xff] %v14447_v26  ;;  %v2620_v57 = vld [vmem:[#allocation11 + $0x7d8] sm:$0xff]  ;;  %18300 = vst [vmem:[#allocation491_spill] sm:$0xff] %v14454_v33  ;;  %v14456_v18 = vcombine.high %v2492_v15, %v2496_v63  ;;  %v14462_v62 = vcombine.low %v2492_v15, %v2496_v63 }
 0x3d4   :  { %v2624_v41 = vld [vmem:[#allocation11 + $0x7f8] sm:$0xff] }
 0x3d5   :  { %5987 = vmatpush1.bf16.msra.mxu0 %v14438_v10  ;;  %18301 = vst [vmem:[#allocation492_spill] sm:$0xff] %v14456_v18  ;;  %v14459_v58 = vcombine.high %v2620_v57, %v2624_v41  ;;  %v2484_v40 = vld [vmem:[#allocation11 + $0x398] sm:$0xff]  ;;  %18303 = vst [vmem:[#allocation494_spill] sm:$0xff] %v14462_v62  ;;  %v14466_v45 = vcombine.low %v2620_v57, %v2624_v41 }
 0x3d6   :  { %6028 = vmatpush1.bf16.msra.mxu1 %v14442_v9  ;;  %5988 = vmatprep.subr.bf16.mxu0 %v14444_v32  ;;  %v2488_v8 = vld [vmem:[#allocation11 + $0x3b8] sm:$0xff] }
 0x3d7   :  { %6029 = vmatprep.subr.bf16.mxu1 %v14447_v26  ;;  %18302 = vst [vmem:[#allocation493_spill] sm:$0xff] %v14459_v58  ;;  %v2612_v31 = vld [vmem:[#allocation11 + $0x798] sm:$0xff]  ;;  %18304 = vst [vmem:[#allocation495_spill] sm:$0xff] %v14466_v45  ;;  %v14468_v35 = vcombine.high %v2484_v40, %v2488_v8  ;;  %v14474_v63 = vcombine.low %v2484_v40, %v2488_v8 }
 0x3d8   :  { %v2616_v30 = vld [vmem:[#allocation11 + $0x7b8] sm:$0xff] }
 0x3d9   :  { %5989 = vmatpush1.bf16.msra.mxu0 %v14450_v29  ;;  %18305 = vst [vmem:[#allocation496_spill] sm:$0xff] %v14468_v35  ;;  %v14471_v7 = vcombine.high %v2612_v31, %v2616_v30  ;;  %v2476_v26 = vld [vmem:[#allocation11 + $0x358] sm:$0xff]  ;;  %18307 = vst [vmem:[#allocation498_spill] sm:$0xff] %v14474_v63  ;;  %v14478_v41 = vcombine.low %v2612_v31, %v2616_v30 }
 0x3da   :  { %6030 = vmatpush1.bf16.msra.mxu1 %v14454_v33  ;;  %5990 = vmatprep.subr.bf16.mxu0 %v14456_v18  ;;  %v2480_v32 = vld [vmem:[#allocation11 + $0x378] sm:$0xff] }
 0x3db   :  { %6031 = vmatprep.subr.bf16.mxu1 %v14459_v58  ;;  %18306 = vst [vmem:[#allocation497_spill] sm:$0xff] %v14471_v7  ;;  %v2604_v9 = vld [vmem:[#allocation11 + $0x758] sm:$0xff]  ;;  %18308 = vst [vmem:[#allocation499_spill] sm:$0xff] %v14478_v41  ;;  %v14480_v57 = vcombine.high %v2476_v26, %v2480_v32  ;;  %v14486_v8 = vcombine.low %v2476_v26, %v2480_v32 }
 0x3dc   :  { %v2608_v10 = vld [vmem:[#allocation11 + $0x778] sm:$0xff] }
 0x3dd   :  { %5991 = vmatpush2.bf16.msra.mxu0 %v14462_v62  ;;  %18309 = vst [vmem:[#allocation500_spill] sm:$0xff] %v14480_v57  ;;  %v14483_v15 = vcombine.high %v2604_v9, %v2608_v10  ;;  %v2468_v58 = vld [vmem:[#allocation11 + $0x318] sm:$0xff]  ;;  %18311 = vst [vmem:[#allocation502_spill] sm:$0xff] %v14486_v8  ;;  %v14490_v30 = vcombine.low %v2604_v9, %v2608_v10 }
 0x3de   :  { %6032 = vmatpush2.bf16.msra.mxu1 %v14466_v45  ;;  %5992 = vmatprep.subr.bf16.mxu0 %v14468_v35  ;;  %v2472_v18 = vld [vmem:[#allocation11 + $0x338] sm:$0xff] }
 0x3df   :  { %6033 = vmatprep.subr.bf16.mxu1 %v14471_v7  ;;  %18310 = vst [vmem:[#allocation501_spill] sm:$0xff] %v14483_v15  ;;  %v2596_v33 = vld [vmem:[#allocation11 + $0x718] sm:$0xff]  ;;  %18312 = vst [vmem:[#allocation503_spill] sm:$0xff] %v14490_v30  ;;  %v14492_v31 = vcombine.high %v2468_v58, %v2472_v18  ;;  %v14498_v32 = vcombine.low %v2468_v58, %v2472_v18 }
 0x3e0   :  { %v2600_v29 = vld [vmem:[#allocation11 + $0x738] sm:$0xff] }
 0x3e1   :  { %5993 = vmatpush2.bf16.msra.mxu0 %v14474_v63  ;;  %18313 = vst [vmem:[#allocation504_spill] sm:$0xff] %v14492_v31  ;;  %v14495_v40 = vcombine.high %v2596_v33, %v2600_v29  ;;  %v2460_v7 = vld [vmem:[#allocation11 + $0x2d8] sm:$0xff]  ;;  %18315 = vst [vmem:[#allocation506_spill] sm:$0xff] %v14498_v32  ;;  %v14502_v10 = vcombine.low %v2596_v33, %v2600_v29 }
 0x3e2   :  { %6034 = vmatpush2.bf16.msra.mxu1 %v14478_v41  ;;  %5994 = vmatprep.subr.bf16.mxu0 %v14480_v57  ;;  %v2464_v35 = vld [vmem:[#allocation11 + $0x2f8] sm:$0xff] }
 0x3e3   :  { %6035 = vmatprep.subr.bf16.mxu1 %v14483_v15  ;;  %18314 = vst [vmem:[#allocation505_spill] sm:$0xff] %v14495_v40  ;;  %v2588_v45 = vld [vmem:[#allocation11 + $0x6d8] sm:$0xff]  ;;  %18316 = vst [vmem:[#allocation507_spill] sm:$0xff] %v14502_v10  ;;  %v14504_v9 = vcombine.high %v2460_v7, %v2464_v35  ;;  %v14510_v18 = vcombine.low %v2460_v7, %v2464_v35 }
 0x3e4   :  { %v2592_v62 = vld [vmem:[#allocation11 + $0x6f8] sm:$0xff] }
 0x3e5   :  { %5995 = vmatpush2.bf16.msra.mxu0 %v14486_v8  ;;  %18317 = vst [vmem:[#allocation508_spill] sm:$0xff] %v14504_v9  ;;  %v14507_v26 = vcombine.high %v2588_v45, %v2592_v62  ;;  %v2452_v15 = vld [vmem:[#allocation11 + $0x298] sm:$0xff]  ;;  %18319 = vst [vmem:[#allocation510_spill] sm:$0xff] %v14510_v18  ;;  %v14514_v29 = vcombine.low %v2588_v45, %v2592_v62 }
 0x3e6   :  { %6036 = vmatpush2.bf16.msra.mxu1 %v14490_v30  ;;  %5996 = vmatprep.subr.bf16.mxu0 %v14492_v31  ;;  %v2456_v57 = vld [vmem:[#allocation11 + $0x2b8] sm:$0xff] }
 0x3e7   :  { %6037 = vmatprep.subr.bf16.mxu1 %v14495_v40  ;;  %18318 = vst [vmem:[#allocation509_spill] sm:$0xff] %v14507_v26  ;;  %v2580_v41 = vld [vmem:[#allocation11 + $0x698] sm:$0xff]  ;;  %18320 = vst [vmem:[#allocation511_spill] sm:$0xff] %v14514_v29  ;;  %v14516_v33 = vcombine.high %v2452_v15, %v2456_v57  ;;  %v14522_v35 = vcombine.low %v2452_v15, %v2456_v57 }
 0x3e8   :  { %v2584_v63 = vld [vmem:[#allocation11 + $0x6b8] sm:$0xff] }
 0x3e9   :  { %5997 = vmatpush2.bf16.msra.mxu0 %v14498_v32  ;;  %18321 = vst [vmem:[#allocation512_spill] sm:$0xff] %v14516_v33  ;;  %v14519_v58 = vcombine.high %v2580_v41, %v2584_v63  ;;  %v2444_v40 = vld [vmem:[#allocation11 + $0x258] sm:$0xff]  ;;  %18323 = vst [vmem:[#allocation514_spill] sm:$0xff] %v14522_v35  ;;  %v14526_v62 = vcombine.low %v2580_v41, %v2584_v63 }
 0x3ea   :  { %6038 = vmatpush2.bf16.msra.mxu1 %v14502_v10  ;;  %5998 = vmatprep.subr.bf16.mxu0 %v14504_v9  ;;  %v2448_v31 = vld [vmem:[#allocation11 + $0x278] sm:$0xff] }
 0x3eb   :  { %6039 = vmatprep.subr.bf16.mxu1 %v14507_v26  ;;  %18322 = vst [vmem:[#allocation513_spill] sm:$0xff] %v14519_v58  ;;  %v2572_v30 = vld [vmem:[#allocation11 + $0x658] sm:$0xff]  ;;  %18324 = vst [vmem:[#allocation515_spill] sm:$0xff] %v14526_v62  ;;  %v14528_v45 = vcombine.high %v2444_v40, %v2448_v31  ;;  %v14534_v57 = vcombine.low %v2444_v40, %v2448_v31 }
 0x3ec   :  { %v2576_v8 = vld [vmem:[#allocation11 + $0x678] sm:$0xff] }
 0x3ed   :  { %5999 = vmatpush2.bf16.msra.mxu0 %v14510_v18  ;;  %18325 = vst [vmem:[#allocation516_spill] sm:$0xff] %v14528_v45  ;;  %v14531_v7 = vcombine.high %v2572_v30, %v2576_v8  ;;  %v2436_v26 = vld [vmem:[#allocation11 + $0x218] sm:$0xff]  ;;  %18327 = vst [vmem:[#allocation518_spill] sm:$0xff] %v14534_v57  ;;  %v14538_v63 = vcombine.low %v2572_v30, %v2576_v8 }
 0x3ee   :  { %6040 = vmatpush2.bf16.msra.mxu1 %v14514_v29  ;;  %6000 = vmatprep.subr.bf16.mxu0 %v14516_v33  ;;  %v2440_v9 = vld [vmem:[#allocation11 + $0x238] sm:$0xff] }
 0x3ef   :  { %6041 = vmatprep.subr.bf16.mxu1 %v14519_v58  ;;  %18326 = vst [vmem:[#allocation517_spill] sm:$0xff] %v14531_v7  ;;  %v2564_v10 = vld [vmem:[#allocation11 + $0x618] sm:$0xff]  ;;  %18328 = vst [vmem:[#allocation519_spill] sm:$0xff] %v14538_v63  ;;  %v14540_v41 = vcombine.high %v2436_v26, %v2440_v9  ;;  %v14546_v31 = vcombine.low %v2436_v26, %v2440_v9 }
 0x3f0   :  { %v2568_v32 = vld [vmem:[#allocation11 + $0x638] sm:$0xff] }
 0x3f1   :  { %6001 = vmatpush2.bf16.msra.mxu0 %v14522_v35  ;;  %18329 = vst [vmem:[#allocation520_spill] sm:$0xff] %v14540_v41  ;;  %v14543_v15 = vcombine.high %v2564_v10, %v2568_v32  ;;  %v2684_v58 = vld [vmem:[#allocation11 + $0x9d8] sm:$0xff]  ;;  %18331 = vst [vmem:[#allocation522_spill] sm:$0xff] %v14546_v31  ;;  %v14550_v8 = vcombine.low %v2564_v10, %v2568_v32 }
 0x3f2   :  { %6042 = vmatpush2.bf16.msra.mxu1 %v14526_v62  ;;  %6002 = vmatprep.subr.bf16.mxu0 %v14528_v45  ;;  %v2688_v33 = vld [vmem:[#allocation11 + $0x9f8] sm:$0xff] }
 0x3f3   :  { %6043 = vmatprep.subr.bf16.mxu1 %v14531_v7  ;;  %18330 = vst [vmem:[#allocation521_spill] sm:$0xff] %v14543_v15  ;;  %v2812_v29 = vld [vmem:[#allocation11 + $0xdd8] sm:$0xff]  ;;  %18332 = vst [vmem:[#allocation523_spill] sm:$0xff] %v14550_v8  ;;  %v14552_v30 = vcombine.high %v2684_v58, %v2688_v33  ;;  %v14558_v62 = vcombine.low %v2684_v58, %v2688_v33 }
 0x3f4   :  { %v2816_v18 = vld [vmem:[#allocation11 + $0xdf8] sm:$0xff] }
 0x3f5   :  { %6003 = vmatpush2.bf16.msra.mxu0 %v14534_v57  ;;  %18333 = vst [vmem:[#allocation524_spill] sm:$0xff] %v14552_v30  ;;  %v14555_v40 = vcombine.high %v2812_v29, %v2816_v18  ;;  %v2676_v7 = vld [vmem:[#allocation11 + $0x998] sm:$0xff]  ;;  %18335 = vst [vmem:[#allocation526_spill] sm:$0xff] %v14558_v62  ;;  %v14562_v32 = vcombine.low %v2812_v29, %v2816_v18 }
 0x3f6   :  { %6044 = vmatpush2.bf16.msra.mxu1 %v14538_v63  ;;  %6004 = vmatprep.subr.bf16.mxu0 %v14540_v41  ;;  %v2680_v45 = vld [vmem:[#allocation11 + $0x9b8] sm:$0xff] }
 0x3f7   :  { %6045 = vmatprep.subr.bf16.mxu1 %v14543_v15  ;;  %18334 = vst [vmem:[#allocation525_spill] sm:$0xff] %v14555_v40  ;;  %v2804_v9 = vld [vmem:[#allocation11 + $0xd98] sm:$0xff]  ;;  %18336 = vst [vmem:[#allocation527_spill] sm:$0xff] %v14562_v32  ;;  %v14565_v10 = vcombine.high %v2676_v7, %v2680_v45  ;;  %v14573_v18 = vcombine.low %v2676_v7, %v2680_v45 }
 0x3f8   :  { %v2808_v26 = vld [vmem:[#allocation11 + $0xdb8] sm:$0xff] }
 0x3f9   :  { %6005 = vmatpush2.bf16.msra.mxu0 %v14546_v31  ;;  %18337 = vst [vmem:[#allocation528_spill] sm:$0xff] %v14565_v10  ;;  %v2668_v15 = vld [vmem:[#allocation11 + $0x958] sm:$0xff]  ;;  %v14568_v31 = vcombine.high %v2804_v9, %v2808_v26  ;;  %18339 = vst [vmem:[#allocation530_spill] sm:$0xff] %v14573_v18 }
 0x3fa   :  { %6046 = vmatpush2.bf16.msra.mxu1 %v14550_v8  ;;  %6056 = vmatprep.subr.bf16.mxu0 %v14552_v30  ;;  %v2672_v41 = vld [vmem:[#allocation11 + $0x978] sm:$0xff] }
 0x3fb   :  { %6097 = vmatprep.subr.bf16.mxu1 %v14555_v40  ;;  %18338 = vst [vmem:[#allocation529_spill] sm:$0xff] %v14568_v31  ;;  %v2796_v33 = vld [vmem:[#allocation11 + $0xd58] sm:$0xff]  ;;  %v14581_v40 = vcombine.high %v2668_v15, %v2672_v41 }
 0x3fc   :  { %v5762_v63 = vpop.f32.mrf.mxu0  ;;  %6007 = vmatmul.mubr.bf16.vlgmr.msra.gmra.mxu0 %v13309_v1  ;;  %v2800_v58 = vld [vmem:[#allocation11 + $0xd78] sm:$0xff]  ;;  %v14579_v1 = vcombine.low %v2804_v9, %v2808_v26 }
 0x3fd   :  { %v5763_v57 = vadd.f32 %v5762_v63, %v14379_v16  ;;  %v5803_v8 = vpop.f32.mrf.mxu1  ;;  %6048 = vmatmul.mubr.bf16.vlgmr.msra.gmra.mxu1 %v13311_v22  ;;  %6057 = vmatpush1.bf16.msra.mxu0 %v14558_v62  ;;  %18340 = vst [vmem:[#allocation531_spill] sm:$0xff] %v14581_v40  ;;  %v14589_v22 = vcombine.high %v2796_v33, %v2800_v58  ;;  %v2660_v45 = vld [vmem:[#allocation11 + $0x918] sm:$0xff] }
 0x3fe   :  { %6088 = vmatprep.mubr.bf16.mxu0 %v13429_v24  ;;  %6098 = vmatpush1.bf16.msra.mxu1 %v14562_v32  ;;  %v14577_v29 = vpop.f32.mrf.mxu0  ;;  %v2664_v24 = vld [vmem:[#allocation11 + $0x938] sm:$0xff] }
 0x3ff   :  { %v14583_v30 = vadd.f32 %v5803_v8, %v5763_v57  ;;  %6129 = vmatprep.mubr.bf16.mxu1 %v13431_v39  ;;  %v14586_v16 = vpop.f32.mrf.mxu1  ;;  %6058 = vmatprep.subr.bf16.mxu0 %v14565_v10  ;;  %18341 = vst [vmem:[#allocation532_spill] sm:$0xff] %v14589_v22  ;;  %v2788_v63 = vld [vmem:[#allocation11 + $0xd18] sm:$0xff]  ;;  %v14593_v57 = vcombine.low %v2668_v15, %v2672_v41 }
 0x400   :  { %v5766_v7 = vpop.f32.mrf.mxu0  ;;  %6099 = vmatprep.subr.bf16.mxu1 %v14568_v31  ;;  %v2792_v9 = vld [vmem:[#allocation11 + $0xd38] sm:$0xff]  ;;  %v14597_v8 = vcombine.low %v2796_v33, %v2800_v58  ;;  %v14599_v10 = vcombine.high %v2660_v45, %v2664_v24  ;;  %v14605_v41 = vcombine.low %v2660_v45, %v2664_v24 }
 0x401   :  { %v5807_v26 = vpop.f32.mrf.mxu1  ;;  %6059 = vmatpush1.bf16.msra.mxu0 %v14573_v18  ;;  %18342 = vst [vmem:[#allocation533_spill] sm:$0xff] %v14593_v57  ;;  %v14602_v7 = vcombine.high %v2788_v63, %v2792_v9  ;;  %v2652_v31 = vld [vmem:[#allocation11 + $0x8d8] sm:$0xff]  ;;  %v14609_v15 = vcombine.low %v2788_v63, %v2792_v9 }
 0x402   :  { %6100 = vmatpush1.bf16.msra.mxu1 %v14579_v1  ;;  %v5767_v39 = vpop.f32.mrf.mxu0  ;;  %6060 = vmatprep.subr.bf16.mxu0 %v14581_v40  ;;  %18343 = vst [vmem:[#allocation534_spill] sm:$0xff] %v14597_v8  ;;  %18344 = vst [vmem:[#allocation535_spill] sm:$0xff] %v14599_v10  ;;  %v2656_v26 = vld [vmem:[#allocation11 + $0x8f8] sm:$0xff] }
 0x403   :  { %v5808_v32 = vpop.f32.mrf.mxu1  ;;  %6101 = vmatprep.subr.bf16.mxu1 %v14589_v22  ;;  %18345 = vst [vmem:[#allocation536_spill] sm:$0xff] %v14602_v7  ;;  %v2780_v62 = vld [vmem:[#allocation11 + $0xcd8] sm:$0xff]  ;;  %18346 = vst [vmem:[#allocation537_spill] sm:$0xff] %v14605_v41  ;;  %v14611_v33 = vcombine.high %v2652_v31, %v2656_v26  ;;  %v14617_v45 = vcombine.low %v2652_v31, %v2656_v26 }
 0x404   :  { %v2784_v18 = vld [vmem:[#allocation11 + $0xcf8] sm:$0xff]  ;;  %18347 = vst [vmem:[#allocation538_spill] sm:$0xff] %v14609_v15 }
 0x405   :  { %6061 = vmatpush1.bf16.msra.mxu0 %v14593_v57  ;;  %18348 = vst [vmem:[#allocation539_spill] sm:$0xff] %v14611_v33  ;;  %v14614_v32 = vcombine.high %v2780_v62, %v2784_v18  ;;  %v2644_v58 = vld [vmem:[#allocation11 + $0x898] sm:$0xff]  ;;  %18350 = vst [vmem:[#allocation541_spill] sm:$0xff] %v14617_v45  ;;  %v14621_v24 = vcombine.low %v2780_v62, %v2784_v18 }
 0x406   :  { %6102 = vmatpush1.bf16.msra.mxu1 %v14597_v8  ;;  %6062 = vmatprep.subr.bf16.mxu0 %v14599_v10  ;;  %v2648_v39 = vld [vmem:[#allocation11 + $0x8b8] sm:$0xff] }
 0x407   :  { %6103 = vmatprep.subr.bf16.mxu1 %v14602_v7  ;;  %18349 = vst [vmem:[#allocation540_spill] sm:$0xff] %v14614_v32  ;;  %v2772_v22 = vld [vmem:[#allocation11 + $0xc98] sm:$0xff]  ;;  %18351 = vst [vmem:[#allocation542_spill] sm:$0xff] %v14621_v24  ;;  %v14623_v63 = vcombine.high %v2644_v58, %v2648_v39  ;;  %v14629_v31 = vcombine.low %v2644_v58, %v2648_v39 }
 0x408   :  { %v2776_v40 = vld [vmem:[#allocation11 + $0xcb8] sm:$0xff] }
 0x409   :  { %6063 = vmatpush1.bf16.msra.mxu0 %v14605_v41  ;;  %18352 = vst [vmem:[#allocation543_spill] sm:$0xff] %v14623_v63  ;;  %v14626_v9 = vcombine.high %v2772_v22, %v2776_v40  ;;  %v2636_v7 = vld [vmem:[#allocation11 + $0x858] sm:$0xff]  ;;  %18354 = vst [vmem:[#allocation545_spill] sm:$0xff] %v14629_v31  ;;  %v14633_v62 = vcombine.low %v2772_v22, %v2776_v40 }
 0x40a   :  { %6104 = vmatpush1.bf16.msra.mxu1 %v14609_v15  ;;  %6064 = vmatprep.subr.bf16.mxu0 %v14611_v33  ;;  %v2640_v10 = vld [vmem:[#allocation11 + $0x878] sm:$0xff] }
 0x40b   :  { %6105 = vmatprep.subr.bf16.mxu1 %v14614_v32  ;;  %18353 = vst [vmem:[#allocation544_spill] sm:$0xff] %v14626_v9  ;;  %v2764_v8 = vld [vmem:[#allocation11 + $0xc58] sm:$0xff]  ;;  %18355 = vst [vmem:[#allocation546_spill] sm:$0xff] %v14633_v62  ;;  %v14635_v18 = vcombine.high %v2636_v7, %v2640_v10  ;;  %v14641_v58 = vcombine.low %v2636_v7, %v2640_v10 }
 0x40c   :  { %v2768_v57 = vld [vmem:[#allocation11 + $0xc78] sm:$0xff] }
 0x40d   :  { %6065 = vmatpush1.bf16.msra.mxu0 %v14617_v45  ;;  %18356 = vst [vmem:[#allocation547_spill] sm:$0xff] %v14635_v18  ;;  %v14638_v26 = vcombine.high %v2764_v8, %v2768_v57  ;;  %v2628_v32 = vld [vmem:[#allocation11 + $0x818] sm:$0xff]  ;;  %18358 = vst [vmem:[#allocation549_spill] sm:$0xff] %v14641_v58  ;;  %v14645_v40 = vcombine.low %v2764_v8, %v2768_v57 }
 0x40e   :  { %6106 = vmatpush1.bf16.msra.mxu1 %v14621_v24  ;;  %6066 = vmatprep.subr.bf16.mxu0 %v14623_v63  ;;  %v2632_v33 = vld [vmem:[#allocation11 + $0x838] sm:$0xff] }
 0x40f   :  { %6107 = vmatprep.subr.bf16.mxu1 %v14626_v9  ;;  %18357 = vst [vmem:[#allocation548_spill] sm:$0xff] %v14638_v26  ;;  %v2756_v15 = vld [vmem:[#allocation11 + $0xc18] sm:$0xff]  ;;  %18359 = vst [vmem:[#allocation550_spill] sm:$0xff] %v14645_v40  ;;  %v14647_v22 = vcombine.high %v2628_v32, %v2632_v33  ;;  %v14653_v10 = vcombine.low %v2628_v32, %v2632_v33 }
 0x410   :  { %v2760_v41 = vld [vmem:[#allocation11 + $0xc38] sm:$0xff] }
 0x411   :  { %6067 = vmatpush1.bf16.msra.mxu0 %v14629_v31  ;;  %18360 = vst [vmem:[#allocation551_spill] sm:$0xff] %v14647_v22  ;;  %v14650_v39 = vcombine.high %v2756_v15, %v2760_v41  ;;  %v2748_v9 = vld [vmem:[#allocation11 + $0xbd8] sm:$0xff]  ;;  %18362 = vst [vmem:[#allocation553_spill] sm:$0xff] %v14653_v10  ;;  %v14657_v57 = vcombine.low %v2756_v15, %v2760_v41 }
 0x412   :  { %6108 = vmatpush1.bf16.msra.mxu1 %v14633_v62  ;;  %6068 = vmatprep.subr.bf16.mxu0 %v14635_v18  ;;  %v2752_v63 = vld [vmem:[#allocation11 + $0xbf8] sm:$0xff] }
 0x413   :  { %6109 = vmatprep.subr.bf16.mxu1 %v14638_v26  ;;  %18361 = vst [vmem:[#allocation552_spill] sm:$0xff] %v14650_v39  ;;  %v2876_v24 = vld [vmem:[#allocation11 + $0xfd8] sm:$0xff]  ;;  %18363 = vst [vmem:[#allocation554_spill] sm:$0xff] %v14657_v57  ;;  %v14659_v8 = vcombine.high %v2748_v9, %v2752_v63  ;;  %v14665_v33 = vcombine.low %v2748_v9, %v2752_v63 }
 0x414   :  { %v2880_v45 = vld [vmem:[#allocation11 + $0xff8] sm:$0xff] }
 0x415   :  { %6069 = vmatpush1.bf16.msra.mxu0 %v14641_v58  ;;  %18364 = vst [vmem:[#allocation555_spill] sm:$0xff] %v14659_v8  ;;  %v14662_v7 = vcombine.high %v2876_v24, %v2880_v45  ;;  %v2740_v26 = vld [vmem:[#allocation11 + $0xb98] sm:$0xff]  ;;  %18366 = vst [vmem:[#allocation557_spill] sm:$0xff] %v14665_v33  ;;  %v14669_v41 = vcombine.low %v2876_v24, %v2880_v45 }
 0x416   :  { %6110 = vmatpush1.bf16.msra.mxu1 %v14645_v40  ;;  %6070 = vmatprep.subr.bf16.mxu0 %v14647_v22  ;;  %v2744_v18 = vld [vmem:[#allocation11 + $0xbb8] sm:$0xff] }
 0x417   :  { %6111 = vmatprep.subr.bf16.mxu1 %v14650_v39  ;;  %18365 = vst [vmem:[#allocation556_spill] sm:$0xff] %v14662_v7  ;;  %v2868_v62 = vld [vmem:[#allocation11 + $0xf98] sm:$0xff]  ;;  %18367 = vst [vmem:[#allocation558_spill] sm:$0xff] %v14669_v41  ;;  %v14671_v15 = vcombine.high %v2740_v26, %v2744_v18  ;;  %v14677_v63 = vcombine.low %v2740_v26, %v2744_v18 }
 0x418   :  { %v2872_v31 = vld [vmem:[#allocation11 + $0xfb8] sm:$0xff] }
 0x419   :  { %6071 = vmatpush1.bf16.msra.mxu0 %v14653_v10  ;;  %18368 = vst [vmem:[#allocation559_spill] sm:$0xff] %v14671_v15  ;;  %v14674_v32 = vcombine.high %v2868_v62, %v2872_v31  ;;  %v2732_v39 = vld [vmem:[#allocation11 + $0xb58] sm:$0xff]  ;;  %18370 = vst [vmem:[#allocation561_spill] sm:$0xff] %v14677_v63  ;;  %v14681_v45 = vcombine.low %v2868_v62, %v2872_v31 }
 0x41a   :  { %6112 = vmatpush1.bf16.msra.mxu1 %v14657_v57  ;;  %6072 = vmatprep.subr.bf16.mxu0 %v14659_v8  ;;  %v2736_v22 = vld [vmem:[#allocation11 + $0xb78] sm:$0xff] }
 0x41b   :  { %6113 = vmatprep.subr.bf16.mxu1 %v14662_v7  ;;  %18369 = vst [vmem:[#allocation560_spill] sm:$0xff] %v14674_v32  ;;  %v2860_v40 = vld [vmem:[#allocation11 + $0xf58] sm:$0xff]  ;;  %18371 = vst [vmem:[#allocation562_spill] sm:$0xff] %v14681_v45  ;;  %v14683_v24 = vcombine.high %v2732_v39, %v2736_v22  ;;  %v14689_v18 = vcombine.low %v2732_v39, %v2736_v22 }
 0x41c   :  { %v2864_v58 = vld [vmem:[#allocation11 + $0xf78] sm:$0xff] }
 0x41d   :  { %6073 = vmatpush2.bf16.msra.mxu0 %v14665_v33  ;;  %18372 = vst [vmem:[#allocation563_spill] sm:$0xff] %v14683_v24  ;;  %v14686_v9 = vcombine.high %v2860_v40, %v2864_v58  ;;  %v2724_v7 = vld [vmem:[#allocation11 + $0xb18] sm:$0xff]  ;;  %18374 = vst [vmem:[#allocation565_spill] sm:$0xff] %v14689_v18  ;;  %v14693_v31 = vcombine.low %v2860_v40, %v2864_v58 }
 0x41e   :  { %6114 = vmatpush2.bf16.msra.mxu1 %v14669_v41  ;;  %6074 = vmatprep.subr.bf16.mxu0 %v14671_v15  ;;  %v2728_v8 = vld [vmem:[#allocation11 + $0xb38] sm:$0xff] }
 0x41f   :  { %6115 = vmatprep.subr.bf16.mxu1 %v14674_v32  ;;  %18373 = vst [vmem:[#allocation564_spill] sm:$0xff] %v14686_v9  ;;  %v2852_v57 = vld [vmem:[#allocation11 + $0xf18] sm:$0xff]  ;;  %18375 = vst [vmem:[#allocation566_spill] sm:$0xff] %v14693_v31  ;;  %v14695_v62 = vcombine.high %v2724_v7, %v2728_v8  ;;  %v14701_v22 = vcombine.low %v2724_v7, %v2728_v8 }
 0x420   :  { %v2856_v10 = vld [vmem:[#allocation11 + $0xf38] sm:$0xff] }
 0x421   :  { %6075 = vmatpush2.bf16.msra.mxu0 %v14677_v63  ;;  %18376 = vst [vmem:[#allocation567_spill] sm:$0xff] %v14695_v62  ;;  %v14698_v26 = vcombine.high %v2852_v57, %v2856_v10  ;;  %v2716_v32 = vld [vmem:[#allocation11 + $0xad8] sm:$0xff]  ;;  %18378 = vst [vmem:[#allocation569_spill] sm:$0xff] %v14701_v22  ;;  %v14705_v58 = vcombine.low %v2852_v57, %v2856_v10 }
 0x422   :  { %6116 = vmatpush2.bf16.msra.mxu1 %v14681_v45  ;;  %6076 = vmatprep.subr.bf16.mxu0 %v14683_v24  ;;  %v2720_v15 = vld [vmem:[#allocation11 + $0xaf8] sm:$0xff] }
 0x423   :  { %6117 = vmatprep.subr.bf16.mxu1 %v14686_v9  ;;  %18377 = vst [vmem:[#allocation568_spill] sm:$0xff] %v14698_v26  ;;  %v2844_v41 = vld [vmem:[#allocation11 + $0xed8] sm:$0xff]  ;;  %18379 = vst [vmem:[#allocation570_spill] sm:$0xff] %v14705_v58  ;;  %v14707_v40 = vcombine.high %v2716_v32, %v2720_v15  ;;  %v14713_v8 = vcombine.low %v2716_v32, %v2720_v15 }
 0x424   :  { %v2848_v33 = vld [vmem:[#allocation11 + $0xef8] sm:$0xff] }
 0x425   :  { %6077 = vmatpush2.bf16.msra.mxu0 %v14689_v18  ;;  %18380 = vst [vmem:[#allocation571_spill] sm:$0xff] %v14707_v40  ;;  %v14710_v39 = vcombine.high %v2844_v41, %v2848_v33  ;;  %v2708_v9 = vld [vmem:[#allocation11 + $0xa98] sm:$0xff]  ;;  %18382 = vst [vmem:[#allocation573_spill] sm:$0xff] %v14713_v8  ;;  %v14717_v10 = vcombine.low %v2844_v41, %v2848_v33 }
 0x426   :  { %6118 = vmatpush2.bf16.msra.mxu1 %v14693_v31  ;;  %6078 = vmatprep.subr.bf16.mxu0 %v14695_v62  ;;  %v2712_v24 = vld [vmem:[#allocation11 + $0xab8] sm:$0xff] }
 0x427   :  { %6119 = vmatprep.subr.bf16.mxu1 %v14698_v26  ;;  %18381 = vst [vmem:[#allocation572_spill] sm:$0xff] %v14710_v39  ;;  %v2836_v45 = vld [vmem:[#allocation11 + $0xe98] sm:$0xff]  ;;  %18383 = vst [vmem:[#allocation574_spill] sm:$0xff] %v14717_v10  ;;  %v14719_v57 = vcombine.high %v2708_v9, %v2712_v24  ;;  %v14725_v15 = vcombine.low %v2708_v9, %v2712_v24 }
 0x428   :  { %v2840_v63 = vld [vmem:[#allocation11 + $0xeb8] sm:$0xff] }
 0x429   :  { %6079 = vmatpush2.bf16.msra.mxu0 %v14701_v22  ;;  %18384 = vst [vmem:[#allocation575_spill] sm:$0xff] %v14719_v57  ;;  %v14722_v7 = vcombine.high %v2836_v45, %v2840_v63  ;;  %v2700_v26 = vld [vmem:[#allocation11 + $0xa58] sm:$0xff]  ;;  %18386 = vst [vmem:[#allocation577_spill] sm:$0xff] %v14725_v15  ;;  %v14729_v33 = vcombine.low %v2836_v45, %v2840_v63 }
 0x42a   :  { %6120 = vmatpush2.bf16.msra.mxu1 %v14705_v58  ;;  %6080 = vmatprep.subr.bf16.mxu0 %v14707_v40  ;;  %v2704_v62 = vld [vmem:[#allocation11 + $0xa78] sm:$0xff] }
 0x42b   :  { %6121 = vmatprep.subr.bf16.mxu1 %v14710_v39  ;;  %18385 = vst [vmem:[#allocation576_spill] sm:$0xff] %v14722_v7  ;;  %v2828_v31 = vld [vmem:[#allocation11 + $0xe58] sm:$0xff]  ;;  %18387 = vst [vmem:[#allocation578_spill] sm:$0xff] %v14729_v33  ;;  %v14731_v41 = vcombine.high %v2700_v26, %v2704_v62  ;;  %v14737_v24 = vcombine.low %v2700_v26, %v2704_v62 }
 0x42c   :  { %v2832_v18 = vld [vmem:[#allocation11 + $0xe78] sm:$0xff] }
 0x42d   :  { %6081 = vmatpush2.bf16.msra.mxu0 %v14713_v8  ;;  %18388 = vst [vmem:[#allocation579_spill] sm:$0xff] %v14731_v41  ;;  %v14734_v32 = vcombine.high %v2828_v31, %v2832_v18  ;;  %v2692_v39 = vld [vmem:[#allocation11 + $0xa18] sm:$0xff]  ;;  %18390 = vst [vmem:[#allocation581_spill] sm:$0xff] %v14737_v24  ;;  %v14741_v63 = vcombine.low %v2828_v31, %v2832_v18  ;;  %v10466_v18 = vld [vmem:[#allocation14 + $0x78] sm:$0xff]  }
 0x42e   :  { %6122 = vmatpush2.bf16.msra.mxu1 %v14717_v10  ;;  %6082 = vmatprep.subr.bf16.mxu0 %v14719_v57  ;;  %v2696_v40 = vld [vmem:[#allocation11 + $0xa38] sm:$0xff]  ;;  %v10467_v31 = vld [vmem:[#allocation14 + $0xf8] sm:$0xff]  }
 0x42f   :  { %6123 = vmatprep.subr.bf16.mxu1 %v14722_v7  ;;  %18389 = vst [vmem:[#allocation580_spill] sm:$0xff] %v14734_v32  ;;  %v2820_v58 = vld [vmem:[#allocation11 + $0xe18] sm:$0xff]  ;;  %18391 = vst [vmem:[#allocation582_spill] sm:$0xff] %v14741_v63  ;;  %v14743_v45 = vcombine.high %v2692_v39, %v2696_v40  ;;  %v5765_v7 = vadd.f32 %v14577_v29, %v14387_v23  ;;  %v10469_v23 = vld [vmem:[#allocation14 + $0xb8] sm:$0xff]  }
 0x430   :  { %v2824_v22 = vld [vmem:[#allocation11 + $0xe38] sm:$0xff] }
 0x431   :  { %6083 = vmatpush2.bf16.msra.mxu0 %v14725_v15  ;;  %18392 = vst [vmem:[#allocation583_spill] sm:$0xff] %v14743_v45  ;;  %v14746_v9 = vcombine.high %v2820_v58, %v2824_v22  ;;  %v14751_v15 = vcombine.low %v2692_v39, %v2696_v40  ;;  %v14755_v62 = vcombine.low %v2820_v58, %v2824_v22  ;;  %v10470_v29 = vld [vmem:[#allocation14 + $0x70] sm:$0xff]  }
 0x432   :  { %6124 = vmatpush2.bf16.msra.mxu1 %v14729_v33  ;;  %6084 = vmatprep.subr.bf16.mxu0 %v14731_v41  ;;  %v5806_v26 = vadd.f32 %v14586_v16, %v5765_v7  ;;  %v6139_v40 = vpack.c.bf16 %v14175_v17, %v14175_v17  ;;  %v10471_v58 = vld [vmem:[#allocation14 + $0xf0] sm:$0xff]  }
 0x433   :  { %6125 = vmatprep.subr.bf16.mxu1 %v14734_v32  ;;  %18393 = vst [vmem:[#allocation584_spill] sm:$0xff] %v14746_v9  ;;  %18394 = vst [vmem:[#allocation585_spill] sm:$0xff] %v14751_v15  ;;  %v10468_v32 = vld [vmem:[#allocation14 + $0x38] sm:$0xff]   ;;  %v10472_v16 = vld [vmem:[#allocation14 + $0x30] sm:$0xff]  }
 0x434   :  { %18395 = vst [vmem:[#allocation586_spill] sm:$0xff] %v14755_v62  ;;  %v6141_v39 = vpack.c.bf16 %v5806_v26, %v5806_v26 }
 0x435   :  { %6085 = vmatpush2.bf16.msra.mxu0 %v14737_v24 }
 0x436   :  { %6126 = vmatpush2.bf16.msra.mxu1 %v14741_v63  ;;  %6086 = vmatprep.subr.bf16.mxu0 %v14743_v45  ;;  %v10479_v45 = vld [vmem:[#allocation14 + $0xe0] sm:$0xff]  }
 0x437   :  { %6127 = vmatprep.subr.bf16.mxu1 %v14746_v9  ;;  %v10480_v63 = vld [vmem:[#allocation14 + $0x20] sm:$0xff]  }
 0x439   :  { %6087 = vmatpush2.bf16.msra.mxu0 %v14751_v15  ;;  %v10476_v15 = vld [vmem:[#allocation14 + $0x28] sm:$0xff]  }
 0x43a   :  { %6128 = vmatpush2.bf16.msra.mxu1 %v14755_v62  ;;  %10183 = vmatprep.subr.bf16.mxu0 %v10466_v18  ;;  %v10473_v18 = vld [vmem:[#allocation14 + $0xb0] sm:$0xff]   ;;  %v10475_v62 = vld [vmem:[#allocation14 + $0xe8] sm:$0xff]  }
 0x43b   :  { %10205 = vmatprep.subr.bf16.mxu1 %v10467_v31  ;;  %v10474_v31 = vld [vmem:[#allocation14 + $0x68] sm:$0xff]  }
 0x43c   :  { %v14763_v22 = vpop.f32.mrf.mxu0  ;;  %6089 = vmatmul.mubr.bf16.vlgmr.msra.gmra.mxu0 %v13537_v42 }
 0x43d   :  { %v14766_v9 = vpop.f32.mrf.mxu1  ;;  %6130 = vmatmul.mubr.bf16.vlgmr.msra.gmra.mxu1 %v13539_v49  ;;  %10184 = vmatpush3.bf16.msra.mxu0 %v10468_v32  ;;  %v10477_v32 = vld [vmem:[#allocation14 + $0xa8] sm:$0xff]  }
 0x43e   :  { %6690 = vmatprep.mubr.bf16.mxu0 %v6139_v40  ;;  %10206 = vmatpush3.bf16.msra.mxu1 %v10469_v23  ;;  %v14769_v7 = vpop.f32.mrf.mxu0  ;;  %v10478_v40 = vld [vmem:[#allocation14 + $0x60] sm:$0xff]  }
 0x43f   :  { %6730 = vmatprep.mubr.bf16.mxu1 %v6141_v39  ;;  %v14771_v17 = vpop.f32.mrf.mxu1  ;;  %10185 = vmatprep.subr.bf16.mxu0 %v10470_v29  ;;  %v10481_v39 = vld [vmem:[#allocation14 + $0xa0] sm:$0xff]   ;;  %v10482_v29 = vld [vmem:[#allocation14 + $0x58] sm:$0xff]  }
 0x440   :  { %v5848_v42 = vpop.f32.mrf.mxu0  ;;  %10207 = vmatprep.subr.bf16.mxu1 %v10471_v58  ;;  %v10484_v58 = vld [vmem:[#allocation14 + $0x18] sm:$0xff]  }
 0x441   :  { %v5889_v26 = vpop.f32.mrf.mxu1  ;;  %10186 = vmatpush3.bf16.msra.mxu0 %v10472_v16  ;;  %v10483_v42 = vld [vmem:[#allocation14 + $0xd8] sm:$0xff]  }
 0x442   :  { %10208 = vmatpush3.bf16.msra.mxu1 %v10473_v18  ;;  %v5849_v49 = vpop.f32.mrf.mxu0  ;;  %10187 = vmatprep.subr.bf16.mxu0 %v10474_v31  ;;  %v10485_v16 = vld [vmem:[#allocation14 + $0x98] sm:$0xff]   ;;  %v10486_v18 = vld [vmem:[#allocation14 + $0x50] sm:$0xff]  }
 0x443   :  { %v5890_v23 = vpop.f32.mrf.mxu1  ;;  %10209 = vmatprep.subr.bf16.mxu1 %v10475_v62  ;;  %v10487_v31 = vld [vmem:[#allocation14 + $0xd0] sm:$0xff]   ;;  %v10490_v62 = vld [vmem:[#allocation14 + $0x48] sm:$0xff]  }
 0x444   :  { %v10488_v26 = vld [vmem:[#allocation14 + $0x10] sm:$0xff]   ;;  %v10491_v49 = vld [vmem:[#allocation14 + $0xc8] sm:$0xff]   ;;  %v10496_v23 = vld [vmem:[#allocation14] sm:$0xff]  }
 0x445   :  { %10188 = vmatpush3.bf16.msra.mxu0 %v10476_v15  ;;  %v10489_v15 = vld [vmem:[#allocation14 + $0x90] sm:$0xff]  }
 0x446   :  { %10210 = vmatpush3.bf16.msra.mxu1 %v10477_v32  ;;  %10189 = vmatprep.subr.bf16.mxu0 %v10478_v40  ;;  %v10492_v32 = vld [vmem:[#allocation14 + $0x8] sm:$0xff]   ;;  %v10495_v40 = vld [vmem:[#allocation14 + $0xc0] sm:$0xff]  }
 0x447   :  { %10211 = vmatprep.subr.bf16.mxu1 %v10479_v45  ;;  %v10494_v45 = vld [vmem:[#allocation14 + $0x40] sm:$0xff]  }
 0x449   :  { %10190 = vmatpush3.bf16.msra.mxu0 %v10480_v63  ;;  %v10493_v63 = vld [vmem:[#allocation14 + $0x88] sm:$0xff]  }
 0x44a   :  { %10212 = vmatpush3.bf16.msra.mxu1 %v10481_v39  ;;  %10191 = vmatprep.subr.bf16.mxu0 %v10482_v29  ;;  %v10497_v39 = vld [vmem:[#allocation14 + $0x80] sm:$0xff]   ;;  %v10498_v29 = vld [vmem:[#allocation14 + $0x178] sm:$0xff]  }
 0x44b   :  { %10213 = vmatprep.subr.bf16.mxu1 %v10483_v42  ;;  %v10514_v42 = vld [vmem:[#allocation14 + $0x1f8] sm:$0xff]  }
 0x44d   :  { %10192 = vmatpush3.bf16.msra.mxu0 %v10484_v58  ;;  %v10499_v58 = vld [vmem:[#allocation14 + $0x138] sm:$0xff]  }
 0x44e   :  { %10214 = vmatpush3.bf16.msra.mxu1 %v10485_v16  ;;  %10193 = vmatprep.subr.bf16.mxu0 %v10486_v18  ;;  %v6138_v16 = vpack.c.bf16 %v14167_v46, %v14167_v46  ;;  %v10500_v18 = vld [vmem:[#allocation14 + $0x170] sm:$0xff]   ;;  %v10503_v46 = vld [vmem:[#allocation14 + $0x128] sm:$0xff]  }
 0x44f   :  { %10215 = vmatprep.subr.bf16.mxu1 %v10487_v31  ;;  %v10515_v31 = vld [vmem:[#allocation14 + $0x1b8] sm:$0xff]  }
 0x451   :  { %10194 = vmatpush3.bf16.msra.mxu0 %v10488_v26  ;;  %v6140_v26 = vpack.c.bf16 %v14583_v30, %v14583_v30  ;;  %v10520_v30 = vld [vmem:[#allocation14 + $0x1e0] sm:$0xff]  }
 0x452   :  { %10216 = vmatpush3.bf16.msra.mxu1 %v10489_v15  ;;  %10195 = vmatprep.subr.bf16.mxu0 %v10490_v62  ;;  %v10516_v15 = vld [vmem:[#allocation14 + $0x1f0] sm:$0xff]  }
 0x453   :  { %10217 = vmatprep.subr.bf16.mxu1 %v10491_v49  ;;  %v10501_v62 = vld [vmem:[#allocation14 + $0x130] sm:$0xff]   ;;  %v10502_v49 = vld [vmem:[#allocation14 + $0x168] sm:$0xff]  }
 0x455   :  { %10196 = vmatpush3.bf16.msra.mxu0 %v10492_v32  ;;  %v10517_v32 = vld [vmem:[#allocation14 + $0x1b0] sm:$0xff]  }
 0x456   :  { %10218 = vmatpush3.bf16.msra.mxu1 %v10493_v63  ;;  %10197 = vmatprep.subr.bf16.mxu0 %v10494_v45  ;;  %v10518_v63 = vld [vmem:[#allocation14 + $0x1e8] sm:$0xff]   ;;  %v10504_v45 = vld [vmem:[#allocation14 + $0x160] sm:$0xff]  }
 0x457   :  { %10219 = vmatprep.subr.bf16.mxu1 %v10495_v40  ;;  %v10519_v40 = vld [vmem:[#allocation14 + $0x1a8] sm:$0xff]  }
 0x459   :  { %10198 = vmatpush3.bf16.msra.mxu0 %v10496_v23  ;;  %v10505_v23 = vld [vmem:[#allocation14 + $0x120] sm:$0xff]  }
 0x45a   :  { %10220 = vmatpush3.bf16.msra.mxu1 %v10497_v39  ;;  %10227 = vmatprep.subr.bf16.mxu0 %v10498_v29  ;;  %v10506_v39 = vld [vmem:[#allocation14 + $0x158] sm:$0xff]   ;;  %v10521_v29 = vld [vmem:[#allocation14 + $0x1a0] sm:$0xff]  }
 0x45b   :  { %10249 = vmatprep.subr.bf16.mxu1 %v10514_v42  ;;  %v10522_v42 = vld [vmem:[#allocation14 + $0x1d8] sm:$0xff]  }
 0x45c   :  { %6691 = vmatmul.mubr.bf16.vlgmr.msra.gmra.mxu0 %v6138_v16  ;;  %v10508_v16 = vld [vmem:[#allocation14 + $0x150] sm:$0xff]  }
 0x45d   :  { %6731 = vmatmul.mubr.bf16.vlgmr.msra.gmra.mxu1 %v6140_v26  ;;  %10228 = vmatpush3.bf16.msra.mxu0 %v10499_v58  ;;  %v10507_v58 = vld [vmem:[#allocation14 + $0x118] sm:$0xff]   ;;  %v10509_v26 = vld [vmem:[#allocation14 + $0x110] sm:$0xff]  }
 0x45e   :  { %10229 = vmatprep.subr.bf16.mxu0 %v10500_v18  ;;  %10250 = vmatpush3.bf16.msra.mxu1 %v10515_v31  ;;  %v10523_v18 = vld [vmem:[#allocation14 + $0x198] sm:$0xff]   ;;  %v10524_v31 = vld [vmem:[#allocation14 + $0x1d0] sm:$0xff]  }
 0x45f   :  { %10251 = vmatprep.subr.bf16.mxu1 %v10516_v15  ;;  %v10510_v15 = vld [vmem:[#allocation14 + $0x148] sm:$0xff]  }
 0x461   :  { %10230 = vmatpush3.bf16.msra.mxu0 %v10501_v62  ;;  %v10525_v62 = vld [vmem:[#allocation14 + $0x190] sm:$0xff]  }
 0x462   :  { %10231 = vmatprep.subr.bf16.mxu0 %v10502_v49  ;;  %10252 = vmatpush3.bf16.msra.mxu1 %v10517_v32  ;;  %v10511_v49 = vld [vmem:[#allocation14 + $0x108] sm:$0xff]   ;;  %v10512_v32 = vld [vmem:[#allocation14 + $0x140] sm:$0xff]  }
 0x463   :  { %10253 = vmatprep.subr.bf16.mxu1 %v10518_v63  ;;  %v14777_v63 = vld [vmem:[#allocation13] sm:$0xff] }
 0x465   :  { %10232 = vmatpush3.bf16.msra.mxu0 %v10503_v46  ;;  %v18396_v46 = vsub.s32 4, %v17936_v44 }
 0x466   :  { %10233 = vmatprep.subr.bf16.mxu0 %v10504_v45  ;;  %10254 = vmatpush3.bf16.msra.mxu1 %v10519_v40  ;;  %v18398_v40 = vsub.s32 5, %v17936_v44 }
 0x467   :  { %10255 = vmatprep.subr.bf16.mxu1 %v10520_v30  ;;  %v14782_v45 = vrot.slane %v14777_v63, %v18396_v46 }
 0x468   :  { %v14787_v30 = vrot.slane %v14777_v63, %v18398_v40 }
 0x469   :  { %10234 = vmatpush3.bf16.msra.mxu0 %v10505_v23  ;;  %18397 = vst [vmem:[#allocation587_spill] sm:$0xff] %v14782_v45  ;;  %v10513_v23 = vld [vmem:[#allocation14 + $0x100] sm:$0xff]  }
 0x46a   :  { %10235 = vmatprep.subr.bf16.mxu0 %v10506_v39  ;;  %10256 = vmatpush3.bf16.msra.mxu1 %v10521_v29  ;;  %18399 = vst [vmem:[#allocation588_spill] sm:$0xff] %v14787_v30  ;;  %v5845_v39 = vadd.f32 %v14763_v22, %v14782_v45  ;;  %v5847_v29 = vadd.f32 %v14769_v7, %v14787_v30 }
 0x46b   :  { %10257 = vmatprep.subr.bf16.mxu1 %v10522_v42 }
 0x46c   :  { %v5886_v42 = vadd.f32 %v14766_v9, %v5845_v39  ;;  %v10529_v39 = vld [vmem:[#allocation14 + $0x180] sm:$0xff]  }
 0x46d   :  { %10236 = vmatpush3.bf16.msra.mxu0 %v10507_v58 }
 0x46e   :  { %10237 = vmatprep.subr.bf16.mxu0 %v10508_v16  ;;  %10258 = vmatpush3.bf16.msra.mxu1 %v10523_v18  ;;  %v5888_v16 = vadd.f32 %v14771_v17, %v5847_v29 }
 0x46f   :  { %10259 = vmatprep.subr.bf16.mxu1 %v10524_v31 }
 0x471   :  { %10238 = vmatpush3.bf16.msra.mxu0 %v10509_v26 }
 0x472   :  { %10239 = vmatprep.subr.bf16.mxu0 %v10510_v15  ;;  %10260 = vmatpush3.bf16.msra.mxu1 %v10525_v62  ;;  %v10526_v15 = vld [vmem:[#allocation14 + $0x1c8] sm:$0xff]  }
 0x473   :  { %10261 = vmatprep.subr.bf16.mxu1 %v10526_v15 }
 0x475   :  { %10240 = vmatpush3.bf16.msra.mxu0 %v10511_v49 }
 0x476   :  { %10241 = vmatprep.subr.bf16.mxu0 %v10512_v32  ;;  %v10527_v32 = vld [vmem:[#allocation14 + $0x188] sm:$0xff]  }
 0x477   :  { %10262 = vmatpush3.bf16.msra.mxu1 %v10527_v32 }
 0x479   :  { %10242 = vmatpush3.bf16.msra.mxu0 %v10513_v23 }
 0x47a   :  { %6827 = vmatprep.subr.bf16.mxu0 %v12831_v14  ;;  %v10528_v14 = vld [vmem:[#allocation14 + $0x1c0] sm:$0xff]  }
 0x47b   :  { %10263 = vmatprep.subr.bf16.mxu1 %v10528_v14 }
 0x47c   :  { %v5926_v58 = vpop.f32.mrf.mxu0  ;;  %10264 = vmatpush3.bf16.msra.mxu1 %v10529_v39 }
 0x47d   :  { %v5927_v18 = vadd.f32 %v5926_v58, %v5886_v42  ;;  %v5967_v31 = vpop.f32.mrf.mxu1  ;;  %6868 = vmatprep.subr.bf16.mxu1 %v12833_v36 }
 0x47e   :  { %v5928_v26 = vpop.f32.mrf.mxu0 }
 0x47f   :  { %v5929_v62 = vadd.f32 %v5928_v26, %v5888_v16  ;;  %v5969_v49 = vpop.f32.mrf.mxu1  ;;  %v5968_v46 = vadd.f32 %v5967_v31, %v5927_v18  ;;  %v18400_v18 = vsub.s32 6, %v17936_v44  ;;  %v18401_v26 = vsub.s32 7, %v17936_v44 }
 0x480   :  { %v5930_v22 = vpop.f32.mrf.mxu0 }
 0x481   :  { %v5970_v40 = vadd.f32 %v5969_v49, %v5929_v62  ;;  %v5971_v7 = vpop.f32.mrf.mxu1  ;;  %v6142_v45 = vpack.c.bf16 %v5968_v46, %v5968_v46  ;;  %v14817_v31 = vrot.slane %v14777_v63, %v18400_v18  ;;  %v14822_v15 = vrot.slane %v14777_v63, %v18401_v26 }
 0x482   :  { %v5931_v23 = vpop.f32.mrf.mxu0 }
 0x483   :  { %v6143_v30 = vpack.c.bf16 %v5970_v40, %v5970_v40  ;;  %v5972_v9 = vpop.f32.mrf.mxu1 }
 0x485   :  { %6770 = vmatprep.mubr.bf16.mxu0 %v6143_v30 }
 0x486   :  { %6771 = vmatmul.mubr.bf16.vlgmr.msra.gmra.mxu0 %v6142_v45 }
 0x487   :  { %6828 = vmatpush1.bf16.msra.mxu0 %v12841_v3  ;;  %6859 = vmatprep.mubr.bf16.mxu0 %v17829_v19 }
 0x488   :  { %6829 = vmatprep.subr.bf16.mxu0 %v12845_v54 }
 0x48b   :  { %6830 = vmatpush1.bf16.msra.mxu0 %v12853_v52 }
 0x48c   :  { %6831 = vmatprep.subr.bf16.mxu0 %v12859_v11 }
 0x48f   :  { %6832 = vmatpush1.bf16.msra.mxu0 %v12867_v0 }
 0x490   :  { %6833 = vmatprep.subr.bf16.mxu0 %v12873_v34 }
 0x493   :  { %6834 = vmatpush1.bf16.msra.mxu0 %v12879_v50 }
 0x494   :  { %6835 = vmatprep.subr.bf16.mxu0 %v12885_v20 }
 0x497   :  { %6836 = vmatpush1.bf16.msra.mxu0 %v12891_v38 }
 0x498   :  { %6837 = vmatprep.subr.bf16.mxu0 %v12897_v5 }
 0x49b   :  { %6838 = vmatpush1.bf16.msra.mxu0 %v12903_v60 }
 0x49c   :  { %6839 = vmatprep.subr.bf16.mxu0 %v12909_v55 }
 0x49f   :  { %6840 = vmatpush1.bf16.msra.mxu0 %v12915_v37 }
 0x4a0   :  { %6841 = vmatprep.subr.bf16.mxu0 %v12921_v13 }
 0x4a3   :  { %6842 = vmatpush1.bf16.msra.mxu0 %v12927_v6 }
 0x4a4   :  { %6909 = vmatprep.subr.bf16.mxu0 %v12933_v4 }
 0x4bc   :  { %v6008_v14 = vpop.f32.mrf.mxu0 }
 0x4bd   :  { %v6049_v17 = vpop.f32.mrf.mxu1  ;;  %v6009_v62 = vadd.f32 %v6008_v14, %v14817_v31 }
 0x4be   :  { %v6010_v45 = vpop.f32.mrf.mxu0 }
 0x4bf   :  { %v6051_v30 = vpop.f32.mrf.mxu1  ;;  %v6011_v49 = vadd.f32 %v6010_v45, %v14822_v15  ;;  %v6050_v32 = vadd.f32 %v6049_v17, %v6009_v62  ;;  %v18402_v17 = vld [vmem:[#allocation33_spill] sm:$0xff] }
 0x4c0   :  { %v6012_v29 = vpop.f32.mrf.mxu0 }
 0x4c1   :  { %v6053_v42 = vpop.f32.mrf.mxu1  ;;  %v6052_v22 = vadd.f32 %v6051_v30, %v6011_v49 }
 0x4c2   :  { %v6013_v58 = vpop.f32.mrf.mxu0 }
 0x4c3   :  { %v6054_v16 = vpop.f32.mrf.mxu1 }
 0x4fc   :  { %v6090_v46 = vpop.f32.mrf.mxu0 }
 0x4fd   :  { %v6091_v40 = vadd.f32 %v6090_v46, %v6050_v32  ;;  %v6131_v7 = vpop.f32.mrf.mxu1  ;;  %v18403_v32 = vld [vmem:[#allocation34_spill] sm:$0xff] }
 0x4fe   :  { %v6092_v23 = vpop.f32.mrf.mxu0 }
 0x4ff   :  { %v6093_v9 = vadd.f32 %v6092_v23, %v6052_v22  ;;  %v6133_v39 = vpop.f32.mrf.mxu1  ;;  %v6132_v29 = vadd.f32 %v6131_v7, %v6091_v40  ;;  %v18404_v40 = vld [vmem:[#allocation35_spill] sm:$0xff] }
 0x500   :  { %v6094_v42 = vpop.f32.mrf.mxu0 }
 0x501   :  { %v6134_v58 = vadd.f32 %v6133_v39, %v6093_v9  ;;  %v6135_v16 = vpop.f32.mrf.mxu1  ;;  %v6144_v26 = vpack.c.bf16 %v6132_v29, %v6132_v29  ;;  %v18405_v29 = vld [vmem:[#allocation37_spill] sm:$0xff]  ;;  %v18406_v42 = vld [vmem:[#allocation54_spill] sm:$0xff] }
 0x502   :  { %v6095_v44 = vpop.f32.mrf.mxu0 }
 0x503   :  { %v6145_v18 = vpack.c.bf16 %v6134_v58, %v6134_v58  ;;  %v6136_v63 = vpop.f32.mrf.mxu1 }
 0x505   :  { %6810 = vmatprep.mubr.bf16.mxu1 %v6145_v18 }
 0x506   :  { %6811 = vmatmul.mubr.bf16.vlgmr.msra.gmra.mxu1 %v6144_v26 }
 0x507   :  { %6869 = vmatpush1.bf16.msra.mxu1 %v12843_v47  ;;  %6900 = vmatprep.mubr.bf16.mxu1 %v17829_v19 }
 0x508   :  { %6870 = vmatprep.subr.bf16.mxu1 %v12847_v51 }
 0x50b   :  { %6871 = vmatpush1.bf16.msra.mxu1 %v12855_v12 }
 0x50c   :  { %6872 = vmatprep.subr.bf16.mxu1 %v12861_v56 }
 0x50f   :  { %6873 = vmatpush1.bf16.msra.mxu1 %v12869_v53 }
 0x510   :  { %6874 = vmatprep.subr.bf16.mxu1 %v12875_v28 }
 0x513   :  { %6875 = vmatpush1.bf16.msra.mxu1 %v12881_v25 }
 0x514   :  { %6876 = vmatprep.subr.bf16.mxu1 %v12887_v61 }
 0x517   :  { %6877 = vmatpush1.bf16.msra.mxu1 %v12893_v43  ;;  %v18714_v43 = vld [vmem:[#allocation342_spill] sm:$0xff] }
 0x518   :  { %6878 = vmatprep.subr.bf16.mxu1 %v12899_v2 }
 0x51b   :  { %6879 = vmatpush1.bf16.msra.mxu1 %v12905_v27  ;;  %v18540_v27 = vld [vmem:[#allocation170_spill] sm:$0xff] }
 0x51c   :  { %v10199_v14 = vpop.f32.mrf.mxu0  ;;  %6880 = vmatprep.subr.bf16.mxu1 %v18402_v17 }
 0x51d   :  { %v10221_v45 = vpop.f32.mrf.mxu1 }
 0x51e   :  { %v10200_v30 = vpop.f32.mrf.mxu0 }
 0x51f   :  { %v10201_v62 = vadd.f32 %v10200_v30, %v10199_v14  ;;  %v10222_v49 = vpop.f32.mrf.mxu1  ;;  %6881 = vmatpush1.bf16.msra.mxu1 %v18403_v32  ;;  %v18538_v32 = vld [vmem:[#allocation166_spill] sm:$0xff] }
 0x520   :  { %v10223_v46 = vadd.f32 %v10222_v49, %v10221_v45  ;;  %v10202_v22 = vpop.f32.mrf.mxu0  ;;  %6882 = vmatprep.subr.bf16.mxu1 %v18404_v40  ;;  %v9543_v40 = vld [vmem:[#allocation16] ss:$0 sm:$0xff] }
 0x521   :  { %v10224_v7 = vpop.f32.mrf.mxu1 }
 0x522   :  { %v6733_v23 = vadd.f32 %v10223_v46, %v10201_v62  ;;  %v10203_v9 = vpop.f32.mrf.mxu0  ;;  %v10532_v62 = vld [vmem:[#allocation17] ss:$0 sm:$0xff] }
 0x523   :  { %v10225_v39 = vpop.f32.mrf.mxu1  ;;  %6883 = vmatpush1.bf16.msra.mxu1 %v18405_v29 }
 0x524   :  { %6950 = vmatprep.subr.bf16.mxu1 %v18406_v42 }
 0x546   :  { %v10243_v58 = vpop.f32.mrf.mxu0 }
 0x548   :  { %v10244_v16 = vpop.f32.mrf.mxu0 }
 0x549   :  { %v10245_v44 = vadd.f32 %v10244_v16, %v10243_v58  ;;  %v18408_v58 = vld [vmem:[#allocation38_spill] sm:$0xff]  ;;  %v18410_v16 = vld [vmem:[#allocation55_spill] sm:$0xff] }
 0x54a   :  { %v10246_v18 = vpop.f32.mrf.mxu0 }
 0x54b   :  { %v6773_v63 = vadd.f32 %v10245_v44, %v6733_v23  ;;  %v18409_v23 = vld [vmem:[#allocation46_spill] sm:$0xff]  ;;  %v18411_v44 = vld [vmem:[#allocation39_spill] sm:$0xff]  ;;  %v18412_v18 = vld [vmem:[#allocation40_spill] sm:$0xff] }
 0x54c   :  { %v10247_v26 = vpop.f32.mrf.mxu0 }
 0x54d   :  { %v18415_v26 = vld [vmem:[#allocation64_spill] sm:$0xff] }
 0x5c6   :  { %v10265_v14 = vpop.f32.mrf.mxu1 }
 0x5c8   :  { %v10266_v30 = vpop.f32.mrf.mxu1 }
 0x5c9   :  { %v10267_v45 = vadd.f32 %v10266_v30, %v10265_v14  ;;  %v18416_v14 = vld [vmem:[#allocation41_spill] sm:$0xff]  ;;  %v18417_v30 = vld [vmem:[#allocation42_spill] sm:$0xff] }
 0x5ca   :  { %v10268_v49 = vpop.f32.mrf.mxu1 }
 0x5cb   :  { %v6813_v22 = vadd.f32 %v10267_v45, %v6773_v63  ;;  %v18414_v63 = vld [vmem:[#allocation47_spill] sm:$0xff]  ;;  %v18418_v45 = vld [vmem:[#allocation65_spill] sm:$0xff] }
 0x5cc   :  { %v10269_v7 = vpop.f32.mrf.mxu1  ;;  %v18419_v49 = vld [vmem:[#allocation43_spill] sm:$0xff] }
 0x5cd   :  { %v6818_v46 = vadd.f32 %v10532_v62, %v6813_v22  ;;  %v18420_v22 = vld [vmem:[#allocation57_spill] sm:$0xff]  ;;  %v18421_v7 = vld [vmem:[#allocation44_spill] sm:$0xff] }
 0x5ce   :  { %v18422_v62 = vld [vmem:[#allocation48_spill] sm:$0xff] }
 0x5cf   :  { %v14843_v9 = vadd.f32 %v9543_v40, %v6818_v46  ;;  %v18413_v40 = vld [vmem:[#allocation56_spill] sm:$0xff]  ;;  %v18423_v46 = vld [vmem:[#allocation66_spill] sm:$0xff] }
 0x5d1   :  { %18407 = vst [vmem:[#allocation589_spill] sm:$0xff] %v14843_v9  ;;  %v6826_v39 = vpack.c.bf16 %v14843_v9, %v14843_v9 }
 0x5d3   :  { %6860 = vmatmul.mubr.bf16.vlgmr.msra.gmra.mxu0 %v6826_v39  ;;  %6901 = vmatmul.mubr.bf16.vlgmr.msra.gmra.mxu1 %v6826_v39 }
 0x5d4   :  { %6910 = vmatpush1.bf16.msra.mxu0 %v18408_v58  ;;  %6951 = vmatpush1.bf16.msra.mxu1 %v18409_v23  ;;  %v18507_v23 = vld [vmem:[#allocation139_spill] sm:$0xff] }
 0x5d5   :  { %6911 = vmatprep.subr.bf16.mxu0 %v18410_v16  ;;  %6952 = vmatprep.subr.bf16.mxu1 %v18411_v44  ;;  %v18506_v16 = vld [vmem:[#allocation138_spill] sm:$0xff] }
 0x5d6   :  { %6941 = vmatprep.mubr.bf16.mxu0 %v17829_v19  ;;  %6982 = vmatprep.mubr.bf16.mxu1 %v17829_v19 }
 0x5d8   :  { %6912 = vmatpush1.bf16.msra.mxu0 %v18412_v18  ;;  %6953 = vmatpush1.bf16.msra.mxu1 %v18413_v40  ;;  %v18424_v40 = vld [vmem:[#allocation49_spill] sm:$0xff] }
 0x5d9   :  { %6913 = vmatprep.subr.bf16.mxu0 %v18414_v63  ;;  %6954 = vmatprep.subr.bf16.mxu1 %v18415_v26  ;;  %v18425_v63 = vld [vmem:[#allocation50_spill] sm:$0xff]  ;;  %v18505_v18 = vld [vmem:[#allocation137_spill] sm:$0xff] }
 0x5da   :  { %v18426_v26 = vld [vmem:[#allocation58_spill] sm:$0xff] }
 0x5dc   :  { %6914 = vmatpush1.bf16.msra.mxu0 %v18416_v14  ;;  %6955 = vmatpush1.bf16.msra.mxu1 %v18417_v30  ;;  %v18427_v14 = vld [vmem:[#allocation76_spill] sm:$0xff]  ;;  %v18428_v30 = vld [vmem:[#allocation51_spill] sm:$0xff] }
 0x5dd   :  { %6915 = vmatprep.subr.bf16.mxu0 %v18418_v45  ;;  %6956 = vmatprep.subr.bf16.mxu1 %v18419_v49  ;;  %v18429_v45 = vld [vmem:[#allocation67_spill] sm:$0xff]  ;;  %v18430_v49 = vld [vmem:[#allocation52_spill] sm:$0xff] }
 0x5e0   :  { %6916 = vmatpush1.bf16.msra.mxu0 %v18420_v22  ;;  %6957 = vmatpush1.bf16.msra.mxu1 %v18421_v7  ;;  %v18431_v22 = vld [vmem:[#allocation68_spill] sm:$0xff]  ;;  %v18432_v7 = vld [vmem:[#allocation59_spill] sm:$0xff] }
 0x5e1   :  { %6917 = vmatprep.subr.bf16.mxu0 %v18422_v62  ;;  %6958 = vmatprep.subr.bf16.mxu1 %v18423_v46  ;;  %v18433_v62 = vld [vmem:[#allocation53_spill] sm:$0xff] }
 0x5e2   :  { %v18434_v46 = vld [vmem:[#allocation69_spill] sm:$0xff] }
 0x5e4   :  { %6918 = vmatpush1.bf16.msra.mxu0 %v18424_v40  ;;  %6959 = vmatpush1.bf16.msra.mxu1 %v18425_v63  ;;  %v18435_v40 = vld [vmem:[#allocation77_spill] sm:$0xff]  ;;  %v18436_v63 = vld [vmem:[#allocation60_spill] sm:$0xff] }
 0x5e5   :  { %6919 = vmatprep.subr.bf16.mxu0 %v18426_v26  ;;  %6960 = vmatprep.subr.bf16.mxu1 %v18427_v14  ;;  %v18437_v26 = vld [vmem:[#allocation70_spill] sm:$0xff] }
 0x5e6   :  { %v18438_v14 = vld [vmem:[#allocation78_spill] sm:$0xff] }
 0x5e8   :  { %6920 = vmatpush1.bf16.msra.mxu0 %v18428_v30  ;;  %6961 = vmatpush1.bf16.msra.mxu1 %v18429_v45  ;;  %v18439_v30 = vld [vmem:[#allocation71_spill] sm:$0xff]  ;;  %v18504_v45 = vld [vmem:[#allocation136_spill] sm:$0xff] }
 0x5e9   :  { %6921 = vmatprep.subr.bf16.mxu0 %v18430_v49  ;;  %6962 = vmatprep.subr.bf16.mxu1 %v18431_v22  ;;  %v18440_v49 = vld [vmem:[#allocation79_spill] sm:$0xff]  ;;  %v18441_v22 = vld [vmem:[#allocation61_spill] sm:$0xff] }
 0x5ec   :  { %6922 = vmatpush1.bf16.msra.mxu0 %v18432_v7  ;;  %6963 = vmatpush1.bf16.msra.mxu1 %v18433_v62  ;;  %v18442_v7 = vld [vmem:[#allocation72_spill] sm:$0xff] }
 0x5ed   :  { %6923 = vmatprep.subr.bf16.mxu0 %v18434_v46  ;;  %6964 = vmatprep.subr.bf16.mxu1 %v18435_v40  ;;  %v18443_v62 = vld [vmem:[#allocation80_spill] sm:$0xff]  ;;  %v18444_v46 = vld [vmem:[#allocation73_spill] sm:$0xff] }
 0x5ee   :  { %v18445_v40 = vld [vmem:[#allocation81_spill] sm:$0xff] }
 0x5f0   :  { %6924 = vmatpush1.bf16.msra.mxu0 %v18436_v63  ;;  %6965 = vmatpush1.bf16.msra.mxu1 %v18437_v26  ;;  %v18446_v63 = vld [vmem:[#allocation82_spill] sm:$0xff] }
 0x5f1   :  { %7007 = vmatprep.subr.bf16.mxu0 %v18438_v14  ;;  %7048 = vmatprep.subr.bf16.mxu1 %v18439_v30  ;;  %v18447_v26 = vld [vmem:[#allocation62_spill] sm:$0xff]  ;;  %v18448_v14 = vld [vmem:[#allocation83_spill] sm:$0xff] }
 0x5f2   :  { %v18449_v30 = vld [vmem:[#allocation74_spill] sm:$0xff] }
 0x5f3   :  { %6942 = vmatmul.mubr.bf16.vlgmr.msra.gmra.mxu0 %v6826_v39  ;;  %6983 = vmatmul.mubr.bf16.vlgmr.msra.gmra.mxu1 %v6826_v39  ;;  %v18450_v39 = vld [vmem:[#allocation30_spill] sm:$0xff] }
 0x5f4   :  { %7008 = vmatpush1.bf16.msra.mxu0 %v18440_v49  ;;  %7049 = vmatpush1.bf16.msra.mxu1 %v18441_v22  ;;  %v18451_v49 = vld [vmem:[#allocation63_spill] sm:$0xff]  ;;  %v18452_v22 = vld [vmem:[#allocation84_spill] sm:$0xff] }
 0x5f5   :  { %7009 = vmatprep.subr.bf16.mxu0 %v18442_v7  ;;  %7050 = vmatprep.subr.bf16.mxu1 %v18443_v62  ;;  %v18453_v7 = vld [vmem:[#allocation89_spill] sm:$0xff] }
 0x5f6   :  { %v18454_v62 = vld [vmem:[#allocation85_spill] sm:$0xff] }
 0x5f8   :  { %7010 = vmatpush1.bf16.msra.mxu0 %v18444_v46  ;;  %7051 = vmatpush1.bf16.msra.mxu1 %v18445_v40  ;;  %v18455_v46 = vld [vmem:[#allocation75_spill] sm:$0xff]  ;;  %v18456_v40 = vld [vmem:[#allocation90_spill] sm:$0xff] }
 0x5f9   :  { %7011 = vmatprep.subr.bf16.mxu0 %v18446_v63  ;;  %7052 = vmatprep.subr.bf16.mxu1 %v18447_v26  ;;  %v18457_v63 = vld [vmem:[#allocation28_spill] sm:$0xff]  ;;  %v18458_v26 = vld [vmem:[#allocation86_spill] sm:$0xff] }
 0x5fc   :  { %7012 = vmatpush1.bf16.msra.mxu0 %v18448_v14  ;;  %7053 = vmatpush1.bf16.msra.mxu1 %v18449_v30  ;;  %v18459_v14 = vld [vmem:[#allocation91_spill] sm:$0xff]  ;;  %v18460_v30 = vld [vmem:[#allocation92_spill] sm:$0xff] }
 0x5fd   :  { %7013 = vmatprep.subr.bf16.mxu0 %v18450_v39  ;;  %7054 = vmatprep.subr.bf16.mxu1 %v18451_v49  ;;  %v18461_v39 = vld [vmem:[#allocation87_spill] sm:$0xff]  ;;  %v18462_v49 = vld [vmem:[#allocation88_spill] sm:$0xff] }
 0x600   :  { %7014 = vmatpush1.bf16.msra.mxu0 %v18452_v22  ;;  %7055 = vmatpush1.bf16.msra.mxu1 %v18453_v7  ;;  %v18463_v22 = vld [vmem:[#allocation29_spill] sm:$0xff] }
 0x601   :  { %7015 = vmatprep.subr.bf16.mxu0 %v18454_v62  ;;  %7056 = vmatprep.subr.bf16.mxu1 %v18455_v46  ;;  %v18464_v7 = vld [vmem:[#allocation93_spill] sm:$0xff]  ;;  %v18465_v62 = vld [vmem:[#allocation94_spill] sm:$0xff]  ;;  %v18466_v46 = vld [vmem:[#allocation95_spill] sm:$0xff] }
 0x604   :  { %7016 = vmatpush1.bf16.msra.mxu0 %v18456_v40  ;;  %7057 = vmatpush1.bf16.msra.mxu1 %v18457_v63  ;;  %v18467_v40 = vld [vmem:[#allocation96_spill] sm:$0xff]  ;;  %v18468_v63 = vld [vmem:[#allocation97_spill] sm:$0xff] }
 0x605   :  { %7017 = vmatprep.subr.bf16.mxu0 %v18458_v26  ;;  %7058 = vmatprep.subr.bf16.mxu1 %v18459_v14  ;;  %v18469_v26 = vld [vmem:[#allocation98_spill] sm:$0xff]  ;;  %v18470_v14 = vld [vmem:[#allocation99_spill] sm:$0xff] }
 0x608   :  { %7018 = vmatpush1.bf16.msra.mxu0 %v18460_v30  ;;  %7059 = vmatpush1.bf16.msra.mxu1 %v18461_v39  ;;  %v18471_v30 = vld [vmem:[#allocation100_spill] sm:$0xff]  ;;  %v18472_v39 = vld [vmem:[#allocation101_spill] sm:$0xff] }
 0x609   :  { %7019 = vmatprep.subr.bf16.mxu0 %v18462_v49  ;;  %7060 = vmatprep.subr.bf16.mxu1 %v18463_v22  ;;  %v18473_v49 = vld [vmem:[#allocation102_spill] sm:$0xff]  ;;  %v18474_v22 = vld [vmem:[#allocation103_spill] sm:$0xff] }
 0x60c   :  { %7020 = vmatpush1.bf16.msra.mxu0 %v18464_v7  ;;  %7061 = vmatpush1.bf16.msra.mxu1 %v18465_v62  ;;  %v18475_v7 = vld [vmem:[#allocation104_spill] sm:$0xff]  ;;  %v18476_v62 = vld [vmem:[#allocation105_spill] sm:$0xff] }
 0x60d   :  { %7021 = vmatprep.subr.bf16.mxu0 %v18466_v46  ;;  %7062 = vmatprep.subr.bf16.mxu1 %v18467_v40  ;;  %v18477_v46 = vld [vmem:[#allocation106_spill] sm:$0xff]  ;;  %v18478_v40 = vld [vmem:[#allocation107_spill] sm:$0xff] }
 0x610   :  { %7022 = vmatpush1.bf16.msra.mxu0 %v18468_v63  ;;  %7063 = vmatpush1.bf16.msra.mxu1 %v18469_v26  ;;  %v18479_v63 = vld [vmem:[#allocation108_spill] sm:$0xff]  ;;  %v18480_v26 = vld [vmem:[#allocation109_spill] sm:$0xff] }
 0x611   :  { %7023 = vmatprep.subr.bf16.mxu0 %v18470_v14  ;;  %7064 = vmatprep.subr.bf16.mxu1 %v18471_v30  ;;  %v18481_v14 = vld [vmem:[#allocation110_spill] sm:$0xff]  ;;  %v18482_v30 = vld [vmem:[#allocation111_spill] sm:$0xff] }
 0x614   :  { %7024 = vmatpush2.bf16.msra.mxu0 %v18472_v39  ;;  %7065 = vmatpush2.bf16.msra.mxu1 %v18473_v49  ;;  %v18483_v39 = vld [vmem:[#allocation112_spill] sm:$0xff]  ;;  %v18484_v49 = vld [vmem:[#allocation115_spill] sm:$0xff] }
 0x615   :  { %7025 = vmatprep.subr.bf16.mxu0 %v18474_v22  ;;  %7066 = vmatprep.subr.bf16.mxu1 %v18475_v7  ;;  %v18485_v22 = vld [vmem:[#allocation116_spill] sm:$0xff]  ;;  %v18486_v7 = vld [vmem:[#allocation117_spill] sm:$0xff] }
 0x618   :  { %7026 = vmatpush2.bf16.msra.mxu0 %v18476_v62  ;;  %7067 = vmatpush2.bf16.msra.mxu1 %v18477_v46  ;;  %v18487_v62 = vld [vmem:[#allocation118_spill] sm:$0xff]  ;;  %v18488_v46 = vld [vmem:[#allocation119_spill] sm:$0xff] }
 0x619   :  { %7027 = vmatprep.subr.bf16.mxu0 %v18478_v40  ;;  %7068 = vmatprep.subr.bf16.mxu1 %v18479_v63  ;;  %v18489_v40 = vld [vmem:[#allocation120_spill] sm:$0xff]  ;;  %v18490_v63 = vld [vmem:[#allocation121_spill] sm:$0xff] }
 0x61c   :  { %7028 = vmatpush2.bf16.msra.mxu0 %v18480_v26  ;;  %7069 = vmatpush2.bf16.msra.mxu1 %v18481_v14  ;;  %v18491_v26 = vld [vmem:[#allocation122_spill] sm:$0xff]  ;;  %v18492_v14 = vld [vmem:[#allocation123_spill] sm:$0xff] }
 0x61d   :  { %7029 = vmatprep.subr.bf16.mxu0 %v18482_v30  ;;  %7070 = vmatprep.subr.bf16.mxu1 %v18483_v39  ;;  %v18493_v30 = vld [vmem:[#allocation124_spill] sm:$0xff]  ;;  %v18494_v39 = vld [vmem:[#allocation125_spill] sm:$0xff] }
 0x620   :  { %7030 = vmatpush2.bf16.msra.mxu0 %v18484_v49  ;;  %7071 = vmatpush2.bf16.msra.mxu1 %v18485_v22  ;;  %v18495_v49 = vld [vmem:[#allocation126_spill] sm:$0xff]  ;;  %v18496_v22 = vld [vmem:[#allocation127_spill] sm:$0xff] }
 0x621   :  { %7031 = vmatprep.subr.bf16.mxu0 %v18486_v7  ;;  %7072 = vmatprep.subr.bf16.mxu1 %v18487_v62  ;;  %v18497_v7 = vld [vmem:[#allocation128_spill] sm:$0xff]  ;;  %v18498_v62 = vld [vmem:[#allocation129_spill] sm:$0xff] }
 0x624   :  { %7032 = vmatpush2.bf16.msra.mxu0 %v18488_v46  ;;  %7073 = vmatpush2.bf16.msra.mxu1 %v18489_v40  ;;  %v18499_v46 = vld [vmem:[#allocation130_spill] sm:$0xff]  ;;  %v18500_v40 = vld [vmem:[#allocation131_spill] sm:$0xff] }
 0x625   :  { %7033 = vmatprep.subr.bf16.mxu0 %v18490_v63  ;;  %7074 = vmatprep.subr.bf16.mxu1 %v18491_v26  ;;  %v18501_v63 = vld [vmem:[#allocation132_spill] sm:$0xff]  ;;  %v18502_v26 = vld [vmem:[#allocation133_spill] sm:$0xff] }
 0x628   :  { %7034 = vmatpush2.bf16.msra.mxu0 %v18492_v14  ;;  %7075 = vmatpush2.bf16.msra.mxu1 %v18493_v30  ;;  %v18503_v14 = vld [vmem:[#allocation134_spill] sm:$0xff] }
 0x629   :  { %7035 = vmatprep.subr.bf16.mxu0 %v18494_v39  ;;  %7076 = vmatprep.subr.bf16.mxu1 %v18495_v49 }
 0x62c   :  { %7036 = vmatpush2.bf16.msra.mxu0 %v18496_v22  ;;  %7077 = vmatpush2.bf16.msra.mxu1 %v18497_v7 }
 0x62d   :  { %7037 = vmatprep.subr.bf16.mxu0 %v18498_v62  ;;  %7078 = vmatprep.subr.bf16.mxu1 %v18499_v46 }
 0x630   :  { %7038 = vmatpush2.bf16.msra.mxu0 %v18500_v40  ;;  %7079 = vmatpush2.bf16.msra.mxu1 %v18501_v63 }
 0x631   :  { %7089 = vmatprep.subr.bf16.mxu0 %v18502_v26  ;;  %7130 = vmatprep.subr.bf16.mxu1 %v18503_v14 }
 0x693   :  { %v6861_v30 = vpop.f32.mrf.mxu0  ;;  %v6902_v39 = vpop.f32.mrf.mxu1 }
 0x694   :  { %v6991_v49 = vadd.f32 %v6861_v30, %v18504_v45  ;;  %v6993_v22 = vadd.f32 %v6902_v39, %v18505_v18  ;;  %v18517_v39 = vld [vmem:[#allocation147_spill] sm:$0xff]  ;;  %v18537_v18 = vld [vmem:[#allocation168_spill] sm:$0xff] }
 0x695   :  { %v6863_v44 = vpop.f32.mrf.mxu0  ;;  %v6904_v7 = vpop.f32.mrf.mxu1 }
 0x696   :  { %v6992_v62 = vadd.f32 %v6863_v44, %v18506_v16  ;;  %v6994_v46 = vadd.f32 %v6904_v7, %v18507_v23  ;;  %v14953_v26 = vpack.c.bf16 %v6991_v49, %v6991_v49  ;;  %v14955_v14 = vpack.c.bf16 %v6993_v22, %v6993_v22  ;;  %v18509_v44 = vld [vmem:[#allocation114_spill] sm:$0xff]  ;;  %v18511_v49 = vld [vmem:[#allocation141_spill] sm:$0xff]  ;;  %v18514_v7 = vld [vmem:[#allocation144_spill] sm:$0xff] }
 0x697   :  { %v6865_v58 = vpop.f32.mrf.mxu0  ;;  %v6906_v40 = vpop.f32.mrf.mxu1  ;;  %v18512_v22 = vld [vmem:[#allocation142_spill] sm:$0xff]  ;;  %v18534_v16 = vld [vmem:[#allocation164_spill] sm:$0xff] }
 0x698   :  { %v14949_v9 = vpack.c.bf16 %v6992_v62, %v6992_v62  ;;  %v14951_v63 = vpack.c.bf16 %v6994_v46, %v6994_v46  ;;  %v18508_v58 = vld [vmem:[#allocation113_spill] sm:$0xff]  ;;  %v18510_v40 = vld [vmem:[#allocation140_spill] sm:$0xff]  ;;  %v18516_v46 = vld [vmem:[#allocation146_spill] sm:$0xff] }
 0x699   :  { %v6866_v42 = vpop.f32.mrf.mxu0  ;;  %v6907_v30 = vpop.f32.mrf.mxu1  ;;  %v18515_v62 = vld [vmem:[#allocation145_spill] sm:$0xff]  ;;  %v18532_v23 = vld [vmem:[#allocation162_spill] sm:$0xff] }
 0x69a   :  { %7039 = vmatprep.mubr.bf16.mxu0 %v14949_v9  ;;  %7080 = vmatprep.mubr.bf16.mxu1 %v14951_v63  ;;  %v18513_v42 = vld [vmem:[#allocation143_spill] sm:$0xff]  ;;  %v18518_v30 = vld [vmem:[#allocation148_spill] sm:$0xff] }
 0x69b   :  { %7040 = vmatmul.mubr.bf16.vlgmr.msra.gmra.mxu0 %v14953_v26  ;;  %7081 = vmatmul.mubr.bf16.vlgmr.msra.gmra.mxu1 %v14955_v14 }
 0x69c   :  { %7090 = vmatpush1.bf16.msra.mxu0 %v18508_v58  ;;  %7131 = vmatpush1.bf16.msra.mxu1 %v18509_v44  ;;  %v18519_v58 = vld [vmem:[#allocation149_spill] sm:$0xff]  ;;  %v18520_v44 = vld [vmem:[#allocation150_spill] sm:$0xff] }
 0x69d   :  { %7091 = vmatprep.subr.bf16.mxu0 %v18510_v40  ;;  %7132 = vmatprep.subr.bf16.mxu1 %v18511_v49  ;;  %v18521_v40 = vld [vmem:[#allocation151_spill] sm:$0xff]  ;;  %v18522_v49 = vld [vmem:[#allocation152_spill] sm:$0xff] }
 0x6a0   :  { %7092 = vmatpush1.bf16.msra.mxu0 %v18512_v22  ;;  %7133 = vmatpush1.bf16.msra.mxu1 %v18513_v42  ;;  %v18523_v22 = vld [vmem:[#allocation153_spill] sm:$0xff]  ;;  %v18524_v42 = vld [vmem:[#allocation154_spill] sm:$0xff] }
 0x6a1   :  { %7093 = vmatprep.subr.bf16.mxu0 %v18514_v7  ;;  %7134 = vmatprep.subr.bf16.mxu1 %v18515_v62  ;;  %v18525_v7 = vld [vmem:[#allocation155_spill] sm:$0xff]  ;;  %v18526_v62 = vld [vmem:[#allocation156_spill] sm:$0xff] }
 0x6a4   :  { %7094 = vmatpush1.bf16.msra.mxu0 %v18516_v46  ;;  %7135 = vmatpush1.bf16.msra.mxu1 %v18517_v39  ;;  %v18527_v46 = vld [vmem:[#allocation157_spill] sm:$0xff]  ;;  %v18528_v39 = vld [vmem:[#allocation158_spill] sm:$0xff] }
 0x6a5   :  { %7095 = vmatprep.subr.bf16.mxu0 %v18518_v30  ;;  %7136 = vmatprep.subr.bf16.mxu1 %v18519_v58  ;;  %v18529_v30 = vld [vmem:[#allocation159_spill] sm:$0xff]  ;;  %v18530_v58 = vld [vmem:[#allocation160_spill] sm:$0xff] }
 0x6a8   :  { %7096 = vmatpush1.bf16.msra.mxu0 %v18520_v44  ;;  %7137 = vmatpush1.bf16.msra.mxu1 %v18521_v40  ;;  %v18531_v44 = vld [vmem:[#allocation161_spill] sm:$0xff] }
 0x6a9   :  { %7097 = vmatprep.subr.bf16.mxu0 %v18522_v49  ;;  %7138 = vmatprep.subr.bf16.mxu1 %v18523_v22  ;;  %v18533_v22 = vld [vmem:[#allocation163_spill] sm:$0xff] }
 0x6ac   :  { %7098 = vmatpush1.bf16.msra.mxu0 %v18524_v42  ;;  %7139 = vmatpush1.bf16.msra.mxu1 %v18525_v7 }
 0x6ad   :  { %7099 = vmatprep.subr.bf16.mxu0 %v18526_v62  ;;  %7140 = vmatprep.subr.bf16.mxu1 %v18527_v46  ;;  %v18535_v62 = vld [vmem:[#allocation165_spill] sm:$0xff]  ;;  %v18536_v46 = vld [vmem:[#allocation167_spill] sm:$0xff] }
 0x6b0   :  { %7100 = vmatpush1.bf16.msra.mxu0 %v18528_v39  ;;  %7141 = vmatpush1.bf16.msra.mxu1 %v18529_v30 }
 0x6b1   :  { %7101 = vmatprep.subr.bf16.mxu0 %v18530_v58  ;;  %7142 = vmatprep.subr.bf16.mxu1 %v18531_v44 }
 0x6b3   :  { %v6943_v40 = vpop.f32.mrf.mxu0  ;;  %v6984_v49 = vpop.f32.mrf.mxu1 }
 0x6b4   :  { %7102 = vmatpush1.bf16.msra.mxu0 %v18532_v23  ;;  %7143 = vmatpush1.bf16.msra.mxu1 %v18533_v22  ;;  %v18539_v23 = vld [vmem:[#allocation169_spill] sm:$0xff] }
 0x6b5   :  { %v6945_v42 = vpop.f32.mrf.mxu0  ;;  %v6986_v7 = vpop.f32.mrf.mxu1  ;;  %7103 = vmatprep.subr.bf16.mxu0 %v18534_v16  ;;  %7144 = vmatprep.subr.bf16.mxu1 %v18535_v62  ;;  %v18541_v16 = vld [vmem:[#allocation171_spill] sm:$0xff] }
 0x6b6   :  { %v6996_v39 = vadd.f32 %v6945_v42, %v18536_v46  ;;  %v6998_v30 = vadd.f32 %v6986_v7, %v18537_v18  ;;  %v18544_v42 = vld [vmem:[#allocation174_spill] sm:$0xff]  ;;  %v18545_v7 = vld [vmem:[#allocation175_spill] sm:$0xff] }
 0x6b7   :  { %v6947_v45 = vpop.f32.mrf.mxu0  ;;  %v6988_v58 = vpop.f32.mrf.mxu1  ;;  %v18570_v18 = vld [vmem:[#allocation198_spill] sm:$0xff]  ;;  %v18711_v62 = vld [vmem:[#allocation339_spill] sm:$0xff] }
 0x6b8   :  { %v14991_v29 = vpack.c.bf16 %v6996_v39, %v6996_v39  ;;  %v14993_v44 = vpack.c.bf16 %v6998_v30, %v6998_v30  ;;  %7104 = vmatpush1.bf16.msra.mxu0 %v18538_v32  ;;  %7145 = vmatpush1.bf16.msra.mxu1 %v18539_v23  ;;  %v18542_v45 = vld [vmem:[#allocation172_spill] sm:$0xff]  ;;  %v18543_v58 = vld [vmem:[#allocation173_spill] sm:$0xff]  ;;  %v18549_v30 = vld [vmem:[#allocation179_spill] sm:$0xff] }
 0x6b9   :  { %v6948_v22 = vpop.f32.mrf.mxu0  ;;  %v6989_v17 = vpop.f32.mrf.mxu1  ;;  %7105 = vmatprep.subr.bf16.mxu0 %v18540_v27  ;;  %7146 = vmatprep.subr.bf16.mxu1 %v18541_v16  ;;  %v18546_v39 = vld [vmem:[#allocation176_spill] sm:$0xff]  ;;  %v18551_v27 = vld [vmem:[#allocation181_spill] sm:$0xff]  ;;  %v18552_v23 = vld [vmem:[#allocation182_spill] sm:$0xff] }
 0x6ba   :  { %7121 = vmatprep.mubr.bf16.mxu0 %v14991_v29  ;;  %7162 = vmatprep.mubr.bf16.mxu1 %v14993_v44  ;;  %v18547_v22 = vld [vmem:[#allocation177_spill] sm:$0xff]  ;;  %v18548_v17 = vld [vmem:[#allocation178_spill] sm:$0xff]  ;;  %v18550_v16 = vld [vmem:[#allocation180_spill] sm:$0xff] }
 0x6bb   :  { %v18569_v32 = vld [vmem:[#allocation135_spill] sm:$0xff] }
 0x6bc   :  { %7106 = vmatpush2.bf16.msra.mxu0 %v18542_v45  ;;  %7147 = vmatpush2.bf16.msra.mxu1 %v18543_v58  ;;  %v18553_v45 = vld [vmem:[#allocation183_spill] sm:$0xff]  ;;  %v18554_v58 = vld [vmem:[#allocation184_spill] sm:$0xff] }
 0x6bd   :  { %7107 = vmatprep.subr.bf16.mxu0 %v18544_v42  ;;  %7148 = vmatprep.subr.bf16.mxu1 %v18545_v7  ;;  %v18555_v42 = vld [vmem:[#allocation185_spill] sm:$0xff]  ;;  %v18556_v7 = vld [vmem:[#allocation186_spill] sm:$0xff] }
 0x6c0   :  { %7108 = vmatpush2.bf16.msra.mxu0 %v18546_v39  ;;  %7149 = vmatpush2.bf16.msra.mxu1 %v18547_v22  ;;  %v18557_v39 = vld [vmem:[#allocation187_spill] sm:$0xff]  ;;  %v18558_v22 = vld [vmem:[#allocation188_spill] sm:$0xff] }
 0x6c1   :  { %7109 = vmatprep.subr.bf16.mxu0 %v18548_v17  ;;  %7150 = vmatprep.subr.bf16.mxu1 %v18549_v30  ;;  %v18559_v17 = vld [vmem:[#allocation189_spill] sm:$0xff]  ;;  %v18560_v30 = vld [vmem:[#allocation190_spill] sm:$0xff] }
 0x6c4   :  { %7110 = vmatpush2.bf16.msra.mxu0 %v18550_v16  ;;  %7151 = vmatpush2.bf16.msra.mxu1 %v18551_v27  ;;  %v18561_v16 = vld [vmem:[#allocation191_spill] sm:$0xff]  ;;  %v18562_v27 = vld [vmem:[#allocation192_spill] sm:$0xff] }
 0x6c5   :  { %7111 = vmatprep.subr.bf16.mxu0 %v18552_v23  ;;  %7152 = vmatprep.subr.bf16.mxu1 %v18553_v45  ;;  %v18563_v23 = vld [vmem:[#allocation193_spill] sm:$0xff]  ;;  %v18564_v45 = vld [vmem:[#allocation194_spill] sm:$0xff] }
 0x6c8   :  { %7112 = vmatpush2.bf16.msra.mxu0 %v18554_v58  ;;  %7153 = vmatpush2.bf16.msra.mxu1 %v18555_v42  ;;  %v18565_v58 = vld [vmem:[#allocation195_spill] sm:$0xff]  ;;  %v18566_v42 = vld [vmem:[#allocation196_spill] sm:$0xff] }
 0x6c9   :  { %7113 = vmatprep.subr.bf16.mxu0 %v18556_v7  ;;  %7154 = vmatprep.subr.bf16.mxu1 %v18557_v39  ;;  %v18567_v7 = vld [vmem:[#allocation197_spill] sm:$0xff]  ;;  %v18568_v39 = vld [vmem:[#allocation27_spill] sm:$0xff] }
 0x6cc   :  { %7114 = vmatpush2.bf16.msra.mxu0 %v18558_v22  ;;  %7155 = vmatpush2.bf16.msra.mxu1 %v18559_v17  ;;  %v6995_v22 = vadd.f32 %v6943_v40, %v18568_v39  ;;  %v6997_v17 = vadd.f32 %v6984_v49, %v18569_v32  ;;  %v18576_v40 = vld [vmem:[#allocation204_spill] sm:$0xff]  ;;  %v18577_v49 = vld [vmem:[#allocation205_spill] sm:$0xff] }
 0x6cd   :  { %7115 = vmatprep.subr.bf16.mxu0 %v18560_v30  ;;  %7156 = vmatprep.subr.bf16.mxu1 %v18561_v16  ;;  %v18571_v30 = vld [vmem:[#allocation199_spill] sm:$0xff]  ;;  %v18572_v16 = vld [vmem:[#allocation200_spill] sm:$0xff] }
 0x6ce   :  { %v18588_v32 = vld [vmem:[#allocation216_spill] sm:$0xff] }
 0x6cf   :  { %v18708_v39 = vld [vmem:[#allocation336_spill] sm:$0xff] }
 0x6d0   :  { %7116 = vmatpush2.bf16.msra.mxu0 %v18562_v27  ;;  %7157 = vmatpush2.bf16.msra.mxu1 %v18563_v23  ;;  %v18573_v27 = vld [vmem:[#allocation201_spill] sm:$0xff]  ;;  %v15033_v23 = vpack.c.bf16 %v6995_v22, %v6995_v22  ;;  %v18578_v22 = vld [vmem:[#allocation206_spill] sm:$0xff] }
 0x6d1   :  { %7117 = vmatprep.subr.bf16.mxu0 %v18564_v45  ;;  %7158 = vmatprep.subr.bf16.mxu1 %v18565_v58  ;;  %v15035_v45 = vpack.c.bf16 %v6997_v17, %v6997_v17  ;;  %v18574_v58 = vld [vmem:[#allocation202_spill] sm:$0xff]  ;;  %v18579_v17 = vld [vmem:[#allocation207_spill] sm:$0xff] }
 0x6d4   :  { %7118 = vmatpush2.bf16.msra.mxu0 %v18566_v42  ;;  %7159 = vmatpush2.bf16.msra.mxu1 %v18567_v7  ;;  %v18575_v42 = vld [vmem:[#allocation203_spill] sm:$0xff]  ;;  %v18709_v7 = vld [vmem:[#allocation337_spill] sm:$0xff] }
 0x6d5   :  { %7119 = vmatprep.subr.bf16.mxu0 %v18570_v18  ;;  %7160 = vmatprep.subr.bf16.mxu1 %v18571_v30  ;;  %v18584_v30 = vld [vmem:[#allocation212_spill] sm:$0xff]  ;;  %v18586_v18 = vld [vmem:[#allocation214_spill] sm:$0xff] }
 0x6d8   :  { %7120 = vmatpush2.bf16.msra.mxu0 %v18572_v16  ;;  %7161 = vmatpush2.bf16.msra.mxu1 %v18573_v27  ;;  %v18580_v27 = vld [vmem:[#allocation208_spill] sm:$0xff]  ;;  %v18583_v16 = vld [vmem:[#allocation211_spill] sm:$0xff] }
 0x6d9   :  { %7171 = vmatprep.subr.bf16.mxu0 %v18574_v58  ;;  %7212 = vmatprep.subr.bf16.mxu1 %v18575_v42  ;;  %v18581_v58 = vld [vmem:[#allocation209_spill] sm:$0xff]  ;;  %v18582_v42 = vld [vmem:[#allocation210_spill] sm:$0xff] }
 0x6db   :  { %7122 = vmatmul.mubr.bf16.vlgmr.msra.gmra.mxu0 %v15033_v23  ;;  %7163 = vmatmul.mubr.bf16.vlgmr.msra.gmra.mxu1 %v15035_v45 }
 0x6dc   :  { %7172 = vmatpush1.bf16.msra.mxu0 %v18576_v40  ;;  %7203 = vmatprep.mubr.bf16.mxu0 %v14949_v9  ;;  %v18585_v40 = vld [vmem:[#allocation213_spill] sm:$0xff] }
 0x6dd   :  { %7213 = vmatpush1.bf16.msra.mxu1 %v18577_v49  ;;  %7244 = vmatprep.mubr.bf16.mxu1 %v14951_v63  ;;  %v18587_v49 = vld [vmem:[#allocation215_spill] sm:$0xff] }
 0x6de   :  { %7173 = vmatprep.subr.bf16.mxu0 %v18578_v22  ;;  %7214 = vmatprep.subr.bf16.mxu1 %v18579_v17  ;;  %v18589_v22 = vld [vmem:[#allocation217_spill] sm:$0xff]  ;;  %v18590_v17 = vld [vmem:[#allocation218_spill] sm:$0xff] }
 0x6e0   :  { %7174 = vmatpush1.bf16.msra.mxu0 %v18580_v27  ;;  %v18591_v27 = vld [vmem:[#allocation219_spill] sm:$0xff] }
 0x6e1   :  { %7215 = vmatpush1.bf16.msra.mxu1 %v18581_v58  ;;  %7175 = vmatprep.subr.bf16.mxu0 %v18582_v42  ;;  %v18592_v58 = vld [vmem:[#allocation220_spill] sm:$0xff]  ;;  %v18593_v42 = vld [vmem:[#allocation221_spill] sm:$0xff] }
 0x6e2   :  { %7216 = vmatprep.subr.bf16.mxu1 %v18583_v16  ;;  %v18594_v16 = vld [vmem:[#allocation222_spill] sm:$0xff] }
 0x6e4   :  { %7176 = vmatpush1.bf16.msra.mxu0 %v18584_v30  ;;  %v18595_v30 = vld [vmem:[#allocation223_spill] sm:$0xff] }
 0x6e5   :  { %7217 = vmatpush1.bf16.msra.mxu1 %v18585_v40  ;;  %7177 = vmatprep.subr.bf16.mxu0 %v18586_v18  ;;  %v18596_v40 = vld [vmem:[#allocation224_spill] sm:$0xff]  ;;  %v18597_v18 = vld [vmem:[#allocation225_spill] sm:$0xff] }
 0x6e6   :  { %7218 = vmatprep.subr.bf16.mxu1 %v18587_v49  ;;  %v18598_v49 = vld [vmem:[#allocation226_spill] sm:$0xff] }
 0x6e8   :  { %7178 = vmatpush1.bf16.msra.mxu0 %v18588_v32  ;;  %v18599_v32 = vld [vmem:[#allocation227_spill] sm:$0xff] }
 0x6e9   :  { %7219 = vmatpush1.bf16.msra.mxu1 %v18589_v22  ;;  %7179 = vmatprep.subr.bf16.mxu0 %v18590_v17  ;;  %v18600_v22 = vld [vmem:[#allocation228_spill] sm:$0xff]  ;;  %v18601_v17 = vld [vmem:[#allocation229_spill] sm:$0xff] }
 0x6ea   :  { %7220 = vmatprep.subr.bf16.mxu1 %v18591_v27  ;;  %v18602_v27 = vld [vmem:[#allocation230_spill] sm:$0xff] }
 0x6ec   :  { %7180 = vmatpush1.bf16.msra.mxu0 %v18592_v58  ;;  %v18603_v58 = vld [vmem:[#allocation231_spill] sm:$0xff] }
 0x6ed   :  { %7221 = vmatpush1.bf16.msra.mxu1 %v18593_v42  ;;  %7181 = vmatprep.subr.bf16.mxu0 %v18594_v16  ;;  %v18604_v42 = vld [vmem:[#allocation232_spill] sm:$0xff]  ;;  %v18605_v16 = vld [vmem:[#allocation233_spill] sm:$0xff] }
 0x6ee   :  { %7222 = vmatprep.subr.bf16.mxu1 %v18595_v30  ;;  %v18606_v30 = vld [vmem:[#allocation234_spill] sm:$0xff] }
 0x6f0   :  { %7182 = vmatpush1.bf16.msra.mxu0 %v18596_v40  ;;  %v18607_v40 = vld [vmem:[#allocation235_spill] sm:$0xff] }
 0x6f1   :  { %7223 = vmatpush1.bf16.msra.mxu1 %v18597_v18  ;;  %7183 = vmatprep.subr.bf16.mxu0 %v18598_v49  ;;  %v18608_v18 = vld [vmem:[#allocation236_spill] sm:$0xff]  ;;  %v18609_v49 = vld [vmem:[#allocation237_spill] sm:$0xff] }
 0x6f2   :  { %7224 = vmatprep.subr.bf16.mxu1 %v18599_v32  ;;  %v18610_v32 = vld [vmem:[#allocation238_spill] sm:$0xff] }
 0x6f4   :  { %7184 = vmatpush1.bf16.msra.mxu0 %v18600_v22  ;;  %v18611_v22 = vld [vmem:[#allocation239_spill] sm:$0xff] }
 0x6f5   :  { %7225 = vmatpush1.bf16.msra.mxu1 %v18601_v17  ;;  %7185 = vmatprep.subr.bf16.mxu0 %v18602_v27  ;;  %v18612_v17 = vld [vmem:[#allocation240_spill] sm:$0xff]  ;;  %v18613_v27 = vld [vmem:[#allocation241_spill] sm:$0xff] }
 0x6f6   :  { %7226 = vmatprep.subr.bf16.mxu1 %v18603_v58  ;;  %v18614_v58 = vld [vmem:[#allocation242_spill] sm:$0xff] }
 0x6f8   :  { %7186 = vmatpush1.bf16.msra.mxu0 %v18604_v42  ;;  %v18615_v42 = vld [vmem:[#allocation243_spill] sm:$0xff] }
 0x6f9   :  { %7227 = vmatpush1.bf16.msra.mxu1 %v18605_v16  ;;  %7187 = vmatprep.subr.bf16.mxu0 %v18606_v30  ;;  %v18616_v16 = vld [vmem:[#allocation244_spill] sm:$0xff]  ;;  %v18617_v30 = vld [vmem:[#allocation245_spill] sm:$0xff] }
 0x6fa   :  { %7228 = vmatprep.subr.bf16.mxu1 %v18607_v40  ;;  %v18618_v40 = vld [vmem:[#allocation246_spill] sm:$0xff] }
 0x6fc   :  { %7188 = vmatpush2.bf16.msra.mxu0 %v18608_v18  ;;  %v18619_v18 = vld [vmem:[#allocation247_spill] sm:$0xff] }
 0x6fd   :  { %7229 = vmatpush2.bf16.msra.mxu1 %v18609_v49  ;;  %7189 = vmatprep.subr.bf16.mxu0 %v18610_v32  ;;  %v18620_v49 = vld [vmem:[#allocation248_spill] sm:$0xff]  ;;  %v18621_v32 = vld [vmem:[#allocation249_spill] sm:$0xff] }
 0x6fe   :  { %7230 = vmatprep.subr.bf16.mxu1 %v18611_v22  ;;  %v18622_v22 = vld [vmem:[#allocation250_spill] sm:$0xff] }
 0x700   :  { %7190 = vmatpush2.bf16.msra.mxu0 %v18612_v17  ;;  %v18623_v17 = vld [vmem:[#allocation251_spill] sm:$0xff] }
 0x701   :  { %7231 = vmatpush2.bf16.msra.mxu1 %v18613_v27  ;;  %7191 = vmatprep.subr.bf16.mxu0 %v18614_v58  ;;  %v18624_v27 = vld [vmem:[#allocation252_spill] sm:$0xff]  ;;  %v18625_v58 = vld [vmem:[#allocation253_spill] sm:$0xff] }
 0x702   :  { %7232 = vmatprep.subr.bf16.mxu1 %v18615_v42  ;;  %v18626_v42 = vld [vmem:[#allocation254_spill] sm:$0xff] }
 0x704   :  { %7192 = vmatpush2.bf16.msra.mxu0 %v18616_v16  ;;  %v18627_v16 = vld [vmem:[#allocation255_spill] sm:$0xff] }
 0x705   :  { %7233 = vmatpush2.bf16.msra.mxu1 %v18617_v30  ;;  %7193 = vmatprep.subr.bf16.mxu0 %v18618_v40  ;;  %v18628_v30 = vld [vmem:[#allocation256_spill] sm:$0xff]  ;;  %v18629_v40 = vld [vmem:[#allocation257_spill] sm:$0xff] }
 0x706   :  { %7234 = vmatprep.subr.bf16.mxu1 %v18619_v18  ;;  %v18630_v18 = vld [vmem:[#allocation258_spill] sm:$0xff] }
 0x708   :  { %7194 = vmatpush2.bf16.msra.mxu0 %v18620_v49  ;;  %v18631_v49 = vld [vmem:[#allocation259_spill] sm:$0xff] }
 0x709   :  { %7235 = vmatpush2.bf16.msra.mxu1 %v18621_v32  ;;  %7195 = vmatprep.subr.bf16.mxu0 %v18622_v22  ;;  %v18632_v32 = vld [vmem:[#allocation260_spill] sm:$0xff]  ;;  %v18633_v22 = vld [vmem:[#allocation261_spill] sm:$0xff] }
 0x70a   :  { %7236 = vmatprep.subr.bf16.mxu1 %v18623_v17  ;;  %v18634_v17 = vld [vmem:[#allocation262_spill] sm:$0xff] }
 0x70c   :  { %7196 = vmatpush2.bf16.msra.mxu0 %v18624_v27  ;;  %v18635_v27 = vld [vmem:[#allocation263_spill] sm:$0xff] }
 0x70d   :  { %7237 = vmatpush2.bf16.msra.mxu1 %v18625_v58  ;;  %7197 = vmatprep.subr.bf16.mxu0 %v18626_v42  ;;  %v18636_v58 = vld [vmem:[#allocation264_spill] sm:$0xff]  ;;  %v18637_v42 = vld [vmem:[#allocation265_spill] sm:$0xff] }
 0x70e   :  { %7238 = vmatprep.subr.bf16.mxu1 %v18627_v16  ;;  %v18638_v16 = vld [vmem:[#allocation266_spill] sm:$0xff] }
 0x710   :  { %7198 = vmatpush2.bf16.msra.mxu0 %v18628_v30  ;;  %v18639_v30 = vld [vmem:[#allocation267_spill] sm:$0xff] }
 0x711   :  { %7239 = vmatpush2.bf16.msra.mxu1 %v18629_v40  ;;  %7199 = vmatprep.subr.bf16.mxu0 %v18630_v18  ;;  %v18650_v18 = vld [vmem:[#allocation278_spill] sm:$0xff]  ;;  %v18652_v40 = vld [vmem:[#allocation280_spill] sm:$0xff] }
 0x712   :  { %7240 = vmatprep.subr.bf16.mxu1 %v18631_v49  ;;  %v18640_v49 = vld [vmem:[#allocation268_spill] sm:$0xff] }
 0x714   :  { %7200 = vmatpush2.bf16.msra.mxu0 %v18632_v32  ;;  %v18648_v32 = vld [vmem:[#allocation276_spill] sm:$0xff] }
 0x715   :  { %7241 = vmatpush2.bf16.msra.mxu1 %v18633_v22  ;;  %7201 = vmatprep.subr.bf16.mxu0 %v18634_v17  ;;  %v18641_v22 = vld [vmem:[#allocation269_spill] sm:$0xff]  ;;  %v18647_v17 = vld [vmem:[#allocation275_spill] sm:$0xff] }
 0x716   :  { %7242 = vmatprep.subr.bf16.mxu1 %v18635_v27  ;;  %v18642_v27 = vld [vmem:[#allocation270_spill] sm:$0xff] }
 0x718   :  { %7202 = vmatpush2.bf16.msra.mxu0 %v18636_v58  ;;  %v18643_v58 = vld [vmem:[#allocation271_spill] sm:$0xff] }
 0x719   :  { %7243 = vmatpush2.bf16.msra.mxu1 %v18637_v42  ;;  %7253 = vmatprep.subr.bf16.mxu0 %v18638_v16  ;;  %v18644_v42 = vld [vmem:[#allocation272_spill] sm:$0xff]  ;;  %v18645_v16 = vld [vmem:[#allocation273_spill] sm:$0xff] }
 0x71a   :  { %7294 = vmatprep.subr.bf16.mxu1 %v18639_v30  ;;  %v18646_v30 = vld [vmem:[#allocation274_spill] sm:$0xff] }
 0x71b   :  { %7204 = vmatmul.mubr.bf16.vlgmr.msra.gmra.mxu0 %v14953_v26 }
 0x71c   :  { %7245 = vmatmul.mubr.bf16.vlgmr.msra.gmra.mxu1 %v14955_v14  ;;  %7254 = vmatpush1.bf16.msra.mxu0 %v18640_v49  ;;  %v18649_v49 = vld [vmem:[#allocation277_spill] sm:$0xff] }
 0x71d   :  { %7285 = vmatprep.mubr.bf16.mxu0 %v14991_v29  ;;  %7295 = vmatpush1.bf16.msra.mxu1 %v18641_v22  ;;  %v18651_v22 = vld [vmem:[#allocation279_spill] sm:$0xff] }
 0x71e   :  { %7326 = vmatprep.mubr.bf16.mxu1 %v14993_v44  ;;  %7255 = vmatprep.subr.bf16.mxu0 %v18642_v27  ;;  %v18653_v27 = vld [vmem:[#allocation281_spill] sm:$0xff] }
 0x71f   :  { %7296 = vmatprep.subr.bf16.mxu1 %v18643_v58  ;;  %v18654_v58 = vld [vmem:[#allocation282_spill] sm:$0xff] }
 0x720   :  { %7256 = vmatpush1.bf16.msra.mxu0 %v18644_v42  ;;  %v18655_v42 = vld [vmem:[#allocation283_spill] sm:$0xff] }
 0x721   :  { %7297 = vmatpush1.bf16.msra.mxu1 %v18645_v16  ;;  %7257 = vmatprep.subr.bf16.mxu0 %v18646_v30  ;;  %v18656_v16 = vld [vmem:[#allocation284_spill] sm:$0xff]  ;;  %v18657_v30 = vld [vmem:[#allocation285_spill] sm:$0xff] }
 0x722   :  { %7298 = vmatprep.subr.bf16.mxu1 %v18647_v17  ;;  %v18658_v17 = vld [vmem:[#allocation286_spill] sm:$0xff] }
 0x724   :  { %7258 = vmatpush1.bf16.msra.mxu0 %v18648_v32  ;;  %v18659_v32 = vld [vmem:[#allocation287_spill] sm:$0xff] }
 0x725   :  { %7299 = vmatpush1.bf16.msra.mxu1 %v18649_v49  ;;  %7259 = vmatprep.subr.bf16.mxu0 %v18650_v18  ;;  %v18660_v49 = vld [vmem:[#allocation288_spill] sm:$0xff]  ;;  %v18661_v18 = vld [vmem:[#allocation289_spill] sm:$0xff] }
 0x726   :  { %7300 = vmatprep.subr.bf16.mxu1 %v18651_v22  ;;  %v18662_v22 = vld [vmem:[#allocation290_spill] sm:$0xff] }
 0x728   :  { %7260 = vmatpush1.bf16.msra.mxu0 %v18652_v40  ;;  %v18663_v40 = vld [vmem:[#allocation291_spill] sm:$0xff] }
 0x729   :  { %7301 = vmatpush1.bf16.msra.mxu1 %v18653_v27  ;;  %7261 = vmatprep.subr.bf16.mxu0 %v18654_v58  ;;  %v18664_v27 = vld [vmem:[#allocation292_spill] sm:$0xff]  ;;  %v18665_v58 = vld [vmem:[#allocation293_spill] sm:$0xff] }
 0x72a   :  { %7302 = vmatprep.subr.bf16.mxu1 %v18655_v42  ;;  %v18666_v42 = vld [vmem:[#allocation294_spill] sm:$0xff] }
 0x72c   :  { %7262 = vmatpush1.bf16.msra.mxu0 %v18656_v16  ;;  %v18667_v16 = vld [vmem:[#allocation295_spill] sm:$0xff] }
 0x72d   :  { %7303 = vmatpush1.bf16.msra.mxu1 %v18657_v30  ;;  %7263 = vmatprep.subr.bf16.mxu0 %v18658_v17  ;;  %v18668_v30 = vld [vmem:[#allocation296_spill] sm:$0xff]  ;;  %v18669_v17 = vld [vmem:[#allocation297_spill] sm:$0xff] }
 0x72e   :  { %7304 = vmatprep.subr.bf16.mxu1 %v18659_v32  ;;  %v18670_v32 = vld [vmem:[#allocation298_spill] sm:$0xff] }
 0x730   :  { %7264 = vmatpush1.bf16.msra.mxu0 %v18660_v49  ;;  %v18671_v49 = vld [vmem:[#allocation299_spill] sm:$0xff] }
 0x731   :  { %7305 = vmatpush1.bf16.msra.mxu1 %v18661_v18  ;;  %7265 = vmatprep.subr.bf16.mxu0 %v18662_v22  ;;  %v18672_v18 = vld [vmem:[#allocation300_spill] sm:$0xff]  ;;  %v18673_v22 = vld [vmem:[#allocation301_spill] sm:$0xff] }
 0x732   :  { %7306 = vmatprep.subr.bf16.mxu1 %v18663_v40  ;;  %v18674_v40 = vld [vmem:[#allocation302_spill] sm:$0xff] }
 0x734   :  { %7266 = vmatpush1.bf16.msra.mxu0 %v18664_v27  ;;  %v18675_v27 = vld [vmem:[#allocation303_spill] sm:$0xff] }
 0x735   :  { %7307 = vmatpush1.bf16.msra.mxu1 %v18665_v58  ;;  %7267 = vmatprep.subr.bf16.mxu0 %v18666_v42  ;;  %v18676_v58 = vld [vmem:[#allocation304_spill] sm:$0xff]  ;;  %v18677_v42 = vld [vmem:[#allocation305_spill] sm:$0xff] }
 0x736   :  { %7308 = vmatprep.subr.bf16.mxu1 %v18667_v16  ;;  %v18678_v16 = vld [vmem:[#allocation306_spill] sm:$0xff] }
 0x738   :  { %7268 = vmatpush1.bf16.msra.mxu0 %v18668_v30  ;;  %v18679_v30 = vld [vmem:[#allocation307_spill] sm:$0xff] }
 0x739   :  { %7309 = vmatpush1.bf16.msra.mxu1 %v18669_v17  ;;  %7269 = vmatprep.subr.bf16.mxu0 %v18670_v32  ;;  %v18680_v17 = vld [vmem:[#allocation308_spill] sm:$0xff]  ;;  %v18681_v32 = vld [vmem:[#allocation309_spill] sm:$0xff] }
 0x73a   :  { %7310 = vmatprep.subr.bf16.mxu1 %v18671_v49  ;;  %v18682_v49 = vld [vmem:[#allocation310_spill] sm:$0xff] }
 0x73c   :  { %7270 = vmatpush2.bf16.msra.mxu0 %v18672_v18  ;;  %v18683_v18 = vld [vmem:[#allocation311_spill] sm:$0xff] }
 0x73d   :  { %7311 = vmatpush2.bf16.msra.mxu1 %v18673_v22  ;;  %7271 = vmatprep.subr.bf16.mxu0 %v18674_v40  ;;  %v18684_v22 = vld [vmem:[#allocation312_spill] sm:$0xff]  ;;  %v18685_v40 = vld [vmem:[#allocation313_spill] sm:$0xff] }
 0x73e   :  { %7312 = vmatprep.subr.bf16.mxu1 %v18675_v27  ;;  %v18686_v27 = vld [vmem:[#allocation314_spill] sm:$0xff] }
 0x740   :  { %7272 = vmatpush2.bf16.msra.mxu0 %v18676_v58  ;;  %v18687_v58 = vld [vmem:[#allocation315_spill] sm:$0xff] }
 0x741   :  { %7313 = vmatpush2.bf16.msra.mxu1 %v18677_v42  ;;  %7273 = vmatprep.subr.bf16.mxu0 %v18678_v16  ;;  %v18688_v42 = vld [vmem:[#allocation316_spill] sm:$0xff]  ;;  %v18689_v16 = vld [vmem:[#allocation317_spill] sm:$0xff] }
 0x742   :  { %7314 = vmatprep.subr.bf16.mxu1 %v18679_v30  ;;  %v18690_v30 = vld [vmem:[#allocation318_spill] sm:$0xff] }
 0x744   :  { %7274 = vmatpush2.bf16.msra.mxu0 %v18680_v17  ;;  %v18691_v17 = vld [vmem:[#allocation319_spill] sm:$0xff] }
 0x745   :  { %7315 = vmatpush2.bf16.msra.mxu1 %v18681_v32  ;;  %7275 = vmatprep.subr.bf16.mxu0 %v18682_v49  ;;  %v18692_v32 = vld [vmem:[#allocation320_spill] sm:$0xff]  ;;  %v18693_v49 = vld [vmem:[#allocation321_spill] sm:$0xff] }
 0x746   :  { %7316 = vmatprep.subr.bf16.mxu1 %v18683_v18  ;;  %v18694_v18 = vld [vmem:[#allocation322_spill] sm:$0xff] }
 0x748   :  { %7276 = vmatpush2.bf16.msra.mxu0 %v18684_v22  ;;  %v18695_v22 = vld [vmem:[#allocation323_spill] sm:$0xff] }
 0x749   :  { %7317 = vmatpush2.bf16.msra.mxu1 %v18685_v40  ;;  %7277 = vmatprep.subr.bf16.mxu0 %v18686_v27  ;;  %v18696_v40 = vld [vmem:[#allocation324_spill] sm:$0xff]  ;;  %v18697_v27 = vld [vmem:[#allocation325_spill] sm:$0xff] }
 0x74a   :  { %7318 = vmatprep.subr.bf16.mxu1 %v18687_v58  ;;  %v18698_v58 = vld [vmem:[#allocation326_spill] sm:$0xff] }
 0x74c   :  { %7278 = vmatpush2.bf16.msra.mxu0 %v18688_v42  ;;  %v18699_v42 = vld [vmem:[#allocation327_spill] sm:$0xff] }
 0x74d   :  { %7319 = vmatpush2.bf16.msra.mxu1 %v18689_v16  ;;  %7279 = vmatprep.subr.bf16.mxu0 %v18690_v30  ;;  %v18700_v16 = vld [vmem:[#allocation328_spill] sm:$0xff]  ;;  %v18701_v30 = vld [vmem:[#allocation329_spill] sm:$0xff] }
 0x74e   :  { %7320 = vmatprep.subr.bf16.mxu1 %v18691_v17  ;;  %v18702_v17 = vld [vmem:[#allocation330_spill] sm:$0xff] }
 0x750   :  { %7280 = vmatpush2.bf16.msra.mxu0 %v18692_v32  ;;  %v18703_v32 = vld [vmem:[#allocation331_spill] sm:$0xff] }
 0x751   :  { %7321 = vmatpush2.bf16.msra.mxu1 %v18693_v49  ;;  %7281 = vmatprep.subr.bf16.mxu0 %v18694_v18  ;;  %v18705_v49 = vld [vmem:[#allocation332_spill] sm:$0xff] }
 0x752   :  { %7322 = vmatprep.subr.bf16.mxu1 %v18695_v22 }
 0x754   :  { %7282 = vmatpush2.bf16.msra.mxu0 %v18696_v40  ;;  %v18704_v40 = vld [vmem:[#allocation333_spill] sm:$0xff] }
 0x755   :  { %7323 = vmatpush2.bf16.msra.mxu1 %v18697_v27  ;;  %7283 = vmatprep.subr.bf16.mxu0 %v18698_v58 }
 0x756   :  { %7324 = vmatprep.subr.bf16.mxu1 %v18699_v42  ;;  %v18706_v42 = vld [vmem:[#allocation334_spill] sm:$0xff] }
 0x758   :  { %7284 = vmatpush2.bf16.msra.mxu0 %v18700_v16 }
 0x759   :  { %7325 = vmatpush2.bf16.msra.mxu1 %v18701_v30  ;;  %7335 = vmatprep.subr.bf16.mxu0 %v18702_v17 }
 0x75a   :  { %7376 = vmatprep.subr.bf16.mxu1 %v18703_v32  ;;  %v18707_v32 = vld [vmem:[#allocation335_spill] sm:$0xff] }
 0x75b   :  { %7286 = vmatmul.mubr.bf16.vlgmr.msra.gmra.mxu0 %v15033_v23  ;;  %v7041_v18 = vpop.f32.mrf.mxu0  ;;  %v7082_v22 = vpop.f32.mrf.mxu1 }
 0x75c   :  { %7327 = vmatmul.mubr.bf16.vlgmr.msra.gmra.mxu1 %v15035_v45  ;;  %v7042_v27 = vadd.f32 %v7041_v18, %v18704_v40  ;;  %7336 = vmatpush1.bf16.msra.mxu0 %v18705_v49  ;;  %v18710_v49 = vld [vmem:[#allocation338_spill] sm:$0xff] }
 0x75d   :  { %7367 = vmatprep.mubr.bf16.mxu0 %v14949_v9  ;;  %7377 = vmatpush1.bf16.msra.mxu1 %v18706_v42  ;;  %v7043_v16 = vpop.f32.mrf.mxu0  ;;  %v7084_v30 = vpop.f32.mrf.mxu1 }
 0x75e   :  { %v15181_v58 = vadd.f32 %v7082_v22, %v7042_v27  ;;  %7408 = vmatprep.mubr.bf16.mxu1 %v14951_v63  ;;  %v7044_v17 = vadd.f32 %v7043_v16, %v18707_v32  ;;  %7337 = vmatprep.subr.bf16.mxu0 %v18708_v39  ;;  %v18712_v27 = vld [vmem:[#allocation340_spill] sm:$0xff]  ;;  %v18713_v22 = vld [vmem:[#allocation341_spill] sm:$0xff]  ;;  %v18715_v16 = vld [vmem:[#allocation343_spill] sm:$0xff] }
 0x75f   :  { %7378 = vmatprep.subr.bf16.mxu1 %v18709_v7  ;;  %v7045_v46 = vpop.f32.mrf.mxu0  ;;  %v7086_v18 = vpop.f32.mrf.mxu1  ;;  %v18716_v39 = vld [vmem:[#allocation344_spill] sm:$0xff]  ;;  %v18777_v7 = vld [vmem:[#allocation405_spill] sm:$0xff] }
 0x760   :  { %v15187_v40 = vadd.f32 %v7084_v30, %v7044_v17  ;;  %7338 = vmatpush1.bf16.msra.mxu0 %v18710_v49  ;;  %v18717_v46 = vld [vmem:[#allocation345_spill] sm:$0xff]  ;;  %v18718_v30 = vld [vmem:[#allocation346_spill] sm:$0xff]  ;;  %v18719_v17 = vld [vmem:[#allocation347_spill] sm:$0xff] }
 0x761   :  { %7379 = vmatpush1.bf16.msra.mxu1 %v18711_v62  ;;  %v7046_v42 = vpop.f32.mrf.mxu0  ;;  %v7087_v2 = vpop.f32.mrf.mxu1  ;;  %7339 = vmatprep.subr.bf16.mxu0 %v18712_v27  ;;  %v18720_v18 = vld [vmem:[#allocation348_spill] sm:$0xff]  ;;  %v18723_v27 = vld [vmem:[#allocation351_spill] sm:$0xff]  ;;  %v18774_v62 = vld [vmem:[#allocation402_spill] sm:$0xff] }
 0x762   :  { %7380 = vmatprep.subr.bf16.mxu1 %v18713_v22  ;;  %v18721_v42 = vld [vmem:[#allocation349_spill] sm:$0xff]  ;;  %v18722_v2 = vld [vmem:[#allocation350_spill] sm:$0xff]  ;;  %v18724_v22 = vld [vmem:[#allocation352_spill] sm:$0xff] }
 0x764   :  { %7340 = vmatpush1.bf16.msra.mxu0 %v18714_v43  ;;  %v18725_v43 = vld [vmem:[#allocation353_spill] sm:$0xff] }
 0x765   :  { %7381 = vmatpush1.bf16.msra.mxu1 %v18715_v16  ;;  %7341 = vmatprep.subr.bf16.mxu0 %v18716_v39  ;;  %v18726_v16 = vld [vmem:[#allocation354_spill] sm:$0xff]  ;;  %v18727_v39 = vld [vmem:[#allocation355_spill] sm:$0xff] }
 0x766   :  { %7382 = vmatprep.subr.bf16.mxu1 %v18717_v46  ;;  %v18728_v46 = vld [vmem:[#allocation356_spill] sm:$0xff] }
 0x768   :  { %7342 = vmatpush1.bf16.msra.mxu0 %v18718_v30  ;;  %v18729_v30 = vld [vmem:[#allocation357_spill] sm:$0xff] }
 0x769   :  { %7383 = vmatpush1.bf16.msra.mxu1 %v18719_v17  ;;  %7343 = vmatprep.subr.bf16.mxu0 %v18720_v18  ;;  %v18730_v17 = vld [vmem:[#allocation358_spill] sm:$0xff]  ;;  %v18731_v18 = vld [vmem:[#allocation359_spill] sm:$0xff] }
 0x76a   :  { %7384 = vmatprep.subr.bf16.mxu1 %v18721_v42  ;;  %v18732_v42 = vld [vmem:[#allocation360_spill] sm:$0xff] }
 0x76c   :  { %7344 = vmatpush1.bf16.msra.mxu0 %v18722_v2  ;;  %v18733_v2 = vld [vmem:[#allocation361_spill] sm:$0xff] }
 0x76d   :  { %7385 = vmatpush1.bf16.msra.mxu1 %v18723_v27  ;;  %7345 = vmatprep.subr.bf16.mxu0 %v18724_v22  ;;  %v18734_v27 = vld [vmem:[#allocation362_spill] sm:$0xff]  ;;  %v18735_v22 = vld [vmem:[#allocation363_spill] sm:$0xff] }
 0x76e   :  { %7386 = vmatprep.subr.bf16.mxu1 %v18725_v43  ;;  %v18736_v43 = vld [vmem:[#allocation364_spill] sm:$0xff] }
 0x770   :  { %7346 = vmatpush1.bf16.msra.mxu0 %v18726_v16  ;;  %v18737_v16 = vld [vmem:[#allocation365_spill] sm:$0xff] }
 0x771   :  { %7387 = vmatpush1.bf16.msra.mxu1 %v18727_v39  ;;  %7347 = vmatprep.subr.bf16.mxu0 %v18728_v46  ;;  %v18738_v39 = vld [vmem:[#allocation366_spill] sm:$0xff]  ;;  %v18739_v46 = vld [vmem:[#allocation367_spill] sm:$0xff] }
 0x772   :  { %7388 = vmatprep.subr.bf16.mxu1 %v18729_v30  ;;  %v18740_v30 = vld [vmem:[#allocation368_spill] sm:$0xff] }
 0x774   :  { %7348 = vmatpush1.bf16.msra.mxu0 %v18730_v17  ;;  %v18741_v17 = vld [vmem:[#allocation369_spill] sm:$0xff] }
 0x775   :  { %7389 = vmatpush1.bf16.msra.mxu1 %v18731_v18  ;;  %7349 = vmatprep.subr.bf16.mxu0 %v18732_v42  ;;  %v18742_v18 = vld [vmem:[#allocation370_spill] sm:$0xff]  ;;  %v18743_v42 = vld [vmem:[#allocation371_spill] sm:$0xff] }
 0x776   :  { %7390 = vmatprep.subr.bf16.mxu1 %v18733_v2  ;;  %v18744_v2 = vld [vmem:[#allocation372_spill] sm:$0xff] }
 0x778   :  { %7350 = vmatpush1.bf16.msra.mxu0 %v18734_v27  ;;  %v18745_v27 = vld [vmem:[#allocation373_spill] sm:$0xff] }
 0x779   :  { %7391 = vmatpush1.bf16.msra.mxu1 %v18735_v22  ;;  %7351 = vmatprep.subr.bf16.mxu0 %v18736_v43  ;;  %v18746_v22 = vld [vmem:[#allocation374_spill] sm:$0xff]  ;;  %v18747_v43 = vld [vmem:[#allocation375_spill] sm:$0xff] }
 0x77a   :  { %7392 = vmatprep.subr.bf16.mxu1 %v18737_v16  ;;  %v18748_v16 = vld [vmem:[#allocation376_spill] sm:$0xff] }
 0x77c   :  { %7352 = vmatpush2.bf16.msra.mxu0 %v18738_v39  ;;  %v18749_v39 = vld [vmem:[#allocation377_spill] sm:$0xff] }
 0x77d   :  { %7393 = vmatpush2.bf16.msra.mxu1 %v18739_v46  ;;  %7353 = vmatprep.subr.bf16.mxu0 %v18740_v30  ;;  %v18750_v46 = vld [vmem:[#allocation378_spill] sm:$0xff]  ;;  %v18751_v30 = vld [vmem:[#allocation379_spill] sm:$0xff] }
 0x77e   :  { %7394 = vmatprep.subr.bf16.mxu1 %v18741_v17  ;;  %v18752_v17 = vld [vmem:[#allocation380_spill] sm:$0xff] }
 0x780   :  { %7354 = vmatpush2.bf16.msra.mxu0 %v18742_v18  ;;  %v18753_v18 = vld [vmem:[#allocation381_spill] sm:$0xff] }
 0x781   :  { %7395 = vmatpush2.bf16.msra.mxu1 %v18743_v42  ;;  %7355 = vmatprep.subr.bf16.mxu0 %v18744_v2  ;;  %v18754_v42 = vld [vmem:[#allocation382_spill] sm:$0xff]  ;;  %v18755_v2 = vld [vmem:[#allocation383_spill] sm:$0xff] }
 0x782   :  { %7396 = vmatprep.subr.bf16.mxu1 %v18745_v27  ;;  %v18756_v27 = vld [vmem:[#allocation384_spill] sm:$0xff] }
 0x784   :  { %7356 = vmatpush2.bf16.msra.mxu0 %v18746_v22  ;;  %v18757_v22 = vld [vmem:[#allocation385_spill] sm:$0xff] }
 0x785   :  { %7397 = vmatpush2.bf16.msra.mxu1 %v18747_v43  ;;  %7357 = vmatprep.subr.bf16.mxu0 %v18748_v16  ;;  %v18758_v43 = vld [vmem:[#allocation386_spill] sm:$0xff]  ;;  %v18759_v16 = vld [vmem:[#allocation387_spill] sm:$0xff] }
 0x786   :  { %7398 = vmatprep.subr.bf16.mxu1 %v18749_v39  ;;  %v18760_v39 = vld [vmem:[#allocation388_spill] sm:$0xff] }
 0x788   :  { %7358 = vmatpush2.bf16.msra.mxu0 %v18750_v46  ;;  %v18761_v46 = vld [vmem:[#allocation389_spill] sm:$0xff] }
 0x789   :  { %7399 = vmatpush2.bf16.msra.mxu1 %v18751_v30  ;;  %7359 = vmatprep.subr.bf16.mxu0 %v18752_v17  ;;  %v18762_v30 = vld [vmem:[#allocation390_spill] sm:$0xff]  ;;  %v18763_v17 = vld [vmem:[#allocation391_spill] sm:$0xff] }
 0x78a   :  { %7400 = vmatprep.subr.bf16.mxu1 %v18753_v18  ;;  %v18764_v18 = vld [vmem:[#allocation392_spill] sm:$0xff] }
 0x78c   :  { %7360 = vmatpush2.bf16.msra.mxu0 %v18754_v42  ;;  %v18765_v42 = vld [vmem:[#allocation393_spill] sm:$0xff] }
 0x78d   :  { %7401 = vmatpush2.bf16.msra.mxu1 %v18755_v2  ;;  %7361 = vmatprep.subr.bf16.mxu0 %v18756_v27  ;;  %v18766_v2 = vld [vmem:[#allocation394_spill] sm:$0xff]  ;;  %v18767_v27 = vld [vmem:[#allocation395_spill] sm:$0xff] }
 0x78e   :  { %7402 = vmatprep.subr.bf16.mxu1 %v18757_v22  ;;  %v18768_v22 = vld [vmem:[#allocation396_spill] sm:$0xff] }
 0x790   :  { %7362 = vmatpush2.bf16.msra.mxu0 %v18758_v43  ;;  %v18769_v43 = vld [vmem:[#allocation397_spill] sm:$0xff] }
 0x791   :  { %7403 = vmatpush2.bf16.msra.mxu1 %v18759_v16  ;;  %7363 = vmatprep.subr.bf16.mxu0 %v18760_v39 }
 0x792   :  { %7404 = vmatprep.subr.bf16.mxu1 %v18761_v46 }
 0x794   :  { %7364 = vmatpush2.bf16.msra.mxu0 %v18762_v30 }
 0x795   :  { %7405 = vmatpush2.bf16.msra.mxu1 %v18763_v17  ;;  %7365 = vmatprep.subr.bf16.mxu0 %v18764_v18  ;;  %v18770_v17 = vld [vmem:[#allocation398_spill] sm:$0xff] }
 0x796   :  { %7406 = vmatprep.subr.bf16.mxu1 %v18765_v42  ;;  %v18771_v42 = vld [vmem:[#allocation399_spill] sm:$0xff] }
 0x798   :  { %7366 = vmatpush2.bf16.msra.mxu0 %v18766_v2 }
 0x799   :  { %7407 = vmatpush2.bf16.msra.mxu1 %v18767_v27  ;;  %7417 = vmatprep.subr.bf16.mxu0 %v18768_v22 }
 0x79a   :  { %7458 = vmatprep.subr.bf16.mxu1 %v18769_v43 }
 0x79b   :  { %v7123_v16 = vpop.f32.mrf.mxu0  ;;  %v7164_v39 = vpop.f32.mrf.mxu1  ;;  %7368 = vmatmul.mubr.bf16.vlgmr.msra.gmra.mxu0 %v14953_v26 }
 0x79c   :  { %v7124_v30 = vadd.f32 %v7123_v16, %v15181_v58  ;;  %7409 = vmatmul.mubr.bf16.vlgmr.msra.gmra.mxu1 %v14955_v14  ;;  %7418 = vmatpush1.bf16.msra.mxu0 %v18770_v17  ;;  %v18772_v16 = vld [vmem:[#allocation400_spill] sm:$0xff]  ;;  %v18773_v17 = vld [vmem:[#allocation401_spill] sm:$0xff] }
 0x79d   :  { %7449 = vmatprep.mubr.bf16.mxu0 %v14991_v29  ;;  %7459 = vmatpush1.bf16.msra.mxu1 %v18771_v42  ;;  %v7125_v2 = vpop.f32.mrf.mxu0  ;;  %v7166_v27 = vpop.f32.mrf.mxu1 }
 0x79e   :  { %v15255_v18 = vadd.f32 %v7164_v39, %v7124_v30  ;;  %7490 = vmatprep.mubr.bf16.mxu1 %v14993_v44  ;;  %v7126_v43 = vadd.f32 %v7125_v2, %v15187_v40  ;;  %7419 = vmatprep.subr.bf16.mxu0 %v14151_v48  ;;  %v18775_v39 = vld [vmem:[#allocation403_spill] sm:$0xff]  ;;  %v18776_v30 = vld [vmem:[#allocation404_spill] sm:$0xff]  ;;  %v18778_v40 = vld [vmem:[#allocation406_spill] sm:$0xff] }
 0x79f   :  { %v7127_v22 = vpop.f32.mrf.mxu0  ;;  %v7168_v58 = vpop.f32.mrf.mxu1  ;;  %7460 = vmatprep.subr.bf16.mxu1 %v18772_v16  ;;  %v18780_v2 = vld [vmem:[#allocation408_spill] sm:$0xff] }
 0x7a0   :  { %v15261_v46 = vadd.f32 %v7166_v27, %v7126_v43  ;;  %7420 = vmatpush1.bf16.msra.mxu0 %v18773_v17  ;;  %v18779_v22 = vld [vmem:[#allocation407_spill] sm:$0xff]  ;;  %v18781_v43 = vld [vmem:[#allocation409_spill] sm:$0xff]  ;;  %v18782_v27 = vld [vmem:[#allocation410_spill] sm:$0xff] }
 0x7a1   :  { %7461 = vmatpush1.bf16.msra.mxu1 %v18774_v62  ;;  %v7128_v42 = vpop.f32.mrf.mxu0  ;;  %v7169_v49 = vpop.f32.mrf.mxu1  ;;  %7421 = vmatprep.subr.bf16.mxu0 %v18775_v39  ;;  %v18783_v58 = vld [vmem:[#allocation411_spill] sm:$0xff]  ;;  %v18786_v39 = vld [vmem:[#allocation414_spill] sm:$0xff] }
 0x7a2   :  { %7462 = vmatprep.subr.bf16.mxu1 %v18776_v30  ;;  %v18784_v42 = vld [vmem:[#allocation412_spill] sm:$0xff]  ;;  %v18785_v49 = vld [vmem:[#allocation413_spill] sm:$0xff]  ;;  %v18787_v30 = vld [vmem:[#allocation415_spill] sm:$0xff] }
 0x7a3   :  { %v18838_v17 = vld [vmem:[#allocation467_spill] sm:$0xff] }
 0x7a4   :  { %7422 = vmatpush1.bf16.msra.mxu0 %v18777_v7  ;;  %v18788_v7 = vld [vmem:[#allocation416_spill] sm:$0xff] }
 0x7a5   :  { %7463 = vmatpush1.bf16.msra.mxu1 %v18778_v40  ;;  %7423 = vmatprep.subr.bf16.mxu0 %v18779_v22  ;;  %v18789_v40 = vld [vmem:[#allocation417_spill] sm:$0xff]  ;;  %v18790_v22 = vld [vmem:[#allocation418_spill] sm:$0xff] }
 0x7a6   :  { %7464 = vmatprep.subr.bf16.mxu1 %v18780_v2  ;;  %v18791_v2 = vld [vmem:[#allocation419_spill] sm:$0xff] }
 0x7a8   :  { %7424 = vmatpush1.bf16.msra.mxu0 %v18781_v43  ;;  %v18792_v43 = vld [vmem:[#allocation420_spill] sm:$0xff] }
 0x7a9   :  { %7465 = vmatpush1.bf16.msra.mxu1 %v18782_v27  ;;  %7425 = vmatprep.subr.bf16.mxu0 %v18783_v58  ;;  %v18793_v27 = vld [vmem:[#allocation421_spill] sm:$0xff]  ;;  %v18794_v58 = vld [vmem:[#allocation422_spill] sm:$0xff] }
 0x7aa   :  { %7466 = vmatprep.subr.bf16.mxu1 %v18784_v42  ;;  %v18795_v42 = vld [vmem:[#allocation423_spill] sm:$0xff] }
 0x7ac   :  { %7426 = vmatpush1.bf16.msra.mxu0 %v18785_v49  ;;  %v18796_v49 = vld [vmem:[#allocation424_spill] sm:$0xff] }
 0x7ad   :  { %7467 = vmatpush1.bf16.msra.mxu1 %v18786_v39  ;;  %7427 = vmatprep.subr.bf16.mxu0 %v18787_v30  ;;  %v18797_v39 = vld [vmem:[#allocation425_spill] sm:$0xff]  ;;  %v18798_v30 = vld [vmem:[#allocation426_spill] sm:$0xff] }
 0x7ae   :  { %7468 = vmatprep.subr.bf16.mxu1 %v18788_v7  ;;  %v18799_v7 = vld [vmem:[#allocation427_spill] sm:$0xff] }
 0x7b0   :  { %7428 = vmatpush1.bf16.msra.mxu0 %v18789_v40  ;;  %v18800_v40 = vld [vmem:[#allocation428_spill] sm:$0xff] }
 0x7b1   :  { %7469 = vmatpush1.bf16.msra.mxu1 %v18790_v22  ;;  %7429 = vmatprep.subr.bf16.mxu0 %v18791_v2  ;;  %v18801_v22 = vld [vmem:[#allocation429_spill] sm:$0xff]  ;;  %v18802_v2 = vld [vmem:[#allocation430_spill] sm:$0xff] }
 0x7b2   :  { %7470 = vmatprep.subr.bf16.mxu1 %v18792_v43  ;;  %v18803_v43 = vld [vmem:[#allocation431_spill] sm:$0xff] }
 0x7b4   :  { %7430 = vmatpush1.bf16.msra.mxu0 %v18793_v27  ;;  %v18804_v27 = vld [vmem:[#allocation432_spill] sm:$0xff] }
 0x7b5   :  { %7471 = vmatpush1.bf16.msra.mxu1 %v18794_v58  ;;  %7431 = vmatprep.subr.bf16.mxu0 %v18795_v42  ;;  %v18805_v58 = vld [vmem:[#allocation433_spill] sm:$0xff]  ;;  %v18806_v42 = vld [vmem:[#allocation434_spill] sm:$0xff] }
 0x7b6   :  { %7472 = vmatprep.subr.bf16.mxu1 %v18796_v49  ;;  %v18807_v49 = vld [vmem:[#allocation435_spill] sm:$0xff] }
 0x7b8   :  { %7432 = vmatpush1.bf16.msra.mxu0 %v18797_v39  ;;  %v18808_v39 = vld [vmem:[#allocation436_spill] sm:$0xff] }
 0x7b9   :  { %7473 = vmatpush1.bf16.msra.mxu1 %v18798_v30  ;;  %7433 = vmatprep.subr.bf16.mxu0 %v18799_v7  ;;  %v18809_v30 = vld [vmem:[#allocation437_spill] sm:$0xff]  ;;  %v18810_v7 = vld [vmem:[#allocation438_spill] sm:$0xff] }
 0x7ba   :  { %7474 = vmatprep.subr.bf16.mxu1 %v18800_v40  ;;  %v18811_v40 = vld [vmem:[#allocation439_spill] sm:$0xff] }
 0x7bc   :  { %7434 = vmatpush2.bf16.msra.mxu0 %v18801_v22  ;;  %v18812_v22 = vld [vmem:[#allocation440_spill] sm:$0xff] }
 0x7bd   :  { %7475 = vmatpush2.bf16.msra.mxu1 %v18802_v2  ;;  %7435 = vmatprep.subr.bf16.mxu0 %v18803_v43  ;;  %v18813_v2 = vld [vmem:[#allocation441_spill] sm:$0xff]  ;;  %v18814_v43 = vld [vmem:[#allocation442_spill] sm:$0xff] }
 0x7be   :  { %7476 = vmatprep.subr.bf16.mxu1 %v18804_v27  ;;  %v18815_v27 = vld [vmem:[#allocation443_spill] sm:$0xff] }
 0x7c0   :  { %7436 = vmatpush2.bf16.msra.mxu0 %v18805_v58  ;;  %v18816_v58 = vld [vmem:[#allocation444_spill] sm:$0xff] }
 0x7c1   :  { %7477 = vmatpush2.bf16.msra.mxu1 %v18806_v42  ;;  %7437 = vmatprep.subr.bf16.mxu0 %v18807_v49  ;;  %v18817_v42 = vld [vmem:[#allocation445_spill] sm:$0xff]  ;;  %v18818_v49 = vld [vmem:[#allocation446_spill] sm:$0xff] }
 0x7c2   :  { %7478 = vmatprep.subr.bf16.mxu1 %v18808_v39  ;;  %v18819_v39 = vld [vmem:[#allocation447_spill] sm:$0xff] }
 0x7c4   :  { %7438 = vmatpush2.bf16.msra.mxu0 %v18809_v30  ;;  %v18820_v30 = vld [vmem:[#allocation448_spill] sm:$0xff] }
 0x7c5   :  { %7479 = vmatpush2.bf16.msra.mxu1 %v18810_v7  ;;  %7439 = vmatprep.subr.bf16.mxu0 %v18811_v40  ;;  %v18821_v7 = vld [vmem:[#allocation449_spill] sm:$0xff]  ;;  %v18822_v40 = vld [vmem:[#allocation450_spill] sm:$0xff] }
 0x7c6   :  { %7480 = vmatprep.subr.bf16.mxu1 %v18812_v22  ;;  %v18823_v22 = vld [vmem:[#allocation451_spill] sm:$0xff] }
 0x7c8   :  { %7440 = vmatpush2.bf16.msra.mxu0 %v18813_v2  ;;  %v18824_v2 = vld [vmem:[#allocation452_spill] sm:$0xff] }
 0x7c9   :  { %7481 = vmatpush2.bf16.msra.mxu1 %v18814_v43  ;;  %7441 = vmatprep.subr.bf16.mxu0 %v18815_v27  ;;  %v18825_v43 = vld [vmem:[#allocation453_spill] sm:$0xff]  ;;  %v18826_v27 = vld [vmem:[#allocation454_spill] sm:$0xff] }
 0x7ca   :  { %7482 = vmatprep.subr.bf16.mxu1 %v18816_v58  ;;  %v18827_v58 = vld [vmem:[#allocation455_spill] sm:$0xff] }
 0x7cc   :  { %7442 = vmatpush2.bf16.msra.mxu0 %v18817_v42  ;;  %v18828_v42 = vld [vmem:[#allocation456_spill] sm:$0xff] }
 0x7cd   :  { %7483 = vmatpush2.bf16.msra.mxu1 %v18818_v49  ;;  %7443 = vmatprep.subr.bf16.mxu0 %v18819_v39  ;;  %v18829_v49 = vld [vmem:[#allocation457_spill] sm:$0xff]  ;;  %v18830_v39 = vld [vmem:[#allocation458_spill] sm:$0xff] }
 0x7ce   :  { %7484 = vmatprep.subr.bf16.mxu1 %v18820_v30  ;;  %v18831_v30 = vld [vmem:[#allocation459_spill] sm:$0xff] }
 0x7d0   :  { %7444 = vmatpush2.bf16.msra.mxu0 %v18821_v7  ;;  %v18832_v7 = vld [vmem:[#allocation460_spill] sm:$0xff] }
 0x7d1   :  { %7485 = vmatpush2.bf16.msra.mxu1 %v18822_v40  ;;  %7445 = vmatprep.subr.bf16.mxu0 %v18823_v22 }
 0x7d2   :  { %7486 = vmatprep.subr.bf16.mxu1 %v18824_v2  ;;  %v18833_v2 = vld [vmem:[#allocation461_spill] sm:$0xff] }
 0x7d4   :  { %7446 = vmatpush2.bf16.msra.mxu0 %v18825_v43 }
 0x7d5   :  { %7487 = vmatpush2.bf16.msra.mxu1 %v18826_v27  ;;  %7447 = vmatprep.subr.bf16.mxu0 %v18827_v58  ;;  %v18834_v27 = vld [vmem:[#allocation462_spill] sm:$0xff]  ;;  %v18836_v58 = vld [vmem:[#allocation465_spill] sm:$0xff] }
 0x7d6   :  { %7488 = vmatprep.subr.bf16.mxu1 %v18828_v42  ;;  %v18835_v42 = vld [vmem:[#allocation463_spill] sm:$0xff] }
 0x7d8   :  { %7448 = vmatpush2.bf16.msra.mxu0 %v18829_v49 }
 0x7d9   :  { %7489 = vmatpush2.bf16.msra.mxu1 %v18830_v39  ;;  %7499 = vmatprep.subr.bf16.mxu0 %v18831_v30 }
 0x7da   :  { %7540 = vmatprep.subr.bf16.mxu1 %v18832_v7 }
 0x7db   :  { %v7205_v40 = vpop.f32.mrf.mxu0  ;;  %7450 = vmatmul.mubr.bf16.vlgmr.msra.gmra.mxu0 %v15033_v23 }
 0x7dc   :  { %v7206_v22 = vadd.f32 %v7205_v40, %v18833_v2  ;;  %v7246_v43 = vpop.f32.mrf.mxu1  ;;  %7491 = vmatmul.mubr.bf16.vlgmr.msra.gmra.mxu1 %v15035_v45  ;;  %7500 = vmatpush1.bf16.msra.mxu0 %v18834_v27  ;;  %v18837_v2 = vld [vmem:[#allocation466_spill] sm:$0xff] }
 0x7dd   :  { %7531 = vmatprep.mubr.bf16.mxu0 %v14949_v9  ;;  %7541 = vmatpush1.bf16.msra.mxu1 %v18835_v42  ;;  %v7207_v49 = vpop.f32.mrf.mxu0 }
 0x7de   :  { %v15329_v39 = vadd.f32 %v7246_v43, %v7206_v22  ;;  %7572 = vmatprep.mubr.bf16.mxu1 %v14951_v63  ;;  %v7208_v7 = vadd.f32 %v7207_v49, %v14361_v21  ;;  %v7248_v30 = vpop.f32.mrf.mxu1  ;;  %7501 = vmatprep.subr.bf16.mxu0 %v18836_v58  ;;  %v18839_v22 = vld [vmem:[#allocation468_spill] sm:$0xff]  ;;  %v18840_v63 = vld [vmem:[#allocation469_spill] sm:$0xff]  ;;  %v18841_v49 = vld [vmem:[#allocation470_spill] sm:$0xff] }
 0x7df   :  { %v7209_v40 = vpop.f32.mrf.mxu0  ;;  %7542 = vmatprep.subr.bf16.mxu1 %v18837_v2  ;;  %v18842_v21 = vld [vmem:[#allocation471_spill] sm:$0xff]  ;;  %v18844_v2 = vld [vmem:[#allocation473_spill] sm:$0xff] }
 0x7e0   :  { %v15335_v62 = vadd.f32 %v7248_v30, %v7208_v7  ;;  %v7250_v27 = vpop.f32.mrf.mxu1  ;;  %7502 = vmatpush1.bf16.msra.mxu0 %v18838_v17  ;;  %v18843_v40 = vld [vmem:[#allocation472_spill] sm:$0xff]  ;;  %v18845_v7 = vld [vmem:[#allocation474_spill] sm:$0xff]  ;;  %v18846_v30 = vld [vmem:[#allocation475_spill] sm:$0xff] }
 0x7e1   :  { %7543 = vmatpush1.bf16.msra.mxu1 %v14375_v59  ;;  %v7210_v9 = vpop.f32.mrf.mxu0  ;;  %7503 = vmatprep.subr.bf16.mxu0 %v18839_v22  ;;  %v18847_v27 = vld [vmem:[#allocation476_spill] sm:$0xff]  ;;  %v18849_v22 = vld [vmem:[#allocation478_spill] sm:$0xff] }
 0x7e2   :  { %v7251_v43 = vpop.f32.mrf.mxu1  ;;  %7544 = vmatprep.subr.bf16.mxu1 %v18840_v63  ;;  %v18848_v9 = vld [vmem:[#allocation477_spill] sm:$0xff]  ;;  %v18851_v63 = vld [vmem:[#allocation480_spill] sm:$0xff] }
 0x7e3   :  { %v18850_v43 = vld [vmem:[#allocation479_spill] sm:$0xff] }
 0x7e4   :  { %7504 = vmatpush1.bf16.msra.mxu0 %v18841_v49  ;;  %v18852_v49 = vld [vmem:[#allocation481_spill] sm:$0xff] }
 0x7e5   :  { %7545 = vmatpush1.bf16.msra.mxu1 %v18842_v21  ;;  %7505 = vmatprep.subr.bf16.mxu0 %v18843_v40  ;;  %v18853_v21 = vld [vmem:[#allocation482_spill] sm:$0xff]  ;;  %v18854_v40 = vld [vmem:[#allocation483_spill] sm:$0xff] }
 0x7e6   :  { %7546 = vmatprep.subr.bf16.mxu1 %v18844_v2  ;;  %v18855_v2 = vld [vmem:[#allocation484_spill] sm:$0xff] }
 0x7e8   :  { %7506 = vmatpush1.bf16.msra.mxu0 %v18845_v7  ;;  %v18856_v7 = vld [vmem:[#allocation485_spill] sm:$0xff] }
 0x7e9   :  { %7547 = vmatpush1.bf16.msra.mxu1 %v18846_v30  ;;  %7507 = vmatprep.subr.bf16.mxu0 %v18847_v27  ;;  %v18857_v30 = vld [vmem:[#allocation486_spill] sm:$0xff]  ;;  %v18858_v27 = vld [vmem:[#allocation487_spill] sm:$0xff] }
 0x7ea   :  { %7548 = vmatprep.subr.bf16.mxu1 %v18848_v9  ;;  %v18859_v9 = vld [vmem:[#allocation488_spill] sm:$0xff] }
 0x7ec   :  { %7508 = vmatpush1.bf16.msra.mxu0 %v18849_v22  ;;  %v18860_v22 = vld [vmem:[#allocation489_spill] sm:$0xff] }
 0x7ed   :  { %7549 = vmatpush1.bf16.msra.mxu1 %v18850_v43  ;;  %7509 = vmatprep.subr.bf16.mxu0 %v18851_v63  ;;  %v18861_v43 = vld [vmem:[#allocation490_spill] sm:$0xff]  ;;  %v18862_v63 = vld [vmem:[#allocation491_spill] sm:$0xff] }
 0x7ee   :  { %7550 = vmatprep.subr.bf16.mxu1 %v18852_v49  ;;  %v18863_v49 = vld [vmem:[#allocation492_spill] sm:$0xff] }
 0x7f0   :  { %7510 = vmatpush1.bf16.msra.mxu0 %v18853_v21  ;;  %v18864_v21 = vld [vmem:[#allocation493_spill] sm:$0xff] }
 0x7f1   :  { %7551 = vmatpush1.bf16.msra.mxu1 %v18854_v40  ;;  %7511 = vmatprep.subr.bf16.mxu0 %v18855_v2  ;;  %v18865_v40 = vld [vmem:[#allocation494_spill] sm:$0xff]  ;;  %v18866_v2 = vld [vmem:[#allocation495_spill] sm:$0xff] }
 0x7f2   :  { %7552 = vmatprep.subr.bf16.mxu1 %v18856_v7  ;;  %v18867_v7 = vld [vmem:[#allocation496_spill] sm:$0xff] }
 0x7f4   :  { %7512 = vmatpush1.bf16.msra.mxu0 %v18857_v30  ;;  %v18868_v30 = vld [vmem:[#allocation497_spill] sm:$0xff] }
 0x7f5   :  { %7553 = vmatpush1.bf16.msra.mxu1 %v18858_v27  ;;  %7513 = vmatprep.subr.bf16.mxu0 %v18859_v9  ;;  %v18869_v27 = vld [vmem:[#allocation498_spill] sm:$0xff]  ;;  %v18870_v9 = vld [vmem:[#allocation499_spill] sm:$0xff] }
 0x7f6   :  { %7554 = vmatprep.subr.bf16.mxu1 %v18860_v22  ;;  %v18871_v22 = vld [vmem:[#allocation500_spill] sm:$0xff] }
 0x7f8   :  { %7514 = vmatpush1.bf16.msra.mxu0 %v18861_v43  ;;  %v18872_v43 = vld [vmem:[#allocation501_spill] sm:$0xff] }
 0x7f9   :  { %7555 = vmatpush1.bf16.msra.mxu1 %v18862_v63  ;;  %7515 = vmatprep.subr.bf16.mxu0 %v18863_v49  ;;  %v18873_v63 = vld [vmem:[#allocation502_spill] sm:$0xff]  ;;  %v18874_v49 = vld [vmem:[#allocation503_spill] sm:$0xff] }
 0x7fa   :  { %7556 = vmatprep.subr.bf16.mxu1 %v18864_v21  ;;  %v18875_v21 = vld [vmem:[#allocation504_spill] sm:$0xff] }
 0x7fc   :  { %7516 = vmatpush2.bf16.msra.mxu0 %v18865_v40  ;;  %v18876_v40 = vld [vmem:[#allocation505_spill] sm:$0xff] }
 0x7fd   :  { %7557 = vmatpush2.bf16.msra.mxu1 %v18866_v2  ;;  %7517 = vmatprep.subr.bf16.mxu0 %v18867_v7  ;;  %v18877_v2 = vld [vmem:[#allocation506_spill] sm:$0xff]  ;;  %v18878_v7 = vld [vmem:[#allocation507_spill] sm:$0xff] }
 0x7fe   :  { %7558 = vmatprep.subr.bf16.mxu1 %v18868_v30  ;;  %v18879_v30 = vld [vmem:[#allocation508_spill] sm:$0xff] }
 0x800   :  { %7518 = vmatpush2.bf16.msra.mxu0 %v18869_v27  ;;  %v18880_v27 = vld [vmem:[#allocation509_spill] sm:$0xff] }
 0x801   :  { %7559 = vmatpush2.bf16.msra.mxu1 %v18870_v9  ;;  %7519 = vmatprep.subr.bf16.mxu0 %v18871_v22  ;;  %v18881_v9 = vld [vmem:[#allocation510_spill] sm:$0xff]  ;;  %v18882_v22 = vld [vmem:[#allocation511_spill] sm:$0xff] }
 0x802   :  { %7560 = vmatprep.subr.bf16.mxu1 %v18872_v43  ;;  %v18883_v43 = vld [vmem:[#allocation512_spill] sm:$0xff] }
 0x804   :  { %7520 = vmatpush2.bf16.msra.mxu0 %v18873_v63  ;;  %v18884_v63 = vld [vmem:[#allocation513_spill] sm:$0xff] }
 0x805   :  { %7561 = vmatpush2.bf16.msra.mxu1 %v18874_v49  ;;  %7521 = vmatprep.subr.bf16.mxu0 %v18875_v21  ;;  %v18885_v21 = vld [vmem:[#allocation515_spill] sm:$0xff] }
 0x806   :  { %7562 = vmatprep.subr.bf16.mxu1 %v18876_v40  ;;  %v18886_v40 = vld [vmem:[#allocation516_spill] sm:$0xff] }
 0x808   :  { %7522 = vmatpush2.bf16.msra.mxu0 %v18877_v2  ;;  %v18887_v2 = vld [vmem:[#allocation517_spill] sm:$0xff] }
 0x809   :  { %7563 = vmatpush2.bf16.msra.mxu1 %v18878_v7  ;;  %7523 = vmatprep.subr.bf16.mxu0 %v18879_v30  ;;  %v18888_v7 = vld [vmem:[#allocation518_spill] sm:$0xff]  ;;  %v18889_v30 = vld [vmem:[#allocation519_spill] sm:$0xff] }
 0x80a   :  { %7564 = vmatprep.subr.bf16.mxu1 %v18880_v27  ;;  %v18890_v27 = vld [vmem:[#allocation520_spill] sm:$0xff] }
 0x80c   :  { %7524 = vmatpush2.bf16.msra.mxu0 %v18881_v9  ;;  %v18891_v9 = vld [vmem:[#allocation521_spill] sm:$0xff] }
 0x80d   :  { %7565 = vmatpush2.bf16.msra.mxu1 %v18882_v22  ;;  %7525 = vmatprep.subr.bf16.mxu0 %v18883_v43  ;;  %v18892_v22 = vld [vmem:[#allocation522_spill] sm:$0xff]  ;;  %v18893_v43 = vld [vmem:[#allocation523_spill] sm:$0xff] }
 0x80e   :  { %7566 = vmatprep.subr.bf16.mxu1 %v18884_v63  ;;  %v18894_v63 = vld [vmem:[#allocation524_spill] sm:$0xff] }
 0x810   :  { %7526 = vmatpush2.bf16.msra.mxu0 %v14522_v35  ;;  %v18895_v35 = vld [vmem:[#allocation525_spill] sm:$0xff] }
 0x811   :  { %7567 = vmatpush2.bf16.msra.mxu1 %v18885_v21  ;;  %7527 = vmatprep.subr.bf16.mxu0 %v18886_v40 }
 0x812   :  { %7568 = vmatprep.subr.bf16.mxu1 %v18887_v2 }
 0x814   :  { %7528 = vmatpush2.bf16.msra.mxu0 %v18888_v7 }
 0x815   :  { %7569 = vmatpush2.bf16.msra.mxu1 %v18889_v30  ;;  %7529 = vmatprep.subr.bf16.mxu0 %v18890_v27  ;;  %v18896_v30 = vld [vmem:[#allocation526_spill] sm:$0xff]  ;;  %v18905_v27 = vld [vmem:[#allocation535_spill] sm:$0xff] }
 0x816   :  { %7570 = vmatprep.subr.bf16.mxu1 %v18891_v9  ;;  %v18897_v9 = vld [vmem:[#allocation527_spill] sm:$0xff] }
 0x818   :  { %7530 = vmatpush2.bf16.msra.mxu0 %v18892_v22 }
 0x819   :  { %7571 = vmatpush2.bf16.msra.mxu1 %v18893_v43  ;;  %7581 = vmatprep.subr.bf16.mxu0 %v18894_v63  ;;  %v18898_v63 = vld [vmem:[#allocation528_spill] sm:$0xff] }
 0x81a   :  { %7622 = vmatprep.subr.bf16.mxu1 %v18895_v35 }
 0x81b   :  { %v7287_v21 = vpop.f32.mrf.mxu0  ;;  %7532 = vmatmul.mubr.bf16.vlgmr.msra.gmra.mxu0 %v14953_v26 }
 0x81c   :  { %v7288_v2 = vadd.f32 %v7287_v21, %v15329_v39  ;;  %v7328_v7 = vpop.f32.mrf.mxu1  ;;  %7573 = vmatmul.mubr.bf16.vlgmr.msra.gmra.mxu1 %v14955_v14  ;;  %7582 = vmatpush1.bf16.msra.mxu0 %v18896_v30  ;;  %v18899_v21 = vld [vmem:[#allocation529_spill] sm:$0xff]  ;;  %v18900_v14 = vld [vmem:[#allocation530_spill] sm:$0xff]  ;;  %v18901_v30 = vld [vmem:[#allocation531_spill] sm:$0xff] }
 0x81d   :  { %7613 = vmatprep.mubr.bf16.mxu0 %v14991_v29  ;;  %7623 = vmatpush1.bf16.msra.mxu1 %v18897_v9  ;;  %v7289_v22 = vpop.f32.mrf.mxu0 }
 0x81e   :  { %v15403_v43 = vadd.f32 %v7328_v7, %v7288_v2  ;;  %7654 = vmatprep.mubr.bf16.mxu1 %v14993_v44  ;;  %v15406_v35 = vpop.f32.mrf.mxu1  ;;  %7583 = vmatprep.subr.bf16.mxu0 %v18898_v63  ;;  %v18902_v2 = vld [vmem:[#allocation532_spill] sm:$0xff]  ;;  %v18903_v7 = vld [vmem:[#allocation533_spill] sm:$0xff]  ;;  %v18904_v44 = vld [vmem:[#allocation534_spill] sm:$0xff] }
 0x81f   :  { %v7291_v26 = vpop.f32.mrf.mxu0  ;;  %7624 = vmatprep.subr.bf16.mxu1 %v18899_v21  ;;  %v18907_v21 = vld [vmem:[#allocation537_spill] sm:$0xff] }
 0x820   :  { %v7332_v39 = vpop.f32.mrf.mxu1  ;;  %7584 = vmatpush1.bf16.msra.mxu0 %v18900_v14  ;;  %v18906_v26 = vld [vmem:[#allocation536_spill] sm:$0xff]  ;;  %v18909_v14 = vld [vmem:[#allocation539_spill] sm:$0xff] }
 0x821   :  { %7625 = vmatpush1.bf16.msra.mxu1 %v14579_v1  ;;  %v7292_v29 = vpop.f32.mrf.mxu0  ;;  %7585 = vmatprep.subr.bf16.mxu0 %v18901_v30  ;;  %v18908_v39 = vld [vmem:[#allocation538_spill] sm:$0xff]  ;;  %v18911_v30 = vld [vmem:[#allocation541_spill] sm:$0xff] }
 0x822   :  { %v7333_v9 = vpop.f32.mrf.mxu1  ;;  %7626 = vmatprep.subr.bf16.mxu1 %v18902_v2  ;;  %v18910_v29 = vld [vmem:[#allocation540_spill] sm:$0xff]  ;;  %v18913_v2 = vld [vmem:[#allocation543_spill] sm:$0xff] }
 0x823   :  { %v18912_v9 = vld [vmem:[#allocation542_spill] sm:$0xff] }
 0x824   :  { %7586 = vmatpush1.bf16.msra.mxu0 %v18903_v7  ;;  %v18914_v7 = vld [vmem:[#allocation544_spill] sm:$0xff] }
 0x825   :  { %7627 = vmatpush1.bf16.msra.mxu1 %v18904_v44  ;;  %7587 = vmatprep.subr.bf16.mxu0 %v18905_v27  ;;  %v18915_v44 = vld [vmem:[#allocation545_spill] sm:$0xff]  ;;  %v18916_v27 = vld [vmem:[#allocation546_spill] sm:$0xff] }
 0x826   :  { %7628 = vmatprep.subr.bf16.mxu1 %v18906_v26  ;;  %v18917_v26 = vld [vmem:[#allocation547_spill] sm:$0xff] }
 0x828   :  { %7588 = vmatpush1.bf16.msra.mxu0 %v18907_v21  ;;  %v18918_v21 = vld [vmem:[#allocation548_spill] sm:$0xff] }
 0x829   :  { %7629 = vmatpush1.bf16.msra.mxu1 %v18908_v39  ;;  %7589 = vmatprep.subr.bf16.mxu0 %v18909_v14  ;;  %v18919_v39 = vld [vmem:[#allocation549_spill] sm:$0xff]  ;;  %v18920_v14 = vld [vmem:[#allocation550_spill] sm:$0xff] }
 0x82a   :  { %7630 = vmatprep.subr.bf16.mxu1 %v18910_v29  ;;  %v18921_v29 = vld [vmem:[#allocation551_spill] sm:$0xff] }
 0x82c   :  { %7590 = vmatpush1.bf16.msra.mxu0 %v18911_v30  ;;  %v18922_v30 = vld [vmem:[#allocation552_spill] sm:$0xff] }
 0x82d   :  { %7631 = vmatpush1.bf16.msra.mxu1 %v18912_v9  ;;  %7591 = vmatprep.subr.bf16.mxu0 %v18913_v2  ;;  %v18923_v9 = vld [vmem:[#allocation553_spill] sm:$0xff]  ;;  %v18924_v2 = vld [vmem:[#allocation554_spill] sm:$0xff] }
 0x82e   :  { %7632 = vmatprep.subr.bf16.mxu1 %v18914_v7  ;;  %v18925_v7 = vld [vmem:[#allocation555_spill] sm:$0xff] }
 0x830   :  { %7592 = vmatpush1.bf16.msra.mxu0 %v18915_v44  ;;  %v18926_v44 = vld [vmem:[#allocation556_spill] sm:$0xff] }
 0x831   :  { %7633 = vmatpush1.bf16.msra.mxu1 %v18916_v27  ;;  %7593 = vmatprep.subr.bf16.mxu0 %v18917_v26  ;;  %v18927_v27 = vld [vmem:[#allocation557_spill] sm:$0xff]  ;;  %v18928_v26 = vld [vmem:[#allocation558_spill] sm:$0xff] }
 0x832   :  { %7634 = vmatprep.subr.bf16.mxu1 %v18918_v21  ;;  %v18929_v21 = vld [vmem:[#allocation559_spill] sm:$0xff] }
 0x834   :  { %7594 = vmatpush1.bf16.msra.mxu0 %v18919_v39  ;;  %v18930_v39 = vld [vmem:[#allocation560_spill] sm:$0xff] }
 0x835   :  { %7635 = vmatpush1.bf16.msra.mxu1 %v18920_v14  ;;  %7595 = vmatprep.subr.bf16.mxu0 %v18921_v29  ;;  %v18931_v14 = vld [vmem:[#allocation561_spill] sm:$0xff]  ;;  %v18932_v29 = vld [vmem:[#allocation562_spill] sm:$0xff] }
 0x836   :  { %7636 = vmatprep.subr.bf16.mxu1 %v18922_v30  ;;  %v18933_v30 = vld [vmem:[#allocation563_spill] sm:$0xff] }
 0x838   :  { %7596 = vmatpush1.bf16.msra.mxu0 %v18923_v9  ;;  %v18934_v9 = vld [vmem:[#allocation564_spill] sm:$0xff] }
 0x839   :  { %7637 = vmatpush1.bf16.msra.mxu1 %v18924_v2  ;;  %7597 = vmatprep.subr.bf16.mxu0 %v18925_v7  ;;  %v18935_v2 = vld [vmem:[#allocation565_spill] sm:$0xff]  ;;  %v18936_v7 = vld [vmem:[#allocation566_spill] sm:$0xff] }
 0x83a   :  { %7638 = vmatprep.subr.bf16.mxu1 %v18926_v44  ;;  %v18937_v44 = vld [vmem:[#allocation567_spill] sm:$0xff] }
 0x83c   :  { %7598 = vmatpush2.bf16.msra.mxu0 %v18927_v27  ;;  %v18938_v27 = vld [vmem:[#allocation568_spill] sm:$0xff] }
 0x83d   :  { %7639 = vmatpush2.bf16.msra.mxu1 %v18928_v26  ;;  %7599 = vmatprep.subr.bf16.mxu0 %v18929_v21  ;;  %v18939_v26 = vld [vmem:[#allocation569_spill] sm:$0xff]  ;;  %v18940_v21 = vld [vmem:[#allocation570_spill] sm:$0xff] }
 0x83e   :  { %7640 = vmatprep.subr.bf16.mxu1 %v18930_v39  ;;  %v18941_v39 = vld [vmem:[#allocation571_spill] sm:$0xff] }
 0x840   :  { %7600 = vmatpush2.bf16.msra.mxu0 %v18931_v14  ;;  %v18942_v14 = vld [vmem:[#allocation572_spill] sm:$0xff] }
 0x841   :  { %7641 = vmatpush2.bf16.msra.mxu1 %v18932_v29  ;;  %7601 = vmatprep.subr.bf16.mxu0 %v18933_v30 }
 0x842   :  { %7642 = vmatprep.subr.bf16.mxu1 %v18934_v9 }
 0x844   :  { %7602 = vmatpush2.bf16.msra.mxu0 %v18935_v2  ;;  %v18943_v2 = vld [vmem:[#allocation576_spill] sm:$0xff] }
 0x845   :  { %7643 = vmatpush2.bf16.msra.mxu1 %v18936_v7  ;;  %7603 = vmatprep.subr.bf16.mxu0 %v18937_v44  ;;  %v18944_v7 = vld [vmem:[#allocation577_spill] sm:$0xff] }
 0x846   :  { %7644 = vmatprep.subr.bf16.mxu1 %v18938_v27 }
 0x848   :  { %7604 = vmatpush2.bf16.msra.mxu0 %v18939_v26  ;;  %v18945_v26 = vld [vmem:[#allocation580_spill] sm:$0xff] }
 0x849   :  { %7645 = vmatpush2.bf16.msra.mxu1 %v18940_v21  ;;  %7605 = vmatprep.subr.bf16.mxu0 %v18941_v39  ;;  %v7290_v39 = vadd.f32 %v7289_v22, %v15335_v62  ;;  %v7664_v62 = vpack.c.bf16 %v15261_v46, %v15261_v46  ;;  %v10537_v46 = vld [vmem:[#allocation14 + $0x70] sm:$0xff]  }
 0x84a   :  { %7646 = vmatprep.subr.bf16.mxu1 %v18942_v14  ;;  %v18946_v14 = vld [vmem:[#allocation582_spill] sm:$0xff] }
 0x84c   :  { %7606 = vmatpush2.bf16.msra.mxu0 %v14713_v8  ;;  %v18947_v8 = vld [vmem:[#allocation583_spill] sm:$0xff] }
 0x84d   :  { %7647 = vmatpush2.bf16.msra.mxu1 %v14717_v10  ;;  %7607 = vmatprep.subr.bf16.mxu0 %v14719_v57  ;;  %v18948_v10 = vld [vmem:[#allocation584_spill] sm:$0xff]  ;;  %v18949_v57 = vld [vmem:[#allocation585_spill] sm:$0xff] }
 0x84e   :  { %7648 = vmatprep.subr.bf16.mxu1 %v18943_v2  ;;  %v7331_v2 = vadd.f32 %v15406_v35, %v7290_v39  ;;  %v10535_v35 = vld [vmem:[#allocation14 + $0x38] sm:$0xff]  }
 0x84f   :  { %v10536_v39 = vld [vmem:[#allocation14 + $0xb8] sm:$0xff]  }
 0x850   :  { %7608 = vmatpush2.bf16.msra.mxu0 %v18944_v7  ;;  %v18950_v7 = vld [vmem:[#allocation586_spill] sm:$0xff] }
 0x851   :  { %7649 = vmatpush2.bf16.msra.mxu1 %v14729_v33  ;;  %7609 = vmatprep.subr.bf16.mxu0 %v14731_v41  ;;  %v10533_v33 = vld [vmem:[#allocation14 + $0x78] sm:$0xff]  }
 0x852   :  { %7650 = vmatprep.subr.bf16.mxu1 %v18945_v26  ;;  %v10534_v41 = vld [vmem:[#allocation14 + $0xf8] sm:$0xff]   ;;  %v10545_v26 = vld [vmem:[#allocation14 + $0x60] sm:$0xff]  }
 0x854   :  { %7610 = vmatpush2.bf16.msra.mxu0 %v14737_v24  ;;  %v10543_v24 = vld [vmem:[#allocation14 + $0x28] sm:$0xff]  }
 0x855   :  { %7651 = vmatpush2.bf16.msra.mxu1 %v18946_v14  ;;  %7611 = vmatprep.subr.bf16.mxu0 %v18947_v8  ;;  %v7666_v8 = vpack.c.bf16 %v7331_v2, %v7331_v2  ;;  %v10539_v2 = vld [vmem:[#allocation14 + $0x30] sm:$0xff]  }
 0x856   :  { %7652 = vmatprep.subr.bf16.mxu1 %v18948_v10  ;;  %v10540_v10 = vld [vmem:[#allocation14 + $0xb0] sm:$0xff]  }
 0x858   :  { %7612 = vmatpush2.bf16.msra.mxu0 %v18949_v57  ;;  %v10538_v57 = vld [vmem:[#allocation14 + $0xf0] sm:$0xff]  }
 0x859   :  { %7653 = vmatpush2.bf16.msra.mxu1 %v18950_v7  ;;  %10271 = vmatprep.subr.bf16.mxu0 %v10533_v33 }
 0x85a   :  { %10293 = vmatprep.subr.bf16.mxu1 %v10534_v41 }
 0x85b   :  { %v15472_v22 = vpop.f32.mrf.mxu0  ;;  %7614 = vmatmul.mubr.bf16.vlgmr.msra.gmra.mxu0 %v15033_v23 }
 0x85c   :  { %v15475_v14 = vpop.f32.mrf.mxu1  ;;  %7655 = vmatmul.mubr.bf16.vlgmr.msra.gmra.mxu1 %v15035_v45  ;;  %10272 = vmatpush3.bf16.msra.mxu0 %v10535_v35  ;;  %v10541_v35 = vld [vmem:[#allocation14 + $0x68] sm:$0xff]  }
 0x85d   :  { %7703 = vmatprep.mubr.bf16.mxu0 %v7664_v62  ;;  %10294 = vmatpush3.bf16.msra.mxu1 %v10536_v39  ;;  %v15478_v33 = vpop.f32.mrf.mxu0  ;;  %v10542_v39 = vld [vmem:[#allocation14 + $0xe8] sm:$0xff]  }
 0x85e   :  { %7743 = vmatprep.mubr.bf16.mxu1 %v7666_v8  ;;  %v15480_v41 = vpop.f32.mrf.mxu1  ;;  %10273 = vmatprep.subr.bf16.mxu0 %v10537_v46  ;;  %v10544_v8 = vld [vmem:[#allocation14 + $0xa8] sm:$0xff]   ;;  %v10548_v46 = vld [vmem:[#allocation14 + $0xa0] sm:$0xff]  }
 0x85f   :  { %v7373_v7 = vpop.f32.mrf.mxu0  ;;  %10295 = vmatprep.subr.bf16.mxu1 %v10538_v57  ;;  %v10547_v57 = vld [vmem:[#allocation14 + $0x20] sm:$0xff]  }
 0x860   :  { %v7414_v23 = vpop.f32.mrf.mxu1  ;;  %10274 = vmatpush3.bf16.msra.mxu0 %v10539_v2  ;;  %v10546_v7 = vld [vmem:[#allocation14 + $0xe0] sm:$0xff]   ;;  %v10551_v2 = vld [vmem:[#allocation14 + $0x18] sm:$0xff]  }
 0x861   :  { %10296 = vmatpush3.bf16.msra.mxu1 %v10540_v10  ;;  %v7374_v45 = vpop.f32.mrf.mxu0  ;;  %10275 = vmatprep.subr.bf16.mxu0 %v10541_v35  ;;  %v10549_v23 = vld [vmem:[#allocation14 + $0x58] sm:$0xff]   ;;  %v10553_v35 = vld [vmem:[#allocation14 + $0x50] sm:$0xff]  }
 0x862   :  { %v7415_v62 = vpop.f32.mrf.mxu1  ;;  %10297 = vmatprep.subr.bf16.mxu1 %v10542_v39  ;;  %v10550_v10 = vld [vmem:[#allocation14 + $0xd8] sm:$0xff]   ;;  %v10557_v39 = vld [vmem:[#allocation14 + $0x48] sm:$0xff]  }
 0x863   :  { %v10552_v45 = vld [vmem:[#allocation14 + $0x98] sm:$0xff]   ;;  %v10555_v62 = vld [vmem:[#allocation14 + $0x10] sm:$0xff]  }
 0x864   :  { %10276 = vmatpush3.bf16.msra.mxu0 %v10543_v24  ;;  %v10554_v24 = vld [vmem:[#allocation14 + $0xd0] sm:$0xff]  }
 0x865   :  { %10298 = vmatpush3.bf16.msra.mxu1 %v10544_v8  ;;  %10277 = vmatprep.subr.bf16.mxu0 %v10545_v26  ;;  %v10556_v26 = vld [vmem:[#allocation14 + $0x90] sm:$0xff]   ;;  %v10558_v8 = vld [vmem:[#allocation14 + $0xc8] sm:$0xff]  }
 0x866   :  { %10299 = vmatprep.subr.bf16.mxu1 %v10546_v7  ;;  %v10559_v7 = vld [vmem:[#allocation14 + $0x8] sm:$0xff]  }
 0x868   :  { %10278 = vmatpush3.bf16.msra.mxu0 %v10547_v57  ;;  %v10560_v57 = vld [vmem:[#allocation14 + $0x88] sm:$0xff]  }
 0x869   :  { %10300 = vmatpush3.bf16.msra.mxu1 %v10548_v46  ;;  %10279 = vmatprep.subr.bf16.mxu0 %v10549_v23  ;;  %v10561_v46 = vld [vmem:[#allocation14 + $0x40] sm:$0xff]  }
 0x86a   :  { %10301 = vmatprep.subr.bf16.mxu1 %v10550_v10  ;;  %v10562_v23 = vld [vmem:[#allocation14 + $0xc0] sm:$0xff]  }
 0x86b   :  { %v10563_v10 = vld [vmem:[#allocation14] sm:$0xff]  }
 0x86c   :  { %10280 = vmatpush3.bf16.msra.mxu0 %v10551_v2  ;;  %v7663_v2 = vpack.c.bf16 %v15255_v18, %v15255_v18  ;;  %v10571_v18 = vld [vmem:[#allocation14 + $0x130] sm:$0xff]  }
 0x86d   :  { %10302 = vmatpush3.bf16.msra.mxu1 %v10552_v45  ;;  %10281 = vmatprep.subr.bf16.mxu0 %v10553_v35  ;;  %v10564_v45 = vld [vmem:[#allocation14 + $0x80] sm:$0xff]   ;;  %v10565_v35 = vld [vmem:[#allocation14 + $0x178] sm:$0xff]  }
 0x86e   :  { %10303 = vmatprep.subr.bf16.mxu1 %v10554_v24  ;;  %v7665_v24 = vpack.c.bf16 %v15403_v43, %v15403_v43  ;;  %v10575_v43 = vld [vmem:[#allocation14 + $0x128] sm:$0xff]  }
 0x870   :  { %10282 = vmatpush3.bf16.msra.mxu0 %v10555_v62  ;;  %v10566_v62 = vld [vmem:[#allocation14 + $0x1f8] sm:$0xff]  }
 0x871   :  { %10304 = vmatpush3.bf16.msra.mxu1 %v10556_v26  ;;  %10283 = vmatprep.subr.bf16.mxu0 %v10557_v39  ;;  %v10567_v26 = vld [vmem:[#allocation14 + $0x138] sm:$0xff]   ;;  %v10568_v39 = vld [vmem:[#allocation14 + $0x170] sm:$0xff]  }
 0x872   :  { %10305 = vmatprep.subr.bf16.mxu1 %v10558_v8  ;;  %v10569_v8 = vld [vmem:[#allocation14 + $0x1b8] sm:$0xff]  }
 0x874   :  { %10284 = vmatpush3.bf16.msra.mxu0 %v10559_v7  ;;  %v10570_v7 = vld [vmem:[#allocation14 + $0x1f0] sm:$0xff]  }
 0x875   :  { %10306 = vmatpush3.bf16.msra.mxu1 %v10560_v57  ;;  %10285 = vmatprep.subr.bf16.mxu0 %v10561_v46  ;;  %v10572_v57 = vld [vmem:[#allocation14 + $0x168] sm:$0xff]   ;;  %v10573_v46 = vld [vmem:[#allocation14 + $0x1b0] sm:$0xff]  }
 0x876   :  { %10307 = vmatprep.subr.bf16.mxu1 %v10562_v23  ;;  %v10574_v23 = vld [vmem:[#allocation14 + $0x1e8] sm:$0xff]  }
 0x878   :  { %10286 = vmatpush3.bf16.msra.mxu0 %v10563_v10  ;;  %v10576_v10 = vld [vmem:[#allocation14 + $0x160] sm:$0xff]  }
 0x879   :  { %10308 = vmatpush3.bf16.msra.mxu1 %v10564_v45  ;;  %10315 = vmatprep.subr.bf16.mxu0 %v10565_v35  ;;  %v10578_v45 = vld [vmem:[#allocation14 + $0x1e0] sm:$0xff]  }
 0x87a   :  { %10337 = vmatprep.subr.bf16.mxu1 %v10566_v62  ;;  %v10579_v35 = vld [vmem:[#allocation14 + $0x120] sm:$0xff]  }
 0x87b   :  { %7704 = vmatmul.mubr.bf16.vlgmr.msra.gmra.mxu0 %v7663_v2  ;;  %v10577_v2 = vld [vmem:[#allocation14 + $0x1a8] sm:$0xff]   ;;  %v10581_v62 = vld [vmem:[#allocation14 + $0x1a0] sm:$0xff]  }
 0x87c   :  { %7744 = vmatmul.mubr.bf16.vlgmr.msra.gmra.mxu1 %v7665_v24  ;;  %10316 = vmatpush3.bf16.msra.mxu0 %v10567_v26  ;;  %v10580_v24 = vld [vmem:[#allocation14 + $0x158] sm:$0xff]  }
 0x87d   :  { %10317 = vmatprep.subr.bf16.mxu0 %v10568_v39  ;;  %10338 = vmatpush3.bf16.msra.mxu1 %v10569_v8  ;;  %v10582_v26 = vld [vmem:[#allocation14 + $0x1d8] sm:$0xff]   ;;  %v10584_v8 = vld [vmem:[#allocation14 + $0x150] sm:$0xff]  }
 0x87e   :  { %10339 = vmatprep.subr.bf16.mxu1 %v10570_v7  ;;  %v10583_v39 = vld [vmem:[#allocation14 + $0x118] sm:$0xff]  }
 0x87f   :  { %v10585_v7 = vld [vmem:[#allocation14 + $0x198] sm:$0xff]  }
 0x880   :  { %10318 = vmatpush3.bf16.msra.mxu0 %v10571_v18  ;;  %v10586_v18 = vld [vmem:[#allocation14 + $0x1d0] sm:$0xff]  }
 0x881   :  { %10319 = vmatprep.subr.bf16.mxu0 %v10572_v57  ;;  %10340 = vmatpush3.bf16.msra.mxu1 %v10573_v46  ;;  %v10587_v57 = vld [vmem:[#allocation14 + $0x110] sm:$0xff]   ;;  %v10588_v46 = vld [vmem:[#allocation14 + $0x148] sm:$0xff]  }
 0x882   :  { %10341 = vmatprep.subr.bf16.mxu1 %v10574_v23  ;;  %v10589_v23 = vld [vmem:[#allocation14 + $0x190] sm:$0xff]  }
 0x884   :  { %10320 = vmatpush3.bf16.msra.mxu0 %v10575_v43  ;;  %v10590_v43 = vld [vmem:[#allocation14 + $0x1c8] sm:$0xff]  }
 0x885   :  { %10321 = vmatprep.subr.bf16.mxu0 %v10576_v10  ;;  %10342 = vmatpush3.bf16.msra.mxu1 %v10577_v2  ;;  %v10591_v10 = vld [vmem:[#allocation14 + $0x108] sm:$0xff]   ;;  %v10592_v2 = vld [vmem:[#allocation14 + $0x140] sm:$0xff]  }
 0x886   :  { %10343 = vmatprep.subr.bf16.mxu1 %v10578_v45  ;;  %v10593_v45 = vld [vmem:[#allocation14 + $0x188] sm:$0xff]  }
 0x888   :  { %10322 = vmatpush3.bf16.msra.mxu0 %v10579_v35  ;;  %v18951_v35 = vld [vmem:[#allocation587_spill] sm:$0xff] }
 0x889   :  { %10323 = vmatprep.subr.bf16.mxu0 %v10580_v24  ;;  %10344 = vmatpush3.bf16.msra.mxu1 %v10581_v62  ;;  %v7370_v24 = vadd.f32 %v15472_v22, %v18951_v35  ;;  %v10594_v62 = vld [vmem:[#allocation14 + $0x1c0] sm:$0xff]  }
 0x88a   :  { %10345 = vmatprep.subr.bf16.mxu1 %v10582_v26  ;;  %v18952_v26 = vld [vmem:[#allocation588_spill] sm:$0xff] }
 0x88c   :  { %10324 = vmatpush3.bf16.msra.mxu0 %v10583_v39  ;;  %v7372_v39 = vadd.f32 %v15478_v33, %v18952_v26 }
 0x88d   :  { %10325 = vmatprep.subr.bf16.mxu0 %v10584_v8  ;;  %10346 = vmatpush3.bf16.msra.mxu1 %v10585_v7  ;;  %v10595_v8 = vld [vmem:[#allocation14 + $0x100] sm:$0xff]  }
 0x88e   :  { %10347 = vmatprep.subr.bf16.mxu1 %v10586_v18  ;;  %v10596_v7 = vld [vmem:[#allocation14 + $0x180] sm:$0xff]   ;;  %v18953_v18 = vld [vmem:[#allocation31_spill] sm:$0xff] }
 0x890   :  { %10326 = vmatpush3.bf16.msra.mxu0 %v10587_v57  ;;  %v7411_v57 = vadd.f32 %v15475_v14, %v7370_v24 }
 0x891   :  { %10327 = vmatprep.subr.bf16.mxu0 %v10588_v46  ;;  %10348 = vmatpush3.bf16.msra.mxu1 %v10589_v23  ;;  %v7413_v23 = vadd.f32 %v15480_v41, %v7372_v39 }
 0x892   :  { %10349 = vmatprep.subr.bf16.mxu1 %v10590_v43 }
 0x894   :  { %10328 = vmatpush3.bf16.msra.mxu0 %v10591_v10 }
 0x895   :  { %10329 = vmatprep.subr.bf16.mxu0 %v10592_v2  ;;  %10350 = vmatpush3.bf16.msra.mxu1 %v10593_v45 }
 0x896   :  { %10351 = vmatprep.subr.bf16.mxu1 %v10594_v62 }
 0x898   :  { %10330 = vmatpush3.bf16.msra.mxu0 %v10595_v8 }
 0x899   :  { %10352 = vmatpush3.bf16.msra.mxu1 %v10596_v7  ;;  %7834 = vmatprep.subr.bf16.mxu0 %v18953_v18 }
 0x89a   :  { %7875 = vmatprep.subr.bf16.mxu1 %v12833_v36 }
 0x89b   :  { %v7451_v46 = vpop.f32.mrf.mxu0 }
 0x89c   :  { %v7452_v43 = vadd.f32 %v7451_v46, %v7411_v57  ;;  %v7492_v22 = vpop.f32.mrf.mxu1 }
 0x89d   :  { %v7453_v10 = vpop.f32.mrf.mxu0 }
 0x89e   :  { %v7454_v2 = vadd.f32 %v7453_v10, %v7413_v23  ;;  %v7494_v45 = vpop.f32.mrf.mxu1  ;;  %v7493_v62 = vadd.f32 %v7492_v22, %v7452_v43  ;;  %v18954_v23 = vld [vmem:[#allocation36_spill] sm:$0xff]  ;;  %v18955_v43 = vld [vmem:[#allocation45_spill] sm:$0xff] }
 0x89f   :  { %v7455_v33 = vpop.f32.mrf.mxu0 }
 0x8a0   :  { %v7495_v26 = vadd.f32 %v7494_v45, %v7454_v2  ;;  %v7496_v8 = vpop.f32.mrf.mxu1  ;;  %v7667_v18 = vpack.c.bf16 %v7493_v62, %v7493_v62 }
 0x8a1   :  { %v7456_v35 = vpop.f32.mrf.mxu0 }
 0x8a2   :  { %v7668_v7 = vpack.c.bf16 %v7495_v26, %v7495_v26  ;;  %v7497_v21 = vpop.f32.mrf.mxu1 }
 0x8a4   :  { %7783 = vmatprep.mubr.bf16.mxu0 %v7668_v7  ;;  %v18960_v7 = vld [vmem:[#allocation37_spill] sm:$0xff] }
 0x8a5   :  { %7784 = vmatmul.mubr.bf16.vlgmr.msra.gmra.mxu0 %v7667_v18  ;;  %v18961_v18 = vld [vmem:[#allocation54_spill] sm:$0xff] }
 0x8a6   :  { %7835 = vmatpush1.bf16.msra.mxu0 %v12841_v3  ;;  %7866 = vmatprep.mubr.bf16.mxu0 %v17829_v19 }
 0x8a7   :  { %7836 = vmatprep.subr.bf16.mxu0 %v12845_v54 }
 0x8aa   :  { %7837 = vmatpush1.bf16.msra.mxu0 %v12853_v52 }
 0x8ab   :  { %7838 = vmatprep.subr.bf16.mxu0 %v12859_v11 }
 0x8ae   :  { %7839 = vmatpush1.bf16.msra.mxu0 %v12867_v0 }
 0x8af   :  { %7840 = vmatprep.subr.bf16.mxu0 %v12873_v34 }
 0x8b2   :  { %7841 = vmatpush1.bf16.msra.mxu0 %v12879_v50 }
 0x8b3   :  { %7842 = vmatprep.subr.bf16.mxu0 %v12885_v20 }
 0x8b6   :  { %7843 = vmatpush1.bf16.msra.mxu0 %v12891_v38 }
 0x8b7   :  { %7844 = vmatprep.subr.bf16.mxu0 %v12897_v5 }
 0x8ba   :  { %7845 = vmatpush1.bf16.msra.mxu0 %v12903_v60 }
 0x8bb   :  { %7846 = vmatprep.subr.bf16.mxu0 %v12909_v55 }
 0x8be   :  { %7847 = vmatpush1.bf16.msra.mxu0 %v12915_v37 }
 0x8bf   :  { %7848 = vmatprep.subr.bf16.mxu0 %v12921_v13 }
 0x8c2   :  { %7849 = vmatpush1.bf16.msra.mxu0 %v12927_v6 }
 0x8c3   :  { %7916 = vmatprep.subr.bf16.mxu0 %v12933_v4 }
 0x8db   :  { %v7533_v36 = vpop.f32.mrf.mxu0 }
 0x8dc   :  { %v7574_v3 = vpop.f32.mrf.mxu1  ;;  %v7534_v20 = vadd.f32 %v7533_v36, %v14817_v31 }
 0x8dd   :  { %v7535_v54 = vpop.f32.mrf.mxu0 }
 0x8de   :  { %v7576_v52 = vpop.f32.mrf.mxu1  ;;  %v7536_v38 = vadd.f32 %v7535_v54, %v14822_v15  ;;  %v7575_v5 = vadd.f32 %v7574_v3, %v7534_v20 }
 0x8df   :  { %v7537_v11 = vpop.f32.mrf.mxu0 }
 0x8e0   :  { %v7578_v0 = vpop.f32.mrf.mxu1  ;;  %v7577_v55 = vadd.f32 %v7576_v52, %v7536_v38 }
 0x8e1   :  { %v7538_v34 = vpop.f32.mrf.mxu0 }
 0x8e2   :  { %v7579_v50 = vpop.f32.mrf.mxu1 }
 0x91b   :  { %v7615_v60 = vpop.f32.mrf.mxu0 }
 0x91c   :  { %v7616_v37 = vadd.f32 %v7615_v60, %v7575_v5  ;;  %v7656_v13 = vpop.f32.mrf.mxu1 }
 0x91d   :  { %v7617_v6 = vpop.f32.mrf.mxu0 }
 0x91e   :  { %v7618_v21 = vadd.f32 %v7617_v6, %v7577_v55  ;;  %v7658_v4 = vpop.f32.mrf.mxu1  ;;  %v7657_v14 = vadd.f32 %v7656_v13, %v7616_v37  ;;  %v18962_v55 = vld [vmem:[#allocation589_spill] sm:$0xff] }
 0x91f   :  { %v7619_v41 = vpop.f32.mrf.mxu0  ;;  %v10597_v13 = vld [vmem:[#allocation16] ss:$0 sm:$0xff] }
 0x920   :  { %v7659_v35 = vadd.f32 %v7658_v4, %v7618_v21  ;;  %v7660_v24 = vpop.f32.mrf.mxu1  ;;  %v7669_v46 = vpack.c.bf16 %v7657_v14, %v7657_v14  ;;  %v18963_v4 = vld [vmem:[#allocation38_spill] sm:$0xff]  ;;  %v18965_v41 = vld [vmem:[#allocation55_spill] sm:$0xff] }
 0x921   :  { %v7620_v26 = vpop.f32.mrf.mxu0  ;;  %v18964_v14 = vld [vmem:[#allocation46_spill] sm:$0xff]  ;;  %v18967_v24 = vld [vmem:[#allocation40_spill] sm:$0xff] }
 0x922   :  { %v7670_v39 = vpack.c.bf16 %v7659_v35, %v7659_v35  ;;  %v7661_v57 = vpop.f32.mrf.mxu1  ;;  %v18966_v35 = vld [vmem:[#allocation39_spill] sm:$0xff]  ;;  %v18968_v26 = vld [vmem:[#allocation56_spill] sm:$0xff] }
 0x923   :  { %v18970_v57 = vld [vmem:[#allocation64_spill] sm:$0xff] }
 0x924   :  { %7823 = vmatprep.mubr.bf16.mxu1 %v7670_v39  ;;  %v18969_v39 = vld [vmem:[#allocation47_spill] sm:$0xff] }
 0x925   :  { %7824 = vmatmul.mubr.bf16.vlgmr.msra.gmra.mxu1 %v7669_v46  ;;  %v18971_v46 = vld [vmem:[#allocation41_spill] sm:$0xff] }
 0x926   :  { %7876 = vmatpush1.bf16.msra.mxu1 %v12843_v47  ;;  %7907 = vmatprep.mubr.bf16.mxu1 %v17829_v19  ;;  %v18956_v47 = vld [vmem:[#allocation32_spill] sm:$0xff] }
 0x927   :  { %7877 = vmatprep.subr.bf16.mxu1 %v12847_v51  ;;  %v18957_v51 = vld [vmem:[#allocation33_spill] sm:$0xff] }
 0x92a   :  { %7878 = vmatpush1.bf16.msra.mxu1 %v12855_v12 }
 0x92b   :  { %7879 = vmatprep.subr.bf16.mxu1 %v12861_v56 }
 0x92e   :  { %7880 = vmatpush1.bf16.msra.mxu1 %v12869_v53  ;;  %v18958_v53 = vld [vmem:[#allocation34_spill] sm:$0xff] }
 0x92f   :  { %7881 = vmatprep.subr.bf16.mxu1 %v12875_v28 }
 0x932   :  { %7882 = vmatpush1.bf16.msra.mxu1 %v12881_v25  ;;  %v18959_v25 = vld [vmem:[#allocation35_spill] sm:$0xff] }
 0x933   :  { %7883 = vmatprep.subr.bf16.mxu1 %v12887_v61 }
 0x936   :  { %7884 = vmatpush1.bf16.msra.mxu1 %v18954_v23  ;;  %v18972_v23 = vld [vmem:[#allocation42_spill] sm:$0xff] }
 0x937   :  { %7885 = vmatprep.subr.bf16.mxu1 %v18955_v43  ;;  %v18973_v43 = vld [vmem:[#allocation65_spill] sm:$0xff] }
 0x93a   :  { %7886 = vmatpush1.bf16.msra.mxu1 %v18956_v47  ;;  %v18974_v47 = vld [vmem:[#allocation43_spill] sm:$0xff] }
 0x93b   :  { %v10287_v22 = vpop.f32.mrf.mxu0  ;;  %7887 = vmatprep.subr.bf16.mxu1 %v18957_v51  ;;  %v18976_v51 = vld [vmem:[#allocation44_spill] sm:$0xff] }
 0x93c   :  { %v10309_v12 = vpop.f32.mrf.mxu1 }
 0x93d   :  { %v10288_v10 = vpop.f32.mrf.mxu0 }
 0x93e   :  { %v10289_v56 = vadd.f32 %v10288_v10, %v10287_v22  ;;  %v10310_v2 = vpop.f32.mrf.mxu1  ;;  %7888 = vmatpush1.bf16.msra.mxu1 %v18958_v53  ;;  %v18975_v22 = vld [vmem:[#allocation57_spill] sm:$0xff]  ;;  %v18982_v53 = vld [vmem:[#allocation76_spill] sm:$0xff] }
 0x93f   :  { %v10311_v28 = vadd.f32 %v10310_v2, %v10309_v12  ;;  %v10290_v45 = vpop.f32.mrf.mxu0  ;;  %7889 = vmatprep.subr.bf16.mxu1 %v18959_v25  ;;  %v18978_v12 = vld [vmem:[#allocation66_spill] sm:$0xff]  ;;  %v18979_v10 = vld [vmem:[#allocation49_spill] sm:$0xff]  ;;  %v18985_v25 = vld [vmem:[#allocation52_spill] sm:$0xff] }
 0x940   :  { %v10312_v61 = vpop.f32.mrf.mxu1  ;;  %v18981_v2 = vld [vmem:[#allocation58_spill] sm:$0xff]  ;;  %v18984_v45 = vld [vmem:[#allocation67_spill] sm:$0xff] }
 0x941   :  { %v7746_v62 = vadd.f32 %v10311_v28, %v10289_v56  ;;  %v10291_v33 = vpop.f32.mrf.mxu0  ;;  %v18980_v56 = vld [vmem:[#allocation50_spill] sm:$0xff]  ;;  %v18983_v28 = vld [vmem:[#allocation51_spill] sm:$0xff]  ;;  %v18986_v61 = vld [vmem:[#allocation68_spill] sm:$0xff] }
 0x942   :  { %v10313_v8 = vpop.f32.mrf.mxu1  ;;  %7890 = vmatpush1.bf16.msra.mxu1 %v18960_v7  ;;  %v18988_v33 = vld [vmem:[#allocation53_spill] sm:$0xff] }
 0x943   :  { %7957 = vmatprep.subr.bf16.mxu1 %v18961_v18  ;;  %v18989_v8 = vld [vmem:[#allocation69_spill] sm:$0xff]  ;;  %v18991_v18 = vld [vmem:[#allocation60_spill] sm:$0xff] }
 0x944   :  { %v18990_v7 = vld [vmem:[#allocation77_spill] sm:$0xff] }
 0x965   :  { %v10331_v36 = vpop.f32.mrf.mxu0 }
 0x967   :  { %v10332_v3 = vpop.f32.mrf.mxu0 }
 0x968   :  { %v10333_v54 = vadd.f32 %v10332_v3, %v10331_v36  ;;  %v18992_v36 = vld [vmem:[#allocation70_spill] sm:$0xff] }
 0x969   :  { %v10334_v52 = vpop.f32.mrf.mxu0  ;;  %v18993_v3 = vld [vmem:[#allocation78_spill] sm:$0xff] }
 0x96a   :  { %v7786_v11 = vadd.f32 %v10333_v54, %v7746_v62  ;;  %v18987_v62 = vld [vmem:[#allocation59_spill] sm:$0xff] }
 0x96b   :  { %v10335_v0 = vpop.f32.mrf.mxu0  ;;  %v18994_v54 = vld [vmem:[#allocation71_spill] sm:$0xff] }
 0x96c   :  { %v18995_v52 = vld [vmem:[#allocation79_spill] sm:$0xff]  ;;  %v18997_v0 = vld [vmem:[#allocation72_spill] sm:$0xff] }
 0x9e5   :  { %v10353_v34 = vpop.f32.mrf.mxu1 }
 0x9e7   :  { %v10354_v50 = vpop.f32.mrf.mxu1 }
 0x9e8   :  { %v10355_v20 = vadd.f32 %v10354_v50, %v10353_v34  ;;  %v18998_v34 = vld [vmem:[#allocation80_spill] sm:$0xff]  ;;  %v18999_v50 = vld [vmem:[#allocation73_spill] sm:$0xff] }
 0x9e9   :  { %v10356_v38 = vpop.f32.mrf.mxu1 }
 0x9ea   :  { %v7826_v5 = vadd.f32 %v10355_v20, %v7786_v11  ;;  %v18996_v11 = vld [vmem:[#allocation61_spill] sm:$0xff]  ;;  %v19001_v38 = vld [vmem:[#allocation82_spill] sm:$0xff] }
 0x9eb   :  { %v10357_v60 = vpop.f32.mrf.mxu1  ;;  %v19000_v20 = vld [vmem:[#allocation81_spill] sm:$0xff] }
 0x9ec   :  { %v7831_v37 = vadd.f32 %v7826_v5, %v18962_v55  ;;  %v19002_v5 = vld [vmem:[#allocation62_spill] sm:$0xff]  ;;  %v19003_v60 = vld [vmem:[#allocation83_spill] sm:$0xff] }
 0x9ed   :  { %v19004_v55 = vld [vmem:[#allocation74_spill] sm:$0xff] }
 0x9ee   :  { %v15531_v6 = vadd.f32 %v10597_v13, %v7831_v37  ;;  %v19005_v37 = vld [vmem:[#allocation30_spill] sm:$0xff]  ;;  %v19006_v13 = vld [vmem:[#allocation63_spill] sm:$0xff] }
 0x9f0   :  { %v7833_v21 = vpack.c.bf16 %v15531_v6, %v15531_v6 }
 0x9f2   :  { %7867 = vmatmul.mubr.bf16.vlgmr.msra.gmra.mxu0 %v7833_v21  ;;  %7908 = vmatmul.mubr.bf16.vlgmr.msra.gmra.mxu1 %v7833_v21 }
 0x9f3   :  { %7917 = vmatpush1.bf16.msra.mxu0 %v18963_v4  ;;  %7958 = vmatpush1.bf16.msra.mxu1 %v18964_v14  ;;  %v19008_v4 = vld [vmem:[#allocation89_spill] sm:$0xff] }
 0x9f4   :  { %7918 = vmatprep.subr.bf16.mxu0 %v18965_v41  ;;  %7959 = vmatprep.subr.bf16.mxu1 %v18966_v35  ;;  %v19009_v14 = vld [vmem:[#allocation85_spill] sm:$0xff]  ;;  %v19010_v41 = vld [vmem:[#allocation75_spill] sm:$0xff]  ;;  %v19011_v35 = vld [vmem:[#allocation90_spill] sm:$0xff] }
 0x9f5   :  { %7948 = vmatprep.mubr.bf16.mxu0 %v17829_v19  ;;  %7989 = vmatprep.mubr.bf16.mxu1 %v17829_v19  ;;  %v18977_v19 = vld [vmem:[#allocation48_spill] sm:$0xff] }
 0x9f7   :  { %7919 = vmatpush1.bf16.msra.mxu0 %v18967_v24  ;;  %7960 = vmatpush1.bf16.msra.mxu1 %v18968_v26  ;;  %v19012_v24 = vld [vmem:[#allocation28_spill] sm:$0xff]  ;;  %v19013_v26 = vld [vmem:[#allocation86_spill] sm:$0xff] }
 0x9f8   :  { %7920 = vmatprep.subr.bf16.mxu0 %v18969_v39  ;;  %7961 = vmatprep.subr.bf16.mxu1 %v18970_v57  ;;  %v19014_v39 = vld [vmem:[#allocation91_spill] sm:$0xff]  ;;  %v19015_v57 = vld [vmem:[#allocation92_spill] sm:$0xff] }
 0x9fb   :  { %7921 = vmatpush1.bf16.msra.mxu0 %v18971_v46  ;;  %7962 = vmatpush1.bf16.msra.mxu1 %v18972_v23  ;;  %v19016_v46 = vld [vmem:[#allocation87_spill] sm:$0xff]  ;;  %v19017_v23 = vld [vmem:[#allocation88_spill] sm:$0xff] }
 0x9fc   :  { %7922 = vmatprep.subr.bf16.mxu0 %v18973_v43  ;;  %7963 = vmatprep.subr.bf16.mxu1 %v18974_v47  ;;  %v19018_v43 = vld [vmem:[#allocation29_spill] sm:$0xff] }
 0x9fd   :  { %v19019_v47 = vld [vmem:[#allocation93_spill] sm:$0xff] }
 0x9ff   :  { %7923 = vmatpush1.bf16.msra.mxu0 %v18975_v22  ;;  %7964 = vmatpush1.bf16.msra.mxu1 %v18976_v51  ;;  %v19020_v22 = vld [vmem:[#allocation94_spill] sm:$0xff]  ;;  %v19021_v51 = vld [vmem:[#allocation95_spill] sm:$0xff] }
 0xa00   :  { %7924 = vmatprep.subr.bf16.mxu0 %v18977_v19  ;;  %7965 = vmatprep.subr.bf16.mxu1 %v18978_v12  ;;  %v19022_v19 = vld [vmem:[#allocation96_spill] sm:$0xff]  ;;  %v19023_v12 = vld [vmem:[#allocation97_spill] sm:$0xff] }
 0xa03   :  { %7925 = vmatpush1.bf16.msra.mxu0 %v18979_v10  ;;  %7966 = vmatpush1.bf16.msra.mxu1 %v18980_v56  ;;  %v19024_v10 = vld [vmem:[#allocation98_spill] sm:$0xff]  ;;  %v19025_v56 = vld [vmem:[#allocation99_spill] sm:$0xff] }
 0xa04   :  { %7926 = vmatprep.subr.bf16.mxu0 %v18981_v2  ;;  %7967 = vmatprep.subr.bf16.mxu1 %v18982_v53  ;;  %v19026_v2 = vld [vmem:[#allocation100_spill] sm:$0xff]  ;;  %v19027_v53 = vld [vmem:[#allocation101_spill] sm:$0xff] }
 0xa07   :  { %7927 = vmatpush1.bf16.msra.mxu0 %v18983_v28  ;;  %7968 = vmatpush1.bf16.msra.mxu1 %v18984_v45  ;;  %v19028_v28 = vld [vmem:[#allocation102_spill] sm:$0xff]  ;;  %v19029_v45 = vld [vmem:[#allocation103_spill] sm:$0xff] }
 0xa08   :  { %7928 = vmatprep.subr.bf16.mxu0 %v18985_v25  ;;  %7969 = vmatprep.subr.bf16.mxu1 %v18986_v61  ;;  %v19030_v25 = vld [vmem:[#allocation104_spill] sm:$0xff]  ;;  %v19031_v61 = vld [vmem:[#allocation105_spill] sm:$0xff] }
 0xa0b   :  { %7929 = vmatpush1.bf16.msra.mxu0 %v18987_v62  ;;  %7970 = vmatpush1.bf16.msra.mxu1 %v18988_v33  ;;  %v19032_v62 = vld [vmem:[#allocation106_spill] sm:$0xff]  ;;  %v19033_v33 = vld [vmem:[#allocation107_spill] sm:$0xff] }
 0xa0c   :  { %7930 = vmatprep.subr.bf16.mxu0 %v18989_v8  ;;  %7971 = vmatprep.subr.bf16.mxu1 %v18990_v7  ;;  %v19034_v8 = vld [vmem:[#allocation108_spill] sm:$0xff]  ;;  %v19035_v7 = vld [vmem:[#allocation109_spill] sm:$0xff] }
 0xa0f   :  { %7931 = vmatpush1.bf16.msra.mxu0 %v18991_v18  ;;  %7972 = vmatpush1.bf16.msra.mxu1 %v18992_v36  ;;  %v19036_v18 = vld [vmem:[#allocation110_spill] sm:$0xff]  ;;  %v19037_v36 = vld [vmem:[#allocation111_spill] sm:$0xff] }
 0xa10   :  { %8014 = vmatprep.subr.bf16.mxu0 %v18993_v3  ;;  %8055 = vmatprep.subr.bf16.mxu1 %v18994_v54  ;;  %v19038_v3 = vld [vmem:[#allocation112_spill] sm:$0xff]  ;;  %v19039_v54 = vld [vmem:[#allocation115_spill] sm:$0xff] }
 0xa12   :  { %7949 = vmatmul.mubr.bf16.vlgmr.msra.gmra.mxu0 %v7833_v21  ;;  %7990 = vmatmul.mubr.bf16.vlgmr.msra.gmra.mxu1 %v7833_v21  ;;  %v19007_v21 = vld [vmem:[#allocation84_spill] sm:$0xff] }
 0xa13   :  { %8015 = vmatpush1.bf16.msra.mxu0 %v18995_v52  ;;  %8056 = vmatpush1.bf16.msra.mxu1 %v18996_v11  ;;  %v19040_v52 = vld [vmem:[#allocation116_spill] sm:$0xff]  ;;  %v19041_v11 = vld [vmem:[#allocation117_spill] sm:$0xff] }
 0xa14   :  { %8016 = vmatprep.subr.bf16.mxu0 %v18997_v0  ;;  %8057 = vmatprep.subr.bf16.mxu1 %v18998_v34  ;;  %v19042_v0 = vld [vmem:[#allocation118_spill] sm:$0xff]  ;;  %v19043_v34 = vld [vmem:[#allocation119_spill] sm:$0xff] }
 0xa17   :  { %8017 = vmatpush1.bf16.msra.mxu0 %v18999_v50  ;;  %8058 = vmatpush1.bf16.msra.mxu1 %v19000_v20  ;;  %v19044_v50 = vld [vmem:[#allocation120_spill] sm:$0xff]  ;;  %v19045_v20 = vld [vmem:[#allocation121_spill] sm:$0xff] }
 0xa18   :  { %8018 = vmatprep.subr.bf16.mxu0 %v19001_v38  ;;  %8059 = vmatprep.subr.bf16.mxu1 %v19002_v5  ;;  %v19046_v38 = vld [vmem:[#allocation122_spill] sm:$0xff]  ;;  %v19047_v5 = vld [vmem:[#allocation123_spill] sm:$0xff] }
 0xa1b   :  { %8019 = vmatpush1.bf16.msra.mxu0 %v19003_v60  ;;  %8060 = vmatpush1.bf16.msra.mxu1 %v19004_v55  ;;  %v19048_v60 = vld [vmem:[#allocation124_spill] sm:$0xff]  ;;  %v19049_v55 = vld [vmem:[#allocation125_spill] sm:$0xff] }
 0xa1c   :  { %8020 = vmatprep.subr.bf16.mxu0 %v19005_v37  ;;  %8061 = vmatprep.subr.bf16.mxu1 %v19006_v13  ;;  %v19050_v37 = vld [vmem:[#allocation126_spill] sm:$0xff]  ;;  %v19051_v13 = vld [vmem:[#allocation127_spill] sm:$0xff] }
 0xa1f   :  { %8021 = vmatpush1.bf16.msra.mxu0 %v19007_v21  ;;  %8062 = vmatpush1.bf16.msra.mxu1 %v19008_v4  ;;  %v19052_v21 = vld [vmem:[#allocation128_spill] sm:$0xff]  ;;  %v19053_v4 = vld [vmem:[#allocation129_spill] sm:$0xff] }
 0xa20   :  { %8022 = vmatprep.subr.bf16.mxu0 %v19009_v14  ;;  %8063 = vmatprep.subr.bf16.mxu1 %v19010_v41  ;;  %v19054_v14 = vld [vmem:[#allocation130_spill] sm:$0xff]  ;;  %v19055_v41 = vld [vmem:[#allocation131_spill] sm:$0xff] }
 0xa23   :  { %8023 = vmatpush1.bf16.msra.mxu0 %v19011_v35  ;;  %8064 = vmatpush1.bf16.msra.mxu1 %v19012_v24  ;;  %v19056_v35 = vld [vmem:[#allocation132_spill] sm:$0xff]  ;;  %v19057_v24 = vld [vmem:[#allocation133_spill] sm:$0xff] }
 0xa24   :  { %8024 = vmatprep.subr.bf16.mxu0 %v19013_v26  ;;  %8065 = vmatprep.subr.bf16.mxu1 %v19014_v39  ;;  %v19058_v26 = vld [vmem:[#allocation134_spill] sm:$0xff] }
 0xa27   :  { %8025 = vmatpush1.bf16.msra.mxu0 %v19015_v57  ;;  %8066 = vmatpush1.bf16.msra.mxu1 %v19016_v46  ;;  %v19059_v46 = vld [vmem:[#allocation136_spill] sm:$0xff] }
 0xa28   :  { %8026 = vmatprep.subr.bf16.mxu0 %v19017_v23  ;;  %8067 = vmatprep.subr.bf16.mxu1 %v19018_v43  ;;  %v19060_v43 = vld [vmem:[#allocation137_spill] sm:$0xff] }
 0xa2b   :  { %8027 = vmatpush1.bf16.msra.mxu0 %v19019_v47  ;;  %8068 = vmatpush1.bf16.msra.mxu1 %v19020_v22 }
 0xa2c   :  { %8028 = vmatprep.subr.bf16.mxu0 %v19021_v51  ;;  %8069 = vmatprep.subr.bf16.mxu1 %v19022_v19  ;;  %v19061_v19 = vld [vmem:[#allocation138_spill] sm:$0xff] }
 0xa2f   :  { %8029 = vmatpush1.bf16.msra.mxu0 %v19023_v12  ;;  %8070 = vmatpush1.bf16.msra.mxu1 %v19024_v10  ;;  %v19062_v10 = vld [vmem:[#allocation139_spill] sm:$0xff] }
 0xa30   :  { %8030 = vmatprep.subr.bf16.mxu0 %v19025_v56  ;;  %8071 = vmatprep.subr.bf16.mxu1 %v19026_v2 }
 0xa33   :  { %8031 = vmatpush2.bf16.msra.mxu0 %v19027_v53  ;;  %8072 = vmatpush2.bf16.msra.mxu1 %v19028_v28 }
 0xa34   :  { %8032 = vmatprep.subr.bf16.mxu0 %v19029_v45  ;;  %8073 = vmatprep.subr.bf16.mxu1 %v19030_v25 }
 0xa37   :  { %8033 = vmatpush2.bf16.msra.mxu0 %v19031_v61  ;;  %8074 = vmatpush2.bf16.msra.mxu1 %v19032_v62 }
 0xa38   :  { %8034 = vmatprep.subr.bf16.mxu0 %v19033_v33  ;;  %8075 = vmatprep.subr.bf16.mxu1 %v19034_v8  ;;  %v19063_v8 = vld [vmem:[#allocation113_spill] sm:$0xff] }
 0xa3b   :  { %8035 = vmatpush2.bf16.msra.mxu0 %v19035_v7  ;;  %8076 = vmatpush2.bf16.msra.mxu1 %v19036_v18  ;;  %v19064_v7 = vld [vmem:[#allocation114_spill] sm:$0xff]  ;;  %v19065_v18 = vld [vmem:[#allocation140_spill] sm:$0xff] }
 0xa3c   :  { %8036 = vmatprep.subr.bf16.mxu0 %v19037_v36  ;;  %8077 = vmatprep.subr.bf16.mxu1 %v19038_v3  ;;  %v19066_v36 = vld [vmem:[#allocation141_spill] sm:$0xff]  ;;  %v19067_v3 = vld [vmem:[#allocation142_spill] sm:$0xff] }
 0xa3f   :  { %8037 = vmatpush2.bf16.msra.mxu0 %v19039_v54  ;;  %8078 = vmatpush2.bf16.msra.mxu1 %v19040_v52  ;;  %v19068_v54 = vld [vmem:[#allocation143_spill] sm:$0xff]  ;;  %v19069_v52 = vld [vmem:[#allocation144_spill] sm:$0xff] }
 0xa40   :  { %8038 = vmatprep.subr.bf16.mxu0 %v19041_v11  ;;  %8079 = vmatprep.subr.bf16.mxu1 %v19042_v0  ;;  %v19070_v11 = vld [vmem:[#allocation145_spill] sm:$0xff]  ;;  %v19071_v0 = vld [vmem:[#allocation146_spill] sm:$0xff] }
 0xa43   :  { %8039 = vmatpush2.bf16.msra.mxu0 %v19043_v34  ;;  %8080 = vmatpush2.bf16.msra.mxu1 %v19044_v50  ;;  %v19072_v34 = vld [vmem:[#allocation147_spill] sm:$0xff]  ;;  %v19073_v50 = vld [vmem:[#allocation148_spill] sm:$0xff] }
 0xa44   :  { %8040 = vmatprep.subr.bf16.mxu0 %v19045_v20  ;;  %8081 = vmatprep.subr.bf16.mxu1 %v19046_v38  ;;  %v19074_v20 = vld [vmem:[#allocation149_spill] sm:$0xff]  ;;  %v19075_v38 = vld [vmem:[#allocation150_spill] sm:$0xff] }
 0xa47   :  { %8041 = vmatpush2.bf16.msra.mxu0 %v19047_v5  ;;  %8082 = vmatpush2.bf16.msra.mxu1 %v19048_v60  ;;  %v19076_v5 = vld [vmem:[#allocation151_spill] sm:$0xff]  ;;  %v19077_v60 = vld [vmem:[#allocation152_spill] sm:$0xff] }
 0xa48   :  { %8042 = vmatprep.subr.bf16.mxu0 %v19049_v55  ;;  %8083 = vmatprep.subr.bf16.mxu1 %v19050_v37  ;;  %v19078_v55 = vld [vmem:[#allocation153_spill] sm:$0xff]  ;;  %v19079_v37 = vld [vmem:[#allocation154_spill] sm:$0xff] }
 0xa4b   :  { %8043 = vmatpush2.bf16.msra.mxu0 %v19051_v13  ;;  %8084 = vmatpush2.bf16.msra.mxu1 %v19052_v21  ;;  %v19080_v13 = vld [vmem:[#allocation155_spill] sm:$0xff]  ;;  %v19081_v21 = vld [vmem:[#allocation156_spill] sm:$0xff] }
 0xa4c   :  { %8044 = vmatprep.subr.bf16.mxu0 %v19053_v4  ;;  %8085 = vmatprep.subr.bf16.mxu1 %v19054_v14  ;;  %v19082_v4 = vld [vmem:[#allocation157_spill] sm:$0xff]  ;;  %v19083_v14 = vld [vmem:[#allocation158_spill] sm:$0xff] }
 0xa4f   :  { %8045 = vmatpush2.bf16.msra.mxu0 %v19055_v41  ;;  %8086 = vmatpush2.bf16.msra.mxu1 %v19056_v35  ;;  %v19084_v41 = vld [vmem:[#allocation159_spill] sm:$0xff]  ;;  %v19085_v35 = vld [vmem:[#allocation160_spill] sm:$0xff] }
 0xa50   :  { %8096 = vmatprep.subr.bf16.mxu0 %v19057_v24  ;;  %8137 = vmatprep.subr.bf16.mxu1 %v19058_v26  ;;  %v19086_v24 = vld [vmem:[#allocation161_spill] sm:$0xff] }
 0xab2   :  { %v7868_v39 = vpop.f32.mrf.mxu0  ;;  %v7909_v57 = vpop.f32.mrf.mxu1 }
 0xab3   :  { %v7998_v23 = vadd.f32 %v7868_v39, %v19059_v46  ;;  %v8000_v47 = vadd.f32 %v7909_v57, %v19060_v43  ;;  %v19087_v57 = vld [vmem:[#allocation162_spill] sm:$0xff]  ;;  %v19088_v46 = vld [vmem:[#allocation163_spill] sm:$0xff] }
 0xab4   :  { %v7870_v22 = vpop.f32.mrf.mxu0  ;;  %v7911_v51 = vpop.f32.mrf.mxu1 }
 0xab5   :  { %v7999_v12 = vadd.f32 %v7870_v22, %v19061_v19  ;;  %v8001_v56 = vadd.f32 %v7911_v51, %v19062_v10  ;;  %v15641_v25 = vpack.c.bf16 %v7998_v23, %v7998_v23  ;;  %v15643_v61 = vpack.c.bf16 %v8000_v47, %v8000_v47  ;;  %v19089_v47 = vld [vmem:[#allocation164_spill] sm:$0xff]  ;;  %v19090_v22 = vld [vmem:[#allocation165_spill] sm:$0xff]  ;;  %v19091_v51 = vld [vmem:[#allocation167_spill] sm:$0xff] }
 0xab6   :  { %v7872_v2 = vpop.f32.mrf.mxu0  ;;  %v7913_v53 = vpop.f32.mrf.mxu1 }
 0xab7   :  { %v15637_v28 = vpack.c.bf16 %v7999_v12, %v7999_v12  ;;  %v15639_v45 = vpack.c.bf16 %v8001_v56, %v8001_v56  ;;  %v19092_v12 = vld [vmem:[#allocation168_spill] sm:$0xff] }
 0xab8   :  { %v7873_v62 = vpop.f32.mrf.mxu0  ;;  %v7914_v33 = vpop.f32.mrf.mxu1 }
 0xab9   :  { %8046 = vmatprep.mubr.bf16.mxu0 %v15637_v28  ;;  %8087 = vmatprep.mubr.bf16.mxu1 %v15639_v45  ;;  %v19093_v33 = vld [vmem:[#allocation166_spill] sm:$0xff] }
 0xaba   :  { %8047 = vmatmul.mubr.bf16.vlgmr.msra.gmra.mxu0 %v15641_v25  ;;  %8088 = vmatmul.mubr.bf16.vlgmr.msra.gmra.mxu1 %v15643_v61 }
 0xabb   :  { %8097 = vmatpush1.bf16.msra.mxu0 %v19063_v8  ;;  %8138 = vmatpush1.bf16.msra.mxu1 %v19064_v7  ;;  %v19094_v8 = vld [vmem:[#allocation169_spill] sm:$0xff] }
 0xabc   :  { %8098 = vmatprep.subr.bf16.mxu0 %v19065_v18  ;;  %8139 = vmatprep.subr.bf16.mxu1 %v19066_v36  ;;  %v19095_v36 = vld [vmem:[#allocation170_spill] sm:$0xff] }
 0xabf   :  { %8099 = vmatpush1.bf16.msra.mxu0 %v19067_v3  ;;  %8140 = vmatpush1.bf16.msra.mxu1 %v19068_v54  ;;  %v19096_v3 = vld [vmem:[#allocation171_spill] sm:$0xff]  ;;  %v19097_v54 = vld [vmem:[#allocation172_spill] sm:$0xff] }
 0xac0   :  { %8100 = vmatprep.subr.bf16.mxu0 %v19069_v52  ;;  %8141 = vmatprep.subr.bf16.mxu1 %v19070_v11  ;;  %v19098_v52 = vld [vmem:[#allocation173_spill] sm:$0xff]  ;;  %v19099_v11 = vld [vmem:[#allocation174_spill] sm:$0xff] }
 0xac3   :  { %8101 = vmatpush1.bf16.msra.mxu0 %v19071_v0  ;;  %8142 = vmatpush1.bf16.msra.mxu1 %v19072_v34  ;;  %v19100_v0 = vld [vmem:[#allocation175_spill] sm:$0xff]  ;;  %v19101_v34 = vld [vmem:[#allocation176_spill] sm:$0xff] }
 0xac4   :  { %8102 = vmatprep.subr.bf16.mxu0 %v19073_v50  ;;  %8143 = vmatprep.subr.bf16.mxu1 %v19074_v20  ;;  %v19102_v50 = vld [vmem:[#allocation177_spill] sm:$0xff]  ;;  %v19103_v20 = vld [vmem:[#allocation178_spill] sm:$0xff] }
 0xac7   :  { %8103 = vmatpush1.bf16.msra.mxu0 %v19075_v38  ;;  %8144 = vmatpush1.bf16.msra.mxu1 %v19076_v5  ;;  %v19104_v38 = vld [vmem:[#allocation179_spill] sm:$0xff]  ;;  %v19105_v5 = vld [vmem:[#allocation180_spill] sm:$0xff] }
 0xac8   :  { %8104 = vmatprep.subr.bf16.mxu0 %v19077_v60  ;;  %8145 = vmatprep.subr.bf16.mxu1 %v19078_v55  ;;  %v19106_v60 = vld [vmem:[#allocation181_spill] sm:$0xff]  ;;  %v19107_v55 = vld [vmem:[#allocation182_spill] sm:$0xff] }
 0xacb   :  { %8105 = vmatpush1.bf16.msra.mxu0 %v19079_v37  ;;  %8146 = vmatpush1.bf16.msra.mxu1 %v19080_v13  ;;  %v19108_v37 = vld [vmem:[#allocation183_spill] sm:$0xff]  ;;  %v19109_v13 = vld [vmem:[#allocation184_spill] sm:$0xff] }
 0xacc   :  { %8106 = vmatprep.subr.bf16.mxu0 %v19081_v21  ;;  %8147 = vmatprep.subr.bf16.mxu1 %v19082_v4  ;;  %v19110_v21 = vld [vmem:[#allocation185_spill] sm:$0xff]  ;;  %v19111_v4 = vld [vmem:[#allocation186_spill] sm:$0xff] }
 0xacf   :  { %8107 = vmatpush1.bf16.msra.mxu0 %v19083_v14  ;;  %8148 = vmatpush1.bf16.msra.mxu1 %v19084_v41  ;;  %v19112_v14 = vld [vmem:[#allocation187_spill] sm:$0xff]  ;;  %v19113_v41 = vld [vmem:[#allocation188_spill] sm:$0xff] }
 0xad0   :  { %8108 = vmatprep.subr.bf16.mxu0 %v19085_v35  ;;  %8149 = vmatprep.subr.bf16.mxu1 %v19086_v24  ;;  %v19114_v35 = vld [vmem:[#allocation189_spill] sm:$0xff]  ;;  %v19115_v24 = vld [vmem:[#allocation190_spill] sm:$0xff] }
 0xad2   :  { %v7950_v26 = vpop.f32.mrf.mxu0  ;;  %v7991_v39 = vpop.f32.mrf.mxu1 }
 0xad3   :  { %8109 = vmatpush1.bf16.msra.mxu0 %v19087_v57  ;;  %8150 = vmatpush1.bf16.msra.mxu1 %v19088_v46  ;;  %v19116_v57 = vld [vmem:[#allocation191_spill] sm:$0xff]  ;;  %v19117_v46 = vld [vmem:[#allocation192_spill] sm:$0xff] }
 0xad4   :  { %v7952_v23 = vpop.f32.mrf.mxu0  ;;  %v7993_v43 = vpop.f32.mrf.mxu1  ;;  %8110 = vmatprep.subr.bf16.mxu0 %v19089_v47  ;;  %8151 = vmatprep.subr.bf16.mxu1 %v19090_v22  ;;  %v19120_v47 = vld [vmem:[#allocation195_spill] sm:$0xff]  ;;  %v19121_v22 = vld [vmem:[#allocation196_spill] sm:$0xff] }
 0xad5   :  { %v8003_v19 = vadd.f32 %v7952_v23, %v19091_v51  ;;  %v8005_v10 = vadd.f32 %v7993_v43, %v19092_v12  ;;  %v19118_v23 = vld [vmem:[#allocation193_spill] sm:$0xff]  ;;  %v19119_v43 = vld [vmem:[#allocation194_spill] sm:$0xff] }
 0xad6   :  { %v7954_v56 = vpop.f32.mrf.mxu0  ;;  %v7995_v2 = vpop.f32.mrf.mxu1  ;;  %v19122_v51 = vld [vmem:[#allocation197_spill] sm:$0xff] }
 0xad7   :  { %v15679_v53 = vpack.c.bf16 %v8003_v19, %v8003_v19  ;;  %v15681_v62 = vpack.c.bf16 %v8005_v10, %v8005_v10  ;;  %8111 = vmatpush1.bf16.msra.mxu0 %v19093_v33  ;;  %8152 = vmatpush1.bf16.msra.mxu1 %v19094_v8  ;;  %v19123_v19 = vld [vmem:[#allocation27_spill] sm:$0xff]  ;;  %v19125_v2 = vld [vmem:[#allocation198_spill] sm:$0xff]  ;;  %v19127_v8 = vld [vmem:[#allocation200_spill] sm:$0xff] }
 0xad8   :  { %v7955_v7 = vpop.f32.mrf.mxu0  ;;  %v7996_v18 = vpop.f32.mrf.mxu1  ;;  %8112 = vmatprep.subr.bf16.mxu0 %v19095_v36  ;;  %8153 = vmatprep.subr.bf16.mxu1 %v19096_v3  ;;  %v8002_v12 = vadd.f32 %v7950_v26, %v19123_v19  ;;  %v19124_v10 = vld [vmem:[#allocation135_spill] sm:$0xff]  ;;  %v19129_v3 = vld [vmem:[#allocation202_spill] sm:$0xff]  ;;  %v19131_v26 = vld [vmem:[#allocation204_spill] sm:$0xff] }
 0xad9   :  { %8128 = vmatprep.mubr.bf16.mxu0 %v15679_v53  ;;  %8169 = vmatprep.mubr.bf16.mxu1 %v15681_v62  ;;  %v8004_v56 = vadd.f32 %v7991_v39, %v19124_v10  ;;  %v19126_v33 = vld [vmem:[#allocation199_spill] sm:$0xff]  ;;  %v19128_v7 = vld [vmem:[#allocation201_spill] sm:$0xff] }
 0xada   :  { %v15721_v18 = vpack.c.bf16 %v8002_v12, %v8002_v12  ;;  %v19132_v39 = vld [vmem:[#allocation205_spill] sm:$0xff]  ;;  %v19158_v19 = vld [vmem:[#allocation231_spill] sm:$0xff]  ;;  %v19159_v12 = vld [vmem:[#allocation232_spill] sm:$0xff] }
 0xadb   :  { %8113 = vmatpush2.bf16.msra.mxu0 %v19097_v54  ;;  %8154 = vmatpush2.bf16.msra.mxu1 %v19098_v52  ;;  %v15723_v36 = vpack.c.bf16 %v8004_v56, %v8004_v56  ;;  %v19130_v54 = vld [vmem:[#allocation203_spill] sm:$0xff]  ;;  %v19133_v52 = vld [vmem:[#allocation206_spill] sm:$0xff]  ;;  %v19160_v10 = vld [vmem:[#allocation233_spill] sm:$0xff] }
 0xadc   :  { %8114 = vmatprep.subr.bf16.mxu0 %v19099_v11  ;;  %8155 = vmatprep.subr.bf16.mxu1 %v19100_v0  ;;  %v19134_v11 = vld [vmem:[#allocation207_spill] sm:$0xff]  ;;  %v19135_v0 = vld [vmem:[#allocation208_spill] sm:$0xff]  ;;  %v19161_v56 = vld [vmem:[#allocation234_spill] sm:$0xff] }
 0xadf   :  { %8115 = vmatpush2.bf16.msra.mxu0 %v19101_v34  ;;  %8156 = vmatpush2.bf16.msra.mxu1 %v19102_v50  ;;  %v19136_v34 = vld [vmem:[#allocation209_spill] sm:$0xff]  ;;  %v19137_v50 = vld [vmem:[#allocation210_spill] sm:$0xff] }
 0xae0   :  { %8116 = vmatprep.subr.bf16.mxu0 %v19103_v20  ;;  %8157 = vmatprep.subr.bf16.mxu1 %v19104_v38  ;;  %v19138_v20 = vld [vmem:[#allocation211_spill] sm:$0xff]  ;;  %v19139_v38 = vld [vmem:[#allocation212_spill] sm:$0xff] }
 0xae3   :  { %8117 = vmatpush2.bf16.msra.mxu0 %v19105_v5  ;;  %8158 = vmatpush2.bf16.msra.mxu1 %v19106_v60  ;;  %v19140_v5 = vld [vmem:[#allocation213_spill] sm:$0xff]  ;;  %v19141_v60 = vld [vmem:[#allocation214_spill] sm:$0xff] }
 0xae4   :  { %8118 = vmatprep.subr.bf16.mxu0 %v19107_v55  ;;  %8159 = vmatprep.subr.bf16.mxu1 %v19108_v37  ;;  %v19142_v55 = vld [vmem:[#allocation215_spill] sm:$0xff]  ;;  %v19143_v37 = vld [vmem:[#allocation216_spill] sm:$0xff] }
 0xae7   :  { %8119 = vmatpush2.bf16.msra.mxu0 %v19109_v13  ;;  %8160 = vmatpush2.bf16.msra.mxu1 %v19110_v21  ;;  %v19144_v13 = vld [vmem:[#allocation217_spill] sm:$0xff]  ;;  %v19145_v21 = vld [vmem:[#allocation218_spill] sm:$0xff] }
 0xae8   :  { %8120 = vmatprep.subr.bf16.mxu0 %v19111_v4  ;;  %8161 = vmatprep.subr.bf16.mxu1 %v19112_v14  ;;  %v19146_v4 = vld [vmem:[#allocation219_spill] sm:$0xff]  ;;  %v19147_v14 = vld [vmem:[#allocation220_spill] sm:$0xff] }
 0xaeb   :  { %8121 = vmatpush2.bf16.msra.mxu0 %v19113_v41  ;;  %8162 = vmatpush2.bf16.msra.mxu1 %v19114_v35  ;;  %v19148_v41 = vld [vmem:[#allocation221_spill] sm:$0xff]  ;;  %v19149_v35 = vld [vmem:[#allocation222_spill] sm:$0xff] }
 0xaec   :  { %8122 = vmatprep.subr.bf16.mxu0 %v19115_v24  ;;  %8163 = vmatprep.subr.bf16.mxu1 %v19116_v57  ;;  %v19150_v24 = vld [vmem:[#allocation223_spill] sm:$0xff]  ;;  %v19151_v57 = vld [vmem:[#allocation224_spill] sm:$0xff] }
 0xaef   :  { %8123 = vmatpush2.bf16.msra.mxu0 %v19117_v46  ;;  %8164 = vmatpush2.bf16.msra.mxu1 %v19118_v23  ;;  %v19152_v46 = vld [vmem:[#allocation225_spill] sm:$0xff]  ;;  %v19153_v23 = vld [vmem:[#allocation226_spill] sm:$0xff] }
 0xaf0   :  { %8124 = vmatprep.subr.bf16.mxu0 %v19119_v43  ;;  %8165 = vmatprep.subr.bf16.mxu1 %v19120_v47  ;;  %v19154_v43 = vld [vmem:[#allocation227_spill] sm:$0xff]  ;;  %v19155_v47 = vld [vmem:[#allocation228_spill] sm:$0xff] }
 0xaf3   :  { %8125 = vmatpush2.bf16.msra.mxu0 %v19121_v22  ;;  %8166 = vmatpush2.bf16.msra.mxu1 %v19122_v51  ;;  %v19156_v22 = vld [vmem:[#allocation229_spill] sm:$0xff]  ;;  %v19157_v51 = vld [vmem:[#allocation230_spill] sm:$0xff] }
 0xaf4   :  { %8126 = vmatprep.subr.bf16.mxu0 %v19125_v2  ;;  %8167 = vmatprep.subr.bf16.mxu1 %v19126_v33  ;;  %v19162_v2 = vld [vmem:[#allocation235_spill] sm:$0xff]  ;;  %v19163_v33 = vld [vmem:[#allocation236_spill] sm:$0xff] }
 0xaf7   :  { %8127 = vmatpush2.bf16.msra.mxu0 %v19127_v8  ;;  %8168 = vmatpush2.bf16.msra.mxu1 %v19128_v7  ;;  %v19164_v8 = vld [vmem:[#allocation237_spill] sm:$0xff]  ;;  %v19165_v7 = vld [vmem:[#allocation238_spill] sm:$0xff] }
 0xaf8   :  { %8178 = vmatprep.subr.bf16.mxu0 %v19129_v3  ;;  %8219 = vmatprep.subr.bf16.mxu1 %v19130_v54  ;;  %v19166_v3 = vld [vmem:[#allocation239_spill] sm:$0xff]  ;;  %v19167_v54 = vld [vmem:[#allocation240_spill] sm:$0xff] }
 0xafa   :  { %8129 = vmatmul.mubr.bf16.vlgmr.msra.gmra.mxu0 %v15721_v18  ;;  %8170 = vmatmul.mubr.bf16.vlgmr.msra.gmra.mxu1 %v15723_v36 }
 0xafb   :  { %8179 = vmatpush1.bf16.msra.mxu0 %v19131_v26  ;;  %8210 = vmatprep.mubr.bf16.mxu0 %v15637_v28  ;;  %v19168_v26 = vld [vmem:[#allocation241_spill] sm:$0xff] }
 0xafc   :  { %8220 = vmatpush1.bf16.msra.mxu1 %v19132_v39  ;;  %8251 = vmatprep.mubr.bf16.mxu1 %v15639_v45  ;;  %v19169_v39 = vld [vmem:[#allocation242_spill] sm:$0xff] }
 0xafd   :  { %8180 = vmatprep.subr.bf16.mxu0 %v19133_v52  ;;  %8221 = vmatprep.subr.bf16.mxu1 %v19134_v11  ;;  %v19170_v52 = vld [vmem:[#allocation243_spill] sm:$0xff]  ;;  %v19171_v11 = vld [vmem:[#allocation244_spill] sm:$0xff] }
 0xaff   :  { %8181 = vmatpush1.bf16.msra.mxu0 %v19135_v0  ;;  %v19172_v0 = vld [vmem:[#allocation245_spill] sm:$0xff] }
 0xb00   :  { %8222 = vmatpush1.bf16.msra.mxu1 %v19136_v34  ;;  %8182 = vmatprep.subr.bf16.mxu0 %v19137_v50  ;;  %v19173_v34 = vld [vmem:[#allocation246_spill] sm:$0xff]  ;;  %v19174_v50 = vld [vmem:[#allocation247_spill] sm:$0xff] }
 0xb01   :  { %8223 = vmatprep.subr.bf16.mxu1 %v19138_v20  ;;  %v19175_v20 = vld [vmem:[#allocation248_spill] sm:$0xff] }
 0xb03   :  { %8183 = vmatpush1.bf16.msra.mxu0 %v19139_v38  ;;  %v19176_v38 = vld [vmem:[#allocation249_spill] sm:$0xff] }
 0xb04   :  { %8224 = vmatpush1.bf16.msra.mxu1 %v19140_v5  ;;  %8184 = vmatprep.subr.bf16.mxu0 %v19141_v60  ;;  %v19177_v5 = vld [vmem:[#allocation250_spill] sm:$0xff]  ;;  %v19178_v60 = vld [vmem:[#allocation251_spill] sm:$0xff] }
 0xb05   :  { %8225 = vmatprep.subr.bf16.mxu1 %v19142_v55  ;;  %v19179_v55 = vld [vmem:[#allocation252_spill] sm:$0xff] }
 0xb07   :  { %8185 = vmatpush1.bf16.msra.mxu0 %v19143_v37  ;;  %v19180_v37 = vld [vmem:[#allocation253_spill] sm:$0xff] }
 0xb08   :  { %8226 = vmatpush1.bf16.msra.mxu1 %v19144_v13  ;;  %8186 = vmatprep.subr.bf16.mxu0 %v19145_v21  ;;  %v19181_v13 = vld [vmem:[#allocation254_spill] sm:$0xff]  ;;  %v19182_v21 = vld [vmem:[#allocation255_spill] sm:$0xff] }
 0xb09   :  { %8227 = vmatprep.subr.bf16.mxu1 %v19146_v4  ;;  %v19183_v4 = vld [vmem:[#allocation256_spill] sm:$0xff] }
 0xb0b   :  { %8187 = vmatpush1.bf16.msra.mxu0 %v19147_v14  ;;  %v19184_v14 = vld [vmem:[#allocation257_spill] sm:$0xff] }
 0xb0c   :  { %8228 = vmatpush1.bf16.msra.mxu1 %v19148_v41  ;;  %8188 = vmatprep.subr.bf16.mxu0 %v19149_v35  ;;  %v19185_v41 = vld [vmem:[#allocation258_spill] sm:$0xff]  ;;  %v19186_v35 = vld [vmem:[#allocation259_spill] sm:$0xff] }
 0xb0d   :  { %8229 = vmatprep.subr.bf16.mxu1 %v19150_v24  ;;  %v19187_v24 = vld [vmem:[#allocation260_spill] sm:$0xff] }
 0xb0f   :  { %8189 = vmatpush1.bf16.msra.mxu0 %v19151_v57  ;;  %v19188_v57 = vld [vmem:[#allocation261_spill] sm:$0xff] }
 0xb10   :  { %8230 = vmatpush1.bf16.msra.mxu1 %v19152_v46  ;;  %8190 = vmatprep.subr.bf16.mxu0 %v19153_v23  ;;  %v19189_v46 = vld [vmem:[#allocation262_spill] sm:$0xff]  ;;  %v19190_v23 = vld [vmem:[#allocation263_spill] sm:$0xff] }
 0xb11   :  { %8231 = vmatprep.subr.bf16.mxu1 %v19154_v43  ;;  %v19191_v43 = vld [vmem:[#allocation264_spill] sm:$0xff] }
 0xb13   :  { %8191 = vmatpush1.bf16.msra.mxu0 %v19155_v47  ;;  %v19192_v47 = vld [vmem:[#allocation265_spill] sm:$0xff] }
 0xb14   :  { %8232 = vmatpush1.bf16.msra.mxu1 %v19156_v22  ;;  %8192 = vmatprep.subr.bf16.mxu0 %v19157_v51  ;;  %v19193_v22 = vld [vmem:[#allocation266_spill] sm:$0xff]  ;;  %v19194_v51 = vld [vmem:[#allocation267_spill] sm:$0xff] }
 0xb15   :  { %8233 = vmatprep.subr.bf16.mxu1 %v19158_v19  ;;  %v19195_v19 = vld [vmem:[#allocation268_spill] sm:$0xff] }
 0xb17   :  { %8193 = vmatpush1.bf16.msra.mxu0 %v19159_v12  ;;  %v19196_v12 = vld [vmem:[#allocation269_spill] sm:$0xff] }
 0xb18   :  { %8234 = vmatpush1.bf16.msra.mxu1 %v19160_v10  ;;  %8194 = vmatprep.subr.bf16.mxu0 %v19161_v56  ;;  %v19197_v10 = vld [vmem:[#allocation270_spill] sm:$0xff]  ;;  %v19198_v56 = vld [vmem:[#allocation271_spill] sm:$0xff] }
 0xb19   :  { %8235 = vmatprep.subr.bf16.mxu1 %v19162_v2  ;;  %v19199_v2 = vld [vmem:[#allocation272_spill] sm:$0xff] }
 0xb1b   :  { %8195 = vmatpush2.bf16.msra.mxu0 %v19163_v33  ;;  %v19200_v33 = vld [vmem:[#allocation273_spill] sm:$0xff] }
 0xb1c   :  { %8236 = vmatpush2.bf16.msra.mxu1 %v19164_v8  ;;  %8196 = vmatprep.subr.bf16.mxu0 %v19165_v7  ;;  %v19201_v8 = vld [vmem:[#allocation274_spill] sm:$0xff]  ;;  %v19202_v7 = vld [vmem:[#allocation275_spill] sm:$0xff] }
 0xb1d   :  { %8237 = vmatprep.subr.bf16.mxu1 %v19166_v3  ;;  %v19203_v3 = vld [vmem:[#allocation276_spill] sm:$0xff] }
 0xb1f   :  { %8197 = vmatpush2.bf16.msra.mxu0 %v19167_v54  ;;  %v19204_v54 = vld [vmem:[#allocation277_spill] sm:$0xff] }
 0xb20   :  { %8238 = vmatpush2.bf16.msra.mxu1 %v19168_v26  ;;  %8198 = vmatprep.subr.bf16.mxu0 %v19169_v39  ;;  %v19205_v26 = vld [vmem:[#allocation278_spill] sm:$0xff]  ;;  %v19206_v39 = vld [vmem:[#allocation279_spill] sm:$0xff] }
 0xb21   :  { %8239 = vmatprep.subr.bf16.mxu1 %v19170_v52  ;;  %v19207_v52 = vld [vmem:[#allocation280_spill] sm:$0xff] }
 0xb23   :  { %8199 = vmatpush2.bf16.msra.mxu0 %v19171_v11  ;;  %v19208_v11 = vld [vmem:[#allocation281_spill] sm:$0xff] }
 0xb24   :  { %8240 = vmatpush2.bf16.msra.mxu1 %v19172_v0  ;;  %8200 = vmatprep.subr.bf16.mxu0 %v19173_v34  ;;  %v19209_v0 = vld [vmem:[#allocation282_spill] sm:$0xff]  ;;  %v19210_v34 = vld [vmem:[#allocation283_spill] sm:$0xff] }
 0xb25   :  { %8241 = vmatprep.subr.bf16.mxu1 %v19174_v50  ;;  %v19211_v50 = vld [vmem:[#allocation284_spill] sm:$0xff] }
 0xb27   :  { %8201 = vmatpush2.bf16.msra.mxu0 %v19175_v20  ;;  %v19212_v20 = vld [vmem:[#allocation285_spill] sm:$0xff] }
 0xb28   :  { %8242 = vmatpush2.bf16.msra.mxu1 %v19176_v38  ;;  %8202 = vmatprep.subr.bf16.mxu0 %v19177_v5  ;;  %v19213_v38 = vld [vmem:[#allocation286_spill] sm:$0xff]  ;;  %v19214_v5 = vld [vmem:[#allocation287_spill] sm:$0xff] }
 0xb29   :  { %8243 = vmatprep.subr.bf16.mxu1 %v19178_v60  ;;  %v19215_v60 = vld [vmem:[#allocation288_spill] sm:$0xff] }
 0xb2b   :  { %8203 = vmatpush2.bf16.msra.mxu0 %v19179_v55  ;;  %v19216_v55 = vld [vmem:[#allocation289_spill] sm:$0xff] }
 0xb2c   :  { %8244 = vmatpush2.bf16.msra.mxu1 %v19180_v37  ;;  %8204 = vmatprep.subr.bf16.mxu0 %v19181_v13  ;;  %v19217_v37 = vld [vmem:[#allocation290_spill] sm:$0xff]  ;;  %v19218_v13 = vld [vmem:[#allocation291_spill] sm:$0xff] }
 0xb2d   :  { %8245 = vmatprep.subr.bf16.mxu1 %v19182_v21  ;;  %v19219_v21 = vld [vmem:[#allocation292_spill] sm:$0xff] }
 0xb2f   :  { %8205 = vmatpush2.bf16.msra.mxu0 %v19183_v4  ;;  %v19220_v4 = vld [vmem:[#allocation293_spill] sm:$0xff] }
 0xb30   :  { %8246 = vmatpush2.bf16.msra.mxu1 %v19184_v14  ;;  %8206 = vmatprep.subr.bf16.mxu0 %v19185_v41  ;;  %v19221_v14 = vld [vmem:[#allocation294_spill] sm:$0xff]  ;;  %v19222_v41 = vld [vmem:[#allocation295_spill] sm:$0xff] }
 0xb31   :  { %8247 = vmatprep.subr.bf16.mxu1 %v19186_v35  ;;  %v19223_v35 = vld [vmem:[#allocation296_spill] sm:$0xff] }
 0xb33   :  { %8207 = vmatpush2.bf16.msra.mxu0 %v19187_v24  ;;  %v19224_v24 = vld [vmem:[#allocation297_spill] sm:$0xff] }
 0xb34   :  { %8248 = vmatpush2.bf16.msra.mxu1 %v19188_v57  ;;  %8208 = vmatprep.subr.bf16.mxu0 %v19189_v46  ;;  %v19225_v57 = vld [vmem:[#allocation298_spill] sm:$0xff]  ;;  %v19226_v46 = vld [vmem:[#allocation299_spill] sm:$0xff] }
 0xb35   :  { %8249 = vmatprep.subr.bf16.mxu1 %v19190_v23  ;;  %v19227_v23 = vld [vmem:[#allocation300_spill] sm:$0xff] }
 0xb37   :  { %8209 = vmatpush2.bf16.msra.mxu0 %v19191_v43  ;;  %v19228_v43 = vld [vmem:[#allocation301_spill] sm:$0xff] }
 0xb38   :  { %8250 = vmatpush2.bf16.msra.mxu1 %v19192_v47  ;;  %8260 = vmatprep.subr.bf16.mxu0 %v19193_v22  ;;  %v19229_v47 = vld [vmem:[#allocation302_spill] sm:$0xff]  ;;  %v19230_v22 = vld [vmem:[#allocation303_spill] sm:$0xff] }
 0xb39   :  { %8301 = vmatprep.subr.bf16.mxu1 %v19194_v51  ;;  %v19231_v51 = vld [vmem:[#allocation304_spill] sm:$0xff] }
 0xb3a   :  { %8211 = vmatmul.mubr.bf16.vlgmr.msra.gmra.mxu0 %v15641_v25 }
 0xb3b   :  { %8252 = vmatmul.mubr.bf16.vlgmr.msra.gmra.mxu1 %v15643_v61  ;;  %8261 = vmatpush1.bf16.msra.mxu0 %v19195_v19  ;;  %v19232_v19 = vld [vmem:[#allocation305_spill] sm:$0xff] }
 0xb3c   :  { %8292 = vmatprep.mubr.bf16.mxu0 %v15679_v53  ;;  %8302 = vmatpush1.bf16.msra.mxu1 %v19196_v12  ;;  %v19233_v12 = vld [vmem:[#allocation306_spill] sm:$0xff] }
 0xb3d   :  { %8333 = vmatprep.mubr.bf16.mxu1 %v15681_v62  ;;  %8262 = vmatprep.subr.bf16.mxu0 %v19197_v10  ;;  %v19234_v10 = vld [vmem:[#allocation307_spill] sm:$0xff] }
 0xb3e   :  { %8303 = vmatprep.subr.bf16.mxu1 %v19198_v56  ;;  %v19235_v56 = vld [vmem:[#allocation308_spill] sm:$0xff] }
 0xb3f   :  { %8263 = vmatpush1.bf16.msra.mxu0 %v19199_v2  ;;  %v19236_v2 = vld [vmem:[#allocation309_spill] sm:$0xff] }
 0xb40   :  { %8304 = vmatpush1.bf16.msra.mxu1 %v19200_v33  ;;  %8264 = vmatprep.subr.bf16.mxu0 %v19201_v8  ;;  %v19237_v33 = vld [vmem:[#allocation310_spill] sm:$0xff]  ;;  %v19238_v8 = vld [vmem:[#allocation311_spill] sm:$0xff] }
 0xb41   :  { %8305 = vmatprep.subr.bf16.mxu1 %v19202_v7  ;;  %v19239_v7 = vld [vmem:[#allocation312_spill] sm:$0xff] }
 0xb43   :  { %8265 = vmatpush1.bf16.msra.mxu0 %v19203_v3  ;;  %v19240_v3 = vld [vmem:[#allocation313_spill] sm:$0xff] }
 0xb44   :  { %8306 = vmatpush1.bf16.msra.mxu1 %v19204_v54  ;;  %8266 = vmatprep.subr.bf16.mxu0 %v19205_v26  ;;  %v19241_v54 = vld [vmem:[#allocation314_spill] sm:$0xff]  ;;  %v19242_v26 = vld [vmem:[#allocation315_spill] sm:$0xff] }
 0xb45   :  { %8307 = vmatprep.subr.bf16.mxu1 %v19206_v39  ;;  %v19243_v39 = vld [vmem:[#allocation316_spill] sm:$0xff] }
 0xb47   :  { %8267 = vmatpush1.bf16.msra.mxu0 %v19207_v52  ;;  %v19244_v52 = vld [vmem:[#allocation317_spill] sm:$0xff] }
 0xb48   :  { %8308 = vmatpush1.bf16.msra.mxu1 %v19208_v11  ;;  %8268 = vmatprep.subr.bf16.mxu0 %v19209_v0  ;;  %v19245_v11 = vld [vmem:[#allocation318_spill] sm:$0xff]  ;;  %v19246_v0 = vld [vmem:[#allocation319_spill] sm:$0xff] }
 0xb49   :  { %8309 = vmatprep.subr.bf16.mxu1 %v19210_v34  ;;  %v19247_v34 = vld [vmem:[#allocation320_spill] sm:$0xff] }
 0xb4b   :  { %8269 = vmatpush1.bf16.msra.mxu0 %v19211_v50  ;;  %v19248_v50 = vld [vmem:[#allocation321_spill] sm:$0xff] }
 0xb4c   :  { %8310 = vmatpush1.bf16.msra.mxu1 %v19212_v20  ;;  %8270 = vmatprep.subr.bf16.mxu0 %v19213_v38  ;;  %v19249_v20 = vld [vmem:[#allocation322_spill] sm:$0xff]  ;;  %v19250_v38 = vld [vmem:[#allocation323_spill] sm:$0xff] }
 0xb4d   :  { %8311 = vmatprep.subr.bf16.mxu1 %v19214_v5  ;;  %v19251_v5 = vld [vmem:[#allocation324_spill] sm:$0xff] }
 0xb4f   :  { %8271 = vmatpush1.bf16.msra.mxu0 %v19215_v60  ;;  %v19252_v60 = vld [vmem:[#allocation325_spill] sm:$0xff] }
 0xb50   :  { %8312 = vmatpush1.bf16.msra.mxu1 %v19216_v55  ;;  %8272 = vmatprep.subr.bf16.mxu0 %v19217_v37  ;;  %v19253_v55 = vld [vmem:[#allocation326_spill] sm:$0xff]  ;;  %v19254_v37 = vld [vmem:[#allocation327_spill] sm:$0xff] }
 0xb51   :  { %8313 = vmatprep.subr.bf16.mxu1 %v19218_v13  ;;  %v19255_v13 = vld [vmem:[#allocation328_spill] sm:$0xff] }
 0xb53   :  { %8273 = vmatpush1.bf16.msra.mxu0 %v19219_v21  ;;  %v19256_v21 = vld [vmem:[#allocation329_spill] sm:$0xff] }
 0xb54   :  { %8314 = vmatpush1.bf16.msra.mxu1 %v19220_v4  ;;  %8274 = vmatprep.subr.bf16.mxu0 %v19221_v14  ;;  %v19257_v4 = vld [vmem:[#allocation330_spill] sm:$0xff]  ;;  %v19258_v14 = vld [vmem:[#allocation331_spill] sm:$0xff] }
 0xb55   :  { %8315 = vmatprep.subr.bf16.mxu1 %v19222_v41 }
 0xb57   :  { %8275 = vmatpush1.bf16.msra.mxu0 %v19223_v35 }
 0xb58   :  { %8316 = vmatpush1.bf16.msra.mxu1 %v19224_v24  ;;  %8276 = vmatprep.subr.bf16.mxu0 %v19225_v57  ;;  %v19259_v24 = vld [vmem:[#allocation333_spill] sm:$0xff] }
 0xb59   :  { %8317 = vmatprep.subr.bf16.mxu1 %v19226_v46  ;;  %v19260_v46 = vld [vmem:[#allocation332_spill] sm:$0xff] }
 0xb5b   :  { %8277 = vmatpush2.bf16.msra.mxu0 %v19227_v23  ;;  %v19261_v23 = vld [vmem:[#allocation334_spill] sm:$0xff] }
 0xb5c   :  { %8318 = vmatpush2.bf16.msra.mxu1 %v19228_v43  ;;  %8278 = vmatprep.subr.bf16.mxu0 %v19229_v47 }
 0xb5d   :  { %8319 = vmatprep.subr.bf16.mxu1 %v19230_v22 }
 0xb5f   :  { %8279 = vmatpush2.bf16.msra.mxu0 %v19231_v51 }
 0xb60   :  { %8320 = vmatpush2.bf16.msra.mxu1 %v19232_v19  ;;  %8280 = vmatprep.subr.bf16.mxu0 %v19233_v12  ;;  %v19262_v19 = vld [vmem:[#allocation336_spill] sm:$0xff]  ;;  %v19263_v12 = vld [vmem:[#allocation337_spill] sm:$0xff] }
 0xb61   :  { %8321 = vmatprep.subr.bf16.mxu1 %v19234_v10 }
 0xb63   :  { %8281 = vmatpush2.bf16.msra.mxu0 %v19235_v56 }
 0xb64   :  { %8322 = vmatpush2.bf16.msra.mxu1 %v19236_v2  ;;  %8282 = vmatprep.subr.bf16.mxu0 %v19237_v33  ;;  %v19264_v33 = vld [vmem:[#allocation338_spill] sm:$0xff] }
 0xb65   :  { %8323 = vmatprep.subr.bf16.mxu1 %v19238_v8  ;;  %v19265_v8 = vld [vmem:[#allocation339_spill] sm:$0xff] }
 0xb67   :  { %8283 = vmatpush2.bf16.msra.mxu0 %v19239_v7 }
 0xb68   :  { %8324 = vmatpush2.bf16.msra.mxu1 %v19240_v3  ;;  %8284 = vmatprep.subr.bf16.mxu0 %v19241_v54  ;;  %v19266_v54 = vld [vmem:[#allocation340_spill] sm:$0xff] }
 0xb69   :  { %8325 = vmatprep.subr.bf16.mxu1 %v19242_v26  ;;  %v19267_v26 = vld [vmem:[#allocation341_spill] sm:$0xff] }
 0xb6b   :  { %8285 = vmatpush2.bf16.msra.mxu0 %v19243_v39  ;;  %v19268_v39 = vld [vmem:[#allocation342_spill] sm:$0xff] }
 0xb6c   :  { %8326 = vmatpush2.bf16.msra.mxu1 %v19244_v52  ;;  %8286 = vmatprep.subr.bf16.mxu0 %v19245_v11  ;;  %v19270_v52 = vld [vmem:[#allocation344_spill] sm:$0xff]  ;;  %v19271_v11 = vld [vmem:[#allocation345_spill] sm:$0xff] }
 0xb6d   :  { %8327 = vmatprep.subr.bf16.mxu1 %v19246_v0  ;;  %v19272_v0 = vld [vmem:[#allocation346_spill] sm:$0xff] }
 0xb6f   :  { %8287 = vmatpush2.bf16.msra.mxu0 %v19247_v34  ;;  %v19273_v34 = vld [vmem:[#allocation347_spill] sm:$0xff] }
 0xb70   :  { %8328 = vmatpush2.bf16.msra.mxu1 %v19248_v50  ;;  %8288 = vmatprep.subr.bf16.mxu0 %v19249_v20  ;;  %v19274_v50 = vld [vmem:[#allocation348_spill] sm:$0xff]  ;;  %v19275_v20 = vld [vmem:[#allocation349_spill] sm:$0xff] }
 0xb71   :  { %8329 = vmatprep.subr.bf16.mxu1 %v19250_v38  ;;  %v19276_v38 = vld [vmem:[#allocation350_spill] sm:$0xff] }
 0xb73   :  { %8289 = vmatpush2.bf16.msra.mxu0 %v19251_v5  ;;  %v19277_v5 = vld [vmem:[#allocation351_spill] sm:$0xff] }
 0xb74   :  { %8330 = vmatpush2.bf16.msra.mxu1 %v19252_v60  ;;  %8290 = vmatprep.subr.bf16.mxu0 %v19253_v55  ;;  %v19278_v60 = vld [vmem:[#allocation352_spill] sm:$0xff]  ;;  %v19279_v55 = vld [vmem:[#allocation353_spill] sm:$0xff] }
 0xb75   :  { %8331 = vmatprep.subr.bf16.mxu1 %v19254_v37  ;;  %v19280_v37 = vld [vmem:[#allocation354_spill] sm:$0xff] }
 0xb77   :  { %8291 = vmatpush2.bf16.msra.mxu0 %v19255_v13  ;;  %v19281_v13 = vld [vmem:[#allocation355_spill] sm:$0xff] }
 0xb78   :  { %8332 = vmatpush2.bf16.msra.mxu1 %v19256_v21  ;;  %8342 = vmatprep.subr.bf16.mxu0 %v19257_v4  ;;  %v19282_v21 = vld [vmem:[#allocation356_spill] sm:$0xff]  ;;  %v19283_v4 = vld [vmem:[#allocation357_spill] sm:$0xff] }
 0xb79   :  { %8383 = vmatprep.subr.bf16.mxu1 %v19258_v14  ;;  %v19284_v14 = vld [vmem:[#allocation358_spill] sm:$0xff] }
 0xb7a   :  { %8293 = vmatmul.mubr.bf16.vlgmr.msra.gmra.mxu0 %v15721_v18  ;;  %v8048_v41 = vpop.f32.mrf.mxu0  ;;  %v8089_v35 = vpop.f32.mrf.mxu1 }
 0xb7b   :  { %8334 = vmatmul.mubr.bf16.vlgmr.msra.gmra.mxu1 %v15723_v36  ;;  %v8049_v57 = vadd.f32 %v8048_v41, %v19259_v24  ;;  %8343 = vmatpush1.bf16.msra.mxu0 %v19260_v46  ;;  %v19285_v41 = vld [vmem:[#allocation359_spill] sm:$0xff]  ;;  %v19287_v24 = vld [vmem:[#allocation361_spill] sm:$0xff] }
 0xb7c   :  { %8374 = vmatprep.mubr.bf16.mxu0 %v15637_v28  ;;  %8384 = vmatpush1.bf16.msra.mxu1 %v19261_v23  ;;  %v8050_v43 = vpop.f32.mrf.mxu0  ;;  %v8091_v47 = vpop.f32.mrf.mxu1  ;;  %v19289_v46 = vld [vmem:[#allocation363_spill] sm:$0xff]  ;;  %v19290_v23 = vld [vmem:[#allocation364_spill] sm:$0xff] }
 0xb7d   :  { %v15869_v22 = vadd.f32 %v8089_v35, %v8049_v57  ;;  %8415 = vmatprep.mubr.bf16.mxu1 %v15639_v45  ;;  %v8051_v51 = vadd.f32 %v8050_v43, %v18707_v32  ;;  %8344 = vmatprep.subr.bf16.mxu0 %v19262_v19  ;;  %v19269_v32 = vld [vmem:[#allocation343_spill] sm:$0xff]  ;;  %v19286_v35 = vld [vmem:[#allocation360_spill] sm:$0xff]  ;;  %v19288_v57 = vld [vmem:[#allocation362_spill] sm:$0xff] }
 0xb7e   :  { %8385 = vmatprep.subr.bf16.mxu1 %v19263_v12  ;;  %v8052_v10 = vpop.f32.mrf.mxu0  ;;  %v8093_v56 = vpop.f32.mrf.mxu1  ;;  %v19291_v43 = vld [vmem:[#allocation365_spill] sm:$0xff]  ;;  %v19294_v19 = vld [vmem:[#allocation368_spill] sm:$0xff] }
 0xb7f   :  { %v15875_v2 = vadd.f32 %v8091_v47, %v8051_v51  ;;  %8345 = vmatpush1.bf16.msra.mxu0 %v19264_v33  ;;  %v19292_v47 = vld [vmem:[#allocation366_spill] sm:$0xff]  ;;  %v19293_v51 = vld [vmem:[#allocation367_spill] sm:$0xff]  ;;  %v19295_v12 = vld [vmem:[#allocation369_spill] sm:$0xff] }
 0xb80   :  { %8386 = vmatpush1.bf16.msra.mxu1 %v19265_v8  ;;  %v8053_v7 = vpop.f32.mrf.mxu0  ;;  %v8094_v3 = vpop.f32.mrf.mxu1  ;;  %8346 = vmatprep.subr.bf16.mxu0 %v19266_v54  ;;  %v19296_v10 = vld [vmem:[#allocation370_spill] sm:$0xff]  ;;  %v19297_v56 = vld [vmem:[#allocation371_spill] sm:$0xff]  ;;  %v19298_v33 = vld [vmem:[#allocation372_spill] sm:$0xff] }
 0xb81   :  { %8387 = vmatprep.subr.bf16.mxu1 %v19267_v26  ;;  %v19299_v8 = vld [vmem:[#allocation373_spill] sm:$0xff]  ;;  %v19300_v7 = vld [vmem:[#allocation374_spill] sm:$0xff]  ;;  %v19301_v3 = vld [vmem:[#allocation375_spill] sm:$0xff] }
 0xb82   :  { %v19302_v54 = vld [vmem:[#allocation376_spill] sm:$0xff]  ;;  %v19303_v26 = vld [vmem:[#allocation377_spill] sm:$0xff] }
 0xb83   :  { %8347 = vmatpush1.bf16.msra.mxu0 %v19268_v39  ;;  %v19304_v39 = vld [vmem:[#allocation378_spill] sm:$0xff] }
 0xb84   :  { %8388 = vmatpush1.bf16.msra.mxu1 %v19269_v32  ;;  %8348 = vmatprep.subr.bf16.mxu0 %v19270_v52  ;;  %v19305_v32 = vld [vmem:[#allocation379_spill] sm:$0xff]  ;;  %v19306_v52 = vld [vmem:[#allocation380_spill] sm:$0xff] }
 0xb85   :  { %8389 = vmatprep.subr.bf16.mxu1 %v19271_v11  ;;  %v19307_v11 = vld [vmem:[#allocation381_spill] sm:$0xff] }
 0xb87   :  { %8349 = vmatpush1.bf16.msra.mxu0 %v19272_v0  ;;  %v19308_v0 = vld [vmem:[#allocation382_spill] sm:$0xff] }
 0xb88   :  { %8390 = vmatpush1.bf16.msra.mxu1 %v19273_v34  ;;  %8350 = vmatprep.subr.bf16.mxu0 %v19274_v50  ;;  %v19309_v34 = vld [vmem:[#allocation383_spill] sm:$0xff]  ;;  %v19310_v50 = vld [vmem:[#allocation384_spill] sm:$0xff] }
 0xb89   :  { %8391 = vmatprep.subr.bf16.mxu1 %v19275_v20  ;;  %v19311_v20 = vld [vmem:[#allocation385_spill] sm:$0xff] }
 0xb8b   :  { %8351 = vmatpush1.bf16.msra.mxu0 %v19276_v38  ;;  %v19312_v38 = vld [vmem:[#allocation386_spill] sm:$0xff] }
 0xb8c   :  { %8392 = vmatpush1.bf16.msra.mxu1 %v19277_v5  ;;  %8352 = vmatprep.subr.bf16.mxu0 %v19278_v60  ;;  %v19313_v5 = vld [vmem:[#allocation387_spill] sm:$0xff]  ;;  %v19314_v60 = vld [vmem:[#allocation388_spill] sm:$0xff] }
 0xb8d   :  { %8393 = vmatprep.subr.bf16.mxu1 %v19279_v55  ;;  %v19315_v55 = vld [vmem:[#allocation389_spill] sm:$0xff] }
 0xb8f   :  { %8353 = vmatpush1.bf16.msra.mxu0 %v19280_v37  ;;  %v19316_v37 = vld [vmem:[#allocation390_spill] sm:$0xff] }
 0xb90   :  { %8394 = vmatpush1.bf16.msra.mxu1 %v19281_v13  ;;  %8354 = vmatprep.subr.bf16.mxu0 %v19282_v21  ;;  %v19317_v13 = vld [vmem:[#allocation391_spill] sm:$0xff]  ;;  %v19318_v21 = vld [vmem:[#allocation392_spill] sm:$0xff] }
 0xb91   :  { %8395 = vmatprep.subr.bf16.mxu1 %v19283_v4  ;;  %v19319_v4 = vld [vmem:[#allocation393_spill] sm:$0xff] }
 0xb93   :  { %8355 = vmatpush1.bf16.msra.mxu0 %v19284_v14  ;;  %v19320_v14 = vld [vmem:[#allocation394_spill] sm:$0xff] }
 0xb94   :  { %8396 = vmatpush1.bf16.msra.mxu1 %v19285_v41  ;;  %8356 = vmatprep.subr.bf16.mxu0 %v19286_v35  ;;  %v19321_v41 = vld [vmem:[#allocation395_spill] sm:$0xff]  ;;  %v19322_v35 = vld [vmem:[#allocation396_spill] sm:$0xff] }
 0xb95   :  { %8397 = vmatprep.subr.bf16.mxu1 %v19287_v24  ;;  %v19323_v24 = vld [vmem:[#allocation397_spill] sm:$0xff] }
 0xb97   :  { %8357 = vmatpush1.bf16.msra.mxu0 %v19288_v57 }
 0xb98   :  { %8398 = vmatpush1.bf16.msra.mxu1 %v19289_v46  ;;  %8358 = vmatprep.subr.bf16.mxu0 %v19290_v23 }
 0xb99   :  { %8399 = vmatprep.subr.bf16.mxu1 %v19291_v43  ;;  %v19324_v43 = vld [vmem:[#allocation398_spill] sm:$0xff] }
 0xb9b   :  { %8359 = vmatpush2.bf16.msra.mxu0 %v19292_v47  ;;  %v19325_v47 = vld [vmem:[#allocation399_spill] sm:$0xff] }
 0xb9c   :  { %8400 = vmatpush2.bf16.msra.mxu1 %v19293_v51  ;;  %8360 = vmatprep.subr.bf16.mxu0 %v19294_v19 }
 0xb9d   :  { %8401 = vmatprep.subr.bf16.mxu1 %v19295_v12 }
 0xb9f   :  { %8361 = vmatpush2.bf16.msra.mxu0 %v19296_v10 }
 0xba0   :  { %8402 = vmatpush2.bf16.msra.mxu1 %v19297_v56  ;;  %8362 = vmatprep.subr.bf16.mxu0 %v19298_v33 }
 0xba1   :  { %8403 = vmatprep.subr.bf16.mxu1 %v19299_v8  ;;  %v19326_v8 = vld [vmem:[#allocation401_spill] sm:$0xff] }
 0xba3   :  { %8363 = vmatpush2.bf16.msra.mxu0 %v19300_v7  ;;  %v19327_v7 = vld [vmem:[#allocation402_spill] sm:$0xff] }
 0xba4   :  { %8404 = vmatpush2.bf16.msra.mxu1 %v19301_v3  ;;  %8364 = vmatprep.subr.bf16.mxu0 %v19302_v54 }
 0xba5   :  { %8405 = vmatprep.subr.bf16.mxu1 %v19303_v26  ;;  %v19328_v26 = vld [vmem:[#allocation403_spill] sm:$0xff] }
 0xba7   :  { %8365 = vmatpush2.bf16.msra.mxu0 %v19304_v39  ;;  %v19329_v39 = vld [vmem:[#allocation404_spill] sm:$0xff] }
 0xba8   :  { %8406 = vmatpush2.bf16.msra.mxu1 %v19305_v32  ;;  %8366 = vmatprep.subr.bf16.mxu0 %v19306_v52  ;;  %v19330_v32 = vld [vmem:[#allocation405_spill] sm:$0xff]  ;;  %v19333_v52 = vld [vmem:[#allocation408_spill] sm:$0xff] }
 0xba9   :  { %8407 = vmatprep.subr.bf16.mxu1 %v19307_v11  ;;  %v19335_v11 = vld [vmem:[#allocation410_spill] sm:$0xff] }
 0xbab   :  { %8367 = vmatpush2.bf16.msra.mxu0 %v19308_v0  ;;  %v19336_v0 = vld [vmem:[#allocation411_spill] sm:$0xff] }
 0xbac   :  { %8408 = vmatpush2.bf16.msra.mxu1 %v19309_v34  ;;  %8368 = vmatprep.subr.bf16.mxu0 %v19310_v50  ;;  %v19337_v34 = vld [vmem:[#allocation412_spill] sm:$0xff]  ;;  %v19338_v50 = vld [vmem:[#allocation413_spill] sm:$0xff] }
 0xbad   :  { %8409 = vmatprep.subr.bf16.mxu1 %v19311_v20  ;;  %v19339_v20 = vld [vmem:[#allocation414_spill] sm:$0xff] }
 0xbaf   :  { %8369 = vmatpush2.bf16.msra.mxu0 %v19312_v38  ;;  %v19340_v38 = vld [vmem:[#allocation415_spill] sm:$0xff] }
 0xbb0   :  { %8410 = vmatpush2.bf16.msra.mxu1 %v19313_v5  ;;  %8370 = vmatprep.subr.bf16.mxu0 %v19314_v60  ;;  %v19341_v5 = vld [vmem:[#allocation416_spill] sm:$0xff]  ;;  %v19342_v60 = vld [vmem:[#allocation417_spill] sm:$0xff] }
 0xbb1   :  { %8411 = vmatprep.subr.bf16.mxu1 %v19315_v55  ;;  %v19343_v55 = vld [vmem:[#allocation418_spill] sm:$0xff] }
 0xbb3   :  { %8371 = vmatpush2.bf16.msra.mxu0 %v19316_v37  ;;  %v19344_v37 = vld [vmem:[#allocation419_spill] sm:$0xff] }
 0xbb4   :  { %8412 = vmatpush2.bf16.msra.mxu1 %v19317_v13  ;;  %8372 = vmatprep.subr.bf16.mxu0 %v19318_v21  ;;  %v19345_v13 = vld [vmem:[#allocation420_spill] sm:$0xff]  ;;  %v19346_v21 = vld [vmem:[#allocation421_spill] sm:$0xff] }
 0xbb5   :  { %8413 = vmatprep.subr.bf16.mxu1 %v19319_v4  ;;  %v19347_v4 = vld [vmem:[#allocation422_spill] sm:$0xff] }
 0xbb7   :  { %8373 = vmatpush2.bf16.msra.mxu0 %v19320_v14  ;;  %v19348_v14 = vld [vmem:[#allocation423_spill] sm:$0xff] }
 0xbb8   :  { %8414 = vmatpush2.bf16.msra.mxu1 %v19321_v41  ;;  %8424 = vmatprep.subr.bf16.mxu0 %v19322_v35  ;;  %v19349_v41 = vld [vmem:[#allocation424_spill] sm:$0xff]  ;;  %v19350_v35 = vld [vmem:[#allocation425_spill] sm:$0xff] }
 0xbb9   :  { %8465 = vmatprep.subr.bf16.mxu1 %v19323_v24  ;;  %v19351_v24 = vld [vmem:[#allocation426_spill] sm:$0xff] }
 0xbba   :  { %v8130_v57 = vpop.f32.mrf.mxu0  ;;  %v8171_v46 = vpop.f32.mrf.mxu1  ;;  %8375 = vmatmul.mubr.bf16.vlgmr.msra.gmra.mxu0 %v15641_v25 }
 0xbbb   :  { %v8131_v23 = vadd.f32 %v8130_v57, %v15869_v22  ;;  %8416 = vmatmul.mubr.bf16.vlgmr.msra.gmra.mxu1 %v15643_v61  ;;  %8425 = vmatpush1.bf16.msra.mxu0 %v19324_v43  ;;  %v19352_v57 = vld [vmem:[#allocation427_spill] sm:$0xff]  ;;  %v19355_v43 = vld [vmem:[#allocation430_spill] sm:$0xff] }
 0xbbc   :  { %8456 = vmatprep.mubr.bf16.mxu0 %v15679_v53  ;;  %8466 = vmatpush1.bf16.msra.mxu1 %v19325_v47  ;;  %v8132_v51 = vpop.f32.mrf.mxu0  ;;  %v8173_v19 = vpop.f32.mrf.mxu1  ;;  %v19356_v47 = vld [vmem:[#allocation431_spill] sm:$0xff] }
 0xbbd   :  { %v15943_v12 = vadd.f32 %v8171_v46, %v8131_v23  ;;  %8497 = vmatprep.mubr.bf16.mxu1 %v15681_v62  ;;  %v8133_v10 = vadd.f32 %v8132_v51, %v15875_v2  ;;  %8426 = vmatprep.subr.bf16.mxu0 %v14151_v48  ;;  %v19331_v2 = vld [vmem:[#allocation406_spill] sm:$0xff]  ;;  %v19332_v48 = vld [vmem:[#allocation407_spill] sm:$0xff]  ;;  %v19353_v46 = vld [vmem:[#allocation428_spill] sm:$0xff] }
 0xbbe   :  { %v8134_v56 = vpop.f32.mrf.mxu0  ;;  %v8175_v22 = vpop.f32.mrf.mxu1  ;;  %8467 = vmatprep.subr.bf16.mxu1 %v18772_v16  ;;  %v19334_v16 = vld [vmem:[#allocation409_spill] sm:$0xff]  ;;  %v19357_v51 = vld [vmem:[#allocation432_spill] sm:$0xff] }
 0xbbf   :  { %v15949_v33 = vadd.f32 %v8173_v19, %v8133_v10  ;;  %8427 = vmatpush1.bf16.msra.mxu0 %v19326_v8  ;;  %v19354_v23 = vld [vmem:[#allocation429_spill] sm:$0xff]  ;;  %v19359_v10 = vld [vmem:[#allocation434_spill] sm:$0xff]  ;;  %v19360_v56 = vld [vmem:[#allocation435_spill] sm:$0xff] }
 0xbc0   :  { %8468 = vmatpush1.bf16.msra.mxu1 %v19327_v7  ;;  %v8135_v3 = vpop.f32.mrf.mxu0  ;;  %v8176_v54 = vpop.f32.mrf.mxu1  ;;  %8428 = vmatprep.subr.bf16.mxu0 %v19328_v26  ;;  %v19358_v19 = vld [vmem:[#allocation433_spill] sm:$0xff]  ;;  %v19361_v22 = vld [vmem:[#allocation436_spill] sm:$0xff]  ;;  %v19363_v7 = vld [vmem:[#allocation438_spill] sm:$0xff] }
 0xbc1   :  { %8469 = vmatprep.subr.bf16.mxu1 %v19329_v39  ;;  %v19362_v8 = vld [vmem:[#allocation437_spill] sm:$0xff]  ;;  %v19364_v3 = vld [vmem:[#allocation439_spill] sm:$0xff]  ;;  %v19365_v54 = vld [vmem:[#allocation440_spill] sm:$0xff] }
 0xbc2   :  { %v19366_v26 = vld [vmem:[#allocation441_spill] sm:$0xff]  ;;  %v19367_v39 = vld [vmem:[#allocation442_spill] sm:$0xff] }
 0xbc3   :  { %8429 = vmatpush1.bf16.msra.mxu0 %v19330_v32  ;;  %v19368_v32 = vld [vmem:[#allocation443_spill] sm:$0xff] }
 0xbc4   :  { %8470 = vmatpush1.bf16.msra.mxu1 %v19331_v2  ;;  %8430 = vmatprep.subr.bf16.mxu0 %v19332_v48  ;;  %v19369_v2 = vld [vmem:[#allocation444_spill] sm:$0xff]  ;;  %v19370_v48 = vld [vmem:[#allocation445_spill] sm:$0xff] }
 0xbc5   :  { %8471 = vmatprep.subr.bf16.mxu1 %v19333_v52  ;;  %v19371_v52 = vld [vmem:[#allocation446_spill] sm:$0xff] }
 0xbc7   :  { %8431 = vmatpush1.bf16.msra.mxu0 %v19334_v16  ;;  %v19372_v16 = vld [vmem:[#allocation447_spill] sm:$0xff] }
 0xbc8   :  { %8472 = vmatpush1.bf16.msra.mxu1 %v19335_v11  ;;  %8432 = vmatprep.subr.bf16.mxu0 %v19336_v0  ;;  %v19373_v11 = vld [vmem:[#allocation448_spill] sm:$0xff]  ;;  %v19374_v0 = vld [vmem:[#allocation449_spill] sm:$0xff] }
 0xbc9   :  { %8473 = vmatprep.subr.bf16.mxu1 %v19337_v34  ;;  %v19375_v34 = vld [vmem:[#allocation450_spill] sm:$0xff] }
 0xbcb   :  { %8433 = vmatpush1.bf16.msra.mxu0 %v19338_v50  ;;  %v19376_v50 = vld [vmem:[#allocation451_spill] sm:$0xff] }
 0xbcc   :  { %8474 = vmatpush1.bf16.msra.mxu1 %v19339_v20  ;;  %8434 = vmatprep.subr.bf16.mxu0 %v19340_v38  ;;  %v19377_v20 = vld [vmem:[#allocation452_spill] sm:$0xff]  ;;  %v19378_v38 = vld [vmem:[#allocation453_spill] sm:$0xff] }
 0xbcd   :  { %8475 = vmatprep.subr.bf16.mxu1 %v19341_v5  ;;  %v19379_v5 = vld [vmem:[#allocation454_spill] sm:$0xff] }
 0xbcf   :  { %8435 = vmatpush1.bf16.msra.mxu0 %v19342_v60  ;;  %v19380_v60 = vld [vmem:[#allocation455_spill] sm:$0xff] }
 0xbd0   :  { %8476 = vmatpush1.bf16.msra.mxu1 %v19343_v55  ;;  %8436 = vmatprep.subr.bf16.mxu0 %v19344_v37  ;;  %v19381_v55 = vld [vmem:[#allocation456_spill] sm:$0xff]  ;;  %v19382_v37 = vld [vmem:[#allocation457_spill] sm:$0xff] }
 0xbd1   :  { %8477 = vmatprep.subr.bf16.mxu1 %v19345_v13  ;;  %v19383_v13 = vld [vmem:[#allocation458_spill] sm:$0xff] }
 0xbd3   :  { %8437 = vmatpush1.bf16.msra.mxu0 %v19346_v21  ;;  %v19384_v21 = vld [vmem:[#allocation459_spill] sm:$0xff] }
 0xbd4   :  { %8478 = vmatpush1.bf16.msra.mxu1 %v19347_v4  ;;  %8438 = vmatprep.subr.bf16.mxu0 %v19348_v14  ;;  %v19385_v4 = vld [vmem:[#allocation460_spill] sm:$0xff] }
 0xbd5   :  { %8479 = vmatprep.subr.bf16.mxu1 %v19349_v41  ;;  %v19386_v41 = vld [vmem:[#allocation461_spill] sm:$0xff] }
 0xbd7   :  { %8439 = vmatpush1.bf16.msra.mxu0 %v19350_v35 }
 0xbd8   :  { %8480 = vmatpush1.bf16.msra.mxu1 %v19351_v24  ;;  %8440 = vmatprep.subr.bf16.mxu0 %v19352_v57  ;;  %v19387_v57 = vld [vmem:[#allocation462_spill] sm:$0xff] }
 0xbd9   :  { %8481 = vmatprep.subr.bf16.mxu1 %v19353_v46 }
 0xbdb   :  { %8441 = vmatpush2.bf16.msra.mxu0 %v19354_v23 }
 0xbdc   :  { %8482 = vmatpush2.bf16.msra.mxu1 %v19355_v43  ;;  %8442 = vmatprep.subr.bf16.mxu0 %v19356_v47  ;;  %v19388_v43 = vld [vmem:[#allocation464_spill] sm:$0xff] }
 0xbdd   :  { %8483 = vmatprep.subr.bf16.mxu1 %v19357_v51 }
 0xbdf   :  { %8443 = vmatpush2.bf16.msra.mxu0 %v19358_v19 }
 0xbe0   :  { %8484 = vmatpush2.bf16.msra.mxu1 %v19359_v10  ;;  %8444 = vmatprep.subr.bf16.mxu0 %v19360_v56  ;;  %v19389_v10 = vld [vmem:[#allocation466_spill] sm:$0xff] }
 0xbe1   :  { %8485 = vmatprep.subr.bf16.mxu1 %v19361_v22 }
 0xbe3   :  { %8445 = vmatpush2.bf16.msra.mxu0 %v19362_v8 }
 0xbe4   :  { %8486 = vmatpush2.bf16.msra.mxu1 %v19363_v7  ;;  %8446 = vmatprep.subr.bf16.mxu0 %v19364_v3  ;;  %v19392_v7 = vld [vmem:[#allocation470_spill] sm:$0xff]  ;;  %v19393_v3 = vld [vmem:[#allocation471_spill] sm:$0xff] }
 0xbe5   :  { %8487 = vmatprep.subr.bf16.mxu1 %v19365_v54  ;;  %v19395_v54 = vld [vmem:[#allocation473_spill] sm:$0xff] }
 0xbe7   :  { %8447 = vmatpush2.bf16.msra.mxu0 %v19366_v26  ;;  %v19396_v26 = vld [vmem:[#allocation474_spill] sm:$0xff] }
 0xbe8   :  { %8488 = vmatpush2.bf16.msra.mxu1 %v19367_v39  ;;  %8448 = vmatprep.subr.bf16.mxu0 %v19368_v32  ;;  %v19397_v39 = vld [vmem:[#allocation475_spill] sm:$0xff]  ;;  %v19400_v32 = vld [vmem:[#allocation478_spill] sm:$0xff] }
 0xbe9   :  { %8489 = vmatprep.subr.bf16.mxu1 %v19369_v2  ;;  %v19401_v2 = vld [vmem:[#allocation479_spill] sm:$0xff] }
 0xbeb   :  { %8449 = vmatpush2.bf16.msra.mxu0 %v19370_v48  ;;  %v19402_v48 = vld [vmem:[#allocation480_spill] sm:$0xff] }
 0xbec   :  { %8490 = vmatpush2.bf16.msra.mxu1 %v19371_v52  ;;  %8450 = vmatprep.subr.bf16.mxu0 %v19372_v16  ;;  %v19403_v52 = vld [vmem:[#allocation481_spill] sm:$0xff]  ;;  %v19404_v16 = vld [vmem:[#allocation482_spill] sm:$0xff] }
 0xbed   :  { %8491 = vmatprep.subr.bf16.mxu1 %v19373_v11  ;;  %v19405_v11 = vld [vmem:[#allocation483_spill] sm:$0xff] }
 0xbef   :  { %8451 = vmatpush2.bf16.msra.mxu0 %v19374_v0  ;;  %v19406_v0 = vld [vmem:[#allocation484_spill] sm:$0xff] }
 0xbf0   :  { %8492 = vmatpush2.bf16.msra.mxu1 %v19375_v34  ;;  %8452 = vmatprep.subr.bf16.mxu0 %v19376_v50  ;;  %v19407_v34 = vld [vmem:[#allocation485_spill] sm:$0xff]  ;;  %v19408_v50 = vld [vmem:[#allocation486_spill] sm:$0xff] }
 0xbf1   :  { %8493 = vmatprep.subr.bf16.mxu1 %v19377_v20  ;;  %v19409_v20 = vld [vmem:[#allocation487_spill] sm:$0xff] }
 0xbf3   :  { %8453 = vmatpush2.bf16.msra.mxu0 %v19378_v38  ;;  %v19410_v38 = vld [vmem:[#allocation488_spill] sm:$0xff] }
 0xbf4   :  { %8494 = vmatpush2.bf16.msra.mxu1 %v19379_v5  ;;  %8454 = vmatprep.subr.bf16.mxu0 %v19380_v60  ;;  %v19411_v5 = vld [vmem:[#allocation489_spill] sm:$0xff]  ;;  %v19412_v60 = vld [vmem:[#allocation490_spill] sm:$0xff] }
 0xbf5   :  { %8495 = vmatprep.subr.bf16.mxu1 %v19381_v55  ;;  %v19413_v55 = vld [vmem:[#allocation491_spill] sm:$0xff] }
 0xbf7   :  { %8455 = vmatpush2.bf16.msra.mxu0 %v19382_v37  ;;  %v19414_v37 = vld [vmem:[#allocation492_spill] sm:$0xff] }
 0xbf8   :  { %8496 = vmatpush2.bf16.msra.mxu1 %v19383_v13  ;;  %8506 = vmatprep.subr.bf16.mxu0 %v19384_v21  ;;  %v19415_v13 = vld [vmem:[#allocation493_spill] sm:$0xff]  ;;  %v19416_v21 = vld [vmem:[#allocation494_spill] sm:$0xff] }
 0xbf9   :  { %8547 = vmatprep.subr.bf16.mxu1 %v19385_v4  ;;  %v19417_v4 = vld [vmem:[#allocation495_spill] sm:$0xff] }
 0xbfa   :  { %v8212_v14 = vpop.f32.mrf.mxu0  ;;  %8457 = vmatmul.mubr.bf16.vlgmr.msra.gmra.mxu0 %v15721_v18 }
 0xbfb   :  { %v8213_v35 = vadd.f32 %v8212_v14, %v19386_v41  ;;  %v8253_v24 = vpop.f32.mrf.mxu1  ;;  %8498 = vmatmul.mubr.bf16.vlgmr.msra.gmra.mxu1 %v15723_v36  ;;  %8507 = vmatpush1.bf16.msra.mxu0 %v19387_v57  ;;  %v19418_v14 = vld [vmem:[#allocation496_spill] sm:$0xff]  ;;  %v19419_v41 = vld [vmem:[#allocation497_spill] sm:$0xff] }
 0xbfc   :  { %8538 = vmatprep.mubr.bf16.mxu0 %v15637_v28  ;;  %8548 = vmatpush1.bf16.msra.mxu1 %v18835_v42  ;;  %v8214_v46 = vpop.f32.mrf.mxu0  ;;  %v19390_v28 = vld [vmem:[#allocation468_spill] sm:$0xff] }
 0xbfd   :  { %v16017_v23 = vadd.f32 %v8253_v24, %v8213_v35  ;;  %8579 = vmatprep.mubr.bf16.mxu1 %v15639_v45  ;;  %v8215_v47 = vadd.f32 %v8214_v46, %v19388_v43  ;;  %v8255_v51 = vpop.f32.mrf.mxu1  ;;  %8508 = vmatprep.subr.bf16.mxu0 %v18836_v58  ;;  %v19391_v45 = vld [vmem:[#allocation469_spill] sm:$0xff]  ;;  %v19394_v58 = vld [vmem:[#allocation472_spill] sm:$0xff]  ;;  %v19420_v35 = vld [vmem:[#allocation498_spill] sm:$0xff] }
 0xbfe   :  { %v8216_v19 = vpop.f32.mrf.mxu0  ;;  %8549 = vmatprep.subr.bf16.mxu1 %v19389_v10  ;;  %v19421_v24 = vld [vmem:[#allocation499_spill] sm:$0xff]  ;;  %v19422_v57 = vld [vmem:[#allocation500_spill] sm:$0xff]  ;;  %v19423_v46 = vld [vmem:[#allocation501_spill] sm:$0xff] }
 0xbff   :  { %v16023_v56 = vadd.f32 %v8255_v51, %v8215_v47  ;;  %v8257_v22 = vpop.f32.mrf.mxu1  ;;  %8509 = vmatpush1.bf16.msra.mxu0 %v18838_v17  ;;  %v19398_v17 = vld [vmem:[#allocation476_spill] sm:$0xff]  ;;  %v19424_v43 = vld [vmem:[#allocation502_spill] sm:$0xff]  ;;  %v19426_v51 = vld [vmem:[#allocation505_spill] sm:$0xff] }
 0xc00   :  { %8550 = vmatpush1.bf16.msra.mxu1 %v14375_v59  ;;  %v8217_v42 = vpop.f32.mrf.mxu0  ;;  %8510 = vmatprep.subr.bf16.mxu0 %v19390_v28  ;;  %v19399_v59 = vld [vmem:[#allocation477_spill] sm:$0xff]  ;;  %v19425_v47 = vld [vmem:[#allocation504_spill] sm:$0xff]  ;;  %v19427_v19 = vld [vmem:[#allocation506_spill] sm:$0xff] }
 0xc01   :  { %v8258_v8 = vpop.f32.mrf.mxu1  ;;  %8551 = vmatprep.subr.bf16.mxu1 %v19391_v45  ;;  %v19428_v10 = vld [vmem:[#allocation507_spill] sm:$0xff]  ;;  %v19429_v22 = vld [vmem:[#allocation508_spill] sm:$0xff]  ;;  %v19430_v42 = vld [vmem:[#allocation509_spill] sm:$0xff] }
 0xc02   :  { %v19431_v28 = vld [vmem:[#allocation510_spill] sm:$0xff]  ;;  %v19432_v8 = vld [vmem:[#allocation511_spill] sm:$0xff]  ;;  %v19433_v45 = vld [vmem:[#allocation512_spill] sm:$0xff] }
 0xc03   :  { %8511 = vmatpush1.bf16.msra.mxu0 %v19392_v7  ;;  %v19434_v7 = vld [vmem:[#allocation513_spill] sm:$0xff] }
 0xc04   :  { %8552 = vmatpush1.bf16.msra.mxu1 %v19393_v3  ;;  %8512 = vmatprep.subr.bf16.mxu0 %v19394_v58  ;;  %v19436_v3 = vld [vmem:[#allocation515_spill] sm:$0xff]  ;;  %v19437_v58 = vld [vmem:[#allocation517_spill] sm:$0xff] }
 0xc05   :  { %8553 = vmatprep.subr.bf16.mxu1 %v19395_v54  ;;  %v19438_v54 = vld [vmem:[#allocation518_spill] sm:$0xff] }
 0xc07   :  { %8513 = vmatpush1.bf16.msra.mxu0 %v19396_v26  ;;  %v19439_v26 = vld [vmem:[#allocation519_spill] sm:$0xff] }
 0xc08   :  { %8554 = vmatpush1.bf16.msra.mxu1 %v19397_v39  ;;  %8514 = vmatprep.subr.bf16.mxu0 %v19398_v17  ;;  %v19440_v39 = vld [vmem:[#allocation520_spill] sm:$0xff]  ;;  %v19441_v17 = vld [vmem:[#allocation521_spill] sm:$0xff] }
 0xc09   :  { %8555 = vmatprep.subr.bf16.mxu1 %v19399_v59  ;;  %v19442_v59 = vld [vmem:[#allocation522_spill] sm:$0xff] }
 0xc0b   :  { %8515 = vmatpush1.bf16.msra.mxu0 %v19400_v32  ;;  %v19443_v32 = vld [vmem:[#allocation523_spill] sm:$0xff] }
 0xc0c   :  { %8556 = vmatpush1.bf16.msra.mxu1 %v19401_v2  ;;  %8516 = vmatprep.subr.bf16.mxu0 %v19402_v48  ;;  %v19444_v2 = vld [vmem:[#allocation524_spill] sm:$0xff]  ;;  %v19445_v48 = vld [vmem:[#allocation525_spill] sm:$0xff] }
 0xc0d   :  { %8557 = vmatprep.subr.bf16.mxu1 %v19403_v52 }
 0xc0f   :  { %8517 = vmatpush1.bf16.msra.mxu0 %v19404_v16 }
 0xc10   :  { %8558 = vmatpush1.bf16.msra.mxu1 %v19405_v11  ;;  %8518 = vmatprep.subr.bf16.mxu0 %v19406_v0  ;;  %v19446_v11 = vld [vmem:[#allocation526_spill] sm:$0xff]  ;;  %v19447_v0 = vld [vmem:[#allocation527_spill] sm:$0xff] }
 0xc11   :  { %8559 = vmatprep.subr.bf16.mxu1 %v19407_v34 }
 0xc13   :  { %8519 = vmatpush1.bf16.msra.mxu0 %v19408_v50 }
 0xc14   :  { %8560 = vmatpush1.bf16.msra.mxu1 %v19409_v20  ;;  %8520 = vmatprep.subr.bf16.mxu0 %v19410_v38 }
 0xc15   :  { %8561 = vmatprep.subr.bf16.mxu1 %v19411_v5  ;;  %v19450_v5 = vld [vmem:[#allocation531_spill] sm:$0xff] }
 0xc17   :  { %8521 = vmatpush1.bf16.msra.mxu0 %v19412_v60 }
 0xc18   :  { %8562 = vmatpush1.bf16.msra.mxu1 %v19413_v55  ;;  %8522 = vmatprep.subr.bf16.mxu0 %v19414_v37  ;;  %v19451_v55 = vld [vmem:[#allocation532_spill] sm:$0xff]  ;;  %v19452_v37 = vld [vmem:[#allocation533_spill] sm:$0xff] }
 0xc19   :  { %8563 = vmatprep.subr.bf16.mxu1 %v19415_v13  ;;  %v19454_v13 = vld [vmem:[#allocation535_spill] sm:$0xff] }
 0xc1b   :  { %8523 = vmatpush2.bf16.msra.mxu0 %v19416_v21  ;;  %v19456_v21 = vld [vmem:[#allocation537_spill] sm:$0xff] }
 0xc1c   :  { %8564 = vmatpush2.bf16.msra.mxu1 %v19417_v4  ;;  %8524 = vmatprep.subr.bf16.mxu0 %v19418_v14  ;;  %v19457_v4 = vld [vmem:[#allocation538_spill] sm:$0xff]  ;;  %v19458_v14 = vld [vmem:[#allocation539_spill] sm:$0xff] }
 0xc1d   :  { %8565 = vmatprep.subr.bf16.mxu1 %v19419_v41  ;;  %v19460_v41 = vld [vmem:[#allocation541_spill] sm:$0xff] }
 0xc1f   :  { %8525 = vmatpush2.bf16.msra.mxu0 %v19420_v35  ;;  %v19461_v35 = vld [vmem:[#allocation542_spill] sm:$0xff] }
 0xc20   :  { %8566 = vmatpush2.bf16.msra.mxu1 %v19421_v24  ;;  %8526 = vmatprep.subr.bf16.mxu0 %v19422_v57  ;;  %v19462_v24 = vld [vmem:[#allocation543_spill] sm:$0xff]  ;;  %v19463_v57 = vld [vmem:[#allocation544_spill] sm:$0xff] }
 0xc21   :  { %8567 = vmatprep.subr.bf16.mxu1 %v19423_v46  ;;  %v19464_v46 = vld [vmem:[#allocation545_spill] sm:$0xff] }
 0xc23   :  { %8527 = vmatpush2.bf16.msra.mxu0 %v19424_v43  ;;  %v19465_v43 = vld [vmem:[#allocation546_spill] sm:$0xff] }
 0xc24   :  { %8568 = vmatpush2.bf16.msra.mxu1 %v18874_v49  ;;  %8528 = vmatprep.subr.bf16.mxu0 %v19425_v47  ;;  %v19435_v49 = vld [vmem:[#allocation514_spill] sm:$0xff]  ;;  %v19466_v47 = vld [vmem:[#allocation547_spill] sm:$0xff] }
 0xc25   :  { %8569 = vmatprep.subr.bf16.mxu1 %v19426_v51  ;;  %v19467_v51 = vld [vmem:[#allocation548_spill] sm:$0xff] }
 0xc27   :  { %8529 = vmatpush2.bf16.msra.mxu0 %v19427_v19  ;;  %v19468_v19 = vld [vmem:[#allocation549_spill] sm:$0xff] }
 0xc28   :  { %8570 = vmatpush2.bf16.msra.mxu1 %v19428_v10  ;;  %8530 = vmatprep.subr.bf16.mxu0 %v19429_v22  ;;  %v19469_v10 = vld [vmem:[#allocation550_spill] sm:$0xff]  ;;  %v19470_v22 = vld [vmem:[#allocation551_spill] sm:$0xff] }
 0xc29   :  { %8571 = vmatprep.subr.bf16.mxu1 %v19430_v42  ;;  %v19471_v42 = vld [vmem:[#allocation552_spill] sm:$0xff] }
 0xc2b   :  { %8531 = vmatpush2.bf16.msra.mxu0 %v19431_v28  ;;  %v19472_v28 = vld [vmem:[#allocation553_spill] sm:$0xff] }
 0xc2c   :  { %8572 = vmatpush2.bf16.msra.mxu1 %v19432_v8  ;;  %8532 = vmatprep.subr.bf16.mxu0 %v19433_v45  ;;  %v19473_v8 = vld [vmem:[#allocation554_spill] sm:$0xff]  ;;  %v19474_v45 = vld [vmem:[#allocation555_spill] sm:$0xff] }
 0xc2d   :  { %8573 = vmatprep.subr.bf16.mxu1 %v19434_v7  ;;  %v19475_v7 = vld [vmem:[#allocation556_spill] sm:$0xff] }
 0xc2f   :  { %8533 = vmatpush2.bf16.msra.mxu0 %v19435_v49  ;;  %v19476_v49 = vld [vmem:[#allocation557_spill] sm:$0xff] }
 0xc30   :  { %8574 = vmatpush2.bf16.msra.mxu1 %v19436_v3  ;;  %8534 = vmatprep.subr.bf16.mxu0 %v18886_v40  ;;  %v19477_v3 = vld [vmem:[#allocation558_spill] sm:$0xff] }
 0xc31   :  { %8575 = vmatprep.subr.bf16.mxu1 %v19437_v58  ;;  %v19478_v58 = vld [vmem:[#allocation559_spill] sm:$0xff] }
 0xc33   :  { %8535 = vmatpush2.bf16.msra.mxu0 %v19438_v54  ;;  %v19479_v54 = vld [vmem:[#allocation560_spill] sm:$0xff] }
 0xc34   :  { %8576 = vmatpush2.bf16.msra.mxu1 %v19439_v26  ;;  %8536 = vmatprep.subr.bf16.mxu0 %v19440_v39  ;;  %v19480_v26 = vld [vmem:[#allocation561_spill] sm:$0xff] }
 0xc35   :  { %8577 = vmatprep.subr.bf16.mxu1 %v19441_v17  ;;  %v19481_v39 = vld [vmem:[#allocation565_spill] sm:$0xff]  ;;  %v19482_v17 = vld [vmem:[#allocation566_spill] sm:$0xff] }
 0xc37   :  { %8537 = vmatpush2.bf16.msra.mxu0 %v19442_v59  ;;  %v19483_v59 = vld [vmem:[#allocation569_spill] sm:$0xff] }
 0xc38   :  { %8578 = vmatpush2.bf16.msra.mxu1 %v19443_v32  ;;  %8588 = vmatprep.subr.bf16.mxu0 %v19444_v2  ;;  %v19484_v32 = vld [vmem:[#allocation570_spill] sm:$0xff]  ;;  %v19485_v2 = vld [vmem:[#allocation571_spill] sm:$0xff] }
 0xc39   :  { %8629 = vmatprep.subr.bf16.mxu1 %v19445_v48  ;;  %v19486_v48 = vld [vmem:[#allocation572_spill] sm:$0xff] }
 0xc3a   :  { %v8294_v52 = vpop.f32.mrf.mxu0  ;;  %8539 = vmatmul.mubr.bf16.vlgmr.msra.gmra.mxu0 %v15641_v25 }
 0xc3b   :  { %v8295_v40 = vadd.f32 %v8294_v52, %v16017_v23  ;;  %v8335_v16 = vpop.f32.mrf.mxu1  ;;  %8580 = vmatmul.mubr.bf16.vlgmr.msra.gmra.mxu1 %v15643_v61  ;;  %8589 = vmatpush1.bf16.msra.mxu0 %v19446_v11  ;;  %v19448_v23 = vld [vmem:[#allocation529_spill] sm:$0xff]  ;;  %v19449_v61 = vld [vmem:[#allocation530_spill] sm:$0xff]  ;;  %v19490_v52 = vld [vmem:[#allocation576_spill] sm:$0xff] }
 0xc3c   :  { %8620 = vmatprep.mubr.bf16.mxu0 %v15679_v53  ;;  %8630 = vmatpush1.bf16.msra.mxu1 %v19447_v0  ;;  %v8296_v34 = vpop.f32.mrf.mxu0  ;;  %v19495_v0 = vld [vmem:[#allocation581_spill] sm:$0xff] }
 0xc3d   :  { %v16091_v50 = vadd.f32 %v8335_v16, %v8295_v40  ;;  %8661 = vmatprep.mubr.bf16.mxu1 %v15681_v62  ;;  %v16094_v20 = vpop.f32.mrf.mxu1  ;;  %8590 = vmatprep.subr.bf16.mxu0 %v18898_v63  ;;  %v19453_v62 = vld [vmem:[#allocation534_spill] sm:$0xff]  ;;  %v19455_v63 = vld [vmem:[#allocation536_spill] sm:$0xff]  ;;  %v19491_v40 = vld [vmem:[#allocation577_spill] sm:$0xff]  ;;  %v8297_v11 = vadd.f32 %v8296_v34, %v16023_v56  ;;  %v8671_v56 = vpack.c.bf16 %v15949_v33, %v15949_v33 }
 0xc3e   :  { %v8298_v25 = vpop.f32.mrf.mxu0  ;;  %8631 = vmatprep.subr.bf16.mxu1 %v19448_v23  ;;  %v19494_v16 = vld [vmem:[#allocation580_spill] sm:$0xff]  ;;  %v19497_v23 = vld [vmem:[#allocation583_spill] sm:$0xff] }
 0xc3f   :  { %v8339_v38 = vpop.f32.mrf.mxu1  ;;  %8591 = vmatpush1.bf16.msra.mxu0 %v19449_v61  ;;  %v19496_v25 = vld [vmem:[#allocation582_spill] sm:$0xff]  ;;  %v8338_v61 = vadd.f32 %v16094_v20, %v8297_v11  ;;  %v10600_v20 = vld [vmem:[#allocation14 + $0x38] sm:$0xff]   ;;  %v10602_v33 = vld [vmem:[#allocation14 + $0x70] sm:$0xff]  }
 0xc40   :  { %8632 = vmatpush1.bf16.msra.mxu1 %v14579_v1  ;;  %v8299_v53 = vpop.f32.mrf.mxu0  ;;  %8592 = vmatprep.subr.bf16.mxu0 %v19450_v5  ;;  %v19459_v1 = vld [vmem:[#allocation540_spill] sm:$0xff]  ;;  %v19500_v5 = vld [vmem:[#allocation586_spill] sm:$0xff] }
 0xc41   :  { %v8340_v60 = vpop.f32.mrf.mxu1  ;;  %8633 = vmatprep.subr.bf16.mxu1 %v19451_v55  ;;  %v19498_v38 = vld [vmem:[#allocation584_spill] sm:$0xff]  ;;  %v19499_v53 = vld [vmem:[#allocation585_spill] sm:$0xff] }
 0xc42   :  { %v10598_v60 = vld [vmem:[#allocation14 + $0x78] sm:$0xff]   ;;  %v10638_v11 = vld [vmem:[#allocation14 + $0x1b0] sm:$0xff]  }
 0xc43   :  { %8593 = vmatpush1.bf16.msra.mxu0 %v19452_v37  ;;  %v10599_v55 = vld [vmem:[#allocation14 + $0xf8] sm:$0xff]   ;;  %v8673_v37 = vpack.c.bf16 %v8338_v61, %v8338_v61  ;;  %v10644_v61 = vld [vmem:[#allocation14 + $0x120] sm:$0xff]  }
 0xc44   :  { %8634 = vmatpush1.bf16.msra.mxu1 %v19453_v62  ;;  %8594 = vmatprep.subr.bf16.mxu0 %v19454_v13  ;;  %v10601_v13 = vld [vmem:[#allocation14 + $0xb8] sm:$0xff]  }
 0xc45   :  { %8635 = vmatprep.subr.bf16.mxu1 %v19455_v63 }
 0xc47   :  { %8595 = vmatpush1.bf16.msra.mxu0 %v19456_v21 }
 0xc48   :  { %8636 = vmatpush1.bf16.msra.mxu1 %v19457_v4  ;;  %8596 = vmatprep.subr.bf16.mxu0 %v19458_v14  ;;  %v10603_v14 = vld [vmem:[#allocation14 + $0xf0] sm:$0xff]  }
 0xc49   :  { %8637 = vmatprep.subr.bf16.mxu1 %v19459_v1  ;;  %v10604_v1 = vld [vmem:[#allocation14 + $0x30] sm:$0xff]  }
 0xc4b   :  { %8597 = vmatpush1.bf16.msra.mxu0 %v19460_v41  ;;  %v10605_v41 = vld [vmem:[#allocation14 + $0xb0] sm:$0xff]  }
 0xc4c   :  { %8638 = vmatpush1.bf16.msra.mxu1 %v19461_v35  ;;  %8598 = vmatprep.subr.bf16.mxu0 %v19462_v24  ;;  %v10606_v35 = vld [vmem:[#allocation14 + $0x68] sm:$0xff]  }
 0xc4d   :  { %8639 = vmatprep.subr.bf16.mxu1 %v19463_v57  ;;  %v10607_v57 = vld [vmem:[#allocation14 + $0xe8] sm:$0xff]  }
 0xc4f   :  { %8599 = vmatpush1.bf16.msra.mxu0 %v19464_v46  ;;  %v10608_v46 = vld [vmem:[#allocation14 + $0x28] sm:$0xff]  }
 0xc50   :  { %8640 = vmatpush1.bf16.msra.mxu1 %v19465_v43  ;;  %8600 = vmatprep.subr.bf16.mxu0 %v19466_v47  ;;  %v10609_v43 = vld [vmem:[#allocation14 + $0xa8] sm:$0xff]   ;;  %v10610_v47 = vld [vmem:[#allocation14 + $0x60] sm:$0xff]  }
 0xc51   :  { %8641 = vmatprep.subr.bf16.mxu1 %v19467_v51  ;;  %v10611_v51 = vld [vmem:[#allocation14 + $0xe0] sm:$0xff]  }
 0xc53   :  { %8601 = vmatpush1.bf16.msra.mxu0 %v19468_v19  ;;  %v10612_v19 = vld [vmem:[#allocation14 + $0x20] sm:$0xff]  }
 0xc54   :  { %8642 = vmatpush1.bf16.msra.mxu1 %v19469_v10  ;;  %8602 = vmatprep.subr.bf16.mxu0 %v19470_v22  ;;  %v10613_v10 = vld [vmem:[#allocation14 + $0xa0] sm:$0xff]   ;;  %v10614_v22 = vld [vmem:[#allocation14 + $0x58] sm:$0xff]  }
 0xc55   :  { %8643 = vmatprep.subr.bf16.mxu1 %v19471_v42  ;;  %v10615_v42 = vld [vmem:[#allocation14 + $0xd8] sm:$0xff]  }
 0xc57   :  { %8603 = vmatpush1.bf16.msra.mxu0 %v19472_v28  ;;  %v10616_v28 = vld [vmem:[#allocation14 + $0x18] sm:$0xff]  }
 0xc58   :  { %8644 = vmatpush1.bf16.msra.mxu1 %v19473_v8  ;;  %8604 = vmatprep.subr.bf16.mxu0 %v19474_v45  ;;  %v10617_v8 = vld [vmem:[#allocation14 + $0x98] sm:$0xff]   ;;  %v10618_v45 = vld [vmem:[#allocation14 + $0x50] sm:$0xff]  }
 0xc59   :  { %8645 = vmatprep.subr.bf16.mxu1 %v19475_v7  ;;  %v10619_v7 = vld [vmem:[#allocation14 + $0xd0] sm:$0xff]  }
 0xc5b   :  { %8605 = vmatpush2.bf16.msra.mxu0 %v19476_v49  ;;  %v10620_v49 = vld [vmem:[#allocation14 + $0x10] sm:$0xff]  }
 0xc5c   :  { %8646 = vmatpush2.bf16.msra.mxu1 %v19477_v3  ;;  %8606 = vmatprep.subr.bf16.mxu0 %v19478_v58  ;;  %v10621_v3 = vld [vmem:[#allocation14 + $0x90] sm:$0xff]   ;;  %v10622_v58 = vld [vmem:[#allocation14 + $0x48] sm:$0xff]  }
 0xc5d   :  { %8647 = vmatprep.subr.bf16.mxu1 %v19479_v54  ;;  %v10623_v54 = vld [vmem:[#allocation14 + $0xc8] sm:$0xff]  }
 0xc5f   :  { %8607 = vmatpush2.bf16.msra.mxu0 %v19480_v26  ;;  %v10624_v26 = vld [vmem:[#allocation14 + $0x8] sm:$0xff]  }
 0xc60   :  { %8648 = vmatpush2.bf16.msra.mxu1 %v18932_v29  ;;  %8608 = vmatprep.subr.bf16.mxu0 %v18933_v30  ;;  %v19487_v29 = vld [vmem:[#allocation573_spill] sm:$0xff]  ;;  %v19488_v30 = vld [vmem:[#allocation574_spill] sm:$0xff] }
 0xc61   :  { %8649 = vmatprep.subr.bf16.mxu1 %v18934_v9  ;;  %v19489_v9 = vld [vmem:[#allocation575_spill] sm:$0xff] }
 0xc63   :  { %8609 = vmatpush2.bf16.msra.mxu0 %v19481_v39  ;;  %v10625_v39 = vld [vmem:[#allocation14 + $0x88] sm:$0xff]  }
 0xc64   :  { %8650 = vmatpush2.bf16.msra.mxu1 %v19482_v17  ;;  %8610 = vmatprep.subr.bf16.mxu0 %v18937_v44  ;;  %v19492_v44 = vld [vmem:[#allocation578_spill] sm:$0xff] }
 0xc65   :  { %8651 = vmatprep.subr.bf16.mxu1 %v18938_v27  ;;  %v19493_v27 = vld [vmem:[#allocation579_spill] sm:$0xff]  ;;  %v10626_v17 = vld [vmem:[#allocation14 + $0x40] sm:$0xff]  }
 0xc67   :  { %8611 = vmatpush2.bf16.msra.mxu0 %v19483_v59  ;;  %v10627_v59 = vld [vmem:[#allocation14 + $0xc0] sm:$0xff]  }
 0xc68   :  { %8652 = vmatpush2.bf16.msra.mxu1 %v19484_v32  ;;  %8612 = vmatprep.subr.bf16.mxu0 %v19485_v2  ;;  %v10628_v32 = vld [vmem:[#allocation14] sm:$0xff]   ;;  %v8670_v2 = vpack.c.bf16 %v15943_v12, %v15943_v12  ;;  %v10636_v12 = vld [vmem:[#allocation14 + $0x130] sm:$0xff]  }
 0xc69   :  { %8653 = vmatprep.subr.bf16.mxu1 %v19486_v48  ;;  %v10629_v48 = vld [vmem:[#allocation14 + $0x80] sm:$0xff]  }
 0xc6b   :  { %8613 = vmatpush2.bf16.msra.mxu0 %v19487_v29  ;;  %v10630_v29 = vld [vmem:[#allocation14 + $0x178] sm:$0xff]  }
 0xc6c   :  { %8654 = vmatpush2.bf16.msra.mxu1 %v19488_v30  ;;  %8614 = vmatprep.subr.bf16.mxu0 %v19489_v9  ;;  %v8672_v30 = vpack.c.bf16 %v16091_v50, %v16091_v50  ;;  %v10631_v9 = vld [vmem:[#allocation14 + $0x1f8] sm:$0xff]   ;;  %v10640_v50 = vld [vmem:[#allocation14 + $0x128] sm:$0xff]  }
 0xc6d   :  { %8655 = vmatprep.subr.bf16.mxu1 %v19490_v52  ;;  %v10632_v52 = vld [vmem:[#allocation14 + $0x138] sm:$0xff]  }
 0xc6f   :  { %8615 = vmatpush2.bf16.msra.mxu0 %v19491_v40  ;;  %v10633_v40 = vld [vmem:[#allocation14 + $0x170] sm:$0xff]  }
 0xc70   :  { %8656 = vmatpush2.bf16.msra.mxu1 %v19492_v44  ;;  %8616 = vmatprep.subr.bf16.mxu0 %v19493_v27  ;;  %v10634_v44 = vld [vmem:[#allocation14 + $0x1b8] sm:$0xff]   ;;  %v10635_v27 = vld [vmem:[#allocation14 + $0x1f0] sm:$0xff]  }
 0xc71   :  { %8657 = vmatprep.subr.bf16.mxu1 %v19494_v16  ;;  %v10637_v16 = vld [vmem:[#allocation14 + $0x168] sm:$0xff]  }
 0xc73   :  { %8617 = vmatpush2.bf16.msra.mxu0 %v19495_v0  ;;  %v10639_v0 = vld [vmem:[#allocation14 + $0x1e8] sm:$0xff]  }
 0xc74   :  { %8658 = vmatpush2.bf16.msra.mxu1 %v19496_v25  ;;  %8618 = vmatprep.subr.bf16.mxu0 %v19497_v23  ;;  %v10641_v25 = vld [vmem:[#allocation14 + $0x160] sm:$0xff]   ;;  %v10642_v23 = vld [vmem:[#allocation14 + $0x1a8] sm:$0xff]  }
 0xc75   :  { %8659 = vmatprep.subr.bf16.mxu1 %v19498_v38  ;;  %v10643_v38 = vld [vmem:[#allocation14 + $0x1e0] sm:$0xff]  }
 0xc77   :  { %8619 = vmatpush2.bf16.msra.mxu0 %v19499_v53  ;;  %v10645_v53 = vld [vmem:[#allocation14 + $0x158] sm:$0xff]  }
 0xc78   :  { %8660 = vmatpush2.bf16.msra.mxu1 %v19500_v5  ;;  %10359 = vmatprep.subr.bf16.mxu0 %v10598_v60  ;;  %v10646_v5 = vld [vmem:[#allocation14 + $0x1a0] sm:$0xff]   ;;  %v10647_v60 = vld [vmem:[#allocation14 + $0x1d8] sm:$0xff]  }
 0xc79   :  { %10381 = vmatprep.subr.bf16.mxu1 %v10599_v55  ;;  %v10648_v55 = vld [vmem:[#allocation14 + $0x118] sm:$0xff]  }
 0xc7a   :  { %v16160_v34 = vpop.f32.mrf.mxu0  ;;  %8621 = vmatmul.mubr.bf16.vlgmr.msra.gmra.mxu0 %v15721_v18 }
 0xc7b   :  { %v16163_v62 = vpop.f32.mrf.mxu1  ;;  %8662 = vmatmul.mubr.bf16.vlgmr.msra.gmra.mxu1 %v15723_v36  ;;  %10360 = vmatpush3.bf16.msra.mxu0 %v10600_v20  ;;  %v10651_v20 = vld [vmem:[#allocation14 + $0x1d0] sm:$0xff]  }
 0xc7c   :  { %8710 = vmatprep.mubr.bf16.mxu0 %v8671_v56  ;;  %10382 = vmatpush3.bf16.msra.mxu1 %v10601_v13  ;;  %v16166_v63 = vpop.f32.mrf.mxu0  ;;  %v10649_v56 = vld [vmem:[#allocation14 + $0x150] sm:$0xff]  }
 0xc7d   :  { %8750 = vmatprep.mubr.bf16.mxu1 %v8673_v37  ;;  %v16168_v21 = vpop.f32.mrf.mxu1  ;;  %10361 = vmatprep.subr.bf16.mxu0 %v10602_v33  ;;  %v10650_v37 = vld [vmem:[#allocation14 + $0x198] sm:$0xff]   ;;  %v10652_v13 = vld [vmem:[#allocation14 + $0x110] sm:$0xff]   ;;  %v10653_v33 = vld [vmem:[#allocation14 + $0x148] sm:$0xff]  }
 0xc7e   :  { %v8380_v4 = vpop.f32.mrf.mxu0  ;;  %10383 = vmatprep.subr.bf16.mxu1 %v10603_v14  ;;  %v10655_v14 = vld [vmem:[#allocation14 + $0x1c8] sm:$0xff]  }
 0xc7f   :  { %v8421_v18 = vpop.f32.mrf.mxu1  ;;  %10362 = vmatpush3.bf16.msra.mxu0 %v10604_v1  ;;  %v10654_v4 = vld [vmem:[#allocation14 + $0x190] sm:$0xff]   ;;  %v10657_v1 = vld [vmem:[#allocation14 + $0x140] sm:$0xff]  }
 0xc80   :  { %10384 = vmatpush3.bf16.msra.mxu1 %v10605_v41  ;;  %v8381_v36 = vpop.f32.mrf.mxu0  ;;  %10363 = vmatprep.subr.bf16.mxu0 %v10606_v35  ;;  %v10656_v18 = vld [vmem:[#allocation14 + $0x108] sm:$0xff]  }
 0xc81   :  { %v8422_v24 = vpop.f32.mrf.mxu1  ;;  %10385 = vmatprep.subr.bf16.mxu1 %v10607_v57  ;;  %v10658_v41 = vld [vmem:[#allocation14 + $0x188] sm:$0xff]   ;;  %v19502_v57 = vld [vmem:[#allocation588_spill] sm:$0xff] }
 0xc82   :  { %v19501_v36 = vld [vmem:[#allocation587_spill] sm:$0xff]  ;;  %v10659_v24 = vld [vmem:[#allocation14 + $0x1c0] sm:$0xff]  }
 0xc83   :  { %10364 = vmatpush3.bf16.msra.mxu0 %v10608_v46  ;;  %v8377_v35 = vadd.f32 %v16160_v34, %v19501_v36  ;;  %v8379_v46 = vadd.f32 %v16166_v63, %v19502_v57 }
 0xc84   :  { %10386 = vmatpush3.bf16.msra.mxu1 %v10609_v43  ;;  %10365 = vmatprep.subr.bf16.mxu0 %v10610_v47  ;;  %v10660_v43 = vld [vmem:[#allocation14 + $0x100] sm:$0xff]  }
 0xc85   :  { %10387 = vmatprep.subr.bf16.mxu1 %v10611_v51  ;;  %v10661_v47 = vld [vmem:[#allocation14 + $0x180] sm:$0xff]   ;;  %v8418_v51 = vadd.f32 %v16163_v62, %v8377_v35 }
 0xc87   :  { %10366 = vmatpush3.bf16.msra.mxu0 %v10612_v19 }
 0xc88   :  { %10388 = vmatpush3.bf16.msra.mxu1 %v10613_v10  ;;  %10367 = vmatprep.subr.bf16.mxu0 %v10614_v22  ;;  %v8420_v10 = vadd.f32 %v16168_v21, %v8379_v46 }
 0xc89   :  { %10389 = vmatprep.subr.bf16.mxu1 %v10615_v42 }
 0xc8b   :  { %10368 = vmatpush3.bf16.msra.mxu0 %v10616_v28 }
 0xc8c   :  { %10390 = vmatpush3.bf16.msra.mxu1 %v10617_v8  ;;  %10369 = vmatprep.subr.bf16.mxu0 %v10618_v45 }
 0xc8d   :  { %10391 = vmatprep.subr.bf16.mxu1 %v10619_v7 }
 0xc8f   :  { %10370 = vmatpush3.bf16.msra.mxu0 %v10620_v49 }
 0xc90   :  { %10392 = vmatpush3.bf16.msra.mxu1 %v10621_v3  ;;  %10371 = vmatprep.subr.bf16.mxu0 %v10622_v58 }
 0xc91   :  { %10393 = vmatprep.subr.bf16.mxu1 %v10623_v54 }
 0xc93   :  { %10372 = vmatpush3.bf16.msra.mxu0 %v10624_v26 }
 0xc94   :  { %10394 = vmatpush3.bf16.msra.mxu1 %v10625_v39  ;;  %10373 = vmatprep.subr.bf16.mxu0 %v10626_v17 }
 0xc95   :  { %10395 = vmatprep.subr.bf16.mxu1 %v10627_v59 }
 0xc97   :  { %10374 = vmatpush3.bf16.msra.mxu0 %v10628_v32 }
 0xc98   :  { %10396 = vmatpush3.bf16.msra.mxu1 %v10629_v48  ;;  %10403 = vmatprep.subr.bf16.mxu0 %v10630_v29 }
 0xc99   :  { %10425 = vmatprep.subr.bf16.mxu1 %v10631_v9 }
 0xc9a   :  { %8711 = vmatmul.mubr.bf16.vlgmr.msra.gmra.mxu0 %v8670_v2 }
 0xc9b   :  { %8751 = vmatmul.mubr.bf16.vlgmr.msra.gmra.mxu1 %v8672_v30  ;;  %10404 = vmatpush3.bf16.msra.mxu0 %v10632_v52 }
 0xc9c   :  { %10405 = vmatprep.subr.bf16.mxu0 %v10633_v40  ;;  %10426 = vmatpush3.bf16.msra.mxu1 %v10634_v44 }
 0xc9d   :  { %10427 = vmatprep.subr.bf16.mxu1 %v10635_v27 }
 0xc9f   :  { %10406 = vmatpush3.bf16.msra.mxu0 %v10636_v12 }
 0xca0   :  { %10407 = vmatprep.subr.bf16.mxu0 %v10637_v16  ;;  %10428 = vmatpush3.bf16.msra.mxu1 %v10638_v11 }
 0xca1   :  { %10429 = vmatprep.subr.bf16.mxu1 %v10639_v0 }
 0xca3   :  { %10408 = vmatpush3.bf16.msra.mxu0 %v10640_v50 }
 0xca4   :  { %10409 = vmatprep.subr.bf16.mxu0 %v10641_v25  ;;  %10430 = vmatpush3.bf16.msra.mxu1 %v10642_v23 }
 0xca5   :  { %10431 = vmatprep.subr.bf16.mxu1 %v10643_v38 }
 0xca7   :  { %10410 = vmatpush3.bf16.msra.mxu0 %v10644_v61 }
 0xca8   :  { %10411 = vmatprep.subr.bf16.mxu0 %v10645_v53  ;;  %10432 = vmatpush3.bf16.msra.mxu1 %v10646_v5 }
 0xca9   :  { %10433 = vmatprep.subr.bf16.mxu1 %v10647_v60 }
 0xcab   :  { %10412 = vmatpush3.bf16.msra.mxu0 %v10648_v55 }
 0xcac   :  { %10413 = vmatprep.subr.bf16.mxu0 %v10649_v56  ;;  %10434 = vmatpush3.bf16.msra.mxu1 %v10650_v37 }
 0xcad   :  { %10435 = vmatprep.subr.bf16.mxu1 %v10651_v20 }
 0xcaf   :  { %10414 = vmatpush3.bf16.msra.mxu0 %v10652_v13 }
 0xcb0   :  { %10415 = vmatprep.subr.bf16.mxu0 %v10653_v33  ;;  %10436 = vmatpush3.bf16.msra.mxu1 %v10654_v4 }
 0xcb1   :  { %10437 = vmatprep.subr.bf16.mxu1 %v10655_v14 }
 0xcb3   :  { %10416 = vmatpush3.bf16.msra.mxu0 %v10656_v18 }
 0xcb4   :  { %10417 = vmatprep.subr.bf16.mxu0 %v10657_v1  ;;  %10438 = vmatpush3.bf16.msra.mxu1 %v10658_v41 }
 0xcb5   :  { %10439 = vmatprep.subr.bf16.mxu1 %v10659_v24 }
 0xcb7   :  { %10418 = vmatpush3.bf16.msra.mxu0 %v10660_v43 }
 0xcb8   :  { %10440 = vmatpush3.bf16.msra.mxu1 %v10661_v47 }
 0xcba   :  { %v8458_v19 = vpop.f32.mrf.mxu0 }
 0xcbb   :  { %v8459_v22 = vadd.f32 %v8458_v19, %v8418_v51  ;;  %v8499_v42 = vpop.f32.mrf.mxu1 }
 0xcbc   :  { %v8460_v28 = vpop.f32.mrf.mxu0 }
 0xcbd   :  { %v8461_v8 = vadd.f32 %v8460_v28, %v8420_v10  ;;  %v8501_v45 = vpop.f32.mrf.mxu1  ;;  %v8500_v34 = vadd.f32 %v8499_v42, %v8459_v22  ;;  %v10662_v22 = vld [vmem:[#allocation16] ss:$0 sm:$0xff] }
 0xcbe   :  { %v8462_v7 = vpop.f32.mrf.mxu0 }
 0xcbf   :  { %v8502_v49 = vadd.f32 %v8501_v45, %v8461_v8  ;;  %v8503_v3 = vpop.f32.mrf.mxu1  ;;  %v8674_v26 = vpack.c.bf16 %v8500_v34, %v8500_v34 }
 0xcc0   :  { %v8463_v58 = vpop.f32.mrf.mxu0 }
 0xcc1   :  { %v8675_v63 = vpack.c.bf16 %v8502_v49, %v8502_v49  ;;  %v8504_v54 = vpop.f32.mrf.mxu1 }
 0xcc3   :  { %8790 = vmatprep.mubr.bf16.mxu0 %v8675_v63 }
 0xcc4   :  { %8791 = vmatmul.mubr.bf16.vlgmr.msra.gmra.mxu0 %v8674_v26 }
 0xcfa   :  { %v8540_v39 = vpop.f32.mrf.mxu0 }
 0xcfb   :  { %v8581_v62 = vpop.f32.mrf.mxu1  ;;  %v8541_v29 = vadd.f32 %v8540_v39, %v14817_v31 }
 0xcfc   :  { %v8542_v17 = vpop.f32.mrf.mxu0 }
 0xcfd   :  { %v8583_v59 = vpop.f32.mrf.mxu1  ;;  %v8543_v30 = vadd.f32 %v8542_v17, %v14822_v15  ;;  %v8582_v9 = vadd.f32 %v8581_v62, %v8541_v29 }
 0xcfe   :  { %v8544_v21 = vpop.f32.mrf.mxu0 }
 0xcff   :  { %v8585_v32 = vpop.f32.mrf.mxu1  ;;  %v8584_v40 = vadd.f32 %v8583_v59, %v8543_v30 }
 0xd00   :  { %v8545_v2 = vpop.f32.mrf.mxu0 }
 0xd01   :  { %v8586_v48 = vpop.f32.mrf.mxu1 }
 0xd3a   :  { %v8622_v52 = vpop.f32.mrf.mxu0 }
 0xd3b   :  { %v8623_v44 = vadd.f32 %v8622_v52, %v8582_v9  ;;  %v8663_v27 = vpop.f32.mrf.mxu1 }
 0xd3c   :  { %v8624_v12 = vpop.f32.mrf.mxu0 }
 0xd3d   :  { %v8625_v16 = vadd.f32 %v8624_v12, %v8584_v40  ;;  %v8665_v11 = vpop.f32.mrf.mxu1  ;;  %v8664_v0 = vadd.f32 %v8663_v27, %v8623_v44 }
 0xd3e   :  { %v8626_v50 = vpop.f32.mrf.mxu0 }
 0xd3f   :  { %v8666_v25 = vadd.f32 %v8665_v11, %v8625_v16  ;;  %v8667_v23 = vpop.f32.mrf.mxu1  ;;  %v8676_v5 = vpack.c.bf16 %v8664_v0, %v8664_v0 }
 0xd40   :  { %v8627_v38 = vpop.f32.mrf.mxu0 }
 0xd41   :  { %v8677_v61 = vpack.c.bf16 %v8666_v25, %v8666_v25  ;;  %v8668_v53 = vpop.f32.mrf.mxu1 }
 0xd43   :  { %8830 = vmatprep.mubr.bf16.mxu1 %v8677_v61 }
 0xd44   :  { %8831 = vmatmul.mubr.bf16.vlgmr.msra.gmra.mxu1 %v8676_v5 }
 0xd5a   :  { %v10375_v31 = vpop.f32.mrf.mxu0 }
 0xd5b   :  { %v10397_v15 = vpop.f32.mrf.mxu1 }
 0xd5c   :  { %v10376_v60 = vpop.f32.mrf.mxu0 }
 0xd5d   :  { %v10377_v55 = vadd.f32 %v10376_v60, %v10375_v31  ;;  %v10398_v56 = vpop.f32.mrf.mxu1 }
 0xd5e   :  { %v10399_v37 = vadd.f32 %v10398_v56, %v10397_v15  ;;  %v10378_v20 = vpop.f32.mrf.mxu0 }
 0xd5f   :  { %v10400_v13 = vpop.f32.mrf.mxu1 }
 0xd60   :  { %v8753_v33 = vadd.f32 %v10399_v37, %v10377_v55  ;;  %v10379_v4 = vpop.f32.mrf.mxu0 }
 0xd61   :  { %v10401_v14 = vpop.f32.mrf.mxu1 }
 0xd84   :  { %v10419_v18 = vpop.f32.mrf.mxu0 }
 0xd86   :  { %v10420_v1 = vpop.f32.mrf.mxu0 }
 0xd87   :  { %v10421_v41 = vadd.f32 %v10420_v1, %v10419_v18 }
 0xd88   :  { %v10422_v36 = vpop.f32.mrf.mxu0 }
 0xd89   :  { %v8793_v35 = vadd.f32 %v10421_v41, %v8753_v33 }
 0xd8a   :  { %v10423_v24 = vpop.f32.mrf.mxu0 }
 0xe04   :  { %v10441_v57 = vpop.f32.mrf.mxu1 }
 0xe06   :  { %v10442_v46 = vpop.f32.mrf.mxu1 }
 0xe07   :  { %v10443_v43 = vadd.f32 %v10442_v46, %v10441_v57 }
 0xe08   :  { %v10444_v47 = vpop.f32.mrf.mxu1 }
 0xe09   :  { %v8833_v51 = vadd.f32 %v10443_v43, %v8793_v35 }
 0xe0a   :  { %v10445_v19 = vpop.f32.mrf.mxu1 }
 0xe0b   :  { %v8838_v10 = vadd.f32 %v8833_v51, %v15531_v6 }
 0xe0d   :  { %v8839_v42 = vadd.f32 %v10662_v22, %v8838_v10 }
 0xe0f   :  { %8840 = vst [vmem:[#allocation19] sm:$0xff] %v8839_v42 }
 0xe10   :  { %10875 = shalt.err (!%p10872_p12)
}
 0xe11   :  { %8867 = dma.vmem_to_hbm [thread:$0]  %s8865_s16, 128, %s16197_s11, [#allocation4]  }
 0xe12   :  { %10896 = dma.done.wait [#allocation4], 128  }
 0xe13   :  { %10897 = vsyncadd [#allocation4], 4294967168 }
 0xe14   :  { %8875 = vsyncpa [#allocation3], 1 }
 0xe15   :  { %8876 = vsyncpa [#allocation6], 1 }
 0xe16   :  { %8877 = vsyncpa [#allocation9], 1 }
 0xe17   :  { %8878 = vsyncpa [#allocation12], 1 }
 0xe18   :  { %8879 = vsyncpa [#allocation15], 1 }
 0xe19   :  { %8880 = vsyncpa [#allocation18], 1 }
 0xe1a   :  { %8881 = vsyncpa [#allocation4], 1 }

</bundles_post_ra>
